<compile_context>
chip_gen: v5e
topology: v5e:2x2
jax: 0.10.0
libtpu: 0.0.40
codegen_flags: <defaults>
</compile_context>

<pallas_src>
import functools

import jax
import jax.numpy as jnp
from jax.experimental import pallas as pl
from jax.experimental.pallas import tpu as pltpu

TM_MAX = 512                      # max row tile (sweet spot of HBM-roofline sweep)
BN_EPS = 1e-5                     # PyTorch BatchNorm2d default eps
VMEM_LIMIT = 32 * 1024 * 1024     # explicit scoped-VMEM budget (safe on v5e/v6e/v7x)


# --------------------------------------------------------------------------
# helpers
# --------------------------------------------------------------------------
def _round_up(x, m):
    return ((x + m - 1) // m) * m


def _choose_tm(m):
    """Row tile: large for DMA pipelining, multiple of 16 for bf16 packing."""
    return min(TM_MAX, _round_up(m, 16))


# --------------------------------------------------------------------------
# Pallas kernels
# --------------------------------------------------------------------------
def _matmul_stats_kernel(a_ref, b_ref, o_ref, ps_ref, pq_ref):
    """bf16 x bf16 -> f32 matmul tile, plus fused per-block 8-row partial
    column sums / sums-of-squares (BatchNorm statistics epilogue)."""
    y = jnp.dot(a_ref[...], b_ref[...], preferred_element_type=jnp.float32)
    o_ref[...] = y.astype(o_ref.dtype)

    rows, cols = y.shape
    ps = jnp.zeros((8, cols), jnp.float32)
    pq = jnp.zeros((8, cols), jnp.float32)
    for r in range(0, rows, 8):       # static; plain VPU adds ride free under the MXU
        blk = y[r:r + 8, :]
        ps = ps + blk
        pq = pq + blk * blk
    ps_ref[0] = ps
    pq_ref[0] = pq


def pallas_matmul_stats(a, b):
    """(M, K) @ (K, N) on the MXU, bf16 operands with f32 accumulation.

    Pads M to a tile multiple and K, N to multiples of 128 (lane-dense,
    unmasked stores, full MXU feeds).  Returns:
      y        : (Mp, Np) bf16 padded product
      colsum   : (Np,) f32 per-column sum of the f32 product (exact: pads are 0)
      colsumsq : (Np,) f32 per-column sum of squares
      m        : true number of rows
    """
    m, k = a.shape
    n = b.shape[1]
    tm = _choose_tm(m)
    mp = _round_up(m, tm)
    kp = _round_up(k, 128)
    np_ = _round_up(n, 128)

    a_p = jnp.zeros((mp, kp), jnp.bfloat16).at[:m, :k].set(a.astype(jnp.bfloat16))
    b_p = jnp.zeros((kp, np_), jnp.bfloat16).at[:k, :n].set(b.astype(jnp.bfloat16))
    nblk = mp // tm

    y, ps, pq = pl.pallas_call(
        _matmul_stats_kernel,
        out_shape=(jax.ShapeDtypeStruct((mp, np_), jnp.bfloat16),
                   jax.ShapeDtypeStruct((nblk, 8, np_), jnp.float32),
                   jax.ShapeDtypeStruct((nblk, 8, np_), jnp.float32)),
        grid=(nblk,),
        in_specs=[pl.BlockSpec((tm, kp), lambda i: (i, 0)),
                  pl.BlockSpec((kp, np_), lambda i: (0, 0))],
        out_specs=(pl.BlockSpec((tm, np_), lambda i: (i, 0)),
                   pl.BlockSpec((1, 8, np_), lambda i: (i, 0, 0)),
                   pl.BlockSpec((1, 8, np_), lambda i: (i, 0, 0))),
        compiler_params=pltpu.CompilerParams(
            dimension_semantics=("parallel",),
            vmem_limit_bytes=VMEM_LIMIT),
    )(a_p, b_p)

    colsum = jnp.sum(ps, axis=(0, 1))   # tiny JAX reduction over per-block partials
    colsumsq = jnp.sum(pq, axis=(0, 1))
    return y, colsum, colsumsq, m


def _affine_act_kernel(x_ref, scale_ref, shift_ref, o_ref, *, relu, tanh_act):
    y = x_ref[...].astype(jnp.float32) * scale_ref[...] + shift_ref[...]
    if relu:
        y = jnp.maximum(y, 0.0)
    if tanh_act:
        y = jnp.tanh(y)
    o_ref[...] = y


def _affine_act_res_kernel(x_ref, scale_ref, shift_ref, res_ref, o_ref, *,
                           relu, tanh_act):
    y = (x_ref[...].astype(jnp.float32) * scale_ref[...] + shift_ref[...]
         + res_ref[...])
    if relu:
        y = jnp.maximum(y, 0.0)
    if tanh_act:
        y = jnp.tanh(y)
    o_ref[...] = y


def pallas_affine_act(y, scale, shift, residual=None, relu=False,
                      tanh_act=False):
    """Fused (y * scale + shift [+ residual]) with optional ReLU / tanh.

    Operates entirely on the lane-dense padded (Mp, Np) layout produced by
    pallas_matmul_stats; caller slices the result.
    """
    mp, np_ = y.shape
    tm = min(TM_MAX, mp)                      # mp is a multiple of tm by construction
    scale = scale.reshape(1, np_).astype(jnp.float32)
    shift = shift.reshape(1, np_).astype(jnp.float32)

    in_specs = [pl.BlockSpec((tm, np_), lambda i: (i, 0)),
                pl.BlockSpec((1, np_), lambda i: (0, 0)),
                pl.BlockSpec((1, np_), lambda i: (0, 0))]
    args = [y, scale, shift]
    if residual is not None:
        in_specs.append(pl.BlockSpec((tm, np_), lambda i: (i, 0)))
        args.append(residual.astype(jnp.float32))
        kern = functools.partial(_affine_act_res_kernel, relu=relu,
                                 tanh_act=tanh_act)
    else:
        kern = functools.partial(_affine_act_kernel, relu=relu,
                                 tanh_act=tanh_act)

    return pl.pallas_call(
        kern,
        out_shape=jax.ShapeDtypeStruct((mp, np_), jnp.float32),
        grid=(mp // tm,),
        in_specs=in_specs,
        out_specs=pl.BlockSpec((tm, np_), lambda i: (i, 0)),
        compiler_params=pltpu.CompilerParams(
            dimension_semantics=("parallel",),
            vmem_limit_bytes=VMEM_LIMIT),
    )(*args)


# --------------------------------------------------------------------------
# conv / deconv layers (JAX glue: padding, im2col, weight reshaping)
# --------------------------------------------------------------------------
def _im2col(x, kh, kw, stride):
    """x: (N, H, W, C) -> patches (N*OH*OW, kh*kw*C)."""
    n, h, w, c = x.shape
    oh = (h - kh) // stride + 1
    ow = (w - kw) // stride + 1
    cols = []
    for i in range(kh):
        for j in range(kw):
            cols.append(x[:, i:i + stride * oh:stride,
                          j:j + stride * ow:stride, :])
    patches = jnp.concatenate(cols, axis=-1)           # (N, OH, OW, kh*kw*C)
    return patches.reshape(n * oh * ow, kh * kw * c), (n, oh, ow)


def _conv_weight_matrix(w):
    """PyTorch Conv2d weight (Cout, Cin, kh, kw) -> (kh*kw*Cin, Cout)."""
    cout, cin, kh, kw = w.shape
    return jnp.transpose(w, (2, 3, 1, 0)).reshape(kh * kw * cin, cout).astype(
        jnp.float32)


def _deconv_weight_matrix(w):
    """ConvTranspose2d(k=3, s=2, p=1, op=1) weight (Cin, Cout, 3, 3) ->
    sub-pixel weight matrix (2*2*Cin, 4*Cout).

    Row index    = (ty*2 + tx)*Cin + ci   (tap of the 2x2 input window)
    Column index = (py*2 + px)*Cout + co  (output-pixel parity class)
    """
    cin, cout = w.shape[0], w.shape[1]
    w = w.astype(jnp.float32)
    wm = jnp.zeros((2, 2, cin, 2, 2, cout), jnp.float32)
    for py in (0, 1):
        for px in (0, 1):
            for ty in (0, 1):
                for tx in (0, 1):
                    if py == 0 and ty == 1:
                        continue            # even output row uses only tap ty=0
                    if px == 0 and tx == 1:
                        continue
                    ky = 1 if py == 0 else (2 if ty == 0 else 0)
                    kx = 1 if px == 0 else (2 if tx == 0 else 0)
                    wm = wm.at[ty, tx, :, py, px, :].set(w[:, :, ky, kx])
    return wm.reshape(4 * cin, 4 * cout)


def conv_layer(x, w, *, stride, pad, pad_mode="zero", bn=True, bn_gamma=None,
               bn_beta=None, relu=False, residual=None, tanh_act=False):
    """Conv2d(bias=False) [+ BatchNorm(batch stats)] [+ residual] [+ act]."""
    if pad > 0:
        mode = "reflect" if pad_mode == "reflect" else "constant"
        x = jnp.pad(x, ((0, 0), (pad, pad), (pad, pad), (0, 0)), mode=mode)
    kh, kw = w.shape[2], w.shape[3]
    patches, (n, oh, ow) = _im2col(x, kh, kw, stride)
    wm = _conv_weight_matrix(w)                         # (K, Cout)
    cout = wm.shape[1]

    y, colsum, colsq, m = pallas_matmul_stats(patches, wm)   # y: (Mp, Np) bf16
    mp, np_ = y.shape

    if bn:
        mean = colsum[:cout] / m
        var = jnp.maximum(colsq[:cout] / m - mean * mean, 0.0)   # biased (training BN)
        inv = jax.lax.rsqrt(var + BN_EPS)
        scale = bn_gamma.astype(jnp.float32) * inv
        shift = bn_beta.astype(jnp.float32) - mean * scale
    else:
        scale = jnp.ones((cout,), jnp.float32)
        shift = jnp.zeros((cout,), jnp.float32)

    scale_p = jnp.ones((np_,), jnp.float32).at[:cout].set(scale)
    shift_p = jnp.zeros((np_,), jnp.float32).at[:cout].set(shift)

    res_p = None
    if residual is not None:
        res_flat = residual.reshape(m, cout).astype(jnp.float32)
        res_p = jnp.zeros((mp, np_), jnp.float32).at[:m, :cout].set(res_flat)

    out = pallas_affine_act(y, scale_p, shift_p, residual=res_p,
                            relu=relu, tanh_act=tanh_act)
    return out[:m, :cout].reshape(n, oh, ow, cout)


def deconv_layer(x, w, *, bn_gamma, bn_beta, relu=True):
    """ConvTranspose2d(k=3, s=2, p=1, op=1, bias=False) + BatchNorm [+ ReLU].

    Sub-pixel decomposition: one stride-1 conv over 2x2 input windows produces
    all 4 output parities as 4*Cout columns (no zero-dilated input, no wasted
    MXU work), then a pixel-shuffle interleave restores (N, 2H, 2W, Cout).
    BN statistics are pooled over the 4 parity groups per channel (exact).
    """
    n, h, wd, cin = x.shape
    cout = w.shape[1]
    xp = jnp.pad(x, ((0, 0), (0, 1), (0, 1), (0, 0)))        # bottom/right zero pad
    patches, _ = _im2col(xp, 2, 2, 1)                        # (n*h*wd, 4*cin)
    wm = _deconv_weight_matrix(w)                            # (4*cin, 4*cout)

    y, colsum, colsq, m = pallas_matmul_stats(patches, wm)
    mp, np_ = y.shape

    s4 = colsum[:4 * cout].reshape(4, cout)
    q4 = colsq[:4 * cout].reshape(4, cout)
    cnt = 4.0 * m                                            # N * (2H) * (2W)
    mean = jnp.sum(s4, axis=0) / cnt
    var = jnp.maximum(jnp.sum(q4, axis=0) / cnt - mean * mean, 0.0)
    inv = jax.lax.rsqrt(var + BN_EPS)
    scale = bn_gamma.astype(jnp.float32) * inv
    shift = bn_beta.astype(jnp.float32) - mean * scale
    scale_p = jnp.ones((np_,), jnp.float32).at[:4 * cout].set(jnp.tile(scale, 4))
    shift_p = jnp.zeros((np_,), jnp.float32).at[:4 * cout].set(jnp.tile(shift, 4))

    out = pallas_affine_act(y, scale_p, shift_p, relu=relu)
    out = out[:m, :4 * cout].reshape(n, h, wd, 2, 2, cout)   # (..., py, px, co)
    out = jnp.transpose(out, (0, 1, 3, 2, 4, 5)).reshape(n, 2 * h, 2 * wd, cout)
    return out


# --------------------------------------------------------------------------
# CycleGenerator parameters + forward
# --------------------------------------------------------------------------
def init_params(key, conv_dim=64, n_res_blocks=6):
    keys = iter(jax.random.split(key, 8 + 4 * n_res_blocks))

    def w(shape):
        return (0.05 * jax.random.normal(next(keys), shape)).astype(jnp.float32)

    def ones(c):
        return jnp.ones((c,), jnp.float32)

    def zeros(c):
        return jnp.zeros((c,), jnp.float32)

    cd = conv_dim
    p = {
        "conv1_w": w((cd, 3, 7, 7)), "conv1_g": ones(cd), "conv1_b": zeros(cd),
        "conv2_w": w((2 * cd, cd, 3, 3)),
        "conv2_g": ones(2 * cd), "conv2_b": zeros(2 * cd),
        "conv3_w": w((4 * cd, 2 * cd, 3, 3)),
        "conv3_g": ones(4 * cd), "conv3_b": zeros(4 * cd),
        # ConvTranspose2d weight layout: (Cin, Cout, kh, kw)
        "deconv1_w": w((4 * cd, 2 * cd, 3, 3)),
        "deconv1_g": ones(2 * cd), "deconv1_b": zeros(2 * cd),
        "deconv2_w": w((2 * cd, cd, 3, 3)),
        "deconv2_g": ones(cd), "deconv2_b": zeros(cd),
        "conv_final_w": w((3, cd, 7, 7)),
        "res": [],
    }
    for _ in range(n_res_blocks):
        p["res"].append({
            "w1": w((4 * cd, 4 * cd, 3, 3)),
            "g1": ones(4 * cd), "b1": zeros(4 * cd),
            "w2": w((4 * cd, 4 * cd, 3, 3)),
            "g2": ones(4 * cd), "b2": zeros(4 * cd),
        })
    return p


def cycle_generator_forward(params, x_nchw):
    """Forward pass.  x_nchw: (N, 3, H, W) -> (N, 3, H, W)."""
    x = jnp.transpose(x_nchw, (0, 2, 3, 1)).astype(jnp.float32)   # NHWC

    # refl_pad(3) -> conv1 (k7, s1, p0) -> BN -> ReLU
    out = conv_layer(x, params["conv1_w"], stride=1, pad=3, pad_mode="reflect",
                     bn=True, bn_gamma=params["conv1_g"],
                     bn_beta=params["conv1_b"], relu=True)
    # conv2 (k3, s2, p1, zero pad) -> BN -> ReLU
    out = conv_layer(out, params["conv2_w"], stride=2, pad=1, pad_mode="zero",
                     bn=True, bn_gamma=params["conv2_g"],
                     bn_beta=params["conv2_b"], relu=True)
    # conv3 (k3, s2, p1, zero pad) -> BN -> ReLU
    out = conv_layer(out, params["conv3_w"], stride=2, pad=1, pad_mode="zero",
                     bn=True, bn_gamma=params["conv3_g"],
                     bn_beta=params["conv3_b"], relu=True)

    # residual blocks
    # TODO(synk): the source ResidualBlock applies ReflectionPad2d(1) AND
    # Conv2d(padding=1), which grows the spatial size by 2 per conv and makes
    # `x + out` shape-invalid in PyTorch; we implement the intended
    # size-preserving variant (reflection pad 1 + padding-0 conv).
    for rp in params["res"]:
        skip = out
        h = conv_layer(out, rp["w1"], stride=1, pad=1, pad_mode="reflect",
                       bn=True, bn_gamma=rp["g1"], bn_beta=rp["b1"], relu=True)
        out = conv_layer(h, rp["w2"], stride=1, pad=1, pad_mode="reflect",
                         bn=True, bn_gamma=rp["g2"], bn_beta=rp["b2"],
                         relu=False, residual=skip)

    # deconv1 / deconv2 (k3, s2, p1, op1) -> BN -> ReLU
    out = deconv_layer(out, params["deconv1_w"],
                       bn_gamma=params["deconv1_g"],
                       bn_beta=params["deconv1_b"], relu=True)
    out = deconv_layer(out, params["deconv2_w"],
                       bn_gamma=params["deconv2_g"],
                       bn_beta=params["deconv2_b"], relu=True)

    # refl_pad(3) -> conv_final (k7, s1, p0, no BN); tanh(x + conv_final(out))
    out = conv_layer(out, params["conv_final_w"], stride=1, pad=3,
                     pad_mode="reflect", bn=False, relu=False,
                     residual=x, tanh_act=True)

    return jnp.transpose(out, (0, 3, 1, 2))            # back to NCHW


# --------------------------------------------------------------------------
# main
# --------------------------------------------------------------------------
if __name__ == "__main__":
    key = jax.random.PRNGKey(0)
    k_params, k_x = jax.random.split(key)

    conv_dim = 8          # small but structurally identical to the module
    n_res_blocks = 2
    batch, height, width = 2, 16, 16

    params = init_params(k_params, conv_dim=conv_dim,
                         n_res_blocks=n_res_blocks)
    x = jax.random.normal(k_x, (batch, 3, height, width), jnp.float32)  # NCHW

    fwd = jax.jit(cycle_generator_forward)
    y = fwd(params, x)
    jax.block_until_ready(y)

    assert y.shape == (batch, 3, height, width), y.shape
    assert bool(jnp.all(jnp.isfinite(y)))
    assert bool(jnp.all(jnp.abs(y) <= 1.0 + 1e-6))     # tanh output range
    print("KERNEL_OK")
</pallas_src>

<mosaic_0001>
module attributes {stable_mosaic.version = 11 : i64} {
  func.func @_matmul_stats_kernel(%arg0: i32, %arg1: memref<512x256xbf16, #tpu.memory_space<vmem>>, %arg2: memref<256x128xbf16, #tpu.memory_space<vmem>>, %arg3: memref<512x128xbf16, #tpu.memory_space<vmem>>, %arg4: memref<1x8x128xf32, #tpu.memory_space<vmem>>, %arg5: memref<1x8x128xf32, #tpu.memory_space<vmem>>) attributes {dimension_semantics = [#tpu.dimension_semantics<parallel>], iteration_bounds = array<i64: 1>, scalar_prefetch = 0 : i64, scratch_operands = 0 : i64, tpu.core_type = #tpu.core_type<tc>, window_params = [{transform_indices = @transform_0, window_bounds = array<i64: 512, 256>}, {pipeline_mode = #tpu.pipeline_mode<synchronous>, transform_indices = @transform_1, window_bounds = array<i64: 256, 128>}, {transform_indices = @transform_2, window_bounds = array<i64: 512, 128>}, {transform_indices = @transform_3, window_bounds = array<i64: 1, 8, 128>}, {transform_indices = @transform_4, window_bounds = array<i64: 1, 8, 128>}]} {
    %c0 = arith.constant 0 : index
    %c0_0 = arith.constant 0 : index
    %0 = vector.load %arg1[%c0, %c0_0] : memref<512x256xbf16, #tpu.memory_space<vmem>>, vector<512x256xbf16>
    %c0_1 = arith.constant 0 : index
    %c0_2 = arith.constant 0 : index
    %1 = vector.load %arg2[%c0_1, %c0_2] : memref<256x128xbf16, #tpu.memory_space<vmem>>, vector<256x128xbf16>
    %cst = arith.constant dense<0.000000e+00> : vector<512x128xf32>
    %2 = tpu.matmul %0, %1, %cst {dimension_numbers = #tpu.dot_dimension_numbers<[1], [0], [0], [1], [0, 0, 1, 1], [], []>} : vector<512x256xbf16>, vector<256x128xbf16>, vector<512x128xf32> -> vector<512x128xf32>
    %3 = arith.truncf %2 : vector<512x128xf32> to vector<512x128xbf16>
    %c0_3 = arith.constant 0 : index
    %c0_4 = arith.constant 0 : index
    %4 = vector.load %arg3[%c0_3, %c0_4] : memref<512x128xbf16, #tpu.memory_space<vmem>>, vector<512x128xbf16>
    tpu.vector_store %arg3[%c0_3, %c0_4], %3 {strides = array<i32>} : memref<512x128xbf16, #tpu.memory_space<vmem>>, vector<512x128xbf16>,
    %cst_5 = arith.constant 0.000000e+00 : f32
    %5 = vector.broadcast %cst_5 : f32 to vector<8x128xf32>
    %cst_6 = arith.constant 0.000000e+00 : f32
    %6 = vector.broadcast %cst_6 : f32 to vector<8x128xf32>
    %7 = vector.extract_strided_slice %2 {offsets = [0, 0], sizes = [8, 128], strides = [1, 1]} : vector<512x128xf32> to vector<8x128xf32>
    %8 = arith.addf %5, %7 : vector<8x128xf32>
    %9 = arith.mulf %7, %7 : vector<8x128xf32>
    %10 = arith.addf %6, %9 : vector<8x128xf32>
    %11 = vector.extract_strided_slice %2 {offsets = [8, 0], sizes = [8, 128], strides = [1, 1]} : vector<512x128xf32> to vector<8x128xf32>
    %12 = arith.addf %8, %11 : vector<8x128xf32>
    %13 = arith.mulf %11, %11 : vector<8x128xf32>
    %14 = arith.addf %10, %13 : vector<8x128xf32>
    %15 = vector.extract_strided_slice %2 {offsets = [16, 0], sizes = [8, 128], strides = [1, 1]} : vector<512x128xf32> to vector<8x128xf32>
    %16 = arith.addf %12, %15 : vector<8x128xf32>
    %17 = arith.mulf %15, %15 : vector<8x128xf32>
    %18 = arith.addf %14, %17 : vector<8x128xf32>
    %19 = vector.extract_strided_slice %2 {offsets = [24, 0], sizes = [8, 128], strides = [1, 1]} : vector<512x128xf32> to vector<8x128xf32>
    %20 = arith.addf %16, %19 : vector<8x128xf32>
    %21 = arith.mulf %19, %19 : vector<8x128xf32>
    %22 = arith.addf %18, %21 : vector<8x128xf32>
    %23 = vector.extract_strided_slice %2 {offsets = [32, 0], sizes = [8, 128], strides = [1, 1]} : vector<512x128xf32> to vector<8x128xf32>
    %24 = arith.addf %20, %23 : vector<8x128xf32>
    %25 = arith.mulf %23, %23 : vector<8x128xf32>
    %26 = arith.addf %22, %25 : vector<8x128xf32>
    %27 = vector.extract_strided_slice %2 {offsets = [40, 0], sizes = [8, 128], strides = [1, 1]} : vector<512x128xf32> to vector<8x128xf32>
    %28 = arith.addf %24, %27 : vector<8x128xf32>
    %29 = arith.mulf %27, %27 : vector<8x128xf32>
    %30 = arith.addf %26, %29 : vector<8x128xf32>
    %31 = vector.extract_strided_slice %2 {offsets = [48, 0], sizes = [8, 128], strides = [1, 1]} : vector<512x128xf32> to vector<8x128xf32>
    %32 = arith.addf %28, %31 : vector<8x128xf32>
    %33 = arith.mulf %31, %31 : vector<8x128xf32>
    %34 = arith.addf %30, %33 : vector<8x128xf32>
    %35 = vector.extract_strided_slice %2 {offsets = [56, 0], sizes = [8, 128], strides = [1, 1]} : vector<512x128xf32> to vector<8x128xf32>
    %36 = arith.addf %32, %35 : vector<8x128xf32>
    %37 = arith.mulf %35, %35 : vector<8x128xf32>
    %38 = arith.addf %34, %37 : vector<8x128xf32>
    %39 = vector.extract_strided_slice %2 {offsets = [64, 0], sizes = [8, 128], strides = [1, 1]} : vector<512x128xf32> to vector<8x128xf32>
    %40 = arith.addf %36, %39 : vector<8x128xf32>
    %41 = arith.mulf %39, %39 : vector<8x128xf32>
    %42 = arith.addf %38, %41 : vector<8x128xf32>
    %43 = vector.extract_strided_slice %2 {offsets = [72, 0], sizes = [8, 128], strides = [1, 1]} : vector<512x128xf32> to vector<8x128xf32>
    %44 = arith.addf %40, %43 : vector<8x128xf32>
    %45 = arith.mulf %43, %43 : vector<8x128xf32>
    %46 = arith.addf %42, %45 : vector<8x128xf32>
    %47 = vector.extract_strided_slice %2 {offsets = [80, 0], sizes = [8, 128], strides = [1, 1]} : vector<512x128xf32> to vector<8x128xf32>
    %48 = arith.addf %44, %47 : vector<8x128xf32>
    %49 = arith.mulf %47, %47 : vector<8x128xf32>
    %50 = arith.addf %46, %49 : vector<8x128xf32>
    %51 = vector.extract_strided_slice %2 {offsets = [88, 0], sizes = [8, 128], strides = [1, 1]} : vector<512x128xf32> to vector<8x128xf32>
    %52 = arith.addf %48, %51 : vector<8x128xf32>
    %53 = arith.mulf %51, %51 : vector<8x128xf32>
    %54 = arith.addf %50, %53 : vector<8x128xf32>
    %55 = vector.extract_strided_slice %2 {offsets = [96, 0], sizes = [8, 128], strides = [1, 1]} : vector<512x128xf32> to vector<8x128xf32>
    %56 = arith.addf %52, %55 : vector<8x128xf32>
    %57 = arith.mulf %55, %55 : vector<8x128xf32>
    %58 = arith.addf %54, %57 : vector<8x128xf32>
    %59 = vector.extract_strided_slice %2 {offsets = [104, 0], sizes = [8, 128], strides = [1, 1]} : vector<512x128xf32> to vector<8x128xf32>
    %60 = arith.addf %56, %59 : vector<8x128xf32>
    %61 = arith.mulf %59, %59 : vector<8x128xf32>
    %62 = arith.addf %58, %61 : vector<8x128xf32>
    %63 = vector.extract_strided_slice %2 {offsets = [112, 0], sizes = [8, 128], strides = [1, 1]} : vector<512x128xf32> to vector<8x128xf32>
    %64 = arith.addf %60, %63 : vector<8x128xf32>
    %65 = arith.mulf %63, %63 : vector<8x128xf32>
    %66 = arith.addf %62, %65 : vector<8x128xf32>
    %67 = vector.extract_strided_slice %2 {offsets = [120, 0], sizes = [8, 128], strides = [1, 1]} : vector<512x128xf32> to vector<8x128xf32>
    %68 = arith.addf %64, %67 : vector<8x128xf32>
    %69 = arith.mulf %67, %67 : vector<8x128xf32>
    %70 = arith.addf %66, %69 : vector<8x128xf32>
    %71 = vector.extract_strided_slice %2 {offsets = [128, 0], sizes = [8, 128], strides = [1, 1]} : vector<512x128xf32> to vector<8x128xf32>
    %72 = arith.addf %68, %71 : vector<8x128xf32>
    %73 = arith.mulf %71, %71 : vector<8x128xf32>
    %74 = arith.addf %70, %73 : vector<8x128xf32>
    %75 = vector.extract_strided_slice %2 {offsets = [136, 0], sizes = [8, 128], strides = [1, 1]} : vector<512x128xf32> to vector<8x128xf32>
    %76 = arith.addf %72, %75 : vector<8x128xf32>
    %77 = arith.mulf %75, %75 : vector<8x128xf32>
    %78 = arith.addf %74, %77 : vector<8x128xf32>
    %79 = vector.extract_strided_slice %2 {offsets = [144, 0], sizes = [8, 128], strides = [1, 1]} : vector<512x128xf32> to vector<8x128xf32>
    %80 = arith.addf %76, %79 : vector<8x128xf32>
    %81 = arith.mulf %79, %79 : vector<8x128xf32>
    %82 = arith.addf %78, %81 : vector<8x128xf32>
    %83 = vector.extract_strided_slice %2 {offsets = [152, 0], sizes = [8, 128], strides = [1, 1]} : vector<512x128xf32> to vector<8x128xf32>
    %84 = arith.addf %80, %83 : vector<8x128xf32>
    %85 = arith.mulf %83, %83 : vector<8x128xf32>
    %86 = arith.addf %82, %85 : vector<8x128xf32>
    %87 = vector.extract_strided_slice %2 {offsets = [160, 0], sizes = [8, 128], strides = [1, 1]} : vector<512x128xf32> to vector<8x128xf32>
    %88 = arith.addf %84, %87 : vector<8x128xf32>
    %89 = arith.mulf %87, %87 : vector<8x128xf32>
    %90 = arith.addf %86, %89 : vector<8x128xf32>
    %91 = vector.extract_strided_slice %2 {offsets = [168, 0], sizes = [8, 128], strides = [1, 1]} : vector<512x128xf32> to vector<8x128xf32>
    %92 = arith.addf %88, %91 : vector<8x128xf32>
    %93 = arith.mulf %91, %91 : vector<8x128xf32>
    %94 = arith.addf %90, %93 : vector<8x128xf32>
    %95 = vector.extract_strided_slice %2 {offsets = [176, 0], sizes = [8, 128], strides = [1, 1]} : vector<512x128xf32> to vector<8x128xf32>
    %96 = arith.addf %92, %95 : vector<8x128xf32>
    %97 = arith.mulf %95, %95 : vector<8x128xf32>
    %98 = arith.addf %94, %97 : vector<8x128xf32>
    %99 = vector.extract_strided_slice %2 {offsets = [184, 0], sizes = [8, 128], strides = [1, 1]} : vector<512x128xf32> to vector<8x128xf32>
    %100 = arith.addf %96, %99 : vector<8x128xf32>
    %101 = arith.mulf %99, %99 : vector<8x128xf32>
    %102 = arith.addf %98, %101 : vector<8x128xf32>
    %103 = vector.extract_strided_slice %2 {offsets = [192, 0], sizes = [8, 128], strides = [1, 1]} : vector<512x128xf32> to vector<8x128xf32>
    %104 = arith.addf %100, %103 : vector<8x128xf32>
    %105 = arith.mulf %103, %103 : vector<8x128xf32>
    %106 = arith.addf %102, %105 : vector<8x128xf32>
    %107 = vector.extract_strided_slice %2 {offsets = [200, 0], sizes = [8, 128], strides = [1, 1]} : vector<512x128xf32> to vector<8x128xf32>
    %108 = arith.addf %104, %107 : vector<8x128xf32>
    %109 = arith.mulf %107, %107 : vector<8x128xf32>
    %110 = arith.addf %106, %109 : vector<8x128xf32>
    %111 = vector.extract_strided_slice %2 {offsets = [208, 0], sizes = [8, 128], strides = [1, 1]} : vector<512x128xf32> to vector<8x128xf32>
    %112 = arith.addf %108, %111 : vector<8x128xf32>
    %113 = arith.mulf %111, %111 : vector<8x128xf32>
    %114 = arith.addf %110, %113 : vector<8x128xf32>
    %115 = vector.extract_strided_slice %2 {offsets = [216, 0], sizes = [8, 128], strides = [1, 1]} : vector<512x128xf32> to vector<8x128xf32>
    %116 = arith.addf %112, %115 : vector<8x128xf32>
    %117 = arith.mulf %115, %115 : vector<8x128xf32>
    %118 = arith.addf %114, %117 : vector<8x128xf32>
    %119 = vector.extract_strided_slice %2 {offsets = [224, 0], sizes = [8, 128], strides = [1, 1]} : vector<512x128xf32> to vector<8x128xf32>
    %120 = arith.addf %116, %119 : vector<8x128xf32>
    %121 = arith.mulf %119, %119 : vector<8x128xf32>
    %122 = arith.addf %118, %121 : vector<8x128xf32>
    %123 = vector.extract_strided_slice %2 {offsets = [232, 0], sizes = [8, 128], strides = [1, 1]} : vector<512x128xf32> to vector<8x128xf32>
    %124 = arith.addf %120, %123 : vector<8x128xf32>
    %125 = arith.mulf %123, %123 : vector<8x128xf32>
    %126 = arith.addf %122, %125 : vector<8x128xf32>
    %127 = vector.extract_strided_slice %2 {offsets = [240, 0], sizes = [8, 128], strides = [1, 1]} : vector<512x128xf32> to vector<8x128xf32>
    %128 = arith.addf %124, %127 : vector<8x128xf32>
    %129 = arith.mulf %127, %127 : vector<8x128xf32>
    %130 = arith.addf %126, %129 : vector<8x128xf32>
    %131 = vector.extract_strided_slice %2 {offsets = [248, 0], sizes = [8, 128], strides = [1, 1]} : vector<512x128xf32> to vector<8x128xf32>
    %132 = arith.addf %128, %131 : vector<8x128xf32>
    %133 = arith.mulf %131, %131 : vector<8x128xf32>
    %134 = arith.addf %130, %133 : vector<8x128xf32>
    %135 = vector.extract_strided_slice %2 {offsets = [256, 0], sizes = [8, 128], strides = [1, 1]} : vector<512x128xf32> to vector<8x128xf32>
    %136 = arith.addf %132, %135 : vector<8x128xf32>
    %137 = arith.mulf %135, %135 : vector<8x128xf32>
    %138 = arith.addf %134, %137 : vector<8x128xf32>
    %139 = vector.extract_strided_slice %2 {offsets = [264, 0], sizes = [8, 128], strides = [1, 1]} : vector<512x128xf32> to vector<8x128xf32>
    %140 = arith.addf %136, %139 : vector<8x128xf32>
    %141 = arith.mulf %139, %139 : vector<8x128xf32>
    %142 = arith.addf %138, %141 : vector<8x128xf32>
    %143 = vector.extract_strided_slice %2 {offsets = [272, 0], sizes = [8, 128], strides = [1, 1]} : vector<512x128xf32> to vector<8x128xf32>
    %144 = arith.addf %140, %143 : vector<8x128xf32>
    %145 = arith.mulf %143, %143 : vector<8x128xf32>
    %146 = arith.addf %142, %145 : vector<8x128xf32>
    %147 = vector.extract_strided_slice %2 {offsets = [280, 0], sizes = [8, 128], strides = [1, 1]} : vector<512x128xf32> to vector<8x128xf32>
    %148 = arith.addf %144, %147 : vector<8x128xf32>
    %149 = arith.mulf %147, %147 : vector<8x128xf32>
    %150 = arith.addf %146, %149 : vector<8x128xf32>
    %151 = vector.extract_strided_slice %2 {offsets = [288, 0], sizes = [8, 128], strides = [1, 1]} : vector<512x128xf32> to vector<8x128xf32>
    %152 = arith.addf %148, %151 : vector<8x128xf32>
    %153 = arith.mulf %151, %151 : vector<8x128xf32>
    %154 = arith.addf %150, %153 : vector<8x128xf32>
    %155 = vector.extract_strided_slice %2 {offsets = [296, 0], sizes = [8, 128], strides = [1, 1]} : vector<512x128xf32> to vector<8x128xf32>
    %156 = arith.addf %152, %155 : vector<8x128xf32>
    %157 = arith.mulf %155, %155 : vector<8x128xf32>
    %158 = arith.addf %154, %157 : vector<8x128xf32>
    %159 = vector.extract_strided_slice %2 {offsets = [304, 0], sizes = [8, 128], strides = [1, 1]} : vector<512x128xf32> to vector<8x128xf32>
    %160 = arith.addf %156, %159 : vector<8x128xf32>
    %161 = arith.mulf %159, %159 : vector<8x128xf32>
    %162 = arith.addf %158, %161 : vector<8x128xf32>
    %163 = vector.extract_strided_slice %2 {offsets = [312, 0], sizes = [8, 128], strides = [1, 1]} : vector<512x128xf32> to vector<8x128xf32>
    %164 = arith.addf %160, %163 : vector<8x128xf32>
    %165 = arith.mulf %163, %163 : vector<8x128xf32>
    %166 = arith.addf %162, %165 : vector<8x128xf32>
    %167 = vector.extract_strided_slice %2 {offsets = [320, 0], sizes = [8, 128], strides = [1, 1]} : vector<512x128xf32> to vector<8x128xf32>
    %168 = arith.addf %164, %167 : vector<8x128xf32>
    %169 = arith.mulf %167, %167 : vector<8x128xf32>
    %170 = arith.addf %166, %169 : vector<8x128xf32>
    %171 = vector.extract_strided_slice %2 {offsets = [328, 0], sizes = [8, 128], strides = [1, 1]} : vector<512x128xf32> to vector<8x128xf32>
    %172 = arith.addf %168, %171 : vector<8x128xf32>
    %173 = arith.mulf %171, %171 : vector<8x128xf32>
    %174 = arith.addf %170, %173 : vector<8x128xf32>
    %175 = vector.extract_strided_slice %2 {offsets = [336, 0], sizes = [8, 128], strides = [1, 1]} : vector<512x128xf32> to vector<8x128xf32>
    %176 = arith.addf %172, %175 : vector<8x128xf32>
    %177 = arith.mulf %175, %175 : vector<8x128xf32>
    %178 = arith.addf %174, %177 : vector<8x128xf32>
    %179 = vector.extract_strided_slice %2 {offsets = [344, 0], sizes = [8, 128], strides = [1, 1]} : vector<512x128xf32> to vector<8x128xf32>
    %180 = arith.addf %176, %179 : vector<8x128xf32>
    %181 = arith.mulf %179, %179 : vector<8x128xf32>
    %182 = arith.addf %178, %181 : vector<8x128xf32>
    %183 = vector.extract_strided_slice %2 {offsets = [352, 0], sizes = [8, 128], strides = [1, 1]} : vector<512x128xf32> to vector<8x128xf32>
    %184 = arith.addf %180, %183 : vector<8x128xf32>
    %185 = arith.mulf %183, %183 : vector<8x128xf32>
    %186 = arith.addf %182, %185 : vector<8x128xf32>
    %187 = vector.extract_strided_slice %2 {offsets = [360, 0], sizes = [8, 128], strides = [1, 1]} : vector<512x128xf32> to vector<8x128xf32>
    %188 = arith.addf %184, %187 : vector<8x128xf32>
    %189 = arith.mulf %187, %187 : vector<8x128xf32>
    %190 = arith.addf %186, %189 : vector<8x128xf32>
    %191 = vector.extract_strided_slice %2 {offsets = [368, 0], sizes = [8, 128], strides = [1, 1]} : vector<512x128xf32> to vector<8x128xf32>
    %192 = arith.addf %188, %191 : vector<8x128xf32>
    %193 = arith.mulf %191, %191 : vector<8x128xf32>
    %194 = arith.addf %190, %193 : vector<8x128xf32>
    %195 = vector.extract_strided_slice %2 {offsets = [376, 0], sizes = [8, 128], strides = [1, 1]} : vector<512x128xf32> to vector<8x128xf32>
    %196 = arith.addf %192, %195 : vector<8x128xf32>
    %197 = arith.mulf %195, %195 : vector<8x128xf32>
    %198 = arith.addf %194, %197 : vector<8x128xf32>
    %199 = vector.extract_strided_slice %2 {offsets = [384, 0], sizes = [8, 128], strides = [1, 1]} : vector<512x128xf32> to vector<8x128xf32>
    %200 = arith.addf %196, %199 : vector<8x128xf32>
    %201 = arith.mulf %199, %199 : vector<8x128xf32>
    %202 = arith.addf %198, %201 : vector<8x128xf32>
    %203 = vector.extract_strided_slice %2 {offsets = [392, 0], sizes = [8, 128], strides = [1, 1]} : vector<512x128xf32> to vector<8x128xf32>
    %204 = arith.addf %200, %203 : vector<8x128xf32>
    %205 = arith.mulf %203, %203 : vector<8x128xf32>
    %206 = arith.addf %202, %205 : vector<8x128xf32>
    %207 = vector.extract_strided_slice %2 {offsets = [400, 0], sizes = [8, 128], strides = [1, 1]} : vector<512x128xf32> to vector<8x128xf32>
    %208 = arith.addf %204, %207 : vector<8x128xf32>
    %209 = arith.mulf %207, %207 : vector<8x128xf32>
    %210 = arith.addf %206, %209 : vector<8x128xf32>
    %211 = vector.extract_strided_slice %2 {offsets = [408, 0], sizes = [8, 128], strides = [1, 1]} : vector<512x128xf32> to vector<8x128xf32>
    %212 = arith.addf %208, %211 : vector<8x128xf32>
    %213 = arith.mulf %211, %211 : vector<8x128xf32>
    %214 = arith.addf %210, %213 : vector<8x128xf32>
    %215 = vector.extract_strided_slice %2 {offsets = [416, 0], sizes = [8, 128], strides = [1, 1]} : vector<512x128xf32> to vector<8x128xf32>
    %216 = arith.addf %212, %215 : vector<8x128xf32>
    %217 = arith.mulf %215, %215 : vector<8x128xf32>
    %218 = arith.addf %214, %217 : vector<8x128xf32>
    %219 = vector.extract_strided_slice %2 {offsets = [424, 0], sizes = [8, 128], strides = [1, 1]} : vector<512x128xf32> to vector<8x128xf32>
    %220 = arith.addf %216, %219 : vector<8x128xf32>
    %221 = arith.mulf %219, %219 : vector<8x128xf32>
    %222 = arith.addf %218, %221 : vector<8x128xf32>
    %223 = vector.extract_strided_slice %2 {offsets = [432, 0], sizes = [8, 128], strides = [1, 1]} : vector<512x128xf32> to vector<8x128xf32>
    %224 = arith.addf %220, %223 : vector<8x128xf32>
    %225 = arith.mulf %223, %223 : vector<8x128xf32>
    %226 = arith.addf %222, %225 : vector<8x128xf32>
    %227 = vector.extract_strided_slice %2 {offsets = [440, 0], sizes = [8, 128], strides = [1, 1]} : vector<512x128xf32> to vector<8x128xf32>
    %228 = arith.addf %224, %227 : vector<8x128xf32>
    %229 = arith.mulf %227, %227 : vector<8x128xf32>
    %230 = arith.addf %226, %229 : vector<8x128xf32>
    %231 = vector.extract_strided_slice %2 {offsets = [448, 0], sizes = [8, 128], strides = [1, 1]} : vector<512x128xf32> to vector<8x128xf32>
    %232 = arith.addf %228, %231 : vector<8x128xf32>
    %233 = arith.mulf %231, %231 : vector<8x128xf32>
    %234 = arith.addf %230, %233 : vector<8x128xf32>
    %235 = vector.extract_strided_slice %2 {offsets = [456, 0], sizes = [8, 128], strides = [1, 1]} : vector<512x128xf32> to vector<8x128xf32>
    %236 = arith.addf %232, %235 : vector<8x128xf32>
    %237 = arith.mulf %235, %235 : vector<8x128xf32>
    %238 = arith.addf %234, %237 : vector<8x128xf32>
    %239 = vector.extract_strided_slice %2 {offsets = [464, 0], sizes = [8, 128], strides = [1, 1]} : vector<512x128xf32> to vector<8x128xf32>
    %240 = arith.addf %236, %239 : vector<8x128xf32>
    %241 = arith.mulf %239, %239 : vector<8x128xf32>
    %242 = arith.addf %238, %241 : vector<8x128xf32>
    %243 = vector.extract_strided_slice %2 {offsets = [472, 0], sizes = [8, 128], strides = [1, 1]} : vector<512x128xf32> to vector<8x128xf32>
    %244 = arith.addf %240, %243 : vector<8x128xf32>
    %245 = arith.mulf %243, %243 : vector<8x128xf32>
    %246 = arith.addf %242, %245 : vector<8x128xf32>
    %247 = vector.extract_strided_slice %2 {offsets = [480, 0], sizes = [8, 128], strides = [1, 1]} : vector<512x128xf32> to vector<8x128xf32>
    %248 = arith.addf %244, %247 : vector<8x128xf32>
    %249 = arith.mulf %247, %247 : vector<8x128xf32>
    %250 = arith.addf %246, %249 : vector<8x128xf32>
    %251 = vector.extract_strided_slice %2 {offsets = [488, 0], sizes = [8, 128], strides = [1, 1]} : vector<512x128xf32> to vector<8x128xf32>
    %252 = arith.addf %248, %251 : vector<8x128xf32>
    %253 = arith.mulf %251, %251 : vector<8x128xf32>
    %254 = arith.addf %250, %253 : vector<8x128xf32>
    %255 = vector.extract_strided_slice %2 {offsets = [496, 0], sizes = [8, 128], strides = [1, 1]} : vector<512x128xf32> to vector<8x128xf32>
    %256 = arith.addf %252, %255 : vector<8x128xf32>
    %257 = arith.mulf %255, %255 : vector<8x128xf32>
    %258 = arith.addf %254, %257 : vector<8x128xf32>
    %259 = vector.extract_strided_slice %2 {offsets = [504, 0], sizes = [8, 128], strides = [1, 1]} : vector<512x128xf32> to vector<8x128xf32>
    %260 = arith.addf %256, %259 : vector<8x128xf32>
    %261 = arith.mulf %259, %259 : vector<8x128xf32>
    %262 = arith.addf %258, %261 : vector<8x128xf32>
    %c0_7 = arith.constant 0 : index
    %c0_8 = arith.constant 0 : index
    %c0_9 = arith.constant 0 : index
    %263 = vector.load %arg4[%c0_7, %c0_8, %c0_9] : memref<1x8x128xf32, #tpu.memory_space<vmem>>, vector<1x8x128xf32>
    %264 = vector.shape_cast %263 : vector<1x8x128xf32> to vector<8x128xf32>
    %265 = vector.shape_cast %260 : vector<8x128xf32> to vector<1x8x128xf32>
    tpu.vector_store %arg4[%c0_7, %c0_8, %c0_9], %265 {strides = array<i32>} : memref<1x8x128xf32, #tpu.memory_space<vmem>>, vector<1x8x128xf32>,
    %c0_10 = arith.constant 0 : index
    %c0_11 = arith.constant 0 : index
    %c0_12 = arith.constant 0 : index
    %266 = vector.load %arg5[%c0_10, %c0_11, %c0_12] : memref<1x8x128xf32, #tpu.memory_space<vmem>>, vector<1x8x128xf32>
    %267 = vector.shape_cast %266 : vector<1x8x128xf32> to vector<8x128xf32>
    %268 = vector.shape_cast %262 : vector<8x128xf32> to vector<1x8x128xf32>
    tpu.vector_store %arg5[%c0_10, %c0_11, %c0_12], %268 {strides = array<i32>} : memref<1x8x128xf32, #tpu.memory_space<vmem>>, vector<1x8x128xf32>,
    return
  }
  func.func @transform_0(%arg0: i32) -> (i32, i32) {
    %c0_i32 = arith.constant 0 : i32
    %c0_i32_0 = arith.constant 0 : i32
    return %arg0, %c0_i32 : i32, i32
  }
  func.func @transform_1(%arg0: i32) -> (i32, i32) {
    %c0_i32 = arith.constant 0 : i32
    %c0_i32_0 = arith.constant 0 : i32
    %c0_i32_1 = arith.constant 0 : i32
    return %c0_i32, %c0_i32_0 : i32, i32
  }
  func.func @transform_2(%arg0: i32) -> (i32, i32) {
    %c0_i32 = arith.constant 0 : i32
    %c0_i32_0 = arith.constant 0 : i32
    return %arg0, %c0_i32 : i32, i32
  }
  func.func @transform_3(%arg0: i32) -> (i32, i32, i32) {
    %c0_i32 = arith.constant 0 : i32
    %c0_i32_0 = arith.constant 0 : i32
    %c0_i32_1 = arith.constant 0 : i32
    return %arg0, %c0_i32, %c0_i32_0 : i32, i32, i32
  }
  func.func @transform_4(%arg0: i32) -> (i32, i32, i32) {
    %c0_i32 = arith.constant 0 : i32
    %c0_i32_0 = arith.constant 0 : i32
    %c0_i32_1 = arith.constant 0 : i32
    return %arg0, %c0_i32, %c0_i32_0 : i32, i32, i32
  }
}

module attributes {stable_mosaic.version = 11 : i64} {
  func.func @_affine_act_kernel(%arg0: i32, %arg1: memref<512x128xbf16, #tpu.memory_space<vmem>>, %arg2: memref<1x128xf32, #tpu.memory_space<vmem>>, %arg3: memref<1x128xf32, #tpu.memory_space<vmem>>, %arg4: memref<512x128xf32, #tpu.memory_space<vmem>>) attributes {dimension_semantics = [#tpu.dimension_semantics<parallel>], iteration_bounds = array<i64: 1>, scalar_prefetch = 0 : i64, scratch_operands = 0 : i64, tpu.core_type = #tpu.core_type<tc>, window_params = [{transform_indices = @transform_0, window_bounds = array<i64: 512, 128>}, {pipeline_mode = #tpu.pipeline_mode<synchronous>, transform_indices = @transform_1, window_bounds = array<i64: 1, 128>}, {pipeline_mode = #tpu.pipeline_mode<synchronous>, transform_indices = @transform_2, window_bounds = array<i64: 1, 128>}, {transform_indices = @transform_3, window_bounds = array<i64: 512, 128>}]} {
    %c0 = arith.constant 0 : index
    %c0_0 = arith.constant 0 : index
    %0 = vector.load %arg1[%c0, %c0_0] : memref<512x128xbf16, #tpu.memory_space<vmem>>, vector<512x128xbf16>
    %1 = arith.extf %0 : vector<512x128xbf16> to vector<512x128xf32>
    %c0_1 = arith.constant 0 : index
    %c0_2 = arith.constant 0 : index
    %2 = vector.load %arg2[%c0_1, %c0_2] : memref<1x128xf32, #tpu.memory_space<vmem>>, vector<1x128xf32>
    %3 = vector.broadcast %2 : vector<1x128xf32> to vector<512x128xf32>
    %4 = arith.mulf %1, %3 : vector<512x128xf32>
    %c0_3 = arith.constant 0 : index
    %c0_4 = arith.constant 0 : index
    %5 = vector.load %arg3[%c0_3, %c0_4] : memref<1x128xf32, #tpu.memory_space<vmem>>, vector<1x128xf32>
    %6 = vector.broadcast %5 : vector<1x128xf32> to vector<512x128xf32>
    %7 = arith.addf %4, %6 : vector<512x128xf32>
    %cst = arith.constant 0.000000e+00 : f32
    %8 = vector.broadcast %cst : f32 to vector<512x128xf32>
    %9 = arith.maximumf %7, %8 : vector<512x128xf32>
    %c0_5 = arith.constant 0 : index
    %c0_6 = arith.constant 0 : index
    %10 = vector.load %arg4[%c0_5, %c0_6] : memref<512x128xf32, #tpu.memory_space<vmem>>, vector<512x128xf32>
    tpu.vector_store %arg4[%c0_5, %c0_6], %9 {strides = array<i32>} : memref<512x128xf32, #tpu.memory_space<vmem>>, vector<512x128xf32>,
    return
  }
  func.func @transform_0(%arg0: i32) -> (i32, i32) {
    %c0_i32 = arith.constant 0 : i32
    %c0_i32_0 = arith.constant 0 : i32
    return %arg0, %c0_i32 : i32, i32
  }
  func.func @transform_1(%arg0: i32) -> (i32, i32) {
    %c0_i32 = arith.constant 0 : i32
    %c0_i32_0 = arith.constant 0 : i32
    %c0_i32_1 = arith.constant 0 : i32
    return %c0_i32, %c0_i32_0 : i32, i32
  }
  func.func @transform_2(%arg0: i32) -> (i32, i32) {
    %c0_i32 = arith.constant 0 : i32
    %c0_i32_0 = arith.constant 0 : i32
    %c0_i32_1 = arith.constant 0 : i32
    return %c0_i32, %c0_i32_0 : i32, i32
  }
  func.func @transform_3(%arg0: i32) -> (i32, i32) {
    %c0_i32 = arith.constant 0 : i32
    %c0_i32_0 = arith.constant 0 : i32
    return %arg0, %c0_i32 : i32, i32
  }
}

module attributes {stable_mosaic.version = 11 : i64} {
  func.func @_affine_act_kernel(%arg0: i32, %arg1: memref<128x128xbf16, #tpu.memory_space<vmem>>, %arg2: memref<1x128xf32, #tpu.memory_space<vmem>>, %arg3: memref<1x128xf32, #tpu.memory_space<vmem>>, %arg4: memref<128x128xf32, #tpu.memory_space<vmem>>) attributes {dimension_semantics = [#tpu.dimension_semantics<parallel>], iteration_bounds = array<i64: 1>, scalar_prefetch = 0 : i64, scratch_operands = 0 : i64, tpu.core_type = #tpu.core_type<tc>, window_params = [{transform_indices = @transform_0, window_bounds = array<i64: 128, 128>}, {pipeline_mode = #tpu.pipeline_mode<synchronous>, transform_indices = @transform_1, window_bounds = array<i64: 1, 128>}, {pipeline_mode = #tpu.pipeline_mode<synchronous>, transform_indices = @transform_2, window_bounds = array<i64: 1, 128>}, {transform_indices = @transform_3, window_bounds = array<i64: 128, 128>}]} {
    %c0 = arith.constant 0 : index
    %c0_0 = arith.constant 0 : index
    %0 = vector.load %arg1[%c0, %c0_0] : memref<128x128xbf16, #tpu.memory_space<vmem>>, vector<128x128xbf16>
    %1 = arith.extf %0 : vector<128x128xbf16> to vector<128x128xf32>
    %c0_1 = arith.constant 0 : index
    %c0_2 = arith.constant 0 : index
    %2 = vector.load %arg2[%c0_1, %c0_2] : memref<1x128xf32, #tpu.memory_space<vmem>>, vector<1x128xf32>
    %3 = vector.broadcast %2 : vector<1x128xf32> to vector<128x128xf32>
    %4 = arith.mulf %1, %3 : vector<128x128xf32>
    %c0_3 = arith.constant 0 : index
    %c0_4 = arith.constant 0 : index
    %5 = vector.load %arg3[%c0_3, %c0_4] : memref<1x128xf32, #tpu.memory_space<vmem>>, vector<1x128xf32>
    %6 = vector.broadcast %5 : vector<1x128xf32> to vector<128x128xf32>
    %7 = arith.addf %4, %6 : vector<128x128xf32>
    %cst = arith.constant 0.000000e+00 : f32
    %8 = vector.broadcast %cst : f32 to vector<128x128xf32>
    %9 = arith.maximumf %7, %8 : vector<128x128xf32>
    %c0_5 = arith.constant 0 : index
    %c0_6 = arith.constant 0 : index
    %10 = vector.load %arg4[%c0_5, %c0_6] : memref<128x128xf32, #tpu.memory_space<vmem>>, vector<128x128xf32>
    tpu.vector_store %arg4[%c0_5, %c0_6], %9 {strides = array<i32>} : memref<128x128xf32, #tpu.memory_space<vmem>>, vector<128x128xf32>,
    return
  }
  func.func @transform_0(%arg0: i32) -> (i32, i32) {
    %c0_i32 = arith.constant 0 : i32
    %c0_i32_0 = arith.constant 0 : i32
    return %arg0, %c0_i32 : i32, i32
  }
  func.func @transform_1(%arg0: i32) -> (i32, i32) {
    %c0_i32 = arith.constant 0 : i32
    %c0_i32_0 = arith.constant 0 : i32
    %c0_i32_1 = arith.constant 0 : i32
    return %c0_i32, %c0_i32_0 : i32, i32
  }
  func.func @transform_2(%arg0: i32) -> (i32, i32) {
    %c0_i32 = arith.constant 0 : i32
    %c0_i32_0 = arith.constant 0 : i32
    %c0_i32_1 = arith.constant 0 : i32
    return %c0_i32, %c0_i32_0 : i32, i32
  }
  func.func @transform_3(%arg0: i32) -> (i32, i32) {
    %c0_i32 = arith.constant 0 : i32
    %c0_i32_0 = arith.constant 0 : i32
    return %arg0, %c0_i32 : i32, i32
  }
}

module attributes {stable_mosaic.version = 11 : i64} {
  func.func @_matmul_stats_kernel(%arg0: i32, %arg1: memref<128x128xbf16, #tpu.memory_space<vmem>>, %arg2: memref<128x128xbf16, #tpu.memory_space<vmem>>, %arg3: memref<128x128xbf16, #tpu.memory_space<vmem>>, %arg4: memref<1x8x128xf32, #tpu.memory_space<vmem>>, %arg5: memref<1x8x128xf32, #tpu.memory_space<vmem>>) attributes {dimension_semantics = [#tpu.dimension_semantics<parallel>], iteration_bounds = array<i64: 1>, scalar_prefetch = 0 : i64, scratch_operands = 0 : i64, tpu.core_type = #tpu.core_type<tc>, window_params = [{transform_indices = @transform_0, window_bounds = array<i64: 128, 128>}, {pipeline_mode = #tpu.pipeline_mode<synchronous>, transform_indices = @transform_1, window_bounds = array<i64: 128, 128>}, {transform_indices = @transform_2, window_bounds = array<i64: 128, 128>}, {transform_indices = @transform_3, window_bounds = array<i64: 1, 8, 128>}, {transform_indices = @transform_4, window_bounds = array<i64: 1, 8, 128>}]} {
    %c0 = arith.constant 0 : index
    %c0_0 = arith.constant 0 : index
    %0 = vector.load %arg1[%c0, %c0_0] : memref<128x128xbf16, #tpu.memory_space<vmem>>, vector<128x128xbf16>
    %c0_1 = arith.constant 0 : index
    %c0_2 = arith.constant 0 : index
    %1 = vector.load %arg2[%c0_1, %c0_2] : memref<128x128xbf16, #tpu.memory_space<vmem>>, vector<128x128xbf16>
    %cst = arith.constant dense<0.000000e+00> : vector<128x128xf32>
    %2 = tpu.matmul %0, %1, %cst {dimension_numbers = #tpu.dot_dimension_numbers<[1], [0], [0], [1], [0, 0, 1, 1], [], []>} : vector<128x128xbf16>, vector<128x128xbf16>, vector<128x128xf32> -> vector<128x128xf32>
    %3 = arith.truncf %2 : vector<128x128xf32> to vector<128x128xbf16>
    %c0_3 = arith.constant 0 : index
    %c0_4 = arith.constant 0 : index
    %4 = vector.load %arg3[%c0_3, %c0_4] : memref<128x128xbf16, #tpu.memory_space<vmem>>, vector<128x128xbf16>
    tpu.vector_store %arg3[%c0_3, %c0_4], %3 {strides = array<i32>} : memref<128x128xbf16, #tpu.memory_space<vmem>>, vector<128x128xbf16>,
    %cst_5 = arith.constant 0.000000e+00 : f32
    %5 = vector.broadcast %cst_5 : f32 to vector<8x128xf32>
    %cst_6 = arith.constant 0.000000e+00 : f32
    %6 = vector.broadcast %cst_6 : f32 to vector<8x128xf32>
    %7 = vector.extract_strided_slice %2 {offsets = [0, 0], sizes = [8, 128], strides = [1, 1]} : vector<128x128xf32> to vector<8x128xf32>
    %8 = arith.addf %5, %7 : vector<8x128xf32>
    %9 = arith.mulf %7, %7 : vector<8x128xf32>
    %10 = arith.addf %6, %9 : vector<8x128xf32>
    %11 = vector.extract_strided_slice %2 {offsets = [8, 0], sizes = [8, 128], strides = [1, 1]} : vector<128x128xf32> to vector<8x128xf32>
    %12 = arith.addf %8, %11 : vector<8x128xf32>
    %13 = arith.mulf %11, %11 : vector<8x128xf32>
    %14 = arith.addf %10, %13 : vector<8x128xf32>
    %15 = vector.extract_strided_slice %2 {offsets = [16, 0], sizes = [8, 128], strides = [1, 1]} : vector<128x128xf32> to vector<8x128xf32>
    %16 = arith.addf %12, %15 : vector<8x128xf32>
    %17 = arith.mulf %15, %15 : vector<8x128xf32>
    %18 = arith.addf %14, %17 : vector<8x128xf32>
    %19 = vector.extract_strided_slice %2 {offsets = [24, 0], sizes = [8, 128], strides = [1, 1]} : vector<128x128xf32> to vector<8x128xf32>
    %20 = arith.addf %16, %19 : vector<8x128xf32>
    %21 = arith.mulf %19, %19 : vector<8x128xf32>
    %22 = arith.addf %18, %21 : vector<8x128xf32>
    %23 = vector.extract_strided_slice %2 {offsets = [32, 0], sizes = [8, 128], strides = [1, 1]} : vector<128x128xf32> to vector<8x128xf32>
    %24 = arith.addf %20, %23 : vector<8x128xf32>
    %25 = arith.mulf %23, %23 : vector<8x128xf32>
    %26 = arith.addf %22, %25 : vector<8x128xf32>
    %27 = vector.extract_strided_slice %2 {offsets = [40, 0], sizes = [8, 128], strides = [1, 1]} : vector<128x128xf32> to vector<8x128xf32>
    %28 = arith.addf %24, %27 : vector<8x128xf32>
    %29 = arith.mulf %27, %27 : vector<8x128xf32>
    %30 = arith.addf %26, %29 : vector<8x128xf32>
    %31 = vector.extract_strided_slice %2 {offsets = [48, 0], sizes = [8, 128], strides = [1, 1]} : vector<128x128xf32> to vector<8x128xf32>
    %32 = arith.addf %28, %31 : vector<8x128xf32>
    %33 = arith.mulf %31, %31 : vector<8x128xf32>
    %34 = arith.addf %30, %33 : vector<8x128xf32>
    %35 = vector.extract_strided_slice %2 {offsets = [56, 0], sizes = [8, 128], strides = [1, 1]} : vector<128x128xf32> to vector<8x128xf32>
    %36 = arith.addf %32, %35 : vector<8x128xf32>
    %37 = arith.mulf %35, %35 : vector<8x128xf32>
    %38 = arith.addf %34, %37 : vector<8x128xf32>
    %39 = vector.extract_strided_slice %2 {offsets = [64, 0], sizes = [8, 128], strides = [1, 1]} : vector<128x128xf32> to vector<8x128xf32>
    %40 = arith.addf %36, %39 : vector<8x128xf32>
    %41 = arith.mulf %39, %39 : vector<8x128xf32>
    %42 = arith.addf %38, %41 : vector<8x128xf32>
    %43 = vector.extract_strided_slice %2 {offsets = [72, 0], sizes = [8, 128], strides = [1, 1]} : vector<128x128xf32> to vector<8x128xf32>
    %44 = arith.addf %40, %43 : vector<8x128xf32>
    %45 = arith.mulf %43, %43 : vector<8x128xf32>
    %46 = arith.addf %42, %45 : vector<8x128xf32>
    %47 = vector.extract_strided_slice %2 {offsets = [80, 0], sizes = [8, 128], strides = [1, 1]} : vector<128x128xf32> to vector<8x128xf32>
    %48 = arith.addf %44, %47 : vector<8x128xf32>
    %49 = arith.mulf %47, %47 : vector<8x128xf32>
    %50 = arith.addf %46, %49 : vector<8x128xf32>
    %51 = vector.extract_strided_slice %2 {offsets = [88, 0], sizes = [8, 128], strides = [1, 1]} : vector<128x128xf32> to vector<8x128xf32>
    %52 = arith.addf %48, %51 : vector<8x128xf32>
    %53 = arith.mulf %51, %51 : vector<8x128xf32>
    %54 = arith.addf %50, %53 : vector<8x128xf32>
    %55 = vector.extract_strided_slice %2 {offsets = [96, 0], sizes = [8, 128], strides = [1, 1]} : vector<128x128xf32> to vector<8x128xf32>
    %56 = arith.addf %52, %55 : vector<8x128xf32>
    %57 = arith.mulf %55, %55 : vector<8x128xf32>
    %58 = arith.addf %54, %57 : vector<8x128xf32>
    %59 = vector.extract_strided_slice %2 {offsets = [104, 0], sizes = [8, 128], strides = [1, 1]} : vector<128x128xf32> to vector<8x128xf32>
    %60 = arith.addf %56, %59 : vector<8x128xf32>
    %61 = arith.mulf %59, %59 : vector<8x128xf32>
    %62 = arith.addf %58, %61 : vector<8x128xf32>
    %63 = vector.extract_strided_slice %2 {offsets = [112, 0], sizes = [8, 128], strides = [1, 1]} : vector<128x128xf32> to vector<8x128xf32>
    %64 = arith.addf %60, %63 : vector<8x128xf32>
    %65 = arith.mulf %63, %63 : vector<8x128xf32>
    %66 = arith.addf %62, %65 : vector<8x128xf32>
    %67 = vector.extract_strided_slice %2 {offsets = [120, 0], sizes = [8, 128], strides = [1, 1]} : vector<128x128xf32> to vector<8x128xf32>
    %68 = arith.addf %64, %67 : vector<8x128xf32>
    %69 = arith.mulf %67, %67 : vector<8x128xf32>
    %70 = arith.addf %66, %69 : vector<8x128xf32>
    %c0_7 = arith.constant 0 : index
    %c0_8 = arith.constant 0 : index
    %c0_9 = arith.constant 0 : index
    %71 = vector.load %arg4[%c0_7, %c0_8, %c0_9] : memref<1x8x128xf32, #tpu.memory_space<vmem>>, vector<1x8x128xf32>
    %72 = vector.shape_cast %71 : vector<1x8x128xf32> to vector<8x128xf32>
    %73 = vector.shape_cast %68 : vector<8x128xf32> to vector<1x8x128xf32>
    tpu.vector_store %arg4[%c0_7, %c0_8, %c0_9], %73 {strides = array<i32>} : memref<1x8x128xf32, #tpu.memory_space<vmem>>, vector<1x8x128xf32>,
    %c0_10 = arith.constant 0 : index
    %c0_11 = arith.constant 0 : index
    %c0_12 = arith.constant 0 : index
    %74 = vector.load %arg5[%c0_10, %c0_11, %c0_12] : memref<1x8x128xf32, #tpu.memory_space<vmem>>, vector<1x8x128xf32>
    %75 = vector.shape_cast %74 : vector<1x8x128xf32> to vector<8x128xf32>
    %76 = vector.shape_cast %70 : vector<8x128xf32> to vector<1x8x128xf32>
    tpu.vector_store %arg5[%c0_10, %c0_11, %c0_12], %76 {strides = array<i32>} : memref<1x8x128xf32, #tpu.memory_space<vmem>>, vector<1x8x128xf32>,
    return
  }
  func.func @transform_0(%arg0: i32) -> (i32, i32) {
    %c0_i32 = arith.constant 0 : i32
    %c0_i32_0 = arith.constant 0 : i32
    return %arg0, %c0_i32 : i32, i32
  }
  func.func @transform_1(%arg0: i32) -> (i32, i32) {
    %c0_i32 = arith.constant 0 : i32
    %c0_i32_0 = arith.constant 0 : i32
    %c0_i32_1 = arith.constant 0 : i32
    return %c0_i32, %c0_i32_0 : i32, i32
  }
  func.func @transform_2(%arg0: i32) -> (i32, i32) {
    %c0_i32 = arith.constant 0 : i32
    %c0_i32_0 = arith.constant 0 : i32
    return %arg0, %c0_i32 : i32, i32
  }
  func.func @transform_3(%arg0: i32) -> (i32, i32, i32) {
    %c0_i32 = arith.constant 0 : i32
    %c0_i32_0 = arith.constant 0 : i32
    %c0_i32_1 = arith.constant 0 : i32
    return %arg0, %c0_i32, %c0_i32_0 : i32, i32, i32
  }
  func.func @transform_4(%arg0: i32) -> (i32, i32, i32) {
    %c0_i32 = arith.constant 0 : i32
    %c0_i32_0 = arith.constant 0 : i32
    %c0_i32_1 = arith.constant 0 : i32
    return %arg0, %c0_i32, %c0_i32_0 : i32, i32, i32
  }
}

module attributes {stable_mosaic.version = 11 : i64} {
  func.func @_matmul_stats_kernel(%arg0: i32, %arg1: memref<32x256xbf16, #tpu.memory_space<vmem>>, %arg2: memref<256x128xbf16, #tpu.memory_space<vmem>>, %arg3: memref<32x128xbf16, #tpu.memory_space<vmem>>, %arg4: memref<1x8x128xf32, #tpu.memory_space<vmem>>, %arg5: memref<1x8x128xf32, #tpu.memory_space<vmem>>) attributes {dimension_semantics = [#tpu.dimension_semantics<parallel>], iteration_bounds = array<i64: 1>, scalar_prefetch = 0 : i64, scratch_operands = 0 : i64, tpu.core_type = #tpu.core_type<tc>, window_params = [{transform_indices = @transform_0, window_bounds = array<i64: 32, 256>}, {pipeline_mode = #tpu.pipeline_mode<synchronous>, transform_indices = @transform_1, window_bounds = array<i64: 256, 128>}, {transform_indices = @transform_2, window_bounds = array<i64: 32, 128>}, {transform_indices = @transform_3, window_bounds = array<i64: 1, 8, 128>}, {transform_indices = @transform_4, window_bounds = array<i64: 1, 8, 128>}]} {
    %c0 = arith.constant 0 : index
    %c0_0 = arith.constant 0 : index
    %0 = vector.load %arg1[%c0, %c0_0] : memref<32x256xbf16, #tpu.memory_space<vmem>>, vector<32x256xbf16>
    %c0_1 = arith.constant 0 : index
    %c0_2 = arith.constant 0 : index
    %1 = vector.load %arg2[%c0_1, %c0_2] : memref<256x128xbf16, #tpu.memory_space<vmem>>, vector<256x128xbf16>
    %cst = arith.constant dense<0.000000e+00> : vector<32x128xf32>
    %2 = tpu.matmul %0, %1, %cst {dimension_numbers = #tpu.dot_dimension_numbers<[1], [0], [0], [1], [0, 0, 1, 1], [], []>} : vector<32x256xbf16>, vector<256x128xbf16>, vector<32x128xf32> -> vector<32x128xf32>
    %3 = arith.truncf %2 : vector<32x128xf32> to vector<32x128xbf16>
    %c0_3 = arith.constant 0 : index
    %c0_4 = arith.constant 0 : index
    %4 = vector.load %arg3[%c0_3, %c0_4] : memref<32x128xbf16, #tpu.memory_space<vmem>>, vector<32x128xbf16>
    tpu.vector_store %arg3[%c0_3, %c0_4], %3 {strides = array<i32>} : memref<32x128xbf16, #tpu.memory_space<vmem>>, vector<32x128xbf16>,
    %cst_5 = arith.constant 0.000000e+00 : f32
    %5 = vector.broadcast %cst_5 : f32 to vector<8x128xf32>
    %cst_6 = arith.constant 0.000000e+00 : f32
    %6 = vector.broadcast %cst_6 : f32 to vector<8x128xf32>
    %7 = vector.extract_strided_slice %2 {offsets = [0, 0], sizes = [8, 128], strides = [1, 1]} : vector<32x128xf32> to vector<8x128xf32>
    %8 = arith.addf %5, %7 : vector<8x128xf32>
    %9 = arith.mulf %7, %7 : vector<8x128xf32>
    %10 = arith.addf %6, %9 : vector<8x128xf32>
    %11 = vector.extract_strided_slice %2 {offsets = [8, 0], sizes = [8, 128], strides = [1, 1]} : vector<32x128xf32> to vector<8x128xf32>
    %12 = arith.addf %8, %11 : vector<8x128xf32>
    %13 = arith.mulf %11, %11 : vector<8x128xf32>
    %14 = arith.addf %10, %13 : vector<8x128xf32>
    %15 = vector.extract_strided_slice %2 {offsets = [16, 0], sizes = [8, 128], strides = [1, 1]} : vector<32x128xf32> to vector<8x128xf32>
    %16 = arith.addf %12, %15 : vector<8x128xf32>
    %17 = arith.mulf %15, %15 : vector<8x128xf32>
    %18 = arith.addf %14, %17 : vector<8x128xf32>
    %19 = vector.extract_strided_slice %2 {offsets = [24, 0], sizes = [8, 128], strides = [1, 1]} : vector<32x128xf32> to vector<8x128xf32>
    %20 = arith.addf %16, %19 : vector<8x128xf32>
    %21 = arith.mulf %19, %19 : vector<8x128xf32>
    %22 = arith.addf %18, %21 : vector<8x128xf32>
    %c0_7 = arith.constant 0 : index
    %c0_8 = arith.constant 0 : index
    %c0_9 = arith.constant 0 : index
    %23 = vector.load %arg4[%c0_7, %c0_8, %c0_9] : memref<1x8x128xf32, #tpu.memory_space<vmem>>, vector<1x8x128xf32>
    %24 = vector.shape_cast %23 : vector<1x8x128xf32> to vector<8x128xf32>
    %25 = vector.shape_cast %20 : vector<8x128xf32> to vector<1x8x128xf32>
    tpu.vector_store %arg4[%c0_7, %c0_8, %c0_9], %25 {strides = array<i32>} : memref<1x8x128xf32, #tpu.memory_space<vmem>>, vector<1x8x128xf32>,
    %c0_10 = arith.constant 0 : index
    %c0_11 = arith.constant 0 : index
    %c0_12 = arith.constant 0 : index
    %26 = vector.load %arg5[%c0_10, %c0_11, %c0_12] : memref<1x8x128xf32, #tpu.memory_space<vmem>>, vector<1x8x128xf32>
    %27 = vector.shape_cast %26 : vector<1x8x128xf32> to vector<8x128xf32>
    %28 = vector.shape_cast %22 : vector<8x128xf32> to vector<1x8x128xf32>
    tpu.vector_store %arg5[%c0_10, %c0_11, %c0_12], %28 {strides = array<i32>} : memref<1x8x128xf32, #tpu.memory_space<vmem>>, vector<1x8x128xf32>,
    return
  }
  func.func @transform_0(%arg0: i32) -> (i32, i32) {
    %c0_i32 = arith.constant 0 : i32
    %c0_i32_0 = arith.constant 0 : i32
    return %arg0, %c0_i32 : i32, i32
  }
  func.func @transform_1(%arg0: i32) -> (i32, i32) {
    %c0_i32 = arith.constant 0 : i32
    %c0_i32_0 = arith.constant 0 : i32
    %c0_i32_1 = arith.constant 0 : i32
    return %c0_i32, %c0_i32_0 : i32, i32
  }
  func.func @transform_2(%arg0: i32) -> (i32, i32) {
    %c0_i32 = arith.constant 0 : i32
    %c0_i32_0 = arith.constant 0 : i32
    return %arg0, %c0_i32 : i32, i32
  }
  func.func @transform_3(%arg0: i32) -> (i32, i32, i32) {
    %c0_i32 = arith.constant 0 : i32
    %c0_i32_0 = arith.constant 0 : i32
    %c0_i32_1 = arith.constant 0 : i32
    return %arg0, %c0_i32, %c0_i32_0 : i32, i32, i32
  }
  func.func @transform_4(%arg0: i32) -> (i32, i32, i32) {
    %c0_i32 = arith.constant 0 : i32
    %c0_i32_0 = arith.constant 0 : i32
    %c0_i32_1 = arith.constant 0 : i32
    return %arg0, %c0_i32, %c0_i32_0 : i32, i32, i32
  }
}

module attributes {stable_mosaic.version = 11 : i64} {
  func.func @_affine_act_kernel(%arg0: i32, %arg1: memref<32x128xbf16, #tpu.memory_space<vmem>>, %arg2: memref<1x128xf32, #tpu.memory_space<vmem>>, %arg3: memref<1x128xf32, #tpu.memory_space<vmem>>, %arg4: memref<32x128xf32, #tpu.memory_space<vmem>>) attributes {dimension_semantics = [#tpu.dimension_semantics<parallel>], iteration_bounds = array<i64: 1>, scalar_prefetch = 0 : i64, scratch_operands = 0 : i64, tpu.core_type = #tpu.core_type<tc>, window_params = [{transform_indices = @transform_0, window_bounds = array<i64: 32, 128>}, {pipeline_mode = #tpu.pipeline_mode<synchronous>, transform_indices = @transform_1, window_bounds = array<i64: 1, 128>}, {pipeline_mode = #tpu.pipeline_mode<synchronous>, transform_indices = @transform_2, window_bounds = array<i64: 1, 128>}, {transform_indices = @transform_3, window_bounds = array<i64: 32, 128>}]} {
    %c0 = arith.constant 0 : index
    %c0_0 = arith.constant 0 : index
    %0 = vector.load %arg1[%c0, %c0_0] : memref<32x128xbf16, #tpu.memory_space<vmem>>, vector<32x128xbf16>
    %1 = arith.extf %0 : vector<32x128xbf16> to vector<32x128xf32>
    %c0_1 = arith.constant 0 : index
    %c0_2 = arith.constant 0 : index
    %2 = vector.load %arg2[%c0_1, %c0_2] : memref<1x128xf32, #tpu.memory_space<vmem>>, vector<1x128xf32>
    %3 = vector.broadcast %2 : vector<1x128xf32> to vector<32x128xf32>
    %4 = arith.mulf %1, %3 : vector<32x128xf32>
    %c0_3 = arith.constant 0 : index
    %c0_4 = arith.constant 0 : index
    %5 = vector.load %arg3[%c0_3, %c0_4] : memref<1x128xf32, #tpu.memory_space<vmem>>, vector<1x128xf32>
    %6 = vector.broadcast %5 : vector<1x128xf32> to vector<32x128xf32>
    %7 = arith.addf %4, %6 : vector<32x128xf32>
    %cst = arith.constant 0.000000e+00 : f32
    %8 = vector.broadcast %cst : f32 to vector<32x128xf32>
    %9 = arith.maximumf %7, %8 : vector<32x128xf32>
    %c0_5 = arith.constant 0 : index
    %c0_6 = arith.constant 0 : index
    %10 = vector.load %arg4[%c0_5, %c0_6] : memref<32x128xf32, #tpu.memory_space<vmem>>, vector<32x128xf32>
    tpu.vector_store %arg4[%c0_5, %c0_6], %9 {strides = array<i32>} : memref<32x128xf32, #tpu.memory_space<vmem>>, vector<32x128xf32>,
    return
  }
  func.func @transform_0(%arg0: i32) -> (i32, i32) {
    %c0_i32 = arith.constant 0 : i32
    %c0_i32_0 = arith.constant 0 : i32
    return %arg0, %c0_i32 : i32, i32
  }
  func.func @transform_1(%arg0: i32) -> (i32, i32) {
    %c0_i32 = arith.constant 0 : i32
    %c0_i32_0 = arith.constant 0 : i32
    %c0_i32_1 = arith.constant 0 : i32
    return %c0_i32, %c0_i32_0 : i32, i32
  }
  func.func @transform_2(%arg0: i32) -> (i32, i32) {
    %c0_i32 = arith.constant 0 : i32
    %c0_i32_0 = arith.constant 0 : i32
    %c0_i32_1 = arith.constant 0 : i32
    return %c0_i32, %c0_i32_0 : i32, i32
  }
  func.func @transform_3(%arg0: i32) -> (i32, i32) {
    %c0_i32 = arith.constant 0 : i32
    %c0_i32_0 = arith.constant 0 : i32
    return %arg0, %c0_i32 : i32, i32
  }
}

module attributes {stable_mosaic.version = 11 : i64} {
  func.func @_matmul_stats_kernel(%arg0: i32, %arg1: memref<32x384xbf16, #tpu.memory_space<vmem>>, %arg2: memref<384x128xbf16, #tpu.memory_space<vmem>>, %arg3: memref<32x128xbf16, #tpu.memory_space<vmem>>, %arg4: memref<1x8x128xf32, #tpu.memory_space<vmem>>, %arg5: memref<1x8x128xf32, #tpu.memory_space<vmem>>) attributes {dimension_semantics = [#tpu.dimension_semantics<parallel>], iteration_bounds = array<i64: 1>, scalar_prefetch = 0 : i64, scratch_operands = 0 : i64, tpu.core_type = #tpu.core_type<tc>, window_params = [{transform_indices = @transform_0, window_bounds = array<i64: 32, 384>}, {pipeline_mode = #tpu.pipeline_mode<synchronous>, transform_indices = @transform_1, window_bounds = array<i64: 384, 128>}, {transform_indices = @transform_2, window_bounds = array<i64: 32, 128>}, {transform_indices = @transform_3, window_bounds = array<i64: 1, 8, 128>}, {transform_indices = @transform_4, window_bounds = array<i64: 1, 8, 128>}]} {
    %c0 = arith.constant 0 : index
    %c0_0 = arith.constant 0 : index
    %0 = vector.load %arg1[%c0, %c0_0] : memref<32x384xbf16, #tpu.memory_space<vmem>>, vector<32x384xbf16>
    %c0_1 = arith.constant 0 : index
    %c0_2 = arith.constant 0 : index
    %1 = vector.load %arg2[%c0_1, %c0_2] : memref<384x128xbf16, #tpu.memory_space<vmem>>, vector<384x128xbf16>
    %cst = arith.constant dense<0.000000e+00> : vector<32x128xf32>
    %2 = tpu.matmul %0, %1, %cst {dimension_numbers = #tpu.dot_dimension_numbers<[1], [0], [0], [1], [0, 0, 1, 1], [], []>} : vector<32x384xbf16>, vector<384x128xbf16>, vector<32x128xf32> -> vector<32x128xf32>
    %3 = arith.truncf %2 : vector<32x128xf32> to vector<32x128xbf16>
    %c0_3 = arith.constant 0 : index
    %c0_4 = arith.constant 0 : index
    %4 = vector.load %arg3[%c0_3, %c0_4] : memref<32x128xbf16, #tpu.memory_space<vmem>>, vector<32x128xbf16>
    tpu.vector_store %arg3[%c0_3, %c0_4], %3 {strides = array<i32>} : memref<32x128xbf16, #tpu.memory_space<vmem>>, vector<32x128xbf16>,
    %cst_5 = arith.constant 0.000000e+00 : f32
    %5 = vector.broadcast %cst_5 : f32 to vector<8x128xf32>
    %cst_6 = arith.constant 0.000000e+00 : f32
    %6 = vector.broadcast %cst_6 : f32 to vector<8x128xf32>
    %7 = vector.extract_strided_slice %2 {offsets = [0, 0], sizes = [8, 128], strides = [1, 1]} : vector<32x128xf32> to vector<8x128xf32>
    %8 = arith.addf %5, %7 : vector<8x128xf32>
    %9 = arith.mulf %7, %7 : vector<8x128xf32>
    %10 = arith.addf %6, %9 : vector<8x128xf32>
    %11 = vector.extract_strided_slice %2 {offsets = [8, 0], sizes = [8, 128], strides = [1, 1]} : vector<32x128xf32> to vector<8x128xf32>
    %12 = arith.addf %8, %11 : vector<8x128xf32>
    %13 = arith.mulf %11, %11 : vector<8x128xf32>
    %14 = arith.addf %10, %13 : vector<8x128xf32>
    %15 = vector.extract_strided_slice %2 {offsets = [16, 0], sizes = [8, 128], strides = [1, 1]} : vector<32x128xf32> to vector<8x128xf32>
    %16 = arith.addf %12, %15 : vector<8x128xf32>
    %17 = arith.mulf %15, %15 : vector<8x128xf32>
    %18 = arith.addf %14, %17 : vector<8x128xf32>
    %19 = vector.extract_strided_slice %2 {offsets = [24, 0], sizes = [8, 128], strides = [1, 1]} : vector<32x128xf32> to vector<8x128xf32>
    %20 = arith.addf %16, %19 : vector<8x128xf32>
    %21 = arith.mulf %19, %19 : vector<8x128xf32>
    %22 = arith.addf %18, %21 : vector<8x128xf32>
    %c0_7 = arith.constant 0 : index
    %c0_8 = arith.constant 0 : index
    %c0_9 = arith.constant 0 : index
    %23 = vector.load %arg4[%c0_7, %c0_8, %c0_9] : memref<1x8x128xf32, #tpu.memory_space<vmem>>, vector<1x8x128xf32>
    %24 = vector.shape_cast %23 : vector<1x8x128xf32> to vector<8x128xf32>
    %25 = vector.shape_cast %20 : vector<8x128xf32> to vector<1x8x128xf32>
    tpu.vector_store %arg4[%c0_7, %c0_8, %c0_9], %25 {strides = array<i32>} : memref<1x8x128xf32, #tpu.memory_space<vmem>>, vector<1x8x128xf32>,
    %c0_10 = arith.constant 0 : index
    %c0_11 = arith.constant 0 : index
    %c0_12 = arith.constant 0 : index
    %26 = vector.load %arg5[%c0_10, %c0_11, %c0_12] : memref<1x8x128xf32, #tpu.memory_space<vmem>>, vector<1x8x128xf32>
    %27 = vector.shape_cast %26 : vector<1x8x128xf32> to vector<8x128xf32>
    %28 = vector.shape_cast %22 : vector<8x128xf32> to vector<1x8x128xf32>
    tpu.vector_store %arg5[%c0_10, %c0_11, %c0_12], %28 {strides = array<i32>} : memref<1x8x128xf32, #tpu.memory_space<vmem>>, vector<1x8x128xf32>,
    return
  }
  func.func @transform_0(%arg0: i32) -> (i32, i32) {
    %c0_i32 = arith.constant 0 : i32
    %c0_i32_0 = arith.constant 0 : i32
    return %arg0, %c0_i32 : i32, i32
  }
  func.func @transform_1(%arg0: i32) -> (i32, i32) {
    %c0_i32 = arith.constant 0 : i32
    %c0_i32_0 = arith.constant 0 : i32
    %c0_i32_1 = arith.constant 0 : i32
    return %c0_i32, %c0_i32_0 : i32, i32
  }
  func.func @transform_2(%arg0: i32) -> (i32, i32) {
    %c0_i32 = arith.constant 0 : i32
    %c0_i32_0 = arith.constant 0 : i32
    return %arg0, %c0_i32 : i32, i32
  }
  func.func @transform_3(%arg0: i32) -> (i32, i32, i32) {
    %c0_i32 = arith.constant 0 : i32
    %c0_i32_0 = arith.constant 0 : i32
    %c0_i32_1 = arith.constant 0 : i32
    return %arg0, %c0_i32, %c0_i32_0 : i32, i32, i32
  }
  func.func @transform_4(%arg0: i32) -> (i32, i32, i32) {
    %c0_i32 = arith.constant 0 : i32
    %c0_i32_0 = arith.constant 0 : i32
    %c0_i32_1 = arith.constant 0 : i32
    return %arg0, %c0_i32, %c0_i32_0 : i32, i32, i32
  }
}

module attributes {stable_mosaic.version = 11 : i64} {
  func.func @_affine_act_res_kernel(%arg0: i32, %arg1: memref<32x128xbf16, #tpu.memory_space<vmem>>, %arg2: memref<1x128xf32, #tpu.memory_space<vmem>>, %arg3: memref<1x128xf32, #tpu.memory_space<vmem>>, %arg4: memref<32x128xf32, #tpu.memory_space<vmem>>, %arg5: memref<32x128xf32, #tpu.memory_space<vmem>>) attributes {dimension_semantics = [#tpu.dimension_semantics<parallel>], iteration_bounds = array<i64: 1>, scalar_prefetch = 0 : i64, scratch_operands = 0 : i64, tpu.core_type = #tpu.core_type<tc>, window_params = [{transform_indices = @transform_0, window_bounds = array<i64: 32, 128>}, {pipeline_mode = #tpu.pipeline_mode<synchronous>, transform_indices = @transform_1, window_bounds = array<i64: 1, 128>}, {pipeline_mode = #tpu.pipeline_mode<synchronous>, transform_indices = @transform_2, window_bounds = array<i64: 1, 128>}, {transform_indices = @transform_3, window_bounds = array<i64: 32, 128>}, {transform_indices = @transform_4, window_bounds = array<i64: 32, 128>}]} {
    %c0 = arith.constant 0 : index
    %c0_0 = arith.constant 0 : index
    %0 = vector.load %arg1[%c0, %c0_0] : memref<32x128xbf16, #tpu.memory_space<vmem>>, vector<32x128xbf16>
    %1 = arith.extf %0 : vector<32x128xbf16> to vector<32x128xf32>
    %c0_1 = arith.constant 0 : index
    %c0_2 = arith.constant 0 : index
    %2 = vector.load %arg2[%c0_1, %c0_2] : memref<1x128xf32, #tpu.memory_space<vmem>>, vector<1x128xf32>
    %3 = vector.broadcast %2 : vector<1x128xf32> to vector<32x128xf32>
    %4 = arith.mulf %1, %3 : vector<32x128xf32>
    %c0_3 = arith.constant 0 : index
    %c0_4 = arith.constant 0 : index
    %5 = vector.load %arg3[%c0_3, %c0_4] : memref<1x128xf32, #tpu.memory_space<vmem>>, vector<1x128xf32>
    %6 = vector.broadcast %5 : vector<1x128xf32> to vector<32x128xf32>
    %7 = arith.addf %4, %6 : vector<32x128xf32>
    %c0_5 = arith.constant 0 : index
    %c0_6 = arith.constant 0 : index
    %8 = vector.load %arg4[%c0_5, %c0_6] : memref<32x128xf32, #tpu.memory_space<vmem>>, vector<32x128xf32>
    %9 = arith.addf %7, %8 : vector<32x128xf32>
    %c0_7 = arith.constant 0 : index
    %c0_8 = arith.constant 0 : index
    %10 = vector.load %arg5[%c0_7, %c0_8] : memref<32x128xf32, #tpu.memory_space<vmem>>, vector<32x128xf32>
    tpu.vector_store %arg5[%c0_7, %c0_8], %9 {strides = array<i32>} : memref<32x128xf32, #tpu.memory_space<vmem>>, vector<32x128xf32>,
    return
  }
  func.func @transform_0(%arg0: i32) -> (i32, i32) {
    %c0_i32 = arith.constant 0 : i32
    %c0_i32_0 = arith.constant 0 : i32
    return %arg0, %c0_i32 : i32, i32
  }
  func.func @transform_1(%arg0: i32) -> (i32, i32) {
    %c0_i32 = arith.constant 0 : i32
    %c0_i32_0 = arith.constant 0 : i32
    %c0_i32_1 = arith.constant 0 : i32
    return %c0_i32, %c0_i32_0 : i32, i32
  }
  func.func @transform_2(%arg0: i32) -> (i32, i32) {
    %c0_i32 = arith.constant 0 : i32
    %c0_i32_0 = arith.constant 0 : i32
    %c0_i32_1 = arith.constant 0 : i32
    return %c0_i32, %c0_i32_0 : i32, i32
  }
  func.func @transform_3(%arg0: i32) -> (i32, i32) {
    %c0_i32 = arith.constant 0 : i32
    %c0_i32_0 = arith.constant 0 : i32
    return %arg0, %c0_i32 : i32, i32
  }
  func.func @transform_4(%arg0: i32) -> (i32, i32) {
    %c0_i32 = arith.constant 0 : i32
    %c0_i32_0 = arith.constant 0 : i32
    return %arg0, %c0_i32 : i32, i32
  }
}

module attributes {stable_mosaic.version = 11 : i64} {
  func.func @_matmul_stats_kernel(%arg0: i32, %arg1: memref<32x128xbf16, #tpu.memory_space<vmem>>, %arg2: memref<128x128xbf16, #tpu.memory_space<vmem>>, %arg3: memref<32x128xbf16, #tpu.memory_space<vmem>>, %arg4: memref<1x8x128xf32, #tpu.memory_space<vmem>>, %arg5: memref<1x8x128xf32, #tpu.memory_space<vmem>>) attributes {dimension_semantics = [#tpu.dimension_semantics<parallel>], iteration_bounds = array<i64: 1>, scalar_prefetch = 0 : i64, scratch_operands = 0 : i64, tpu.core_type = #tpu.core_type<tc>, window_params = [{transform_indices = @transform_0, window_bounds = array<i64: 32, 128>}, {pipeline_mode = #tpu.pipeline_mode<synchronous>, transform_indices = @transform_1, window_bounds = array<i64: 128, 128>}, {transform_indices = @transform_2, window_bounds = array<i64: 32, 128>}, {transform_indices = @transform_3, window_bounds = array<i64: 1, 8, 128>}, {transform_indices = @transform_4, window_bounds = array<i64: 1, 8, 128>}]} {
    %c0 = arith.constant 0 : index
    %c0_0 = arith.constant 0 : index
    %0 = vector.load %arg1[%c0, %c0_0] : memref<32x128xbf16, #tpu.memory_space<vmem>>, vector<32x128xbf16>
    %c0_1 = arith.constant 0 : index
    %c0_2 = arith.constant 0 : index
    %1 = vector.load %arg2[%c0_1, %c0_2] : memref<128x128xbf16, #tpu.memory_space<vmem>>, vector<128x128xbf16>
    %cst = arith.constant dense<0.000000e+00> : vector<32x128xf32>
    %2 = tpu.matmul %0, %1, %cst {dimension_numbers = #tpu.dot_dimension_numbers<[1], [0], [0], [1], [0, 0, 1, 1], [], []>} : vector<32x128xbf16>, vector<128x128xbf16>, vector<32x128xf32> -> vector<32x128xf32>
    %3 = arith.truncf %2 : vector<32x128xf32> to vector<32x128xbf16>
    %c0_3 = arith.constant 0 : index
    %c0_4 = arith.constant 0 : index
    %4 = vector.load %arg3[%c0_3, %c0_4] : memref<32x128xbf16, #tpu.memory_space<vmem>>, vector<32x128xbf16>
    tpu.vector_store %arg3[%c0_3, %c0_4], %3 {strides = array<i32>} : memref<32x128xbf16, #tpu.memory_space<vmem>>, vector<32x128xbf16>,
    %cst_5 = arith.constant 0.000000e+00 : f32
    %5 = vector.broadcast %cst_5 : f32 to vector<8x128xf32>
    %cst_6 = arith.constant 0.000000e+00 : f32
    %6 = vector.broadcast %cst_6 : f32 to vector<8x128xf32>
    %7 = vector.extract_strided_slice %2 {offsets = [0, 0], sizes = [8, 128], strides = [1, 1]} : vector<32x128xf32> to vector<8x128xf32>
    %8 = arith.addf %5, %7 : vector<8x128xf32>
    %9 = arith.mulf %7, %7 : vector<8x128xf32>
    %10 = arith.addf %6, %9 : vector<8x128xf32>
    %11 = vector.extract_strided_slice %2 {offsets = [8, 0], sizes = [8, 128], strides = [1, 1]} : vector<32x128xf32> to vector<8x128xf32>
    %12 = arith.addf %8, %11 : vector<8x128xf32>
    %13 = arith.mulf %11, %11 : vector<8x128xf32>
    %14 = arith.addf %10, %13 : vector<8x128xf32>
    %15 = vector.extract_strided_slice %2 {offsets = [16, 0], sizes = [8, 128], strides = [1, 1]} : vector<32x128xf32> to vector<8x128xf32>
    %16 = arith.addf %12, %15 : vector<8x128xf32>
    %17 = arith.mulf %15, %15 : vector<8x128xf32>
    %18 = arith.addf %14, %17 : vector<8x128xf32>
    %19 = vector.extract_strided_slice %2 {offsets = [24, 0], sizes = [8, 128], strides = [1, 1]} : vector<32x128xf32> to vector<8x128xf32>
    %20 = arith.addf %16, %19 : vector<8x128xf32>
    %21 = arith.mulf %19, %19 : vector<8x128xf32>
    %22 = arith.addf %18, %21 : vector<8x128xf32>
    %c0_7 = arith.constant 0 : index
    %c0_8 = arith.constant 0 : index
    %c0_9 = arith.constant 0 : index
    %23 = vector.load %arg4[%c0_7, %c0_8, %c0_9] : memref<1x8x128xf32, #tpu.memory_space<vmem>>, vector<1x8x128xf32>
    %24 = vector.shape_cast %23 : vector<1x8x128xf32> to vector<8x128xf32>
    %25 = vector.shape_cast %20 : vector<8x128xf32> to vector<1x8x128xf32>
    tpu.vector_store %arg4[%c0_7, %c0_8, %c0_9], %25 {strides = array<i32>} : memref<1x8x128xf32, #tpu.memory_space<vmem>>, vector<1x8x128xf32>,
    %c0_10 = arith.constant 0 : index
    %c0_11 = arith.constant 0 : index
    %c0_12 = arith.constant 0 : index
    %26 = vector.load %arg5[%c0_10, %c0_11, %c0_12] : memref<1x8x128xf32, #tpu.memory_space<vmem>>, vector<1x8x128xf32>
    %27 = vector.shape_cast %26 : vector<1x8x128xf32> to vector<8x128xf32>
    %28 = vector.shape_cast %22 : vector<8x128xf32> to vector<1x8x128xf32>
    tpu.vector_store %arg5[%c0_10, %c0_11, %c0_12], %28 {strides = array<i32>} : memref<1x8x128xf32, #tpu.memory_space<vmem>>, vector<1x8x128xf32>,
    return
  }
  func.func @transform_0(%arg0: i32) -> (i32, i32) {
    %c0_i32 = arith.constant 0 : i32
    %c0_i32_0 = arith.constant 0 : i32
    return %arg0, %c0_i32 : i32, i32
  }
  func.func @transform_1(%arg0: i32) -> (i32, i32) {
    %c0_i32 = arith.constant 0 : i32
    %c0_i32_0 = arith.constant 0 : i32
    %c0_i32_1 = arith.constant 0 : i32
    return %c0_i32, %c0_i32_0 : i32, i32
  }
  func.func @transform_2(%arg0: i32) -> (i32, i32) {
    %c0_i32 = arith.constant 0 : i32
    %c0_i32_0 = arith.constant 0 : i32
    return %arg0, %c0_i32 : i32, i32
  }
  func.func @transform_3(%arg0: i32) -> (i32, i32, i32) {
    %c0_i32 = arith.constant 0 : i32
    %c0_i32_0 = arith.constant 0 : i32
    %c0_i32_1 = arith.constant 0 : i32
    return %arg0, %c0_i32, %c0_i32_0 : i32, i32, i32
  }
  func.func @transform_4(%arg0: i32) -> (i32, i32, i32) {
    %c0_i32 = arith.constant 0 : i32
    %c0_i32_0 = arith.constant 0 : i32
    %c0_i32_1 = arith.constant 0 : i32
    return %arg0, %c0_i32, %c0_i32_0 : i32, i32, i32
  }
}

module attributes {stable_mosaic.version = 11 : i64} {
  func.func @_matmul_stats_kernel(%arg0: i32, %arg1: memref<512x512xbf16, #tpu.memory_space<vmem>>, %arg2: memref<512x128xbf16, #tpu.memory_space<vmem>>, %arg3: memref<512x128xbf16, #tpu.memory_space<vmem>>, %arg4: memref<1x8x128xf32, #tpu.memory_space<vmem>>, %arg5: memref<1x8x128xf32, #tpu.memory_space<vmem>>) attributes {dimension_semantics = [#tpu.dimension_semantics<parallel>], iteration_bounds = array<i64: 1>, scalar_prefetch = 0 : i64, scratch_operands = 0 : i64, tpu.core_type = #tpu.core_type<tc>, window_params = [{transform_indices = @transform_0, window_bounds = array<i64: 512, 512>}, {pipeline_mode = #tpu.pipeline_mode<synchronous>, transform_indices = @transform_1, window_bounds = array<i64: 512, 128>}, {transform_indices = @transform_2, window_bounds = array<i64: 512, 128>}, {transform_indices = @transform_3, window_bounds = array<i64: 1, 8, 128>}, {transform_indices = @transform_4, window_bounds = array<i64: 1, 8, 128>}]} {
    %c0 = arith.constant 0 : index
    %c0_0 = arith.constant 0 : index
    %0 = vector.load %arg1[%c0, %c0_0] : memref<512x512xbf16, #tpu.memory_space<vmem>>, vector<512x512xbf16>
    %c0_1 = arith.constant 0 : index
    %c0_2 = arith.constant 0 : index
    %1 = vector.load %arg2[%c0_1, %c0_2] : memref<512x128xbf16, #tpu.memory_space<vmem>>, vector<512x128xbf16>
    %cst = arith.constant dense<0.000000e+00> : vector<512x128xf32>
    %2 = tpu.matmul %0, %1, %cst {dimension_numbers = #tpu.dot_dimension_numbers<[1], [0], [0], [1], [0, 0, 1, 1], [], []>} : vector<512x512xbf16>, vector<512x128xbf16>, vector<512x128xf32> -> vector<512x128xf32>
    %3 = arith.truncf %2 : vector<512x128xf32> to vector<512x128xbf16>
    %c0_3 = arith.constant 0 : index
    %c0_4 = arith.constant 0 : index
    %4 = vector.load %arg3[%c0_3, %c0_4] : memref<512x128xbf16, #tpu.memory_space<vmem>>, vector<512x128xbf16>
    tpu.vector_store %arg3[%c0_3, %c0_4], %3 {strides = array<i32>} : memref<512x128xbf16, #tpu.memory_space<vmem>>, vector<512x128xbf16>,
    %cst_5 = arith.constant 0.000000e+00 : f32
    %5 = vector.broadcast %cst_5 : f32 to vector<8x128xf32>
    %cst_6 = arith.constant 0.000000e+00 : f32
    %6 = vector.broadcast %cst_6 : f32 to vector<8x128xf32>
    %7 = vector.extract_strided_slice %2 {offsets = [0, 0], sizes = [8, 128], strides = [1, 1]} : vector<512x128xf32> to vector<8x128xf32>
    %8 = arith.addf %5, %7 : vector<8x128xf32>
    %9 = arith.mulf %7, %7 : vector<8x128xf32>
    %10 = arith.addf %6, %9 : vector<8x128xf32>
    %11 = vector.extract_strided_slice %2 {offsets = [8, 0], sizes = [8, 128], strides = [1, 1]} : vector<512x128xf32> to vector<8x128xf32>
    %12 = arith.addf %8, %11 : vector<8x128xf32>
    %13 = arith.mulf %11, %11 : vector<8x128xf32>
    %14 = arith.addf %10, %13 : vector<8x128xf32>
    %15 = vector.extract_strided_slice %2 {offsets = [16, 0], sizes = [8, 128], strides = [1, 1]} : vector<512x128xf32> to vector<8x128xf32>
    %16 = arith.addf %12, %15 : vector<8x128xf32>
    %17 = arith.mulf %15, %15 : vector<8x128xf32>
    %18 = arith.addf %14, %17 : vector<8x128xf32>
    %19 = vector.extract_strided_slice %2 {offsets = [24, 0], sizes = [8, 128], strides = [1, 1]} : vector<512x128xf32> to vector<8x128xf32>
    %20 = arith.addf %16, %19 : vector<8x128xf32>
    %21 = arith.mulf %19, %19 : vector<8x128xf32>
    %22 = arith.addf %18, %21 : vector<8x128xf32>
    %23 = vector.extract_strided_slice %2 {offsets = [32, 0], sizes = [8, 128], strides = [1, 1]} : vector<512x128xf32> to vector<8x128xf32>
    %24 = arith.addf %20, %23 : vector<8x128xf32>
    %25 = arith.mulf %23, %23 : vector<8x128xf32>
    %26 = arith.addf %22, %25 : vector<8x128xf32>
    %27 = vector.extract_strided_slice %2 {offsets = [40, 0], sizes = [8, 128], strides = [1, 1]} : vector<512x128xf32> to vector<8x128xf32>
    %28 = arith.addf %24, %27 : vector<8x128xf32>
    %29 = arith.mulf %27, %27 : vector<8x128xf32>
    %30 = arith.addf %26, %29 : vector<8x128xf32>
    %31 = vector.extract_strided_slice %2 {offsets = [48, 0], sizes = [8, 128], strides = [1, 1]} : vector<512x128xf32> to vector<8x128xf32>
    %32 = arith.addf %28, %31 : vector<8x128xf32>
    %33 = arith.mulf %31, %31 : vector<8x128xf32>
    %34 = arith.addf %30, %33 : vector<8x128xf32>
    %35 = vector.extract_strided_slice %2 {offsets = [56, 0], sizes = [8, 128], strides = [1, 1]} : vector<512x128xf32> to vector<8x128xf32>
    %36 = arith.addf %32, %35 : vector<8x128xf32>
    %37 = arith.mulf %35, %35 : vector<8x128xf32>
    %38 = arith.addf %34, %37 : vector<8x128xf32>
    %39 = vector.extract_strided_slice %2 {offsets = [64, 0], sizes = [8, 128], strides = [1, 1]} : vector<512x128xf32> to vector<8x128xf32>
    %40 = arith.addf %36, %39 : vector<8x128xf32>
    %41 = arith.mulf %39, %39 : vector<8x128xf32>
    %42 = arith.addf %38, %41 : vector<8x128xf32>
    %43 = vector.extract_strided_slice %2 {offsets = [72, 0], sizes = [8, 128], strides = [1, 1]} : vector<512x128xf32> to vector<8x128xf32>
    %44 = arith.addf %40, %43 : vector<8x128xf32>
    %45 = arith.mulf %43, %43 : vector<8x128xf32>
    %46 = arith.addf %42, %45 : vector<8x128xf32>
    %47 = vector.extract_strided_slice %2 {offsets = [80, 0], sizes = [8, 128], strides = [1, 1]} : vector<512x128xf32> to vector<8x128xf32>
    %48 = arith.addf %44, %47 : vector<8x128xf32>
    %49 = arith.mulf %47, %47 : vector<8x128xf32>
    %50 = arith.addf %46, %49 : vector<8x128xf32>
    %51 = vector.extract_strided_slice %2 {offsets = [88, 0], sizes = [8, 128], strides = [1, 1]} : vector<512x128xf32> to vector<8x128xf32>
    %52 = arith.addf %48, %51 : vector<8x128xf32>
    %53 = arith.mulf %51, %51 : vector<8x128xf32>
    %54 = arith.addf %50, %53 : vector<8x128xf32>
    %55 = vector.extract_strided_slice %2 {offsets = [96, 0], sizes = [8, 128], strides = [1, 1]} : vector<512x128xf32> to vector<8x128xf32>
    %56 = arith.addf %52, %55 : vector<8x128xf32>
    %57 = arith.mulf %55, %55 : vector<8x128xf32>
    %58 = arith.addf %54, %57 : vector<8x128xf32>
    %59 = vector.extract_strided_slice %2 {offsets = [104, 0], sizes = [8, 128], strides = [1, 1]} : vector<512x128xf32> to vector<8x128xf32>
    %60 = arith.addf %56, %59 : vector<8x128xf32>
    %61 = arith.mulf %59, %59 : vector<8x128xf32>
    %62 = arith.addf %58, %61 : vector<8x128xf32>
    %63 = vector.extract_strided_slice %2 {offsets = [112, 0], sizes = [8, 128], strides = [1, 1]} : vector<512x128xf32> to vector<8x128xf32>
    %64 = arith.addf %60, %63 : vector<8x128xf32>
    %65 = arith.mulf %63, %63 : vector<8x128xf32>
    %66 = arith.addf %62, %65 : vector<8x128xf32>
    %67 = vector.extract_strided_slice %2 {offsets = [120, 0], sizes = [8, 128], strides = [1, 1]} : vector<512x128xf32> to vector<8x128xf32>
    %68 = arith.addf %64, %67 : vector<8x128xf32>
    %69 = arith.mulf %67, %67 : vector<8x128xf32>
    %70 = arith.addf %66, %69 : vector<8x128xf32>
    %71 = vector.extract_strided_slice %2 {offsets = [128, 0], sizes = [8, 128], strides = [1, 1]} : vector<512x128xf32> to vector<8x128xf32>
    %72 = arith.addf %68, %71 : vector<8x128xf32>
    %73 = arith.mulf %71, %71 : vector<8x128xf32>
    %74 = arith.addf %70, %73 : vector<8x128xf32>
    %75 = vector.extract_strided_slice %2 {offsets = [136, 0], sizes = [8, 128], strides = [1, 1]} : vector<512x128xf32> to vector<8x128xf32>
    %76 = arith.addf %72, %75 : vector<8x128xf32>
    %77 = arith.mulf %75, %75 : vector<8x128xf32>
    %78 = arith.addf %74, %77 : vector<8x128xf32>
    %79 = vector.extract_strided_slice %2 {offsets = [144, 0], sizes = [8, 128], strides = [1, 1]} : vector<512x128xf32> to vector<8x128xf32>
    %80 = arith.addf %76, %79 : vector<8x128xf32>
    %81 = arith.mulf %79, %79 : vector<8x128xf32>
    %82 = arith.addf %78, %81 : vector<8x128xf32>
    %83 = vector.extract_strided_slice %2 {offsets = [152, 0], sizes = [8, 128], strides = [1, 1]} : vector<512x128xf32> to vector<8x128xf32>
    %84 = arith.addf %80, %83 : vector<8x128xf32>
    %85 = arith.mulf %83, %83 : vector<8x128xf32>
    %86 = arith.addf %82, %85 : vector<8x128xf32>
    %87 = vector.extract_strided_slice %2 {offsets = [160, 0], sizes = [8, 128], strides = [1, 1]} : vector<512x128xf32> to vector<8x128xf32>
    %88 = arith.addf %84, %87 : vector<8x128xf32>
    %89 = arith.mulf %87, %87 : vector<8x128xf32>
    %90 = arith.addf %86, %89 : vector<8x128xf32>
    %91 = vector.extract_strided_slice %2 {offsets = [168, 0], sizes = [8, 128], strides = [1, 1]} : vector<512x128xf32> to vector<8x128xf32>
    %92 = arith.addf %88, %91 : vector<8x128xf32>
    %93 = arith.mulf %91, %91 : vector<8x128xf32>
    %94 = arith.addf %90, %93 : vector<8x128xf32>
    %95 = vector.extract_strided_slice %2 {offsets = [176, 0], sizes = [8, 128], strides = [1, 1]} : vector<512x128xf32> to vector<8x128xf32>
    %96 = arith.addf %92, %95 : vector<8x128xf32>
    %97 = arith.mulf %95, %95 : vector<8x128xf32>
    %98 = arith.addf %94, %97 : vector<8x128xf32>
    %99 = vector.extract_strided_slice %2 {offsets = [184, 0], sizes = [8, 128], strides = [1, 1]} : vector<512x128xf32> to vector<8x128xf32>
    %100 = arith.addf %96, %99 : vector<8x128xf32>
    %101 = arith.mulf %99, %99 : vector<8x128xf32>
    %102 = arith.addf %98, %101 : vector<8x128xf32>
    %103 = vector.extract_strided_slice %2 {offsets = [192, 0], sizes = [8, 128], strides = [1, 1]} : vector<512x128xf32> to vector<8x128xf32>
    %104 = arith.addf %100, %103 : vector<8x128xf32>
    %105 = arith.mulf %103, %103 : vector<8x128xf32>
    %106 = arith.addf %102, %105 : vector<8x128xf32>
    %107 = vector.extract_strided_slice %2 {offsets = [200, 0], sizes = [8, 128], strides = [1, 1]} : vector<512x128xf32> to vector<8x128xf32>
    %108 = arith.addf %104, %107 : vector<8x128xf32>
    %109 = arith.mulf %107, %107 : vector<8x128xf32>
    %110 = arith.addf %106, %109 : vector<8x128xf32>
    %111 = vector.extract_strided_slice %2 {offsets = [208, 0], sizes = [8, 128], strides = [1, 1]} : vector<512x128xf32> to vector<8x128xf32>
    %112 = arith.addf %108, %111 : vector<8x128xf32>
    %113 = arith.mulf %111, %111 : vector<8x128xf32>
    %114 = arith.addf %110, %113 : vector<8x128xf32>
    %115 = vector.extract_strided_slice %2 {offsets = [216, 0], sizes = [8, 128], strides = [1, 1]} : vector<512x128xf32> to vector<8x128xf32>
    %116 = arith.addf %112, %115 : vector<8x128xf32>
    %117 = arith.mulf %115, %115 : vector<8x128xf32>
    %118 = arith.addf %114, %117 : vector<8x128xf32>
    %119 = vector.extract_strided_slice %2 {offsets = [224, 0], sizes = [8, 128], strides = [1, 1]} : vector<512x128xf32> to vector<8x128xf32>
    %120 = arith.addf %116, %119 : vector<8x128xf32>
    %121 = arith.mulf %119, %119 : vector<8x128xf32>
    %122 = arith.addf %118, %121 : vector<8x128xf32>
    %123 = vector.extract_strided_slice %2 {offsets = [232, 0], sizes = [8, 128], strides = [1, 1]} : vector<512x128xf32> to vector<8x128xf32>
    %124 = arith.addf %120, %123 : vector<8x128xf32>
    %125 = arith.mulf %123, %123 : vector<8x128xf32>
    %126 = arith.addf %122, %125 : vector<8x128xf32>
    %127 = vector.extract_strided_slice %2 {offsets = [240, 0], sizes = [8, 128], strides = [1, 1]} : vector<512x128xf32> to vector<8x128xf32>
    %128 = arith.addf %124, %127 : vector<8x128xf32>
    %129 = arith.mulf %127, %127 : vector<8x128xf32>
    %130 = arith.addf %126, %129 : vector<8x128xf32>
    %131 = vector.extract_strided_slice %2 {offsets = [248, 0], sizes = [8, 128], strides = [1, 1]} : vector<512x128xf32> to vector<8x128xf32>
    %132 = arith.addf %128, %131 : vector<8x128xf32>
    %133 = arith.mulf %131, %131 : vector<8x128xf32>
    %134 = arith.addf %130, %133 : vector<8x128xf32>
    %135 = vector.extract_strided_slice %2 {offsets = [256, 0], sizes = [8, 128], strides = [1, 1]} : vector<512x128xf32> to vector<8x128xf32>
    %136 = arith.addf %132, %135 : vector<8x128xf32>
    %137 = arith.mulf %135, %135 : vector<8x128xf32>
    %138 = arith.addf %134, %137 : vector<8x128xf32>
    %139 = vector.extract_strided_slice %2 {offsets = [264, 0], sizes = [8, 128], strides = [1, 1]} : vector<512x128xf32> to vector<8x128xf32>
    %140 = arith.addf %136, %139 : vector<8x128xf32>
    %141 = arith.mulf %139, %139 : vector<8x128xf32>
    %142 = arith.addf %138, %141 : vector<8x128xf32>
    %143 = vector.extract_strided_slice %2 {offsets = [272, 0], sizes = [8, 128], strides = [1, 1]} : vector<512x128xf32> to vector<8x128xf32>
    %144 = arith.addf %140, %143 : vector<8x128xf32>
    %145 = arith.mulf %143, %143 : vector<8x128xf32>
    %146 = arith.addf %142, %145 : vector<8x128xf32>
    %147 = vector.extract_strided_slice %2 {offsets = [280, 0], sizes = [8, 128], strides = [1, 1]} : vector<512x128xf32> to vector<8x128xf32>
    %148 = arith.addf %144, %147 : vector<8x128xf32>
    %149 = arith.mulf %147, %147 : vector<8x128xf32>
    %150 = arith.addf %146, %149 : vector<8x128xf32>
    %151 = vector.extract_strided_slice %2 {offsets = [288, 0], sizes = [8, 128], strides = [1, 1]} : vector<512x128xf32> to vector<8x128xf32>
    %152 = arith.addf %148, %151 : vector<8x128xf32>
    %153 = arith.mulf %151, %151 : vector<8x128xf32>
    %154 = arith.addf %150, %153 : vector<8x128xf32>
    %155 = vector.extract_strided_slice %2 {offsets = [296, 0], sizes = [8, 128], strides = [1, 1]} : vector<512x128xf32> to vector<8x128xf32>
    %156 = arith.addf %152, %155 : vector<8x128xf32>
    %157 = arith.mulf %155, %155 : vector<8x128xf32>
    %158 = arith.addf %154, %157 : vector<8x128xf32>
    %159 = vector.extract_strided_slice %2 {offsets = [304, 0], sizes = [8, 128], strides = [1, 1]} : vector<512x128xf32> to vector<8x128xf32>
    %160 = arith.addf %156, %159 : vector<8x128xf32>
    %161 = arith.mulf %159, %159 : vector<8x128xf32>
    %162 = arith.addf %158, %161 : vector<8x128xf32>
    %163 = vector.extract_strided_slice %2 {offsets = [312, 0], sizes = [8, 128], strides = [1, 1]} : vector<512x128xf32> to vector<8x128xf32>
    %164 = arith.addf %160, %163 : vector<8x128xf32>
    %165 = arith.mulf %163, %163 : vector<8x128xf32>
    %166 = arith.addf %162, %165 : vector<8x128xf32>
    %167 = vector.extract_strided_slice %2 {offsets = [320, 0], sizes = [8, 128], strides = [1, 1]} : vector<512x128xf32> to vector<8x128xf32>
    %168 = arith.addf %164, %167 : vector<8x128xf32>
    %169 = arith.mulf %167, %167 : vector<8x128xf32>
    %170 = arith.addf %166, %169 : vector<8x128xf32>
    %171 = vector.extract_strided_slice %2 {offsets = [328, 0], sizes = [8, 128], strides = [1, 1]} : vector<512x128xf32> to vector<8x128xf32>
    %172 = arith.addf %168, %171 : vector<8x128xf32>
    %173 = arith.mulf %171, %171 : vector<8x128xf32>
    %174 = arith.addf %170, %173 : vector<8x128xf32>
    %175 = vector.extract_strided_slice %2 {offsets = [336, 0], sizes = [8, 128], strides = [1, 1]} : vector<512x128xf32> to vector<8x128xf32>
    %176 = arith.addf %172, %175 : vector<8x128xf32>
    %177 = arith.mulf %175, %175 : vector<8x128xf32>
    %178 = arith.addf %174, %177 : vector<8x128xf32>
    %179 = vector.extract_strided_slice %2 {offsets = [344, 0], sizes = [8, 128], strides = [1, 1]} : vector<512x128xf32> to vector<8x128xf32>
    %180 = arith.addf %176, %179 : vector<8x128xf32>
    %181 = arith.mulf %179, %179 : vector<8x128xf32>
    %182 = arith.addf %178, %181 : vector<8x128xf32>
    %183 = vector.extract_strided_slice %2 {offsets = [352, 0], sizes = [8, 128], strides = [1, 1]} : vector<512x128xf32> to vector<8x128xf32>
    %184 = arith.addf %180, %183 : vector<8x128xf32>
    %185 = arith.mulf %183, %183 : vector<8x128xf32>
    %186 = arith.addf %182, %185 : vector<8x128xf32>
    %187 = vector.extract_strided_slice %2 {offsets = [360, 0], sizes = [8, 128], strides = [1, 1]} : vector<512x128xf32> to vector<8x128xf32>
    %188 = arith.addf %184, %187 : vector<8x128xf32>
    %189 = arith.mulf %187, %187 : vector<8x128xf32>
    %190 = arith.addf %186, %189 : vector<8x128xf32>
    %191 = vector.extract_strided_slice %2 {offsets = [368, 0], sizes = [8, 128], strides = [1, 1]} : vector<512x128xf32> to vector<8x128xf32>
    %192 = arith.addf %188, %191 : vector<8x128xf32>
    %193 = arith.mulf %191, %191 : vector<8x128xf32>
    %194 = arith.addf %190, %193 : vector<8x128xf32>
    %195 = vector.extract_strided_slice %2 {offsets = [376, 0], sizes = [8, 128], strides = [1, 1]} : vector<512x128xf32> to vector<8x128xf32>
    %196 = arith.addf %192, %195 : vector<8x128xf32>
    %197 = arith.mulf %195, %195 : vector<8x128xf32>
    %198 = arith.addf %194, %197 : vector<8x128xf32>
    %199 = vector.extract_strided_slice %2 {offsets = [384, 0], sizes = [8, 128], strides = [1, 1]} : vector<512x128xf32> to vector<8x128xf32>
    %200 = arith.addf %196, %199 : vector<8x128xf32>
    %201 = arith.mulf %199, %199 : vector<8x128xf32>
    %202 = arith.addf %198, %201 : vector<8x128xf32>
    %203 = vector.extract_strided_slice %2 {offsets = [392, 0], sizes = [8, 128], strides = [1, 1]} : vector<512x128xf32> to vector<8x128xf32>
    %204 = arith.addf %200, %203 : vector<8x128xf32>
    %205 = arith.mulf %203, %203 : vector<8x128xf32>
    %206 = arith.addf %202, %205 : vector<8x128xf32>
    %207 = vector.extract_strided_slice %2 {offsets = [400, 0], sizes = [8, 128], strides = [1, 1]} : vector<512x128xf32> to vector<8x128xf32>
    %208 = arith.addf %204, %207 : vector<8x128xf32>
    %209 = arith.mulf %207, %207 : vector<8x128xf32>
    %210 = arith.addf %206, %209 : vector<8x128xf32>
    %211 = vector.extract_strided_slice %2 {offsets = [408, 0], sizes = [8, 128], strides = [1, 1]} : vector<512x128xf32> to vector<8x128xf32>
    %212 = arith.addf %208, %211 : vector<8x128xf32>
    %213 = arith.mulf %211, %211 : vector<8x128xf32>
    %214 = arith.addf %210, %213 : vector<8x128xf32>
    %215 = vector.extract_strided_slice %2 {offsets = [416, 0], sizes = [8, 128], strides = [1, 1]} : vector<512x128xf32> to vector<8x128xf32>
    %216 = arith.addf %212, %215 : vector<8x128xf32>
    %217 = arith.mulf %215, %215 : vector<8x128xf32>
    %218 = arith.addf %214, %217 : vector<8x128xf32>
    %219 = vector.extract_strided_slice %2 {offsets = [424, 0], sizes = [8, 128], strides = [1, 1]} : vector<512x128xf32> to vector<8x128xf32>
    %220 = arith.addf %216, %219 : vector<8x128xf32>
    %221 = arith.mulf %219, %219 : vector<8x128xf32>
    %222 = arith.addf %218, %221 : vector<8x128xf32>
    %223 = vector.extract_strided_slice %2 {offsets = [432, 0], sizes = [8, 128], strides = [1, 1]} : vector<512x128xf32> to vector<8x128xf32>
    %224 = arith.addf %220, %223 : vector<8x128xf32>
    %225 = arith.mulf %223, %223 : vector<8x128xf32>
    %226 = arith.addf %222, %225 : vector<8x128xf32>
    %227 = vector.extract_strided_slice %2 {offsets = [440, 0], sizes = [8, 128], strides = [1, 1]} : vector<512x128xf32> to vector<8x128xf32>
    %228 = arith.addf %224, %227 : vector<8x128xf32>
    %229 = arith.mulf %227, %227 : vector<8x128xf32>
    %230 = arith.addf %226, %229 : vector<8x128xf32>
    %231 = vector.extract_strided_slice %2 {offsets = [448, 0], sizes = [8, 128], strides = [1, 1]} : vector<512x128xf32> to vector<8x128xf32>
    %232 = arith.addf %228, %231 : vector<8x128xf32>
    %233 = arith.mulf %231, %231 : vector<8x128xf32>
    %234 = arith.addf %230, %233 : vector<8x128xf32>
    %235 = vector.extract_strided_slice %2 {offsets = [456, 0], sizes = [8, 128], strides = [1, 1]} : vector<512x128xf32> to vector<8x128xf32>
    %236 = arith.addf %232, %235 : vector<8x128xf32>
    %237 = arith.mulf %235, %235 : vector<8x128xf32>
    %238 = arith.addf %234, %237 : vector<8x128xf32>
    %239 = vector.extract_strided_slice %2 {offsets = [464, 0], sizes = [8, 128], strides = [1, 1]} : vector<512x128xf32> to vector<8x128xf32>
    %240 = arith.addf %236, %239 : vector<8x128xf32>
    %241 = arith.mulf %239, %239 : vector<8x128xf32>
    %242 = arith.addf %238, %241 : vector<8x128xf32>
    %243 = vector.extract_strided_slice %2 {offsets = [472, 0], sizes = [8, 128], strides = [1, 1]} : vector<512x128xf32> to vector<8x128xf32>
    %244 = arith.addf %240, %243 : vector<8x128xf32>
    %245 = arith.mulf %243, %243 : vector<8x128xf32>
    %246 = arith.addf %242, %245 : vector<8x128xf32>
    %247 = vector.extract_strided_slice %2 {offsets = [480, 0], sizes = [8, 128], strides = [1, 1]} : vector<512x128xf32> to vector<8x128xf32>
    %248 = arith.addf %244, %247 : vector<8x128xf32>
    %249 = arith.mulf %247, %247 : vector<8x128xf32>
    %250 = arith.addf %246, %249 : vector<8x128xf32>
    %251 = vector.extract_strided_slice %2 {offsets = [488, 0], sizes = [8, 128], strides = [1, 1]} : vector<512x128xf32> to vector<8x128xf32>
    %252 = arith.addf %248, %251 : vector<8x128xf32>
    %253 = arith.mulf %251, %251 : vector<8x128xf32>
    %254 = arith.addf %250, %253 : vector<8x128xf32>
    %255 = vector.extract_strided_slice %2 {offsets = [496, 0], sizes = [8, 128], strides = [1, 1]} : vector<512x128xf32> to vector<8x128xf32>
    %256 = arith.addf %252, %255 : vector<8x128xf32>
    %257 = arith.mulf %255, %255 : vector<8x128xf32>
    %258 = arith.addf %254, %257 : vector<8x128xf32>
    %259 = vector.extract_strided_slice %2 {offsets = [504, 0], sizes = [8, 128], strides = [1, 1]} : vector<512x128xf32> to vector<8x128xf32>
    %260 = arith.addf %256, %259 : vector<8x128xf32>
    %261 = arith.mulf %259, %259 : vector<8x128xf32>
    %262 = arith.addf %258, %261 : vector<8x128xf32>
    %c0_7 = arith.constant 0 : index
    %c0_8 = arith.constant 0 : index
    %c0_9 = arith.constant 0 : index
    %263 = vector.load %arg4[%c0_7, %c0_8, %c0_9] : memref<1x8x128xf32, #tpu.memory_space<vmem>>, vector<1x8x128xf32>
    %264 = vector.shape_cast %263 : vector<1x8x128xf32> to vector<8x128xf32>
    %265 = vector.shape_cast %260 : vector<8x128xf32> to vector<1x8x128xf32>
    tpu.vector_store %arg4[%c0_7, %c0_8, %c0_9], %265 {strides = array<i32>} : memref<1x8x128xf32, #tpu.memory_space<vmem>>, vector<1x8x128xf32>,
    %c0_10 = arith.constant 0 : index
    %c0_11 = arith.constant 0 : index
    %c0_12 = arith.constant 0 : index
    %266 = vector.load %arg5[%c0_10, %c0_11, %c0_12] : memref<1x8x128xf32, #tpu.memory_space<vmem>>, vector<1x8x128xf32>
    %267 = vector.shape_cast %266 : vector<1x8x128xf32> to vector<8x128xf32>
    %268 = vector.shape_cast %262 : vector<8x128xf32> to vector<1x8x128xf32>
    tpu.vector_store %arg5[%c0_10, %c0_11, %c0_12], %268 {strides = array<i32>} : memref<1x8x128xf32, #tpu.memory_space<vmem>>, vector<1x8x128xf32>,
    return
  }
  func.func @transform_0(%arg0: i32) -> (i32, i32) {
    %c0_i32 = arith.constant 0 : i32
    %c0_i32_0 = arith.constant 0 : i32
    return %arg0, %c0_i32 : i32, i32
  }
  func.func @transform_1(%arg0: i32) -> (i32, i32) {
    %c0_i32 = arith.constant 0 : i32
    %c0_i32_0 = arith.constant 0 : i32
    %c0_i32_1 = arith.constant 0 : i32
    return %c0_i32, %c0_i32_0 : i32, i32
  }
  func.func @transform_2(%arg0: i32) -> (i32, i32) {
    %c0_i32 = arith.constant 0 : i32
    %c0_i32_0 = arith.constant 0 : i32
    return %arg0, %c0_i32 : i32, i32
  }
  func.func @transform_3(%arg0: i32) -> (i32, i32, i32) {
    %c0_i32 = arith.constant 0 : i32
    %c0_i32_0 = arith.constant 0 : i32
    %c0_i32_1 = arith.constant 0 : i32
    return %arg0, %c0_i32, %c0_i32_0 : i32, i32, i32
  }
  func.func @transform_4(%arg0: i32) -> (i32, i32, i32) {
    %c0_i32 = arith.constant 0 : i32
    %c0_i32_0 = arith.constant 0 : i32
    %c0_i32_1 = arith.constant 0 : i32
    return %arg0, %c0_i32, %c0_i32_0 : i32, i32, i32
  }
}

module attributes {stable_mosaic.version = 11 : i64} {
  func.func @_affine_act_res_kernel(%arg0: i32, %arg1: memref<512x128xbf16, #tpu.memory_space<vmem>>, %arg2: memref<1x128xf32, #tpu.memory_space<vmem>>, %arg3: memref<1x128xf32, #tpu.memory_space<vmem>>, %arg4: memref<512x128xf32, #tpu.memory_space<vmem>>, %arg5: memref<512x128xf32, #tpu.memory_space<vmem>>) attributes {dimension_semantics = [#tpu.dimension_semantics<parallel>], iteration_bounds = array<i64: 1>, scalar_prefetch = 0 : i64, scratch_operands = 0 : i64, tpu.core_type = #tpu.core_type<tc>, window_params = [{transform_indices = @transform_0, window_bounds = array<i64: 512, 128>}, {pipeline_mode = #tpu.pipeline_mode<synchronous>, transform_indices = @transform_1, window_bounds = array<i64: 1, 128>}, {pipeline_mode = #tpu.pipeline_mode<synchronous>, transform_indices = @transform_2, window_bounds = array<i64: 1, 128>}, {transform_indices = @transform_3, window_bounds = array<i64: 512, 128>}, {transform_indices = @transform_4, window_bounds = array<i64: 512, 128>}]} {
    %c0 = arith.constant 0 : index
    %c0_0 = arith.constant 0 : index
    %0 = vector.load %arg1[%c0, %c0_0] : memref<512x128xbf16, #tpu.memory_space<vmem>>, vector<512x128xbf16>
    %1 = arith.extf %0 : vector<512x128xbf16> to vector<512x128xf32>
    %c0_1 = arith.constant 0 : index
    %c0_2 = arith.constant 0 : index
    %2 = vector.load %arg2[%c0_1, %c0_2] : memref<1x128xf32, #tpu.memory_space<vmem>>, vector<1x128xf32>
    %3 = vector.broadcast %2 : vector<1x128xf32> to vector<512x128xf32>
    %4 = arith.mulf %1, %3 : vector<512x128xf32>
    %c0_3 = arith.constant 0 : index
    %c0_4 = arith.constant 0 : index
    %5 = vector.load %arg3[%c0_3, %c0_4] : memref<1x128xf32, #tpu.memory_space<vmem>>, vector<1x128xf32>
    %6 = vector.broadcast %5 : vector<1x128xf32> to vector<512x128xf32>
    %7 = arith.addf %4, %6 : vector<512x128xf32>
    %c0_5 = arith.constant 0 : index
    %c0_6 = arith.constant 0 : index
    %8 = vector.load %arg4[%c0_5, %c0_6] : memref<512x128xf32, #tpu.memory_space<vmem>>, vector<512x128xf32>
    %9 = arith.addf %7, %8 : vector<512x128xf32>
    %10 = math.tanh %9 : vector<512x128xf32>
    %c0_7 = arith.constant 0 : index
    %c0_8 = arith.constant 0 : index
    %11 = vector.load %arg5[%c0_7, %c0_8] : memref<512x128xf32, #tpu.memory_space<vmem>>, vector<512x128xf32>
    tpu.vector_store %arg5[%c0_7, %c0_8], %10 {strides = array<i32>} : memref<512x128xf32, #tpu.memory_space<vmem>>, vector<512x128xf32>,
    return
  }
  func.func @transform_0(%arg0: i32) -> (i32, i32) {
    %c0_i32 = arith.constant 0 : i32
    %c0_i32_0 = arith.constant 0 : i32
    return %arg0, %c0_i32 : i32, i32
  }
  func.func @transform_1(%arg0: i32) -> (i32, i32) {
    %c0_i32 = arith.constant 0 : i32
    %c0_i32_0 = arith.constant 0 : i32
    %c0_i32_1 = arith.constant 0 : i32
    return %c0_i32, %c0_i32_0 : i32, i32
  }
  func.func @transform_2(%arg0: i32) -> (i32, i32) {
    %c0_i32 = arith.constant 0 : i32
    %c0_i32_0 = arith.constant 0 : i32
    %c0_i32_1 = arith.constant 0 : i32
    return %c0_i32, %c0_i32_0 : i32, i32
  }
  func.func @transform_3(%arg0: i32) -> (i32, i32) {
    %c0_i32 = arith.constant 0 : i32
    %c0_i32_0 = arith.constant 0 : i32
    return %arg0, %c0_i32 : i32, i32
  }
  func.func @transform_4(%arg0: i32) -> (i32, i32) {
    %c0_i32 = arith.constant 0 : i32
    %c0_i32_0 = arith.constant 0 : i32
    return %arg0, %c0_i32 : i32, i32
  }
}

</mosaic_0001>

<bundles_post_ra>
// kernel: cycle_generator_forward.21
= control target key start
LH: loop header
LB: loop body
LE: loop exit
PB: predicated region body
PF: predicated region fallthrough
CT: control target
= control target key end

     0   :  { %s1017_s0 = inlined_call_operand.vmem [shape: bf16[512,128], index: 0, kind: input, shape index: {}]   ;;  %s1018_s1 = inlined_call_operand.vmem [shape: f32[1,128], index: 1, kind: input, shape index: {}]   ;;  %s1019_s2 = inlined_call_operand.vmem [shape: f32[1,128], index: 2, kind: input, shape index: {}]   ;;  %s1020_s3 = inlined_call_operand.vmem [shape: f32[512,128], index: 3, kind: output, shape index: {}]  }
   0x1   :  { %v411_v0 = vld [vmem:[%s1017_s0] sm:$0xff]   ;;  %v538_v5 = vld [vmem:[%s1017_s0 + $0x8] sm:$0xff]   ;;  %v539_v8 = vld [vmem:[%s1017_s0 + $0x10] sm:$0xff]  }
   0x2   :  { %v597_v1 = vld [vmem:[%s1018_s1] ss:$0 sm:$0xff]  ;;  %v412_v2 = vunpack.c.l.bf16 %v411_v0  ;;  %v413_v4 = vunpack.c.h.bf16 %v411_v0  ;;  %v416_v6 = vunpack.c.l.bf16 %v538_v5  ;;  %v417_v7 = vunpack.c.h.bf16 %v538_v5  ;;  %v540_v9 = vld [vmem:[%s1017_s0 + $0x18] sm:$0xff]   ;;  %v542_v31 = vld [vmem:[%s1017_s0 + $0x28] sm:$0xff]  }
   0x3   :  { %v602_v3 = vld [vmem:[%s1019_s2] ss:$0 sm:$0xff]  ;;  %v420_v12 = vunpack.c.l.bf16 %v539_v8  ;;  %v421_v13 = vunpack.c.h.bf16 %v539_v8  ;;  %v424_v16 = vunpack.c.l.bf16 %v540_v9  ;;  %v425_v17 = vunpack.c.h.bf16 %v540_v9  ;;  %v543_v36 = vld [vmem:[%s1017_s0 + $0x30] sm:$0xff]   ;;  %v544_v41 = vld [vmem:[%s1017_s0 + $0x38] sm:$0xff]  }
   0x4   :  { %v146_v10 = vmul.f32 %v597_v1, %v412_v2  ;;  %v147_v11 = vmul.f32 %v597_v1, %v413_v4  ;;  %v148_v14 = vmul.f32 %v597_v1, %v416_v6  ;;  %v149_v15 = vmul.f32 %v597_v1, %v417_v7  ;;  %v541_v26 = vld [vmem:[%s1017_s0 + $0x20] sm:$0xff]   ;;  %v546_v5 = vld [vmem:[%s1017_s0 + $0x48] sm:$0xff]  }
   0x5   :  { %v150_v20 = vmul.f32 %v597_v1, %v420_v12  ;;  %v151_v21 = vmul.f32 %v597_v1, %v421_v13  ;;  %v152_v24 = vmul.f32 %v597_v1, %v424_v16  ;;  %v153_v25 = vmul.f32 %v597_v1, %v425_v17  ;;  %v545_v62 = vld [vmem:[%s1017_s0 + $0x40] sm:$0xff]  }
   0x6   :  { %v214_v18 = vadd.f32 %v602_v3, %v146_v10  ;;  %v215_v19 = vadd.f32 %v602_v3, %v147_v11  ;;  %v216_v22 = vadd.f32 %v602_v3, %v148_v14  ;;  %v217_v23 = vadd.f32 %v602_v3, %v149_v15  ;;  %v547_v10 = vld [vmem:[%s1017_s0 + $0x50] sm:$0xff]   ;;  %v548_v15 = vld [vmem:[%s1017_s0 + $0x58] sm:$0xff]  }
   0x7   :  { %v218_v29 = vadd.f32 %v602_v3, %v150_v20  ;;  %v219_v30 = vadd.f32 %v602_v3, %v151_v21  ;;  %v220_v34 = vadd.f32 %v602_v3, %v152_v24  ;;  %v221_v35 = vadd.f32 %v602_v3, %v153_v25 }
   0x8   :  { %v278_v27 = vmax.f32 %v214_v18, 0.0  ;;  %v279_v28 = vmax.f32 %v215_v19, 0.0  ;;  %v280_v32 = vmax.f32 %v216_v22, 0.0  ;;  %v281_v33 = vmax.f32 %v217_v23, 0.0 }
   0x9   :  { %v282_v37 = vmax.f32 %v218_v29, 0.0  ;;  %v283_v38 = vmax.f32 %v219_v30, 0.0  ;;  %v428_v39 = vunpack.c.l.bf16 %v541_v26  ;;  %v429_v40 = vunpack.c.h.bf16 %v541_v26 }
   0xa   :  { %342 = vst [vmem:[%s1020_s3] sm:$0xff] %v278_v27  ;;  %v284_v42 = vmax.f32 %v220_v34, 0.0  ;;  %v285_v43 = vmax.f32 %v221_v35, 0.0  ;;  %v432_v44 = vunpack.c.l.bf16 %v542_v31  ;;  %v433_v45 = vunpack.c.h.bf16 %v542_v31 }
   0xb   :  { %343 = vst [vmem:[%s1020_s3 + $0x8] sm:$0xff] %v279_v28  ;;  %v154_v46 = vmul.f32 %v597_v1, %v428_v39  ;;  %v155_v47 = vmul.f32 %v597_v1, %v429_v40  ;;  %v436_v48 = vunpack.c.l.bf16 %v543_v36  ;;  %v437_v49 = vunpack.c.h.bf16 %v543_v36  ;;  %v549_v36 = vld [vmem:[%s1017_s0 + $0x60] sm:$0xff]  }
   0xc   :  { %344 = vst [vmem:[%s1020_s3 + $0x10] sm:$0xff] %v280_v32  ;;  %v156_v50 = vmul.f32 %v597_v1, %v432_v44  ;;  %v157_v51 = vmul.f32 %v597_v1, %v433_v45  ;;  %v440_v52 = vunpack.c.l.bf16 %v544_v41  ;;  %v441_v53 = vunpack.c.h.bf16 %v544_v41  ;;  %v550_v41 = vld [vmem:[%s1017_s0 + $0x68] sm:$0xff]  }
   0xd   :  { %345 = vst [vmem:[%s1020_s3 + $0x18] sm:$0xff] %v281_v33  ;;  %v222_v54 = vadd.f32 %v602_v3, %v154_v46  ;;  %v223_v55 = vadd.f32 %v602_v3, %v155_v47  ;;  %v158_v56 = vmul.f32 %v597_v1, %v436_v48  ;;  %v159_v57 = vmul.f32 %v597_v1, %v437_v49  ;;  %v551_v46 = vld [vmem:[%s1017_s0 + $0x70] sm:$0xff]  }
   0xe   :  { %346 = vst [vmem:[%s1020_s3 + $0x20] sm:$0xff] %v282_v37  ;;  %v224_v58 = vadd.f32 %v602_v3, %v156_v50  ;;  %v225_v59 = vadd.f32 %v602_v3, %v157_v51  ;;  %v160_v60 = vmul.f32 %v597_v1, %v440_v52  ;;  %v161_v61 = vmul.f32 %v597_v1, %v441_v53  ;;  %v552_v51 = vld [vmem:[%s1017_s0 + $0x78] sm:$0xff]  }
   0xf   :  { %347 = vst [vmem:[%s1020_s3 + $0x28] sm:$0xff] %v283_v38  ;;  %v286_v63 = vmax.f32 %v222_v54, 0.0  ;;  %v287_v0 = vmax.f32 %v223_v55, 0.0  ;;  %v226_v2 = vadd.f32 %v602_v3, %v158_v56  ;;  %v227_v4 = vadd.f32 %v602_v3, %v159_v57 }
  0x10   :  { %348 = vst [vmem:[%s1020_s3 + $0x30] sm:$0xff] %v284_v42  ;;  %v288_v6 = vmax.f32 %v224_v58, 0.0  ;;  %v289_v7 = vmax.f32 %v225_v59, 0.0  ;;  %v228_v8 = vadd.f32 %v602_v3, %v160_v60  ;;  %v229_v9 = vadd.f32 %v602_v3, %v161_v61 }
  0x11   :  { %349 = vst [vmem:[%s1020_s3 + $0x38] sm:$0xff] %v285_v43  ;;  %v290_v11 = vmax.f32 %v226_v2, 0.0  ;;  %v291_v12 = vmax.f32 %v227_v4, 0.0  ;;  %v444_v13 = vunpack.c.l.bf16 %v545_v62  ;;  %v445_v14 = vunpack.c.h.bf16 %v545_v62 }
  0x12   :  { %350 = vst [vmem:[%s1020_s3 + $0x40] sm:$0xff] %v286_v63  ;;  %v292_v16 = vmax.f32 %v228_v8, 0.0  ;;  %v293_v17 = vmax.f32 %v229_v9, 0.0  ;;  %v448_v18 = vunpack.c.l.bf16 %v546_v5  ;;  %v449_v19 = vunpack.c.h.bf16 %v546_v5 }
  0x13   :  { %351 = vst [vmem:[%s1020_s3 + $0x48] sm:$0xff] %v287_v0  ;;  %v162_v20 = vmul.f32 %v597_v1, %v444_v13  ;;  %v163_v21 = vmul.f32 %v597_v1, %v445_v14  ;;  %v452_v22 = vunpack.c.l.bf16 %v547_v10  ;;  %v453_v23 = vunpack.c.h.bf16 %v547_v10  ;;  %v553_v10 = vld [vmem:[%s1017_s0 + $0x80] sm:$0xff]  }
  0x14   :  { %352 = vst [vmem:[%s1020_s3 + $0x50] sm:$0xff] %v288_v6  ;;  %v164_v24 = vmul.f32 %v597_v1, %v448_v18  ;;  %v165_v25 = vmul.f32 %v597_v1, %v449_v19  ;;  %v456_v26 = vunpack.c.l.bf16 %v548_v15  ;;  %v457_v27 = vunpack.c.h.bf16 %v548_v15  ;;  %v554_v15 = vld [vmem:[%s1017_s0 + $0x88] sm:$0xff]  }
  0x15   :  { %353 = vst [vmem:[%s1020_s3 + $0x58] sm:$0xff] %v289_v7  ;;  %v230_v28 = vadd.f32 %v602_v3, %v162_v20  ;;  %v231_v29 = vadd.f32 %v602_v3, %v163_v21  ;;  %v166_v30 = vmul.f32 %v597_v1, %v452_v22  ;;  %v167_v31 = vmul.f32 %v597_v1, %v453_v23  ;;  %v555_v20 = vld [vmem:[%s1017_s0 + $0x90] sm:$0xff]  }
  0x16   :  { %354 = vst [vmem:[%s1020_s3 + $0x60] sm:$0xff] %v290_v11  ;;  %v232_v32 = vadd.f32 %v602_v3, %v164_v24  ;;  %v233_v33 = vadd.f32 %v602_v3, %v165_v25  ;;  %v168_v34 = vmul.f32 %v597_v1, %v456_v26  ;;  %v169_v35 = vmul.f32 %v597_v1, %v457_v27  ;;  %v556_v25 = vld [vmem:[%s1017_s0 + $0x98] sm:$0xff]  }
  0x17   :  { %355 = vst [vmem:[%s1020_s3 + $0x68] sm:$0xff] %v291_v12  ;;  %v294_v37 = vmax.f32 %v230_v28, 0.0  ;;  %v295_v38 = vmax.f32 %v231_v29, 0.0  ;;  %v234_v39 = vadd.f32 %v602_v3, %v166_v30  ;;  %v235_v40 = vadd.f32 %v602_v3, %v167_v31 }
  0x18   :  { %356 = vst [vmem:[%s1020_s3 + $0x70] sm:$0xff] %v292_v16  ;;  %v296_v42 = vmax.f32 %v232_v32, 0.0  ;;  %v297_v43 = vmax.f32 %v233_v33, 0.0  ;;  %v236_v44 = vadd.f32 %v602_v3, %v168_v34  ;;  %v237_v45 = vadd.f32 %v602_v3, %v169_v35 }
  0x19   :  { %357 = vst [vmem:[%s1020_s3 + $0x78] sm:$0xff] %v293_v17  ;;  %v298_v47 = vmax.f32 %v234_v39, 0.0  ;;  %v299_v48 = vmax.f32 %v235_v40, 0.0  ;;  %v460_v49 = vunpack.c.l.bf16 %v549_v36  ;;  %v461_v50 = vunpack.c.h.bf16 %v549_v36 }
  0x1a   :  { %358 = vst [vmem:[%s1020_s3 + $0x80] sm:$0xff] %v294_v37  ;;  %v300_v52 = vmax.f32 %v236_v44, 0.0  ;;  %v301_v53 = vmax.f32 %v237_v45, 0.0  ;;  %v464_v54 = vunpack.c.l.bf16 %v550_v41  ;;  %v465_v55 = vunpack.c.h.bf16 %v550_v41 }
  0x1b   :  { %359 = vst [vmem:[%s1020_s3 + $0x88] sm:$0xff] %v295_v38  ;;  %v170_v56 = vmul.f32 %v597_v1, %v460_v49  ;;  %v171_v57 = vmul.f32 %v597_v1, %v461_v50  ;;  %v468_v58 = vunpack.c.l.bf16 %v551_v46  ;;  %v469_v59 = vunpack.c.h.bf16 %v551_v46  ;;  %v557_v46 = vld [vmem:[%s1017_s0 + $0xa0] sm:$0xff]  }
  0x1c   :  { %360 = vst [vmem:[%s1020_s3 + $0x90] sm:$0xff] %v296_v42  ;;  %v172_v60 = vmul.f32 %v597_v1, %v464_v54  ;;  %v173_v61 = vmul.f32 %v597_v1, %v465_v55  ;;  %v472_v62 = vunpack.c.l.bf16 %v552_v51  ;;  %v473_v63 = vunpack.c.h.bf16 %v552_v51  ;;  %v558_v51 = vld [vmem:[%s1017_s0 + $0xa8] sm:$0xff]  }
  0x1d   :  { %361 = vst [vmem:[%s1020_s3 + $0x98] sm:$0xff] %v297_v43  ;;  %v238_v0 = vadd.f32 %v602_v3, %v170_v56  ;;  %v239_v2 = vadd.f32 %v602_v3, %v171_v57  ;;  %v174_v4 = vmul.f32 %v597_v1, %v468_v58  ;;  %v175_v5 = vmul.f32 %v597_v1, %v469_v59  ;;  %v559_v56 = vld [vmem:[%s1017_s0 + $0xb0] sm:$0xff]  }
  0x1e   :  { %362 = vst [vmem:[%s1020_s3 + $0xa0] sm:$0xff] %v298_v47  ;;  %v240_v6 = vadd.f32 %v602_v3, %v172_v60  ;;  %v241_v7 = vadd.f32 %v602_v3, %v173_v61  ;;  %v176_v8 = vmul.f32 %v597_v1, %v472_v62  ;;  %v177_v9 = vmul.f32 %v597_v1, %v473_v63  ;;  %v560_v61 = vld [vmem:[%s1017_s0 + $0xb8] sm:$0xff]  }
  0x1f   :  { %363 = vst [vmem:[%s1020_s3 + $0xa8] sm:$0xff] %v299_v48  ;;  %v302_v11 = vmax.f32 %v238_v0, 0.0  ;;  %v303_v12 = vmax.f32 %v239_v2, 0.0  ;;  %v242_v13 = vadd.f32 %v602_v3, %v174_v4  ;;  %v243_v14 = vadd.f32 %v602_v3, %v175_v5 }
  0x20   :  { %364 = vst [vmem:[%s1020_s3 + $0xb0] sm:$0xff] %v300_v52  ;;  %v304_v16 = vmax.f32 %v240_v6, 0.0  ;;  %v305_v17 = vmax.f32 %v241_v7, 0.0  ;;  %v244_v18 = vadd.f32 %v602_v3, %v176_v8  ;;  %v245_v19 = vadd.f32 %v602_v3, %v177_v9 }
  0x21   :  { %365 = vst [vmem:[%s1020_s3 + $0xb8] sm:$0xff] %v301_v53  ;;  %v306_v21 = vmax.f32 %v242_v13, 0.0  ;;  %v307_v22 = vmax.f32 %v243_v14, 0.0  ;;  %v476_v23 = vunpack.c.l.bf16 %v553_v10  ;;  %v477_v24 = vunpack.c.h.bf16 %v553_v10 }
  0x22   :  { %366 = vst [vmem:[%s1020_s3 + $0xc0] sm:$0xff] %v302_v11  ;;  %v308_v26 = vmax.f32 %v244_v18, 0.0  ;;  %v309_v27 = vmax.f32 %v245_v19, 0.0  ;;  %v480_v28 = vunpack.c.l.bf16 %v554_v15  ;;  %v481_v29 = vunpack.c.h.bf16 %v554_v15 }
  0x23   :  { %367 = vst [vmem:[%s1020_s3 + $0xc8] sm:$0xff] %v303_v12  ;;  %v178_v30 = vmul.f32 %v597_v1, %v476_v23  ;;  %v179_v31 = vmul.f32 %v597_v1, %v477_v24  ;;  %v484_v32 = vunpack.c.l.bf16 %v555_v20  ;;  %v485_v33 = vunpack.c.h.bf16 %v555_v20  ;;  %v561_v20 = vld [vmem:[%s1017_s0 + $0xc0] sm:$0xff]  }
  0x24   :  { %368 = vst [vmem:[%s1020_s3 + $0xd0] sm:$0xff] %v304_v16  ;;  %v180_v34 = vmul.f32 %v597_v1, %v480_v28  ;;  %v181_v35 = vmul.f32 %v597_v1, %v481_v29  ;;  %v488_v36 = vunpack.c.l.bf16 %v556_v25  ;;  %v489_v37 = vunpack.c.h.bf16 %v556_v25  ;;  %v562_v25 = vld [vmem:[%s1017_s0 + $0xc8] sm:$0xff]  }
  0x25   :  { %369 = vst [vmem:[%s1020_s3 + $0xd8] sm:$0xff] %v305_v17  ;;  %v246_v38 = vadd.f32 %v602_v3, %v178_v30  ;;  %v247_v39 = vadd.f32 %v602_v3, %v179_v31  ;;  %v182_v40 = vmul.f32 %v597_v1, %v484_v32  ;;  %v183_v41 = vmul.f32 %v597_v1, %v485_v33  ;;  %v563_v30 = vld [vmem:[%s1017_s0 + $0xd0] sm:$0xff]  }
  0x26   :  { %370 = vst [vmem:[%s1020_s3 + $0xe0] sm:$0xff] %v306_v21  ;;  %v248_v42 = vadd.f32 %v602_v3, %v180_v34  ;;  %v249_v43 = vadd.f32 %v602_v3, %v181_v35  ;;  %v184_v44 = vmul.f32 %v597_v1, %v488_v36  ;;  %v185_v45 = vmul.f32 %v597_v1, %v489_v37  ;;  %v564_v35 = vld [vmem:[%s1017_s0 + $0xd8] sm:$0xff]  }
  0x27   :  { %371 = vst [vmem:[%s1020_s3 + $0xe8] sm:$0xff] %v307_v22  ;;  %v310_v47 = vmax.f32 %v246_v38, 0.0  ;;  %v311_v48 = vmax.f32 %v247_v39, 0.0  ;;  %v250_v49 = vadd.f32 %v602_v3, %v182_v40  ;;  %v251_v50 = vadd.f32 %v602_v3, %v183_v41 }
  0x28   :  { %372 = vst [vmem:[%s1020_s3 + $0xf0] sm:$0xff] %v308_v26  ;;  %v312_v52 = vmax.f32 %v248_v42, 0.0  ;;  %v313_v53 = vmax.f32 %v249_v43, 0.0  ;;  %v252_v54 = vadd.f32 %v602_v3, %v184_v44  ;;  %v253_v55 = vadd.f32 %v602_v3, %v185_v45 }
  0x29   :  { %373 = vst [vmem:[%s1020_s3 + $0xf8] sm:$0xff] %v309_v27  ;;  %v314_v57 = vmax.f32 %v250_v49, 0.0  ;;  %v315_v58 = vmax.f32 %v251_v50, 0.0  ;;  %v492_v59 = vunpack.c.l.bf16 %v557_v46  ;;  %v493_v60 = vunpack.c.h.bf16 %v557_v46 }
  0x2a   :  { %374 = vst [vmem:[%s1020_s3 + $0x100] sm:$0xff] %v310_v47  ;;  %v316_v62 = vmax.f32 %v252_v54, 0.0  ;;  %v317_v63 = vmax.f32 %v253_v55, 0.0  ;;  %v496_v0 = vunpack.c.l.bf16 %v558_v51  ;;  %v497_v2 = vunpack.c.h.bf16 %v558_v51 }
  0x2b   :  { %375 = vst [vmem:[%s1020_s3 + $0x108] sm:$0xff] %v311_v48  ;;  %v186_v4 = vmul.f32 %v597_v1, %v492_v59  ;;  %v187_v5 = vmul.f32 %v597_v1, %v493_v60  ;;  %v500_v6 = vunpack.c.l.bf16 %v559_v56  ;;  %v501_v7 = vunpack.c.h.bf16 %v559_v56  ;;  %v565_v56 = vld [vmem:[%s1017_s0 + $0xe0] sm:$0xff]  }
  0x2c   :  { %376 = vst [vmem:[%s1020_s3 + $0x110] sm:$0xff] %v312_v52  ;;  %v188_v8 = vmul.f32 %v597_v1, %v496_v0  ;;  %v189_v9 = vmul.f32 %v597_v1, %v497_v2  ;;  %v504_v10 = vunpack.c.l.bf16 %v560_v61  ;;  %v505_v11 = vunpack.c.h.bf16 %v560_v61  ;;  %v566_v61 = vld [vmem:[%s1017_s0 + $0xe8] sm:$0xff]  }
  0x2d   :  { %377 = vst [vmem:[%s1020_s3 + $0x118] sm:$0xff] %v313_v53  ;;  %v254_v12 = vadd.f32 %v602_v3, %v186_v4  ;;  %v255_v13 = vadd.f32 %v602_v3, %v187_v5  ;;  %v190_v14 = vmul.f32 %v597_v1, %v500_v6  ;;  %v191_v15 = vmul.f32 %v597_v1, %v501_v7  ;;  %v567_v4 = vld [vmem:[%s1017_s0 + $0xf0] sm:$0xff]  }
  0x2e   :  { %378 = vst [vmem:[%s1020_s3 + $0x120] sm:$0xff] %v314_v57  ;;  %v256_v16 = vadd.f32 %v602_v3, %v188_v8  ;;  %v257_v17 = vadd.f32 %v602_v3, %v189_v9  ;;  %v192_v18 = vmul.f32 %v597_v1, %v504_v10  ;;  %v193_v19 = vmul.f32 %v597_v1, %v505_v11  ;;  %v568_v9 = vld [vmem:[%s1017_s0 + $0xf8] sm:$0xff]  }
  0x2f   :  { %379 = vst [vmem:[%s1020_s3 + $0x128] sm:$0xff] %v315_v58  ;;  %v318_v21 = vmax.f32 %v254_v12, 0.0  ;;  %v319_v22 = vmax.f32 %v255_v13, 0.0  ;;  %v258_v23 = vadd.f32 %v602_v3, %v190_v14  ;;  %v259_v24 = vadd.f32 %v602_v3, %v191_v15 }
  0x30   :  { %380 = vst [vmem:[%s1020_s3 + $0x130] sm:$0xff] %v316_v62  ;;  %v320_v26 = vmax.f32 %v256_v16, 0.0  ;;  %v321_v27 = vmax.f32 %v257_v17, 0.0  ;;  %v260_v28 = vadd.f32 %v602_v3, %v192_v18  ;;  %v261_v29 = vadd.f32 %v602_v3, %v193_v19 }
  0x31   :  { %381 = vst [vmem:[%s1020_s3 + $0x138] sm:$0xff] %v317_v63  ;;  %v322_v31 = vmax.f32 %v258_v23, 0.0  ;;  %v323_v32 = vmax.f32 %v259_v24, 0.0  ;;  %v508_v33 = vunpack.c.l.bf16 %v561_v20  ;;  %v509_v34 = vunpack.c.h.bf16 %v561_v20 }
  0x32   :  { %382 = vst [vmem:[%s1020_s3 + $0x140] sm:$0xff] %v318_v21  ;;  %v324_v36 = vmax.f32 %v260_v28, 0.0  ;;  %v325_v37 = vmax.f32 %v261_v29, 0.0  ;;  %v512_v38 = vunpack.c.l.bf16 %v562_v25  ;;  %v513_v39 = vunpack.c.h.bf16 %v562_v25 }
  0x33   :  { %383 = vst [vmem:[%s1020_s3 + $0x148] sm:$0xff] %v319_v22  ;;  %v194_v40 = vmul.f32 %v597_v1, %v508_v33  ;;  %v195_v41 = vmul.f32 %v597_v1, %v509_v34  ;;  %v516_v42 = vunpack.c.l.bf16 %v563_v30  ;;  %v517_v43 = vunpack.c.h.bf16 %v563_v30 }
  0x34   :  { %384 = vst [vmem:[%s1020_s3 + $0x150] sm:$0xff] %v320_v26  ;;  %v196_v44 = vmul.f32 %v597_v1, %v512_v38  ;;  %v197_v45 = vmul.f32 %v597_v1, %v513_v39  ;;  %v520_v46 = vunpack.c.l.bf16 %v564_v35  ;;  %v521_v47 = vunpack.c.h.bf16 %v564_v35 }
  0x35   :  { %385 = vst [vmem:[%s1020_s3 + $0x158] sm:$0xff] %v321_v27  ;;  %v262_v48 = vadd.f32 %v602_v3, %v194_v40  ;;  %v263_v49 = vadd.f32 %v602_v3, %v195_v41  ;;  %v198_v50 = vmul.f32 %v597_v1, %v516_v42  ;;  %v199_v51 = vmul.f32 %v597_v1, %v517_v43 }
  0x36   :  { %386 = vst [vmem:[%s1020_s3 + $0x160] sm:$0xff] %v322_v31  ;;  %v264_v52 = vadd.f32 %v602_v3, %v196_v44  ;;  %v265_v53 = vadd.f32 %v602_v3, %v197_v45  ;;  %v200_v54 = vmul.f32 %v597_v1, %v520_v46  ;;  %v201_v55 = vmul.f32 %v597_v1, %v521_v47 }
  0x37   :  { %387 = vst [vmem:[%s1020_s3 + $0x168] sm:$0xff] %v323_v32  ;;  %v326_v57 = vmax.f32 %v262_v48, 0.0  ;;  %v327_v58 = vmax.f32 %v263_v49, 0.0  ;;  %v266_v59 = vadd.f32 %v602_v3, %v198_v50  ;;  %v267_v60 = vadd.f32 %v602_v3, %v199_v51 }
  0x38   :  { %388 = vst [vmem:[%s1020_s3 + $0x170] sm:$0xff] %v324_v36  ;;  %v328_v62 = vmax.f32 %v264_v52, 0.0  ;;  %v329_v63 = vmax.f32 %v265_v53, 0.0  ;;  %v268_v0 = vadd.f32 %v602_v3, %v200_v54  ;;  %v269_v2 = vadd.f32 %v602_v3, %v201_v55 }
  0x39   :  { %389 = vst [vmem:[%s1020_s3 + $0x178] sm:$0xff] %v325_v37  ;;  %v330_v5 = vmax.f32 %v266_v59, 0.0  ;;  %v331_v6 = vmax.f32 %v267_v60, 0.0  ;;  %v524_v7 = vunpack.c.l.bf16 %v565_v56  ;;  %v525_v8 = vunpack.c.h.bf16 %v565_v56 }
  0x3a   :  { %390 = vst [vmem:[%s1020_s3 + $0x180] sm:$0xff] %v326_v57  ;;  %v332_v10 = vmax.f32 %v268_v0, 0.0  ;;  %v333_v11 = vmax.f32 %v269_v2, 0.0  ;;  %v528_v12 = vunpack.c.l.bf16 %v566_v61  ;;  %v529_v13 = vunpack.c.h.bf16 %v566_v61 }
  0x3b   :  { %391 = vst [vmem:[%s1020_s3 + $0x188] sm:$0xff] %v327_v58  ;;  %v202_v14 = vmul.f32 %v597_v1, %v524_v7  ;;  %v203_v15 = vmul.f32 %v597_v1, %v525_v8  ;;  %v532_v16 = vunpack.c.l.bf16 %v567_v4  ;;  %v533_v17 = vunpack.c.h.bf16 %v567_v4 }
  0x3c   :  { %392 = vst [vmem:[%s1020_s3 + $0x190] sm:$0xff] %v328_v62  ;;  %v204_v18 = vmul.f32 %v597_v1, %v528_v12  ;;  %v205_v19 = vmul.f32 %v597_v1, %v529_v13  ;;  %v536_v20 = vunpack.c.l.bf16 %v568_v9  ;;  %v537_v21 = vunpack.c.h.bf16 %v568_v9 }
  0x3d   :  { %393 = vst [vmem:[%s1020_s3 + $0x198] sm:$0xff] %v329_v63  ;;  %v270_v22 = vadd.f32 %v602_v3, %v202_v14  ;;  %v271_v23 = vadd.f32 %v602_v3, %v203_v15  ;;  %v206_v24 = vmul.f32 %v597_v1, %v532_v16  ;;  %v207_v25 = vmul.f32 %v597_v1, %v533_v17 }
  0x3e   :  { %394 = vst [vmem:[%s1020_s3 + $0x1a0] sm:$0xff] %v330_v5  ;;  %v272_v26 = vadd.f32 %v602_v3, %v204_v18  ;;  %v273_v27 = vadd.f32 %v602_v3, %v205_v19  ;;  %v208_v28 = vmul.f32 %v597_v1, %v536_v20  ;;  %v209_v29 = vmul.f32 %v597_v1, %v537_v21 }
  0x3f   :  { %395 = vst [vmem:[%s1020_s3 + $0x1a8] sm:$0xff] %v331_v6  ;;  %v334_v30 = vmax.f32 %v270_v22, 0.0  ;;  %v335_v31 = vmax.f32 %v271_v23, 0.0  ;;  %v274_v32 = vadd.f32 %v602_v3, %v206_v24  ;;  %v275_v33 = vadd.f32 %v602_v3, %v207_v25 }
  0x40   :  { %396 = vst [vmem:[%s1020_s3 + $0x1b0] sm:$0xff] %v332_v10  ;;  %v336_v34 = vmax.f32 %v272_v26, 0.0  ;;  %v337_v35 = vmax.f32 %v273_v27, 0.0  ;;  %v276_v36 = vadd.f32 %v602_v3, %v208_v28  ;;  %v277_v1 = vadd.f32 %v602_v3, %v209_v29 }
  0x41   :  { %397 = vst [vmem:[%s1020_s3 + $0x1b8] sm:$0xff] %v333_v11  ;;  %v338_v37 = vmax.f32 %v274_v32, 0.0  ;;  %v339_v38 = vmax.f32 %v275_v33, 0.0 }
  0x42   :  { %398 = vst [vmem:[%s1020_s3 + $0x1c0] sm:$0xff] %v334_v30  ;;  %v340_v39 = vmax.f32 %v276_v36, 0.0  ;;  %v341_v3 = vmax.f32 %v277_v1, 0.0 }
  0x43   :  { %399 = vst [vmem:[%s1020_s3 + $0x1c8] sm:$0xff] %v335_v31 }
  0x44   :  { %400 = vst [vmem:[%s1020_s3 + $0x1d0] sm:$0xff] %v336_v34 }
  0x45   :  { %401 = vst [vmem:[%s1020_s3 + $0x1d8] sm:$0xff] %v337_v35 }
  0x46   :  { %402 = vst [vmem:[%s1020_s3 + $0x1e0] sm:$0xff] %v338_v37 }
  0x47   :  { %403 = vst [vmem:[%s1020_s3 + $0x1e8] sm:$0xff] %v339_v38 }
  0x48   :  { %404 = vst [vmem:[%s1020_s3 + $0x1f0] sm:$0xff] %v340_v39 }
  0x49   :  { %405 = vst [vmem:[%s1020_s3 + $0x1f8] sm:$0xff] %v341_v3 }

// kernel: cycle_generator_forward.20
= control target key start
LH: loop header
LB: loop body
LE: loop exit
PB: predicated region body
PF: predicated region fallthrough
CT: control target
= control target key end

     0   :  { %s2574_s1 = inlined_call_operand.vmem [shape: bf16[256,128], index: 1, kind: input, shape index: {}]   ;;  %s2575_s0 = inlined_call_operand.vmem [shape: bf16[512,256], index: 0, kind: input, shape index: {}]   ;;  %s2576_s2 = inlined_call_operand.vmem [shape: bf16[512,128], index: 2, kind: output, shape index: {0}]   ;;  %s2577_s3 = inlined_call_operand.vmem [shape: f32[1,8,128], index: 3, kind: output, shape index: {1}]   ;;  %s2578_s4 = inlined_call_operand.vmem [shape: f32[1,8,128], index: 4, kind: output, shape index: {2}]  }
   0x1   :  { %v1589_v0 = vld [vmem:[%s2574_s1 + $0x38] sm:$0xff]  ;;  %v1588_v2 = vld [vmem:[%s2574_s1 + $0x30] sm:$0xff]  ;;  %v1587_v4 = vld [vmem:[%s2574_s1 + $0x28] sm:$0xff] }
   0x2   :  { %v1597_v1 = vld [vmem:[%s2574_s1 + $0x78] sm:$0xff]  ;;  %526 = vmatpush.bf16.msra.mxu0 %v1589_v0  ;;  %v1596_v3 = vld [vmem:[%s2574_s1 + $0x70] sm:$0xff]  ;;  %1789 = vmatpush.bf16.msra.mxu2 %v1589_v0  ;;  %v1595_v5 = vld [vmem:[%s2574_s1 + $0x68] sm:$0xff] }
   0x3   :  { %695 = vmatpush.bf16.msra.mxu1 %v1597_v1  ;;  %1797 = vmatpush.bf16.msra.mxu3 %v1597_v1  ;;  %v1586_v6 = vld [vmem:[%s2574_s1 + $0x20] sm:$0xff]  ;;  %v1585_v8 = vld [vmem:[%s2574_s1 + $0x18] sm:$0xff]  ;;  %v1584_v10 = vld [vmem:[%s2574_s1 + $0x10] sm:$0xff] }
   0x4   :  { %v1594_v7 = vld [vmem:[%s2574_s1 + $0x60] sm:$0xff]  ;;  %v1593_v9 = vld [vmem:[%s2574_s1 + $0x58] sm:$0xff]  ;;  %v1592_v11 = vld [vmem:[%s2574_s1 + $0x50] sm:$0xff] }
   0x5   :  { %v1583_v12 = vld [vmem:[%s2574_s1 + $0x8] sm:$0xff]  ;;  %v1582_v14 = vld [vmem:[%s2574_s1] sm:$0xff]  ;;  %v1208_v22 = vld [vmem:[%s2575_s0 + $0x10] sm:$0xf] }
   0x6   :  { %527 = vmatpush.bf16.msra.mxu0 %v1588_v2  ;;  %1790 = vmatpush.bf16.msra.mxu2 %v1588_v2  ;;  %v1591_v13 = vld [vmem:[%s2574_s1 + $0x48] sm:$0xff]  ;;  %v1590_v15 = vld [vmem:[%s2574_s1 + $0x40] sm:$0xff]  ;;  %v1521_v23 = vld [vmem:[%s2575_s0 + $0x14] sm:$0xf0] }
   0x7   :  { %696 = vmatpush.bf16.msra.mxu1 %v1596_v3  ;;  %1798 = vmatpush.bf16.msra.mxu3 %v1596_v3  ;;  %v1200_v16 = vld [vmem:[%s2575_s0] sm:$0xf]  ;;  %v1519_v17 = vld [vmem:[%s2575_s0 + $0x4] sm:$0xf0]  ;;  %v1518_v18 = vld [vmem:[%s2575_s0 + $0x4] sm:$0xf]  ;;  %v1209_v26 = vor.u32 %v1521_v23, %v1208_v22 }
   0x8   :  { %v1202_v19 = vld [vmem:[%s2575_s0 + $0x8] sm:$0xf0]  ;;  %v1201_v20 = vor.u32 %v1519_v17, %v1200_v16  ;;  %v1520_v24 = vld [vmem:[%s2575_s0 + $0x14] sm:$0xf]  ;;  %v1210_v25 = vld [vmem:[%s2575_s0 + $0x18] sm:$0xf0] }
   0x9   :  { %v1205_v21 = vor.u32 %v1518_v18, %v1202_v19  ;;  %v1213_v27 = vor.u32 %v1520_v24, %v1210_v25  ;;  %v1328_v28 = vld [vmem:[%s2575_s0 + $0x100] sm:$0xf]  ;;  %v1551_v29 = vld [vmem:[%s2575_s0 + $0x104] sm:$0xf0]  ;;  %v1550_v30 = vld [vmem:[%s2575_s0 + $0x104] sm:$0xf] }
   0xa   :  { %528 = vmatpush.bf16.msra.mxu0 %v1587_v4  ;;  %1791 = vmatpush.bf16.msra.mxu2 %v1587_v4  ;;  %v1329_v31 = vor.u32 %v1551_v29, %v1328_v28  ;;  %v1330_v32 = vld [vmem:[%s2575_s0 + $0x108] sm:$0xf0]  ;;  %v1216_v34 = vld [vmem:[%s2575_s0 + $0x20] sm:$0xf]  ;;  %v1523_v35 = vld [vmem:[%s2575_s0 + $0x24] sm:$0xf0] }
   0xb   :  { %697 = vmatpush.bf16.msra.mxu1 %v1595_v5  ;;  %1799 = vmatpush.bf16.msra.mxu3 %v1595_v5  ;;  %v1333_v33 = vor.u32 %v1550_v30, %v1330_v32  ;;  %v1522_v36 = vld [vmem:[%s2575_s0 + $0x24] sm:$0xf]  ;;  %v1218_v37 = vld [vmem:[%s2575_s0 + $0x28] sm:$0xf0]  ;;  %v1217_v38 = vor.u32 %v1523_v35, %v1216_v34  ;;  %v1336_v40 = vld [vmem:[%s2575_s0 + $0x110] sm:$0xf] }
   0xc   :  { %v1221_v39 = vor.u32 %v1522_v36, %v1218_v37  ;;  %v1553_v41 = vld [vmem:[%s2575_s0 + $0x114] sm:$0xf0]  ;;  %v1552_v42 = vld [vmem:[%s2575_s0 + $0x114] sm:$0xf]  ;;  %v1338_v44 = vld [vmem:[%s2575_s0 + $0x118] sm:$0xf0] }
   0xd   :  { %v1337_v43 = vor.u32 %v1553_v41, %v1336_v40  ;;  %v1341_v45 = vor.u32 %v1552_v42, %v1338_v44  ;;  %v1224_v46 = vld [vmem:[%s2575_s0 + $0x30] sm:$0xf]  ;;  %v1525_v47 = vld [vmem:[%s2575_s0 + $0x34] sm:$0xf0]  ;;  %v1524_v48 = vld [vmem:[%s2575_s0 + $0x34] sm:$0xf] }
   0xe   :  { %529 = vmatpush.bf16.msra.mxu0 %v1586_v6  ;;  %1792 = vmatpush.bf16.msra.mxu2 %v1586_v6  ;;  %v1226_v49 = vld [vmem:[%s2575_s0 + $0x38] sm:$0xf0]  ;;  %v1225_v50 = vor.u32 %v1525_v47, %v1224_v46  ;;  %v1344_v52 = vld [vmem:[%s2575_s0 + $0x120] sm:$0xf]  ;;  %v1555_v53 = vld [vmem:[%s2575_s0 + $0x124] sm:$0xf0] }
   0xf   :  { %698 = vmatpush.bf16.msra.mxu1 %v1594_v7  ;;  %1800 = vmatpush.bf16.msra.mxu3 %v1594_v7  ;;  %v1229_v51 = vor.u32 %v1524_v48, %v1226_v49  ;;  %v1554_v54 = vld [vmem:[%s2575_s0 + $0x124] sm:$0xf]  ;;  %v1345_v55 = vor.u32 %v1555_v53, %v1344_v52  ;;  %v1346_v56 = vld [vmem:[%s2575_s0 + $0x128] sm:$0xf0]  ;;  %v1232_v58 = vld [vmem:[%s2575_s0 + $0x40] sm:$0xf] }
  0x10   :  { %v1349_v57 = vor.u32 %v1554_v54, %v1346_v56  ;;  %v1527_v59 = vld [vmem:[%s2575_s0 + $0x44] sm:$0xf0]  ;;  %v1526_v60 = vld [vmem:[%s2575_s0 + $0x44] sm:$0xf]  ;;  %v1234_v61 = vld [vmem:[%s2575_s0 + $0x48] sm:$0xf0] }
  0x11   :  { %v1233_v62 = vor.u32 %v1527_v59, %v1232_v58  ;;  %v1237_v63 = vor.u32 %v1526_v60, %v1234_v61  ;;  %v1352_v0 = vld [vmem:[%s2575_s0 + $0x130] sm:$0xf]  ;;  %v1557_v1 = vld [vmem:[%s2575_s0 + $0x134] sm:$0xf0]  ;;  %v1556_v2 = vld [vmem:[%s2575_s0 + $0x134] sm:$0xf] }
  0x12   :  { %530 = vmatpush.bf16.msra.mxu0 %v1585_v8  ;;  %1793 = vmatpush.bf16.msra.mxu2 %v1585_v8  ;;  %v1353_v3 = vor.u32 %v1557_v1, %v1352_v0  ;;  %v1354_v4 = vld [vmem:[%s2575_s0 + $0x138] sm:$0xf0]  ;;  %v1240_v6 = vld [vmem:[%s2575_s0 + $0x50] sm:$0xf]  ;;  %v1529_v7 = vld [vmem:[%s2575_s0 + $0x54] sm:$0xf0] }
  0x13   :  { %699 = vmatpush.bf16.msra.mxu1 %v1593_v9  ;;  %1801 = vmatpush.bf16.msra.mxu3 %v1593_v9  ;;  %v1357_v5 = vor.u32 %v1556_v2, %v1354_v4  ;;  %v1528_v8 = vld [vmem:[%s2575_s0 + $0x54] sm:$0xf]  ;;  %v1242_v9 = vld [vmem:[%s2575_s0 + $0x58] sm:$0xf0]  ;;  %v1362_v16 = vld [vmem:[%s2575_s0 + $0x148] sm:$0xf0] }
  0x14   :  { %v1248_v18 = vld [vmem:[%s2575_s0 + $0x60] sm:$0xf]  ;;  %v1531_v19 = vld [vmem:[%s2575_s0 + $0x64] sm:$0xf0]  ;;  %v1368_v24 = vld [vmem:[%s2575_s0 + $0x150] sm:$0xf] }
  0x15   :  { %v1249_v22 = vor.u32 %v1531_v19, %v1248_v18  ;;  %v1561_v25 = vld [vmem:[%s2575_s0 + $0x154] sm:$0xf0]  ;;  %v1370_v28 = vld [vmem:[%s2575_s0 + $0x158] sm:$0xf0]  ;;  %v1256_v30 = vld [vmem:[%s2575_s0 + $0x70] sm:$0xf] }
  0x16   :  { %531 = vmatpush.bf16.msra.mxu0 %v1584_v10  ;;  %1794 = vmatpush.bf16.msra.mxu2 %v1584_v10  ;;  %v1241_v10 = vor.u32 %v1529_v7, %v1240_v6  ;;  %v1532_v32 = vld [vmem:[%s2575_s0 + $0x74] sm:$0xf]  ;;  %v1376_v36 = vld [vmem:[%s2575_s0 + $0x160] sm:$0xf]  ;;  %v1563_v37 = vld [vmem:[%s2575_s0 + $0x164] sm:$0xf0] }
  0x17   :  { %700 = vmatpush.bf16.msra.mxu1 %v1592_v11  ;;  %1802 = vmatpush.bf16.msra.mxu3 %v1592_v11  ;;  %v1245_v11 = vor.u32 %v1528_v8, %v1242_v9  ;;  %v1378_v40 = vld [vmem:[%s2575_s0 + $0x168] sm:$0xf0]  ;;  %v1264_v42 = vld [vmem:[%s2575_s0 + $0x80] sm:$0xf]  ;;  %v1534_v44 = vld [vmem:[%s2575_s0 + $0x84] sm:$0xf] }
  0x18   :  { %v1564_v52 = vld [vmem:[%s2575_s0 + $0x174] sm:$0xf]  ;;  %v1386_v54 = vld [vmem:[%s2575_s0 + $0x178] sm:$0xf0]  ;;  %v1272_v0 = vld [vmem:[%s2575_s0 + $0x90] sm:$0xf] }
  0x19   :  { %v1537_v1 = vld [vmem:[%s2575_s0 + $0x94] sm:$0xf0]  ;;  %v1536_v2 = vld [vmem:[%s2575_s0 + $0x94] sm:$0xf] }
  0x1a   :  { %532 = vmatpush.bf16.msra.mxu0 %v1583_v12  ;;  %1795 = vmatpush.bf16.msra.mxu2 %v1583_v12  ;;  %v1360_v12 = vld [vmem:[%s2575_s0 + $0x140] sm:$0xf] }
  0x1b   :  { %701 = vmatpush.bf16.msra.mxu1 %v1591_v13  ;;  %1803 = vmatpush.bf16.msra.mxu3 %v1591_v13  ;;  %v1559_v13 = vld [vmem:[%s2575_s0 + $0x144] sm:$0xf0] }
  0x1e   :  { %533 = vmatpush.bf16.msra.mxu0 %v1582_v14  ;;  %1796 = vmatpush.bf16.msra.mxu2 %v1582_v14  ;;  %v1558_v14 = vld [vmem:[%s2575_s0 + $0x144] sm:$0xf] }
  0x1f   :  { %702 = vmatpush.bf16.msra.mxu1 %v1590_v15  ;;  %1804 = vmatpush.bf16.msra.mxu3 %v1590_v15  ;;  %v1361_v15 = vor.u32 %v1559_v13, %v1360_v12  ;;  %v1365_v17 = vor.u32 %v1558_v14, %v1362_v16  ;;  %v1566_v12 = vld [vmem:[%s2575_s0 + $0x184] sm:$0xf]  ;;  %v1394_v16 = vld [vmem:[%s2575_s0 + $0x188] sm:$0xf0] }
  0x21   :  { %534 = vmatmul.bf16.vlgmr.msra.gmra.mxu0 %v1201_v20  ;;  %614 = vmatmul.bf16.vlgmr.msra.gmra.mxu2 %v1329_v31  ;;  %v1530_v20 = vld [vmem:[%s2575_s0 + $0x64] sm:$0xf]  ;;  %v1533_v31 = vld [vmem:[%s2575_s0 + $0x74] sm:$0xf0] }
  0x22   :  { %703 = vmatmul.bf16.vlgmr.msra.gmra.mxu1 %v1205_v21  ;;  %783 = vmatmul.bf16.vlgmr.msra.gmra.mxu3 %v1333_v33  ;;  %v1250_v21 = vld [vmem:[%s2575_s0 + $0x68] sm:$0xf0]  ;;  %v1258_v33 = vld [vmem:[%s2575_s0 + $0x78] sm:$0xf0]  ;;  %v1257_v34 = vor.u32 %v1533_v31, %v1256_v30 }
  0x23   :  { %v1253_v23 = vor.u32 %v1530_v20, %v1250_v21  ;;  %v1261_v35 = vor.u32 %v1532_v32, %v1258_v33  ;;  %v1282_v30 = vld [vmem:[%s2575_s0 + $0xa8] sm:$0xf0] }
  0x31   :  { %539 = vmatmul.bf16.gmra.mxu0 %v1209_v26  ;;  %619 = vmatmul.bf16.gmra.mxu2 %v1337_v43  ;;  %v1560_v26 = vld [vmem:[%s2575_s0 + $0x154] sm:$0xf]  ;;  %v1535_v43 = vld [vmem:[%s2575_s0 + $0x84] sm:$0xf0] }
  0x32   :  { %708 = vmatmul.bf16.gmra.mxu1 %v1213_v27  ;;  %788 = vmatmul.bf16.gmra.mxu3 %v1341_v45  ;;  %v1369_v27 = vor.u32 %v1561_v25, %v1368_v24  ;;  %v1373_v29 = vor.u32 %v1560_v26, %v1370_v28  ;;  %v1266_v45 = vld [vmem:[%s2575_s0 + $0x88] sm:$0xf0]  ;;  %v1265_v46 = vor.u32 %v1535_v43, %v1264_v42  ;;  %v1539_v28 = vld [vmem:[%s2575_s0 + $0xa4] sm:$0xf0]  ;;  %v1569_v42 = vld [vmem:[%s2575_s0 + $0x194] sm:$0xf0] }
  0x33   :  { %v1269_v47 = vor.u32 %v1534_v44, %v1266_v45  ;;  %v1568_v43 = vld [vmem:[%s2575_s0 + $0x194] sm:$0xf] }
  0x41   :  { %544 = vmatmul.bf16.gmra.mxu0 %v1217_v38  ;;  %624 = vmatmul.bf16.gmra.mxu2 %v1345_v55  ;;  %v1562_v38 = vld [vmem:[%s2575_s0 + $0x164] sm:$0xf]  ;;  %v1389_v55 = vor.u32 %v1564_v52, %v1386_v54 }
  0x42   :  { %713 = vmatmul.bf16.gmra.mxu1 %v1221_v39  ;;  %793 = vmatmul.bf16.gmra.mxu3 %v1349_v57  ;;  %v1377_v39 = vor.u32 %v1563_v37, %v1376_v36  ;;  %v1381_v41 = vor.u32 %v1562_v38, %v1378_v40 }
  0x51   :  { %549 = vmatmul.bf16.gmra.mxu0 %v1225_v50  ;;  %629 = vmatmul.bf16.gmra.mxu2 %v1353_v3  ;;  %v1384_v50 = vld [vmem:[%s2575_s0 + $0x170] sm:$0xf]  ;;  %v1274_v3 = vld [vmem:[%s2575_s0 + $0x98] sm:$0xf0] }
  0x52   :  { %718 = vmatmul.bf16.gmra.mxu1 %v1229_v51  ;;  %798 = vmatmul.bf16.gmra.mxu3 %v1357_v5  ;;  %v1565_v51 = vld [vmem:[%s2575_s0 + $0x174] sm:$0xf0]  ;;  %v1273_v5 = vor.u32 %v1537_v1, %v1272_v0  ;;  %v1277_v6 = vor.u32 %v1536_v2, %v1274_v3 }
  0x53   :  { %v1385_v53 = vor.u32 %v1565_v51, %v1384_v50 }
  0x61   :  { %554 = vmatmul.bf16.gmra.mxu0 %v1233_v62  ;;  %634 = vmatmul.bf16.gmra.mxu2 %v1361_v15 }
  0x62   :  { %723 = vmatmul.bf16.gmra.mxu1 %v1237_v63  ;;  %803 = vmatmul.bf16.gmra.mxu3 %v1365_v17  ;;  %v1397_v17 = vor.u32 %v1566_v12, %v1394_v16 }
  0x71   :  { %559 = vmatmul.bf16.gmra.mxu0 %v1241_v10  ;;  %639 = vmatmul.bf16.gmra.mxu2 %v1369_v27  ;;  %v1392_v10 = vld [vmem:[%s2575_s0 + $0x180] sm:$0xf] }
  0x72   :  { %728 = vmatmul.bf16.gmra.mxu1 %v1245_v11  ;;  %808 = vmatmul.bf16.gmra.mxu3 %v1373_v29  ;;  %v1567_v11 = vld [vmem:[%s2575_s0 + $0x184] sm:$0xf0]  ;;  %v1280_v27 = vld [vmem:[%s2575_s0 + $0xa0] sm:$0xf]  ;;  %v1538_v29 = vld [vmem:[%s2575_s0 + $0xa4] sm:$0xf] }
  0x73   :  { %v1393_v15 = vor.u32 %v1567_v11, %v1392_v10  ;;  %v1281_v32 = vor.u32 %v1539_v28, %v1280_v27  ;;  %v1285_v33 = vor.u32 %v1538_v29, %v1282_v30  ;;  %v1571_v10 = vld [vmem:[%s2575_s0 + $0x1a4] sm:$0xf0]  ;;  %v1570_v11 = vld [vmem:[%s2575_s0 + $0x1a4] sm:$0xf]  ;;  %v1296_v27 = vld [vmem:[%s2575_s0 + $0xc0] sm:$0xf] }
  0x74   :  { %v1543_v28 = vld [vmem:[%s2575_s0 + $0xc4] sm:$0xf0]  ;;  %v1542_v29 = vld [vmem:[%s2575_s0 + $0xc4] sm:$0xf]  ;;  %v1298_v30 = vld [vmem:[%s2575_s0 + $0xc8] sm:$0xf0] }
  0x81   :  { %564 = vmatmul.bf16.gmra.mxu0 %v1249_v22  ;;  %644 = vmatmul.bf16.gmra.mxu2 %v1377_v39 }
  0x82   :  { %733 = vmatmul.bf16.gmra.mxu1 %v1253_v23  ;;  %813 = vmatmul.bf16.gmra.mxu3 %v1381_v41  ;;  %v1400_v41 = vld [vmem:[%s2575_s0 + $0x190] sm:$0xf] }
  0x91   :  { %569 = vmatmul.bf16.gmra.mxu0 %v1257_v34  ;;  %649 = vmatmul.bf16.gmra.mxu2 %v1385_v53 }
  0x92   :  { %738 = vmatmul.bf16.gmra.mxu1 %v1261_v35  ;;  %818 = vmatmul.bf16.gmra.mxu3 %v1389_v55 }
  0x9e   :  { %v535_v48 = vpop.f32.mrf.mxu0 }
  0x9f   :  { %v704_v49 = vpop.f32.mrf.mxu1 }
  0xa0   :  { %v705_v56 = vadd.f32 %v704_v49, %v535_v48 }
  0xa1   :  { %574 = vmatmul.bf16.gmra.mxu0 %v1265_v46  ;;  %654 = vmatmul.bf16.gmra.mxu2 %v1393_v15  ;;  %v1401_v46 = vor.u32 %v1569_v42, %v1400_v41  ;;  %v1410_v15 = vld [vmem:[%s2575_s0 + $0x1a8] sm:$0xf0] }
  0xa2   :  { %743 = vmatmul.bf16.gmra.mxu1 %v1269_v47  ;;  %v993_v60 = vmul.f32 %v705_v56, %v705_v56  ;;  %823 = vmatmul.bf16.gmra.mxu3 %v1397_v17  ;;  %v1402_v47 = vld [vmem:[%s2575_s0 + $0x198] sm:$0xf0]  ;;  %v1413_v17 = vor.u32 %v1570_v11, %v1410_v15  ;;  %v1574_v15 = vld [vmem:[%s2575_s0 + $0x1c4] sm:$0xf] }
  0xa3   :  { %v1405_v49 = vor.u32 %v1568_v43, %v1402_v47  ;;  %v1416_v43 = vld [vmem:[%s2575_s0 + $0x1b0] sm:$0xf] }
  0xa4   :  { %v615_v22 = vpop.f32.mrf.mxu2 }
  0xa5   :  { %v784_v23 = vpop.f32.mrf.mxu3 }
  0xa6   :  { %v537_v57 = vpop.f32.mrf.mxu0  ;;  %v2124_v36 = vadd.f32 %v784_v23, %v615_v22 }
  0xa7   :  { %v706_v58 = vpop.f32.mrf.mxu1 }
  0xa8   :  { %v707_v59 = vadd.f32 %v706_v58, %v537_v57 }
  0xaa   :  { %v1601_v61 = vpack.c.bf16 %v707_v59, %v705_v56  ;;  %v995_v62 = vadd.f32 %v707_v59, %v705_v56  ;;  %v996_v63 = vmul.f32 %v707_v59, %v707_v59  ;;  %v1288_v59 = vld [vmem:[%s2575_s0 + $0xb0] sm:$0xf] }
  0xac   :  { %1602 = vst [vmem:[%s2576_s2] sm:$0xff] %v1601_v61   ;;  %v997_v4 = vadd.f32 %v996_v63, %v993_v60  ;;  %v617_v38 = vpop.f32.mrf.mxu2  ;;  %v1541_v60 = vld [vmem:[%s2575_s0 + $0xb4] sm:$0xf0]  ;;  %v1540_v61 = vld [vmem:[%s2575_s0 + $0xb4] sm:$0xf] }
  0xad   :  { %v786_v39 = vpop.f32.mrf.mxu3  ;;  %v1289_v0 = vor.u32 %v1541_v60, %v1288_v59 }
  0xae   :  { %v540_v7 = vpop.f32.mrf.mxu0  ;;  %v2126_v40 = vadd.f32 %v786_v39, %v617_v38 }
  0xaf   :  { %v709_v8 = vpop.f32.mrf.mxu1 }
  0xb0   :  { %v710_v9 = vadd.f32 %v709_v8, %v540_v7  ;;  %v1681_v48 = vpack.c.bf16 %v2126_v40, %v2124_v36 }
  0xb1   :  { %579 = vmatmul.bf16.gmra.mxu0 %v1273_v5  ;;  %659 = vmatmul.bf16.gmra.mxu2 %v1401_v46 }
  0xb2   :  { %v998_v13 = vadd.f32 %v995_v62, %v710_v9  ;;  %v999_v14 = vmul.f32 %v710_v9, %v710_v9  ;;  %748 = vmatmul.bf16.gmra.mxu1 %v1277_v6  ;;  %1773 = vst [vmem:[%s2576_s2 + $0x80] sm:$0xff] %v1681_v48   ;;  %828 = vmatmul.bf16.gmra.mxu3 %v1405_v49  ;;  %v1290_v62 = vld [vmem:[%s2575_s0 + $0xb8] sm:$0xf0] }
  0xb3   :  { %v1293_v1 = vor.u32 %v1540_v61, %v1290_v62  ;;  %v1418_v49 = vld [vmem:[%s2575_s0 + $0x1b8] sm:$0xf0]  ;;  %v1304_v61 = vld [vmem:[%s2575_s0 + $0xd0] sm:$0xf]  ;;  %v1545_v62 = vld [vmem:[%s2575_s0 + $0xd4] sm:$0xf0] }
  0xb4   :  { %v1000_v18 = vadd.f32 %v999_v14, %v997_v4  ;;  %v620_v54 = vpop.f32.mrf.mxu2 }
  0xb5   :  { %v789_v55 = vpop.f32.mrf.mxu3 }
  0xb6   :  { %v542_v19 = vpop.f32.mrf.mxu0  ;;  %v2160_v4 = vadd.f32 %v789_v55, %v620_v54 }
  0xb7   :  { %v711_v20 = vpop.f32.mrf.mxu1 }
  0xb8   :  { %v712_v21 = vadd.f32 %v711_v20, %v542_v19 }
  0xba   :  { %v1606_v24 = vpack.c.bf16 %v712_v21, %v710_v9  ;;  %v1001_v25 = vadd.f32 %v998_v13, %v712_v21  ;;  %v1002_v26 = vmul.f32 %v712_v21, %v712_v21  ;;  %v1408_v9 = vld [vmem:[%s2575_s0 + $0x1a0] sm:$0xf] }
  0xbb   :  { %v1409_v14 = vor.u32 %v1571_v10, %v1408_v9 }
  0xbc   :  { %1758 = vst [vmem:[%s2576_s2 + $0x8] sm:$0xff] %v1606_v24   ;;  %v1003_v31 = vadd.f32 %v1002_v26, %v1000_v18  ;;  %v622_v6 = vpop.f32.mrf.mxu2 }
  0xbd   :  { %v791_v7 = vpop.f32.mrf.mxu3 }
  0xbe   :  { %v545_v34 = vpop.f32.mrf.mxu0  ;;  %v2162_v8 = vadd.f32 %v791_v7, %v622_v6 }
  0xbf   :  { %v714_v35 = vpop.f32.mrf.mxu1 }
  0xc0   :  { %v715_v37 = vadd.f32 %v714_v35, %v545_v34  ;;  %v1686_v16 = vpack.c.bf16 %v2162_v8, %v2160_v4 }
  0xc1   :  { %584 = vmatmul.bf16.gmra.mxu0 %v1281_v32  ;;  %664 = vmatmul.bf16.gmra.mxu2 %v1409_v14  ;;  %v1297_v32 = vor.u32 %v1543_v28, %v1296_v27  ;;  %v1575_v14 = vld [vmem:[%s2575_s0 + $0x1c4] sm:$0xf0] }
  0xc2   :  { %v1004_v44 = vadd.f32 %v1001_v25, %v715_v37  ;;  %v1005_v45 = vmul.f32 %v715_v37, %v715_v37  ;;  %753 = vmatmul.bf16.gmra.mxu1 %v1285_v33  ;;  %1774 = vst [vmem:[%s2576_s2 + $0x88] sm:$0xff] %v1686_v16   ;;  %833 = vmatmul.bf16.gmra.mxu3 %v1413_v17 }
  0xc3   :  { %v1301_v33 = vor.u32 %v1542_v29, %v1298_v30 }
  0xc4   :  { %v1006_v50 = vadd.f32 %v1005_v45, %v1003_v31  ;;  %v625_v22 = vpop.f32.mrf.mxu2  ;;  %v1572_v45 = vld [vmem:[%s2575_s0 + $0x1b4] sm:$0xf] }
  0xc5   :  { %v794_v23 = vpop.f32.mrf.mxu3 }
  0xc6   :  { %v547_v51 = vpop.f32.mrf.mxu0 }
  0xc7   :  { %v716_v52 = vpop.f32.mrf.mxu1 }
  0xc8   :  { %v717_v53 = vadd.f32 %v716_v52, %v547_v51  ;;  %v1421_v51 = vor.u32 %v1572_v45, %v1418_v49  ;;  %v1432_v49 = vld [vmem:[%s2575_s0 + $0x1d0] sm:$0xf] }
  0xca   :  { %v1611_v56 = vpack.c.bf16 %v717_v53, %v715_v37  ;;  %v1007_v57 = vadd.f32 %v1004_v44, %v717_v53  ;;  %v1008_v58 = vmul.f32 %v717_v53, %v717_v53  ;;  %v2196_v37 = vadd.f32 %v794_v23, %v625_v22  ;;  %v1573_v44 = vld [vmem:[%s2575_s0 + $0x1b4] sm:$0xf0] }
  0xcb   :  { %v1417_v48 = vor.u32 %v1573_v44, %v1416_v43 }
  0xcc   :  { %1759 = vst [vmem:[%s2576_s2 + $0x10] sm:$0xff] %v1611_v56   ;;  %v1009_v63 = vadd.f32 %v1008_v58, %v1006_v50  ;;  %v627_v39 = vpop.f32.mrf.mxu2 }
  0xcd   :  { %v796_v41 = vpop.f32.mrf.mxu3 }
  0xce   :  { %v550_v2 = vpop.f32.mrf.mxu0  ;;  %v2198_v42 = vadd.f32 %v796_v41, %v627_v39 }
  0xcf   :  { %v719_v3 = vpop.f32.mrf.mxu1 }
  0xd0   :  { %v720_v5 = vadd.f32 %v719_v3, %v550_v2  ;;  %v1691_v50 = vpack.c.bf16 %v2198_v42, %v2196_v37  ;;  %v1305_v2 = vor.u32 %v1545_v62, %v1304_v61 }
  0xd1   :  { %589 = vmatmul.bf16.gmra.mxu0 %v1289_v0  ;;  %669 = vmatmul.bf16.gmra.mxu2 %v1417_v48  ;;  %v1306_v0 = vld [vmem:[%s2575_s0 + $0xd8] sm:$0xf0] }
  0xd2   :  { %v1010_v12 = vadd.f32 %v1007_v57, %v720_v5  ;;  %v1011_v13 = vmul.f32 %v720_v5, %v720_v5  ;;  %758 = vmatmul.bf16.gmra.mxu1 %v1293_v1  ;;  %1775 = vst [vmem:[%s2576_s2 + $0x90] sm:$0xff] %v1691_v50   ;;  %838 = vmatmul.bf16.gmra.mxu3 %v1421_v51  ;;  %v1577_v50 = vld [vmem:[%s2575_s0 + $0x1d4] sm:$0xf0]  ;;  %v1576_v51 = vld [vmem:[%s2575_s0 + $0x1d4] sm:$0xf] }
  0xd4   :  { %v1012_v18 = vadd.f32 %v1011_v13, %v1009_v63  ;;  %v630_v56 = vpop.f32.mrf.mxu2  ;;  %v1544_v63 = vld [vmem:[%s2575_s0 + $0xd4] sm:$0xf]  ;;  %v1424_v13 = vld [vmem:[%s2575_s0 + $0x1c0] sm:$0xf] }
  0xd5   :  { %v799_v57 = vpop.f32.mrf.mxu3  ;;  %v1309_v3 = vor.u32 %v1544_v63, %v1306_v0 }
  0xd6   :  { %v552_v19 = vpop.f32.mrf.mxu0  ;;  %v2232_v7 = vadd.f32 %v799_v57, %v630_v56 }
  0xd7   :  { %v721_v20 = vpop.f32.mrf.mxu1 }
  0xd8   :  { %v722_v21 = vadd.f32 %v721_v20, %v552_v19  ;;  %v1426_v19 = vld [vmem:[%s2575_s0 + $0x1c8] sm:$0xf0] }
  0xda   :  { %v1616_v24 = vpack.c.bf16 %v722_v21, %v720_v5  ;;  %v1013_v25 = vadd.f32 %v1010_v12, %v722_v21  ;;  %v1014_v26 = vmul.f32 %v722_v21, %v722_v21  ;;  %v1429_v21 = vor.u32 %v1574_v15, %v1426_v19 }
  0xdc   :  { %1760 = vst [vmem:[%s2576_s2 + $0x18] sm:$0xff] %v1616_v24   ;;  %v1015_v31 = vadd.f32 %v1014_v26, %v1012_v18  ;;  %v632_v10 = vpop.f32.mrf.mxu2  ;;  %v1425_v18 = vor.u32 %v1575_v14, %v1424_v13 }
  0xdd   :  { %v801_v11 = vpop.f32.mrf.mxu3 }
  0xde   :  { %v555_v34 = vpop.f32.mrf.mxu0  ;;  %v2234_v12 = vadd.f32 %v801_v11, %v632_v10 }
  0xdf   :  { %v724_v35 = vpop.f32.mrf.mxu1 }
  0xe0   :  { %v725_v38 = vadd.f32 %v724_v35, %v555_v34  ;;  %v1696_v20 = vpack.c.bf16 %v2234_v12, %v2232_v7  ;;  %v1314_v34 = vld [vmem:[%s2575_s0 + $0xe8] sm:$0xf0] }
  0xe1   :  { %594 = vmatmul.bf16.gmra.mxu0 %v1297_v32  ;;  %674 = vmatmul.bf16.gmra.mxu2 %v1425_v18  ;;  %v1547_v32 = vld [vmem:[%s2575_s0 + $0xe4] sm:$0xf0] }
  0xe2   :  { %v1016_v46 = vadd.f32 %v1013_v25, %v725_v38  ;;  %v1017_v47 = vmul.f32 %v725_v38, %v725_v38  ;;  %763 = vmatmul.bf16.gmra.mxu1 %v1301_v33  ;;  %1776 = vst [vmem:[%s2576_s2 + $0x98] sm:$0xff] %v1696_v20   ;;  %843 = vmatmul.bf16.gmra.mxu3 %v1429_v21  ;;  %v1546_v33 = vld [vmem:[%s2575_s0 + $0xe4] sm:$0xf]  ;;  %v1440_v21 = vld [vmem:[%s2575_s0 + $0x1e0] sm:$0xf] }
  0xe3   :  { %v1317_v39 = vor.u32 %v1546_v33, %v1314_v34 }
  0xe4   :  { %v1018_v52 = vadd.f32 %v1017_v47, %v1015_v31  ;;  %v635_v26 = vpop.f32.mrf.mxu2  ;;  %v1312_v31 = vld [vmem:[%s2575_s0 + $0xe0] sm:$0xf] }
  0xe5   :  { %v804_v27 = vpop.f32.mrf.mxu3 }
  0xe6   :  { %v557_v53 = vpop.f32.mrf.mxu0  ;;  %v2268_v44 = vadd.f32 %v804_v27, %v635_v26  ;;  %v1442_v27 = vld [vmem:[%s2575_s0 + $0x1e8] sm:$0xf0] }
  0xe7   :  { %v726_v54 = vpop.f32.mrf.mxu1 }
  0xe8   :  { %v727_v55 = vadd.f32 %v726_v54, %v557_v53  ;;  %v1433_v54 = vor.u32 %v1577_v50, %v1432_v49 }
  0xea   :  { %v1621_v58 = vpack.c.bf16 %v727_v55, %v725_v38  ;;  %v1019_v59 = vadd.f32 %v1016_v46, %v727_v55  ;;  %v1020_v60 = vmul.f32 %v727_v55, %v727_v55  ;;  %v1313_v38 = vor.u32 %v1547_v32, %v1312_v31  ;;  %v1434_v55 = vld [vmem:[%s2575_s0 + $0x1d8] sm:$0xf0] }
  0xeb   :  { %v1437_v57 = vor.u32 %v1576_v51, %v1434_v55  ;;  %v1580_v55 = vld [vmem:[%s2575_s0 + $0x1f4] sm:$0xf] }
  0xec   :  { %1761 = vst [vmem:[%s2576_s2 + $0x20] sm:$0xff] %v1621_v58   ;;  %v1021_v1 = vadd.f32 %v1020_v60, %v1018_v52  ;;  %v637_v46 = vpop.f32.mrf.mxu2 }
  0xed   :  { %v806_v47 = vpop.f32.mrf.mxu3 }
  0xee   :  { %v560_v5 = vpop.f32.mrf.mxu0  ;;  %v2270_v48 = vadd.f32 %v806_v47, %v637_v46 }
  0xef   :  { %v729_v6 = vpop.f32.mrf.mxu1 }
  0xf0   :  { %v730_v9 = vadd.f32 %v729_v6, %v560_v5  ;;  %v1701_v56 = vpack.c.bf16 %v2270_v48, %v2268_v44  ;;  %v1549_v5 = vld [vmem:[%s2575_s0 + $0xf4] sm:$0xf0]  ;;  %v1548_v6 = vld [vmem:[%s2575_s0 + $0xf4] sm:$0xf] }
  0xf1   :  { %599 = vmatmul.bf16.gmra.mxu0 %v1305_v2  ;;  %679 = vmatmul.bf16.gmra.mxu2 %v1433_v54  ;;  %v1581_v54 = vld [vmem:[%s2575_s0 + $0x1f4] sm:$0xf0] }
  0xf2   :  { %v1022_v16 = vadd.f32 %v1019_v59, %v730_v9  ;;  %v1023_v17 = vmul.f32 %v730_v9, %v730_v9  ;;  %768 = vmatmul.bf16.gmra.mxu1 %v1309_v3  ;;  %1777 = vst [vmem:[%s2576_s2 + $0xa0] sm:$0xff] %v1701_v56   ;;  %848 = vmatmul.bf16.gmra.mxu3 %v1437_v57  ;;  %v1320_v3 = vld [vmem:[%s2575_s0 + $0xf0] sm:$0xf] }
  0xf3   :  { %v1321_v11 = vor.u32 %v1549_v5, %v1320_v3 }
  0xf4   :  { %v1024_v22 = vadd.f32 %v1023_v17, %v1021_v1  ;;  %v640_v62 = vpop.f32.mrf.mxu2 }
  0xf5   :  { %v809_v63 = vpop.f32.mrf.mxu3 }
  0xf6   :  { %v562_v23 = vpop.f32.mrf.mxu0 }
  0xf7   :  { %v731_v24 = vpop.f32.mrf.mxu1 }
  0xf8   :  { %v732_v25 = vadd.f32 %v731_v24, %v562_v23  ;;  %v1578_v23 = vld [vmem:[%s2575_s0 + $0x1e4] sm:$0xf] }
  0xfa   :  { %v1626_v28 = vpack.c.bf16 %v732_v25, %v730_v9  ;;  %v1025_v29 = vadd.f32 %v1022_v16, %v732_v25  ;;  %v1026_v30 = vmul.f32 %v732_v25, %v732_v25  ;;  %v1322_v9 = vld [vmem:[%s2575_s0 + $0xf8] sm:$0xf0]  ;;  %v2304_v16 = vadd.f32 %v809_v63, %v640_v62 }
  0xfb   :  { %v1325_v13 = vor.u32 %v1548_v6, %v1322_v9 }
  0xfc   :  { %1762 = vst [vmem:[%s2576_s2 + $0x28] sm:$0xff] %v1626_v28   ;;  %v1027_v35 = vadd.f32 %v1026_v30, %v1024_v22  ;;  %v642_v18 = vpop.f32.mrf.mxu2  ;;  %v1579_v22 = vld [vmem:[%s2575_s0 + $0x1e4] sm:$0xf0] }
  0xfd   :  { %v811_v19 = vpop.f32.mrf.mxu3  ;;  %v1441_v26 = vor.u32 %v1579_v22, %v1440_v21 }
  0xfe   :  { %v565_v41 = vpop.f32.mrf.mxu0  ;;  %v2306_v20 = vadd.f32 %v811_v19, %v642_v18 }
  0xff   :  { %v734_v43 = vpop.f32.mrf.mxu1 }
 0x100   :  { %v735_v45 = vadd.f32 %v734_v43, %v565_v41  ;;  %v1706_v28 = vpack.c.bf16 %v2306_v20, %v2304_v16 }
 0x101   :  { %604 = vmatmul.bf16.gmra.mxu0 %v1313_v38  ;;  %684 = vmatmul.bf16.gmra.mxu2 %v1441_v26 }
 0x102   :  { %v1028_v52 = vadd.f32 %v1025_v29, %v735_v45  ;;  %v1029_v53 = vmul.f32 %v735_v45, %v735_v45  ;;  %773 = vmatmul.bf16.gmra.mxu1 %v1317_v39  ;;  %v1445_v29 = vor.u32 %v1578_v23, %v1442_v27  ;;  %1778 = vst [vmem:[%s2576_s2 + $0xa8] sm:$0xff] %v1706_v28  }
 0x104   :  { %v1030_v58 = vadd.f32 %v1029_v53, %v1027_v35  ;;  %853 = vmatmul.bf16.gmra.mxu3 %v1445_v29  ;;  %v645_v34 = vpop.f32.mrf.mxu2  ;;  %v1448_v53 = vld [vmem:[%s2575_s0 + $0x1f0] sm:$0xf] }
 0x105   :  { %v814_v35 = vpop.f32.mrf.mxu3 }
 0x106   :  { %v567_v59 = vpop.f32.mrf.mxu0  ;;  %v2328_v47 = vadd.f32 %v814_v35, %v645_v34 }
 0x107   :  { %v736_v60 = vpop.f32.mrf.mxu1 }
 0x108   :  { %v737_v61 = vadd.f32 %v736_v60, %v567_v59  ;;  %v1450_v59 = vld [vmem:[%s2575_s0 + $0x1f8] sm:$0xf0] }
 0x10a   :  { %v1631_v0 = vpack.c.bf16 %v737_v61, %v735_v45  ;;  %v1031_v1 = vadd.f32 %v1028_v52, %v737_v61  ;;  %v1032_v2 = vmul.f32 %v737_v61, %v737_v61  ;;  %v1453_v61 = vor.u32 %v1580_v55, %v1450_v59 }
 0x10c   :  { %1763 = vst [vmem:[%s2576_s2 + $0x30] sm:$0xff] %v1631_v0   ;;  %v1033_v10 = vadd.f32 %v1032_v2, %v1030_v58  ;;  %v647_v50 = vpop.f32.mrf.mxu2  ;;  %v1449_v58 = vor.u32 %v1581_v54, %v1448_v53 }
 0x10d   :  { %v816_v51 = vpop.f32.mrf.mxu3 }
 0x10e   :  { %v570_v14 = vpop.f32.mrf.mxu0  ;;  %v2330_v52 = vadd.f32 %v816_v51, %v647_v50 }
 0x10f   :  { %v739_v15 = vpop.f32.mrf.mxu1 }
 0x110   :  { %v740_v17 = vadd.f32 %v739_v15, %v570_v14  ;;  %v1711_v60 = vpack.c.bf16 %v2330_v52, %v2328_v47 }
 0x111   :  { %609 = vmatmul.bf16.gmra.mxu0 %v1321_v11  ;;  %689 = vmatmul.bf16.gmra.mxu2 %v1449_v58 }
 0x112   :  { %v1034_v24 = vadd.f32 %v1031_v1, %v740_v17  ;;  %v1035_v25 = vmul.f32 %v740_v17, %v740_v17  ;;  %778 = vmatmul.bf16.gmra.mxu1 %v1325_v13  ;;  %1779 = vst [vmem:[%s2576_s2 + $0xb0] sm:$0xff] %v1711_v60  }
 0x114   :  { %v1036_v30 = vadd.f32 %v1035_v25, %v1033_v10  ;;  %858 = vmatmul.bf16.gmra.mxu3 %v1453_v61  ;;  %v650_v2 = vpop.f32.mrf.mxu2 }
 0x115   :  { %v819_v3 = vpop.f32.mrf.mxu3 }
 0x116   :  { %v572_v31 = vpop.f32.mrf.mxu0  ;;  %v2352_v14 = vadd.f32 %v819_v3, %v650_v2 }
 0x117   :  { %v741_v32 = vpop.f32.mrf.mxu1 }
 0x118   :  { %v742_v33 = vadd.f32 %v741_v32, %v572_v31 }
 0x11a   :  { %v1636_v38 = vpack.c.bf16 %v742_v33, %v740_v17  ;;  %v1037_v39 = vadd.f32 %v1034_v24, %v742_v33  ;;  %v1038_v41 = vmul.f32 %v742_v33, %v742_v33 }
 0x11c   :  { %1764 = vst [vmem:[%s2576_s2 + $0x38] sm:$0xff] %v1636_v38   ;;  %v1039_v43 = vadd.f32 %v1038_v41, %v1036_v30  ;;  %v652_v17 = vpop.f32.mrf.mxu2 }
 0x11d   :  { %v821_v18 = vpop.f32.mrf.mxu3 }
 0x11e   :  { %v575_v45 = vpop.f32.mrf.mxu0  ;;  %v2354_v19 = vadd.f32 %v821_v18, %v652_v17 }
 0x11f   :  { %v744_v46 = vpop.f32.mrf.mxu1 }
 0x120   :  { %v745_v49 = vadd.f32 %v744_v46, %v575_v45  ;;  %v1716_v23 = vpack.c.bf16 %v2354_v19, %v2352_v14 }
 0x122   :  { %v1040_v56 = vadd.f32 %v1037_v39, %v745_v49  ;;  %v1041_v57 = vmul.f32 %v745_v49, %v745_v49  ;;  %1780 = vst [vmem:[%s2576_s2 + $0xb8] sm:$0xff] %v1716_v23  }
 0x124   :  { %v1042_v62 = vadd.f32 %v1041_v57, %v1039_v43  ;;  %v655_v28 = vpop.f32.mrf.mxu2 }
 0x125   :  { %v824_v29 = vpop.f32.mrf.mxu3 }
 0x126   :  { %v577_v63 = vpop.f32.mrf.mxu0  ;;  %v2368_v38 = vadd.f32 %v824_v29, %v655_v28 }
 0x127   :  { %v746_v0 = vpop.f32.mrf.mxu1 }
 0x128   :  { %v747_v1 = vadd.f32 %v746_v0, %v577_v63 }
 0x12a   :  { %v1641_v5 = vpack.c.bf16 %v747_v1, %v745_v49  ;;  %v1043_v6 = vadd.f32 %v1040_v56, %v747_v1  ;;  %v1044_v9 = vmul.f32 %v747_v1, %v747_v1 }
 0x12c   :  { %1765 = vst [vmem:[%s2576_s2 + $0x40] sm:$0xff] %v1641_v5   ;;  %v1045_v10 = vadd.f32 %v1044_v9, %v1042_v62  ;;  %v657_v39 = vpop.f32.mrf.mxu2 }
 0x12d   :  { %v826_v41 = vpop.f32.mrf.mxu3 }
 0x12e   :  { %v580_v11 = vpop.f32.mrf.mxu0  ;;  %v2370_v43 = vadd.f32 %v826_v41, %v657_v39 }
 0x12f   :  { %v749_v13 = vpop.f32.mrf.mxu1 }
 0x130   :  { %v750_v15 = vadd.f32 %v749_v13, %v580_v11  ;;  %v1721_v45 = vpack.c.bf16 %v2370_v43, %v2368_v38 }
 0x132   :  { %v1046_v21 = vadd.f32 %v1043_v6, %v750_v15  ;;  %v1047_v22 = vmul.f32 %v750_v15, %v750_v15  ;;  %1781 = vst [vmem:[%s2576_s2 + $0xc0] sm:$0xff] %v1721_v45  }
 0x134   :  { %v1048_v24 = vadd.f32 %v1047_v22, %v1045_v10  ;;  %v660_v53 = vpop.f32.mrf.mxu2 }
 0x135   :  { %v829_v54 = vpop.f32.mrf.mxu3 }
 0x136   :  { %v582_v25 = vpop.f32.mrf.mxu0  ;;  %v2386_v58 = vadd.f32 %v829_v54, %v660_v53 }
 0x137   :  { %v751_v26 = vpop.f32.mrf.mxu1 }
 0x138   :  { %v752_v27 = vadd.f32 %v751_v26, %v582_v25 }
 0x13a   :  { %v1646_v30 = vpack.c.bf16 %v752_v27, %v750_v15  ;;  %v2361_v31 = vadd.f32 %v1046_v21, %v752_v27  ;;  %v1050_v32 = vmul.f32 %v752_v27, %v752_v27 }
 0x13c   :  { %1766 = vst [vmem:[%s2576_s2 + $0x48] sm:$0xff] %v1646_v30   ;;  %v2366_v33 = vadd.f32 %v1050_v32, %v1048_v24  ;;  %v662_v59 = vpop.f32.mrf.mxu2 }
 0x13d   :  { %v831_v60 = vpop.f32.mrf.mxu3 }
 0x13e   :  { %v585_v34 = vpop.f32.mrf.mxu0  ;;  %v2388_v61 = vadd.f32 %v831_v60, %v662_v59 }
 0x13f   :  { %v754_v35 = vpop.f32.mrf.mxu1 }
 0x140   :  { %v2377_v50 = vadd.f32 %v754_v35, %v585_v34  ;;  %v1726_v62 = vpack.c.bf16 %v2388_v61, %v2386_v58 }
 0x142   :  { %1782 = vst [vmem:[%s2576_s2 + $0xc8] sm:$0xff] %v1726_v62  }
 0x144   :  { %v665_v3 = vpop.f32.mrf.mxu2 }
 0x145   :  { %v834_v5 = vpop.f32.mrf.mxu3 }
 0x146   :  { %v587_v46 = vpop.f32.mrf.mxu0  ;;  %v2398_v11 = vadd.f32 %v834_v5, %v665_v3 }
 0x147   :  { %v756_v49 = vpop.f32.mrf.mxu1 }
 0x148   :  { %v2379_v51 = vadd.f32 %v756_v49, %v587_v46 }
 0x14a   :  { %v1651_v55 = vpack.c.bf16 %v2379_v51, %v2377_v50  ;;  %v1056_v3 = vmul.f32 %v2379_v51, %v2379_v51 }
 0x14c   :  { %1767 = vst [vmem:[%s2576_s2 + $0x50] sm:$0xff] %v1651_v55   ;;  %v667_v13 = vpop.f32.mrf.mxu2 }
 0x14d   :  { %v836_v15 = vpop.f32.mrf.mxu3 }
 0x14e   :  { %v590_v56 = vpop.f32.mrf.mxu0  ;;  %v2400_v17 = vadd.f32 %v836_v15, %v667_v13 }
 0x14f   :  { %v759_v57 = vpop.f32.mrf.mxu1 }
 0x150   :  { %v760_v1 = vadd.f32 %v759_v57, %v590_v56  ;;  %v1731_v18 = vpack.c.bf16 %v2400_v17, %v2398_v11 }
 0x152   :  { %1783 = vst [vmem:[%s2576_s2 + $0xd0] sm:$0xff] %v1731_v18   ;;  %v1059_v13 = vmul.f32 %v760_v1, %v760_v1 }
 0x154   :  { %v670_v25 = vpop.f32.mrf.mxu2 }
 0x155   :  { %v839_v26 = vpop.f32.mrf.mxu3 }
 0x156   :  { %v592_v63 = vpop.f32.mrf.mxu0  ;;  %v2410_v30 = vadd.f32 %v839_v26, %v670_v25 }
 0x157   :  { %v761_v0 = vpop.f32.mrf.mxu1 }
 0x158   :  { %v762_v2 = vadd.f32 %v761_v0, %v592_v63  ;;  %v1053_v63 = vmul.f32 %v2377_v50, %v2377_v50 }
 0x15a   :  { %v1656_v6 = vpack.c.bf16 %v762_v2, %v760_v1  ;;  %v1062_v25 = vmul.f32 %v762_v2, %v762_v2 }
 0x15c   :  { %1768 = vst [vmem:[%s2576_s2 + $0x58] sm:$0xff] %v1656_v6   ;;  %v672_v32 = vpop.f32.mrf.mxu2  ;;  %v1052_v6 = vadd.f32 %v2361_v31, %v2377_v50 }
 0x15d   :  { %v841_v34 = vpop.f32.mrf.mxu3 }
 0x15e   :  { %v595_v9 = vpop.f32.mrf.mxu0  ;;  %v2412_v35 = vadd.f32 %v841_v34, %v672_v32 }
 0x15f   :  { %v764_v10 = vpop.f32.mrf.mxu1 }
 0x160   :  { %v765_v23 = vadd.f32 %v764_v10, %v595_v9  ;;  %v1736_v39 = vpack.c.bf16 %v2412_v35, %v2410_v30  ;;  %v1054_v9 = vadd.f32 %v1053_v63, %v2366_v33  ;;  %v1055_v10 = vadd.f32 %v1052_v6, %v2379_v51 }
 0x162   :  { %1784 = vst [vmem:[%s2576_s2 + $0xd8] sm:$0xff] %v1736_v39   ;;  %v1057_v15 = vadd.f32 %v1056_v3, %v1054_v9  ;;  %v1065_v50 = vmul.f32 %v765_v23, %v765_v23 }
 0x164   :  { %v675_v53 = vpop.f32.mrf.mxu2  ;;  %v1060_v32 = vadd.f32 %v1059_v13, %v1057_v15 }
 0x165   :  { %v844_v54 = vpop.f32.mrf.mxu3 }
 0x166   :  { %v597_v21 = vpop.f32.mrf.mxu0  ;;  %v2422_v59 = vadd.f32 %v844_v54, %v675_v53  ;;  %v1063_v34 = vadd.f32 %v1062_v25, %v1060_v32 }
 0x167   :  { %v766_v22 = vpop.f32.mrf.mxu1 }
 0x168   :  { %v767_v24 = vadd.f32 %v766_v22, %v597_v21  ;;  %v1058_v22 = vadd.f32 %v1055_v10, %v760_v1  ;;  %v1066_v51 = vadd.f32 %v1065_v50, %v1063_v34 }
 0x16a   :  { %v1661_v27 = vpack.c.bf16 %v767_v24, %v765_v23  ;;  %v1061_v31 = vadd.f32 %v1058_v22, %v762_v2 }
 0x16c   :  { %1769 = vst [vmem:[%s2576_s2 + $0x60] sm:$0xff] %v1661_v27   ;;  %v677_v60 = vpop.f32.mrf.mxu2  ;;  %v1064_v39 = vadd.f32 %v1061_v31, %v765_v23 }
 0x16d   :  { %v846_v62 = vpop.f32.mrf.mxu3 }
 0x16e   :  { %v600_v28 = vpop.f32.mrf.mxu0  ;;  %v2426_v0 = vadd.f32 %v846_v62, %v677_v60 }
 0x16f   :  { %v769_v29 = vpop.f32.mrf.mxu1 }
 0x170   :  { %v770_v46 = vadd.f32 %v769_v29, %v600_v28  ;;  %v1741_v5 = vpack.c.bf16 %v2426_v0, %v2422_v59 }
 0x172   :  { %1785 = vst [vmem:[%s2576_s2 + $0xe0] sm:$0xff] %v1741_v5   ;;  %v1071_v53 = vmul.f32 %v770_v46, %v770_v46 }
 0x174   :  { %v680_v28 = vpop.f32.mrf.mxu2 }
 0x175   :  { %v849_v29 = vpop.f32.mrf.mxu3 }
 0x176   :  { %v602_v41 = vpop.f32.mrf.mxu0  ;;  %v2442_v60 = vadd.f32 %v849_v29, %v680_v28 }
 0x177   :  { %v771_v45 = vpop.f32.mrf.mxu1 }
 0x178   :  { %v772_v49 = vadd.f32 %v771_v45, %v602_v41  ;;  %v1068_v41 = vmul.f32 %v767_v24, %v767_v24  ;;  %v1067_v45 = vadd.f32 %v1064_v39, %v767_v24 }
 0x17a   :  { %v1666_v55 = vpack.c.bf16 %v772_v49, %v770_v46 }
 0x17c   :  { %1770 = vst [vmem:[%s2576_s2 + $0x68] sm:$0xff] %v1666_v55   ;;  %v1069_v55 = vadd.f32 %v1068_v41, %v1066_v51  ;;  %v682_v2 = vpop.f32.mrf.mxu2  ;;  %v1092_v41 = vmul.f32 %v2126_v40, %v2126_v40 }
 0x17d   :  { %v851_v62 = vpop.f32.mrf.mxu3 }
 0x17e   :  { %v605_v56 = vpop.f32.mrf.mxu0  ;;  %v2444_v63 = vadd.f32 %v851_v62, %v682_v2  ;;  %v1072_v23 = vadd.f32 %v1071_v53, %v1069_v55  ;;  %v1095_v53 = vmul.f32 %v2160_v4, %v2160_v4 }
 0x17f   :  { %v774_v57 = vpop.f32.mrf.mxu1 }
 0x180   :  { %v775_v26 = vadd.f32 %v774_v57, %v605_v56  ;;  %v1070_v56 = vadd.f32 %v1067_v45, %v770_v46  ;;  %v1074_v57 = vmul.f32 %v772_v49, %v772_v49  ;;  %v1746_v9 = vpack.c.bf16 %v2444_v63, %v2442_v60 }
 0x182   :  { %v1073_v3 = vadd.f32 %v1070_v56, %v772_v49  ;;  %v1077_v5 = vmul.f32 %v775_v26, %v775_v26  ;;  %v1075_v24 = vadd.f32 %v1074_v57, %v1072_v23  ;;  %1786 = vst [vmem:[%s2576_s2 + $0xe8] sm:$0xff] %v1746_v9  }
 0x184   :  { %v1076_v10 = vadd.f32 %v1073_v3, %v775_v26  ;;  %v1078_v46 = vadd.f32 %v1077_v5, %v1075_v24  ;;  %v685_v29 = vpop.f32.mrf.mxu2  ;;  %v1101_v3 = vmul.f32 %v2196_v37, %v2196_v37 }
 0x186   :  { %v607_v18 = vpop.f32.mrf.mxu0 }
 0x187   :  { %v776_v21 = vpop.f32.mrf.mxu1  ;;  %v854_v32 = vpop.f32.mrf.mxu3 }
 0x188   :  { %v777_v27 = vadd.f32 %v776_v21, %v607_v18  ;;  %v2463_v55 = vadd.f32 %v854_v32, %v685_v29  ;;  %v1119_v29 = vmul.f32 %v2304_v16, %v2304_v16 }
 0x18a   :  { %v1671_v33 = vpack.c.bf16 %v777_v27, %v775_v26  ;;  %v1080_v13 = vmul.f32 %v777_v27, %v777_v27  ;;  %v1079_v15 = vadd.f32 %v1076_v10, %v777_v27  ;;  %v1089_v26 = vmul.f32 %v2124_v36, %v2124_v36 }
 0x18c   :  { %1771 = vst [vmem:[%s2576_s2 + $0x70] sm:$0xff] %v1671_v33   ;;  %v1081_v25 = vadd.f32 %v1080_v13, %v1078_v46  ;;  %v687_v56 = vpop.f32.mrf.mxu2 }
 0x18e   :  { %v610_v1 = vpop.f32.mrf.mxu0 }
 0x18f   :  { %v779_v54 = vpop.f32.mrf.mxu1  ;;  %v856_v57 = vpop.f32.mrf.mxu3 }
 0x190   :  { %v780_v6 = vadd.f32 %v779_v54, %v610_v1  ;;  %v2465_v2 = vadd.f32 %v856_v57, %v687_v56  ;;  %v1134_v56 = vmul.f32 %v2354_v19, %v2354_v19 }
 0x192   :  { %v1083_v18 = vmul.f32 %v780_v6, %v780_v6  ;;  %v1082_v28 = vadd.f32 %v1079_v15, %v780_v6 }
 0x194   :  { %v1084_v31 = vadd.f32 %v1083_v18, %v1081_v25  ;;  %v690_v46 = vpop.f32.mrf.mxu2 }
 0x196   :  { %v612_v21 = vpop.f32.mrf.mxu0 }
 0x197   :  { %v781_v22 = vpop.f32.mrf.mxu1  ;;  %v859_v15 = vpop.f32.mrf.mxu3 }
 0x198   :  { %v782_v49 = vadd.f32 %v781_v22, %v612_v21  ;;  %v1113_v22 = vmul.f32 %v2268_v44, %v2268_v44 }
 0x19a   :  { %v1676_v50 = vpack.c.bf16 %v782_v49, %v780_v6  ;;  %v1085_v33 = vadd.f32 %v1082_v28, %v782_v49  ;;  %v1086_v34 = vmul.f32 %v782_v49, %v782_v49  ;;  %v1104_v6 = vmul.f32 %v2198_v42, %v2198_v42 }
 0x19b   :  { %v1116_v28 = vmul.f32 %v2270_v48, %v2270_v48 }
 0x19c   :  { %1772 = vst [vmem:[%s2576_s2 + $0x78] sm:$0xff] %v1676_v50   ;;  %v1087_v27 = vadd.f32 %v1086_v34, %v1084_v31  ;;  %v1088_v39 = vadd.f32 %v1085_v33, %v2124_v36  ;;  %v1098_v36 = vmul.f32 %v2162_v8, %v2162_v8  ;;  %v2496_v50 = vadd.f32 %v859_v15, %v690_v46 }
 0x19e   :  { %v1090_v51 = vadd.f32 %v1089_v26, %v1087_v27  ;;  %v1091_v45 = vadd.f32 %v1088_v39, %v2126_v40  ;;  %v1751_v40 = vpack.c.bf16 %v2465_v2, %v2463_v55  ;;  %v1125_v39 = vmul.f32 %v2328_v47, %v2328_v47 }
 0x19f   :  { %v861_v33 = vpop.f32.mrf.mxu3 }
 0x1a0   :  { %v1093_v1 = vadd.f32 %v1092_v41, %v1090_v51  ;;  %v1094_v54 = vadd.f32 %v1091_v45, %v2160_v4  ;;  %1787 = vst [vmem:[%s2576_s2 + $0xf0] sm:$0xff] %v1751_v40   ;;  %v1128_v51 = vmul.f32 %v2330_v52, %v2330_v52 }
 0x1a2   :  { %v1096_v62 = vadd.f32 %v1095_v53, %v1093_v1  ;;  %v1097_v23 = vadd.f32 %v1094_v54, %v2162_v8  ;;  %v1107_v8 = vmul.f32 %v2232_v7, %v2232_v7 }
 0x1a4   :  { %v1099_v5 = vadd.f32 %v1098_v36, %v1096_v62  ;;  %v1100_v4 = vadd.f32 %v1097_v23, %v2196_v37  ;;  %v1110_v37 = vmul.f32 %v2234_v12, %v2234_v12  ;;  %v1137_v36 = vmul.f32 %v2368_v38, %v2368_v38 }
 0x1a6   :  { %v1102_v9 = vadd.f32 %v1101_v3, %v1099_v5  ;;  %v1103_v24 = vadd.f32 %v1100_v4, %v2198_v42 }
 0x1a8   :  { %v1105_v10 = vadd.f32 %v1104_v6, %v1102_v9  ;;  %v1106_v13 = vadd.f32 %v1103_v24, %v2232_v7 }
 0x1aa   :  { %v1108_v18 = vadd.f32 %v1107_v8, %v1105_v10  ;;  %v1109_v21 = vadd.f32 %v1106_v13, %v2234_v12  ;;  %v692_v12 = vpop.f32.mrf.mxu2 }
 0x1ab   :  { %v2498_v34 = vadd.f32 %v861_v33, %v692_v12  ;;  %v1176_v33 = vmul.f32 %v2465_v2, %v2465_v2 }
 0x1ac   :  { %v1111_v25 = vadd.f32 %v1110_v37, %v1108_v18  ;;  %v1112_v42 = vadd.f32 %v1109_v21, %v2268_v44  ;;  %v1122_v44 = vmul.f32 %v2306_v20, %v2306_v20 }
 0x1ae   :  { %v1114_v49 = vadd.f32 %v1113_v22, %v1111_v25  ;;  %v1115_v7 = vadd.f32 %v1112_v42, %v2270_v48  ;;  %v1756_v48 = vpack.c.bf16 %v2498_v34, %v2496_v50  ;;  %v1161_v22 = vmul.f32 %v2422_v59, %v2422_v59 }
 0x1af   :  { %v1164_v42 = vmul.f32 %v2426_v0, %v2426_v0 }
 0x1b0   :  { %v1117_v32 = vadd.f32 %v1116_v28, %v1114_v49  ;;  %v1118_v31 = vadd.f32 %v1115_v7, %v2304_v16  ;;  %1788 = vst [vmem:[%s2576_s2 + $0xf8] sm:$0xff] %v1756_v48   ;;  %v1167_v49 = vmul.f32 %v2442_v60, %v2442_v60  ;;  %v1182_v48 = vmul.f32 %v2498_v34, %v2498_v34 }
 0x1b2   :  { %v1120_v26 = vadd.f32 %v1119_v29, %v1117_v32  ;;  %v1121_v27 = vadd.f32 %v1118_v31, %v2306_v20  ;;  %v1131_v20 = vmul.f32 %v2352_v14, %v2352_v14  ;;  %v1170_v29 = vmul.f32 %v2444_v63, %v2444_v63 }
 0x1b3   :  { %v1173_v31 = vmul.f32 %v2463_v55, %v2463_v55 }
 0x1b4   :  { %v1123_v41 = vadd.f32 %v1122_v44, %v1120_v26  ;;  %v1124_v16 = vadd.f32 %v1121_v27, %v2328_v47  ;;  %v1179_v26 = vmul.f32 %v2496_v50, %v2496_v50 }
 0x1b6   :  { %v1126_v45 = vadd.f32 %v1125_v39, %v1123_v41  ;;  %v1127_v53 = vadd.f32 %v1124_v16, %v2330_v52  ;;  %v1140_v52 = vmul.f32 %v2370_v43, %v2370_v43 }
 0x1b8   :  { %v1129_v1 = vadd.f32 %v1128_v51, %v1126_v45  ;;  %v1130_v54 = vadd.f32 %v1127_v53, %v2352_v14  ;;  %v1143_v14 = vmul.f32 %v2386_v58, %v2386_v58 }
 0x1ba   :  { %v1132_v47 = vadd.f32 %v1131_v20, %v1129_v1  ;;  %v1133_v57 = vadd.f32 %v1130_v54, %v2354_v19  ;;  %v1146_v19 = vmul.f32 %v2388_v61, %v2388_v61 }
 0x1bc   :  { %v1135_v62 = vadd.f32 %v1134_v56, %v1132_v47  ;;  %v1136_v23 = vadd.f32 %v1133_v57, %v2368_v38  ;;  %v1149_v38 = vmul.f32 %v2398_v11, %v2398_v11 }
 0x1be   :  { %v1138_v40 = vadd.f32 %v1137_v36, %v1135_v62  ;;  %v1139_v3 = vadd.f32 %v1136_v23, %v2370_v43  ;;  %v1152_v43 = vmul.f32 %v2400_v17, %v2400_v17 }
 0x1c0   :  { %v1141_v5 = vadd.f32 %v1140_v52, %v1138_v40  ;;  %v1142_v4 = vadd.f32 %v1139_v3, %v2386_v58  ;;  %v1155_v58 = vmul.f32 %v2410_v30, %v2410_v30 }
 0x1c2   :  { %v1144_v6 = vadd.f32 %v1143_v14, %v1141_v5  ;;  %v1145_v9 = vadd.f32 %v1142_v4, %v2388_v61  ;;  %v1158_v61 = vmul.f32 %v2412_v35, %v2412_v35 }
 0x1c4   :  { %v1147_v24 = vadd.f32 %v1146_v19, %v1144_v6  ;;  %v1148_v8 = vadd.f32 %v1145_v9, %v2398_v11 }
 0x1c6   :  { %v1150_v10 = vadd.f32 %v1149_v38, %v1147_v24  ;;  %v1151_v13 = vadd.f32 %v1148_v8, %v2400_v17 }
 0x1c8   :  { %v1153_v46 = vadd.f32 %v1152_v43, %v1150_v10  ;;  %v1154_v15 = vadd.f32 %v1151_v13, %v2410_v30 }
 0x1ca   :  { %v1156_v37 = vadd.f32 %v1155_v58, %v1153_v46  ;;  %v1157_v18 = vadd.f32 %v1154_v15, %v2412_v35 }
 0x1cc   :  { %v1159_v21 = vadd.f32 %v1158_v61, %v1156_v37  ;;  %v1160_v11 = vadd.f32 %v1157_v18, %v2422_v59 }
 0x1ce   :  { %v1162_v25 = vadd.f32 %v1161_v22, %v1159_v21  ;;  %v1163_v17 = vadd.f32 %v1160_v11, %v2426_v0 }
 0x1d0   :  { %v1165_v28 = vadd.f32 %v1164_v42, %v1162_v25  ;;  %v1166_v30 = vadd.f32 %v1163_v17, %v2442_v60 }
 0x1d2   :  { %v1168_v7 = vadd.f32 %v1167_v49, %v1165_v28  ;;  %v1169_v35 = vadd.f32 %v1166_v30, %v2444_v63 }
 0x1d4   :  { %v1171_v32 = vadd.f32 %v1170_v29, %v1168_v7  ;;  %v1172_v59 = vadd.f32 %v1169_v35, %v2463_v55 }
 0x1d6   :  { %v1174_v12 = vadd.f32 %v1173_v31, %v1171_v32  ;;  %v1175_v0 = vadd.f32 %v1172_v59, %v2465_v2 }
 0x1d8   :  { %v1177_v44 = vadd.f32 %v1176_v33, %v1174_v12  ;;  %v1178_v60 = vadd.f32 %v1175_v0, %v2496_v50 }
 0x1da   :  { %v1180_v27 = vadd.f32 %v1179_v26, %v1177_v44  ;;  %v1181_v63 = vadd.f32 %v1178_v60, %v2498_v34 }
 0x1dc   :  { %v1183_v39 = vadd.f32 %v1182_v48, %v1180_v27  ;;  %1184 = vst [vmem:[%s2577_s3] sm:$0xff] %v1181_v63 }
 0x1de   :  { %1185 = vst [vmem:[%s2578_s4] sm:$0xff] %v1183_v39 }

// kernel: cycle_generator_forward.23
= control target key start
LH: loop header
LB: loop body
LE: loop exit
PB: predicated region body
PF: predicated region fallthrough
CT: control target
= control target key end

     0   :  { %s297_s0 = inlined_call_operand.vmem [shape: bf16[128,128], index: 0, kind: input, shape index: {}]   ;;  %s298_s1 = inlined_call_operand.vmem [shape: f32[1,128], index: 1, kind: input, shape index: {}]   ;;  %s299_s2 = inlined_call_operand.vmem [shape: f32[1,128], index: 2, kind: input, shape index: {}]   ;;  %s300_s3 = inlined_call_operand.vmem [shape: f32[128,128], index: 3, kind: output, shape index: {}]  }
   0x1   :  { %v123_v0 = vld [vmem:[%s297_s0] sm:$0xff]   ;;  %v154_v5 = vld [vmem:[%s297_s0 + $0x8] sm:$0xff]   ;;  %v155_v8 = vld [vmem:[%s297_s0 + $0x10] sm:$0xff]  }
   0x2   :  { %v189_v1 = vld [vmem:[%s298_s1] ss:$0 sm:$0xff]  ;;  %v124_v2 = vunpack.c.l.bf16 %v123_v0  ;;  %v125_v4 = vunpack.c.h.bf16 %v123_v0  ;;  %v128_v6 = vunpack.c.l.bf16 %v154_v5  ;;  %v129_v7 = vunpack.c.h.bf16 %v154_v5  ;;  %v156_v9 = vld [vmem:[%s297_s0 + $0x18] sm:$0xff]   ;;  %v158_v31 = vld [vmem:[%s297_s0 + $0x28] sm:$0xff]  }
   0x3   :  { %v194_v3 = vld [vmem:[%s299_s2] ss:$0 sm:$0xff]  ;;  %v132_v12 = vunpack.c.l.bf16 %v155_v8  ;;  %v133_v13 = vunpack.c.h.bf16 %v155_v8  ;;  %v136_v16 = vunpack.c.l.bf16 %v156_v9  ;;  %v137_v17 = vunpack.c.h.bf16 %v156_v9  ;;  %v159_v36 = vld [vmem:[%s297_s0 + $0x30] sm:$0xff]   ;;  %v160_v41 = vld [vmem:[%s297_s0 + $0x38] sm:$0xff]  }
   0x4   :  { %v50_v10 = vmul.f32 %v189_v1, %v124_v2  ;;  %v51_v11 = vmul.f32 %v189_v1, %v125_v4  ;;  %v52_v14 = vmul.f32 %v189_v1, %v128_v6  ;;  %v53_v15 = vmul.f32 %v189_v1, %v129_v7  ;;  %v157_v26 = vld [vmem:[%s297_s0 + $0x20] sm:$0xff]  }
   0x5   :  { %v54_v20 = vmul.f32 %v189_v1, %v132_v12  ;;  %v55_v21 = vmul.f32 %v189_v1, %v133_v13  ;;  %v56_v24 = vmul.f32 %v189_v1, %v136_v16  ;;  %v57_v25 = vmul.f32 %v189_v1, %v137_v17 }
   0x6   :  { %v70_v18 = vadd.f32 %v194_v3, %v50_v10  ;;  %v71_v19 = vadd.f32 %v194_v3, %v51_v11  ;;  %v72_v22 = vadd.f32 %v194_v3, %v52_v14  ;;  %v73_v23 = vadd.f32 %v194_v3, %v53_v15 }
   0x7   :  { %v74_v29 = vadd.f32 %v194_v3, %v54_v20  ;;  %v75_v30 = vadd.f32 %v194_v3, %v55_v21  ;;  %v76_v34 = vadd.f32 %v194_v3, %v56_v24  ;;  %v77_v35 = vadd.f32 %v194_v3, %v57_v25 }
   0x8   :  { %v86_v27 = vmax.f32 %v70_v18, 0.0  ;;  %v87_v28 = vmax.f32 %v71_v19, 0.0  ;;  %v88_v32 = vmax.f32 %v72_v22, 0.0  ;;  %v89_v33 = vmax.f32 %v73_v23, 0.0 }
   0x9   :  { %v90_v37 = vmax.f32 %v74_v29, 0.0  ;;  %v91_v38 = vmax.f32 %v75_v30, 0.0  ;;  %v140_v39 = vunpack.c.l.bf16 %v157_v26  ;;  %v141_v40 = vunpack.c.h.bf16 %v157_v26 }
   0xa   :  { %102 = vst [vmem:[%s300_s3] sm:$0xff] %v86_v27  ;;  %v92_v42 = vmax.f32 %v76_v34, 0.0  ;;  %v93_v43 = vmax.f32 %v77_v35, 0.0  ;;  %v144_v44 = vunpack.c.l.bf16 %v158_v31  ;;  %v145_v45 = vunpack.c.h.bf16 %v158_v31 }
   0xb   :  { %103 = vst [vmem:[%s300_s3 + $0x8] sm:$0xff] %v87_v28  ;;  %v58_v46 = vmul.f32 %v189_v1, %v140_v39  ;;  %v59_v47 = vmul.f32 %v189_v1, %v141_v40  ;;  %v148_v48 = vunpack.c.l.bf16 %v159_v36  ;;  %v149_v49 = vunpack.c.h.bf16 %v159_v36 }
   0xc   :  { %104 = vst [vmem:[%s300_s3 + $0x10] sm:$0xff] %v88_v32  ;;  %v60_v50 = vmul.f32 %v189_v1, %v144_v44  ;;  %v61_v51 = vmul.f32 %v189_v1, %v145_v45  ;;  %v152_v52 = vunpack.c.l.bf16 %v160_v41  ;;  %v153_v53 = vunpack.c.h.bf16 %v160_v41 }
   0xd   :  { %105 = vst [vmem:[%s300_s3 + $0x18] sm:$0xff] %v89_v33  ;;  %v78_v54 = vadd.f32 %v194_v3, %v58_v46  ;;  %v79_v55 = vadd.f32 %v194_v3, %v59_v47  ;;  %v62_v56 = vmul.f32 %v189_v1, %v148_v48  ;;  %v63_v57 = vmul.f32 %v189_v1, %v149_v49 }
   0xe   :  { %106 = vst [vmem:[%s300_s3 + $0x20] sm:$0xff] %v90_v37  ;;  %v80_v58 = vadd.f32 %v194_v3, %v60_v50  ;;  %v81_v59 = vadd.f32 %v194_v3, %v61_v51  ;;  %v64_v60 = vmul.f32 %v189_v1, %v152_v52  ;;  %v65_v61 = vmul.f32 %v189_v1, %v153_v53 }
   0xf   :  { %107 = vst [vmem:[%s300_s3 + $0x28] sm:$0xff] %v91_v38  ;;  %v94_v62 = vmax.f32 %v78_v54, 0.0  ;;  %v95_v63 = vmax.f32 %v79_v55, 0.0  ;;  %v82_v0 = vadd.f32 %v194_v3, %v62_v56  ;;  %v83_v2 = vadd.f32 %v194_v3, %v63_v57 }
  0x10   :  { %108 = vst [vmem:[%s300_s3 + $0x30] sm:$0xff] %v92_v42  ;;  %v96_v4 = vmax.f32 %v80_v58, 0.0  ;;  %v97_v5 = vmax.f32 %v81_v59, 0.0  ;;  %v84_v6 = vadd.f32 %v194_v3, %v64_v60  ;;  %v85_v1 = vadd.f32 %v194_v3, %v65_v61 }
  0x11   :  { %109 = vst [vmem:[%s300_s3 + $0x38] sm:$0xff] %v93_v43  ;;  %v98_v7 = vmax.f32 %v82_v0, 0.0  ;;  %v99_v8 = vmax.f32 %v83_v2, 0.0 }
  0x12   :  { %110 = vst [vmem:[%s300_s3 + $0x40] sm:$0xff] %v94_v62  ;;  %v100_v9 = vmax.f32 %v84_v6, 0.0  ;;  %v101_v3 = vmax.f32 %v85_v1, 0.0 }
  0x13   :  { %111 = vst [vmem:[%s300_s3 + $0x48] sm:$0xff] %v95_v63 }
  0x14   :  { %112 = vst [vmem:[%s300_s3 + $0x50] sm:$0xff] %v96_v4 }
  0x15   :  { %113 = vst [vmem:[%s300_s3 + $0x58] sm:$0xff] %v97_v5 }
  0x16   :  { %114 = vst [vmem:[%s300_s3 + $0x60] sm:$0xff] %v98_v7 }
  0x17   :  { %115 = vst [vmem:[%s300_s3 + $0x68] sm:$0xff] %v99_v8 }
  0x18   :  { %116 = vst [vmem:[%s300_s3 + $0x70] sm:$0xff] %v100_v9 }
  0x19   :  { %117 = vst [vmem:[%s300_s3 + $0x78] sm:$0xff] %v101_v3 }

// kernel: cycle_generator_forward.22
= control target key start
LH: loop header
LB: loop body
LE: loop exit
PB: predicated region body
PF: predicated region fallthrough
CT: control target
= control target key end

     0   :  { %s545_s1 = inlined_call_operand.vmem [shape: bf16[128,128], index: 1, kind: input, shape index: {}]   ;;  %s546_s0 = inlined_call_operand.vmem [shape: bf16[128,128], index: 0, kind: input, shape index: {}]   ;;  %s547_s2 = inlined_call_operand.vmem [shape: bf16[128,128], index: 2, kind: output, shape index: {0}]   ;;  %s548_s3 = inlined_call_operand.vmem [shape: f32[1,8,128], index: 3, kind: output, shape index: {1}]   ;;  %s549_s4 = inlined_call_operand.vmem [shape: f32[1,8,128], index: 4, kind: output, shape index: {2}]  }
   0x1   :  { %v364_v0 = vld [vmem:[%s545_s1 + $0x38] sm:$0xff]  ;;  %v363_v1 = vld [vmem:[%s545_s1 + $0x30] sm:$0xff]  ;;  %v362_v2 = vld [vmem:[%s545_s1 + $0x28] sm:$0xff] }
   0x2   :  { %142 = vmatpush.bf16.msra.mxu0 %v364_v0  ;;  %412 = vmatpush.bf16.msra.mxu1 %v364_v0  ;;  %v361_v3 = vld [vmem:[%s545_s1 + $0x20] sm:$0xff]  ;;  %v360_v4 = vld [vmem:[%s545_s1 + $0x18] sm:$0xff]  ;;  %v359_v5 = vld [vmem:[%s545_s1 + $0x10] sm:$0xff] }
   0x3   :  { %413 = vmatpush.bf16.msra.mxu2 %v364_v0  ;;  %414 = vmatpush.bf16.msra.mxu3 %v364_v0  ;;  %v358_v6 = vld [vmem:[%s545_s1 + $0x8] sm:$0xff]  ;;  %v357_v7 = vld [vmem:[%s545_s1] sm:$0xff]  ;;  %v351_v9 = vld [vmem:[%s546_s0 + $0x10] sm:$0xff] }
   0x4   :  { %v349_v8 = vld [vmem:[%s546_s0] sm:$0xff]  ;;  %v355_v11 = vld [vmem:[%s546_s0 + $0x30] sm:$0xff]  ;;  %v350_v12 = vld [vmem:[%s546_s0 + $0x8] sm:$0xff] }
   0x5   :  { %v353_v10 = vld [vmem:[%s546_s0 + $0x20] sm:$0xff]  ;;  %v352_v13 = vld [vmem:[%s546_s0 + $0x18] sm:$0xff]  ;;  %v354_v14 = vld [vmem:[%s546_s0 + $0x28] sm:$0xff] }
   0x6   :  { %143 = vmatpush.bf16.msra.mxu0 %v363_v1  ;;  %415 = vmatpush.bf16.msra.mxu1 %v363_v1  ;;  %v356_v15 = vld [vmem:[%s546_s0 + $0x38] sm:$0xff] }
   0x7   :  { %416 = vmatpush.bf16.msra.mxu2 %v363_v1  ;;  %417 = vmatpush.bf16.msra.mxu3 %v363_v1 }
   0xa   :  { %144 = vmatpush.bf16.msra.mxu0 %v362_v2  ;;  %418 = vmatpush.bf16.msra.mxu1 %v362_v2 }
   0xb   :  { %419 = vmatpush.bf16.msra.mxu2 %v362_v2  ;;  %420 = vmatpush.bf16.msra.mxu3 %v362_v2 }
   0xe   :  { %145 = vmatpush.bf16.msra.mxu0 %v361_v3  ;;  %421 = vmatpush.bf16.msra.mxu1 %v361_v3 }
   0xf   :  { %422 = vmatpush.bf16.msra.mxu2 %v361_v3  ;;  %423 = vmatpush.bf16.msra.mxu3 %v361_v3 }
  0x12   :  { %146 = vmatpush.bf16.msra.mxu0 %v360_v4  ;;  %424 = vmatpush.bf16.msra.mxu1 %v360_v4 }
  0x13   :  { %425 = vmatpush.bf16.msra.mxu2 %v360_v4  ;;  %426 = vmatpush.bf16.msra.mxu3 %v360_v4 }
  0x16   :  { %147 = vmatpush.bf16.msra.mxu0 %v359_v5  ;;  %427 = vmatpush.bf16.msra.mxu1 %v359_v5 }
  0x17   :  { %428 = vmatpush.bf16.msra.mxu2 %v359_v5  ;;  %429 = vmatpush.bf16.msra.mxu3 %v359_v5 }
  0x1a   :  { %148 = vmatpush.bf16.msra.mxu0 %v358_v6  ;;  %430 = vmatpush.bf16.msra.mxu1 %v358_v6 }
  0x1b   :  { %431 = vmatpush.bf16.msra.mxu2 %v358_v6  ;;  %432 = vmatpush.bf16.msra.mxu3 %v358_v6 }
  0x1e   :  { %149 = vmatpush.bf16.msra.mxu0 %v357_v7  ;;  %433 = vmatpush.bf16.msra.mxu1 %v357_v7 }
  0x1f   :  { %434 = vmatpush.bf16.msra.mxu2 %v357_v7  ;;  %435 = vmatpush.bf16.msra.mxu3 %v357_v7 }
  0x21   :  { %150 = vmatmul.bf16.vlgmr.msra.gmra.mxu0 %v349_v8  ;;  %160 = vmatmul.bf16.vlgmr.msra.gmra.mxu1 %v351_v9 }
  0x22   :  { %170 = vmatmul.bf16.vlgmr.msra.gmra.mxu2 %v353_v10  ;;  %180 = vmatmul.bf16.vlgmr.msra.gmra.mxu3 %v355_v11 }
  0x31   :  { %155 = vmatmul.bf16.gmra.mxu0 %v350_v12  ;;  %165 = vmatmul.bf16.gmra.mxu1 %v352_v13 }
  0x32   :  { %175 = vmatmul.bf16.gmra.mxu2 %v354_v14  ;;  %185 = vmatmul.bf16.gmra.mxu3 %v356_v15 }
  0x9e   :  { %v151_v16 = vpop.f32.mrf.mxu0  ;;  %v161_v17 = vpop.f32.mrf.mxu1 }
  0x9f   :  { %v224_v31 = vmul.f32 %v151_v16, %v151_v16  ;;  %v236_v45 = vmul.f32 %v161_v17, %v161_v17 }
  0xa5   :  { %v171_v18 = vpop.f32.mrf.mxu2  ;;  %v509_v19 = vpop.f32.mrf.mxu3 }
  0xa6   :  { %v153_v20 = vpop.f32.mrf.mxu0  ;;  %v163_v21 = vpop.f32.mrf.mxu1  ;;  %v248_v61 = vmul.f32 %v171_v18, %v171_v18  ;;  %v260_v9 = vmul.f32 %v509_v19, %v509_v19 }
  0xa7   :  { %v368_v22 = vpack.c.bf16 %v153_v20, %v151_v16  ;;  %v378_v23 = vpack.c.bf16 %v163_v21, %v161_v17  ;;  %v227_v30 = vmul.f32 %v153_v20, %v153_v20  ;;  %v226_v33 = vadd.f32 %v153_v20, %v151_v16 }
  0xa8   :  { %v239_v48 = vmul.f32 %v163_v21, %v163_v21 }
  0xa9   :  { %369 = vst [vmem:[%s547_s2] sm:$0xff] %v368_v22   ;;  %v228_v34 = vadd.f32 %v227_v30, %v224_v31 }
  0xaa   :  { %406 = vst [vmem:[%s547_s2 + $0x10] sm:$0xff] %v378_v23  }
  0xad   :  { %v173_v24 = vpop.f32.mrf.mxu2  ;;  %v183_v25 = vpop.f32.mrf.mxu3 }
  0xae   :  { %v156_v26 = vpop.f32.mrf.mxu0  ;;  %v166_v27 = vpop.f32.mrf.mxu1  ;;  %v388_v28 = vpack.c.bf16 %v173_v24, %v171_v18  ;;  %v398_v29 = vpack.c.bf16 %v183_v25, %v509_v19  ;;  %v251_v0 = vmul.f32 %v173_v24, %v173_v24  ;;  %v263_v12 = vmul.f32 %v183_v25, %v183_v25 }
  0xaf   :  { %v230_v32 = vmul.f32 %v156_v26, %v156_v26  ;;  %v229_v35 = vadd.f32 %v226_v33, %v156_v26  ;;  %v242_v51 = vmul.f32 %v166_v27, %v166_v27 }
  0xb0   :  { %408 = vst [vmem:[%s547_s2 + $0x20] sm:$0xff] %v388_v28  }
  0xb1   :  { %410 = vst [vmem:[%s547_s2 + $0x30] sm:$0xff] %v398_v29   ;;  %v231_v38 = vadd.f32 %v230_v32, %v228_v34 }
  0xb5   :  { %v176_v36 = vpop.f32.mrf.mxu2  ;;  %v186_v37 = vpop.f32.mrf.mxu3 }
  0xb6   :  { %v158_v39 = vpop.f32.mrf.mxu0  ;;  %v168_v40 = vpop.f32.mrf.mxu1  ;;  %v254_v5 = vmul.f32 %v176_v36, %v176_v36 }
  0xb7   :  { %v373_v41 = vpack.c.bf16 %v158_v39, %v156_v26  ;;  %v232_v42 = vadd.f32 %v229_v35, %v158_v39  ;;  %v233_v43 = vmul.f32 %v158_v39, %v158_v39  ;;  %v383_v44 = vpack.c.bf16 %v168_v40, %v166_v27 }
  0xb8   :  { %v245_v60 = vmul.f32 %v168_v40, %v168_v40 }
  0xb9   :  { %405 = vst [vmem:[%s547_s2 + $0x8] sm:$0xff] %v373_v41   ;;  %v234_v46 = vadd.f32 %v233_v43, %v231_v38  ;;  %v235_v47 = vadd.f32 %v232_v42, %v161_v17  ;;  %v266_v17 = vmul.f32 %v186_v37, %v186_v37 }
  0xba   :  { %407 = vst [vmem:[%s547_s2 + $0x18] sm:$0xff] %v383_v44  }
  0xbb   :  { %v237_v49 = vadd.f32 %v236_v45, %v234_v46  ;;  %v238_v50 = vadd.f32 %v235_v47, %v163_v21 }
  0xbd   :  { %v240_v52 = vadd.f32 %v239_v48, %v237_v49  ;;  %v241_v53 = vadd.f32 %v238_v50, %v166_v27  ;;  %v178_v54 = vpop.f32.mrf.mxu2  ;;  %v188_v55 = vpop.f32.mrf.mxu3 }
  0xbe   :  { %v393_v56 = vpack.c.bf16 %v178_v54, %v176_v36  ;;  %v403_v57 = vpack.c.bf16 %v188_v55, %v186_v37  ;;  %v257_v8 = vmul.f32 %v178_v54, %v178_v54  ;;  %v269_v21 = vmul.f32 %v188_v55, %v188_v55 }
  0xbf   :  { %v243_v58 = vadd.f32 %v242_v51, %v240_v52  ;;  %v244_v59 = vadd.f32 %v241_v53, %v168_v40 }
  0xc0   :  { %409 = vst [vmem:[%s547_s2 + $0x28] sm:$0xff] %v393_v56  }
  0xc1   :  { %v246_v62 = vadd.f32 %v245_v60, %v243_v58  ;;  %v247_v63 = vadd.f32 %v244_v59, %v171_v18  ;;  %411 = vst [vmem:[%s547_s2 + $0x38] sm:$0xff] %v403_v57  }
  0xc3   :  { %v249_v1 = vadd.f32 %v248_v61, %v246_v62  ;;  %v250_v2 = vadd.f32 %v247_v63, %v173_v24 }
  0xc5   :  { %v252_v3 = vadd.f32 %v251_v0, %v249_v1  ;;  %v253_v4 = vadd.f32 %v250_v2, %v176_v36 }
  0xc7   :  { %v255_v6 = vadd.f32 %v254_v5, %v252_v3  ;;  %v256_v7 = vadd.f32 %v253_v4, %v178_v54 }
  0xc9   :  { %v258_v10 = vadd.f32 %v257_v8, %v255_v6  ;;  %v259_v11 = vadd.f32 %v256_v7, %v509_v19 }
  0xcb   :  { %v261_v13 = vadd.f32 %v260_v9, %v258_v10  ;;  %v262_v14 = vadd.f32 %v259_v11, %v183_v25 }
  0xcd   :  { %v264_v15 = vadd.f32 %v263_v12, %v261_v13  ;;  %v265_v16 = vadd.f32 %v262_v14, %v186_v37 }
  0xcf   :  { %v267_v18 = vadd.f32 %v266_v17, %v264_v15  ;;  %v268_v20 = vadd.f32 %v265_v16, %v188_v55 }
  0xd1   :  { %v270_v22 = vadd.f32 %v269_v21, %v267_v18  ;;  %271 = vst [vmem:[%s548_s3] sm:$0xff] %v268_v20 }
  0xd3   :  { %272 = vst [vmem:[%s549_s4] sm:$0xff] %v270_v22 }

// kernel: cycle_generator_forward.24
= control target key start
LH: loop header
LB: loop body
LE: loop exit
PB: predicated region body
PF: predicated region fallthrough
CT: control target
= control target key end

     0   :  { %s474_s1 = inlined_call_operand.vmem [shape: bf16[256,128], index: 1, kind: input, shape index: {}]   ;;  %s475_s0 = inlined_call_operand.vmem [shape: bf16[32,256], index: 0, kind: input, shape index: {}]   ;;  %s476_s2 = inlined_call_operand.vmem [shape: bf16[32,128], index: 2, kind: output, shape index: {0}]   ;;  %s477_s3 = inlined_call_operand.vmem [shape: f32[1,8,128], index: 3, kind: output, shape index: {1}]   ;;  %s478_s4 = inlined_call_operand.vmem [shape: f32[1,8,128], index: 4, kind: output, shape index: {2}]  }
   0x1   :  { %v329_v0 = vld [vmem:[%s474_s1 + $0x38] sm:$0xff]  ;;  %v328_v2 = vld [vmem:[%s474_s1 + $0x30] sm:$0xff]  ;;  %v327_v4 = vld [vmem:[%s474_s1 + $0x28] sm:$0xff] }
   0x2   :  { %v337_v1 = vld [vmem:[%s474_s1 + $0x78] sm:$0xff]  ;;  %166 = vmatpush.bf16.msra.mxu0 %v329_v0  ;;  %349 = vmatpush.bf16.msra.mxu2 %v329_v0  ;;  %v336_v3 = vld [vmem:[%s474_s1 + $0x70] sm:$0xff]  ;;  %v335_v5 = vld [vmem:[%s474_s1 + $0x68] sm:$0xff] }
   0x3   :  { %185 = vmatpush.bf16.msra.mxu1 %v337_v1  ;;  %357 = vmatpush.bf16.msra.mxu3 %v337_v1  ;;  %v326_v6 = vld [vmem:[%s474_s1 + $0x20] sm:$0xff]  ;;  %v325_v8 = vld [vmem:[%s474_s1 + $0x18] sm:$0xff]  ;;  %v324_v10 = vld [vmem:[%s474_s1 + $0x10] sm:$0xff] }
   0x4   :  { %v334_v7 = vld [vmem:[%s474_s1 + $0x60] sm:$0xff]  ;;  %v333_v9 = vld [vmem:[%s474_s1 + $0x58] sm:$0xff]  ;;  %v332_v11 = vld [vmem:[%s474_s1 + $0x50] sm:$0xff] }
   0x5   :  { %v323_v12 = vld [vmem:[%s474_s1 + $0x8] sm:$0xff]  ;;  %v322_v14 = vld [vmem:[%s474_s1] sm:$0xff]  ;;  %v248_v18 = vld [vmem:[%s475_s0 + $0x10] sm:$0xf] }
   0x6   :  { %167 = vmatpush.bf16.msra.mxu0 %v328_v2  ;;  %350 = vmatpush.bf16.msra.mxu2 %v328_v2  ;;  %v331_v13 = vld [vmem:[%s474_s1 + $0x48] sm:$0xff]  ;;  %v330_v15 = vld [vmem:[%s474_s1 + $0x40] sm:$0xff]  ;;  %v321_v19 = vld [vmem:[%s475_s0 + $0x14] sm:$0xf0] }
   0x7   :  { %186 = vmatpush.bf16.msra.mxu1 %v336_v3  ;;  %358 = vmatpush.bf16.msra.mxu3 %v336_v3  ;;  %v240_v16 = vld [vmem:[%s475_s0] sm:$0xf]  ;;  %v319_v17 = vld [vmem:[%s475_s0 + $0x4] sm:$0xf0]  ;;  %v318_v20 = vld [vmem:[%s475_s0 + $0x4] sm:$0xf]  ;;  %v249_v25 = vor.u32 %v321_v19, %v248_v18 }
   0x8   :  { %v242_v21 = vld [vmem:[%s475_s0 + $0x8] sm:$0xf0]  ;;  %v320_v22 = vld [vmem:[%s475_s0 + $0x14] sm:$0xf]  ;;  %v250_v23 = vld [vmem:[%s475_s0 + $0x18] sm:$0xf0]  ;;  %v241_v24 = vor.u32 %v319_v17, %v240_v16 }
   0x9   :  { %v245_v26 = vor.u32 %v318_v20, %v242_v21  ;;  %v253_v27 = vor.u32 %v320_v22, %v250_v23 }
   0xa   :  { %168 = vmatpush.bf16.msra.mxu0 %v327_v4  ;;  %351 = vmatpush.bf16.msra.mxu2 %v327_v4 }
   0xb   :  { %187 = vmatpush.bf16.msra.mxu1 %v335_v5  ;;  %359 = vmatpush.bf16.msra.mxu3 %v335_v5 }
   0xe   :  { %169 = vmatpush.bf16.msra.mxu0 %v326_v6  ;;  %352 = vmatpush.bf16.msra.mxu2 %v326_v6 }
   0xf   :  { %188 = vmatpush.bf16.msra.mxu1 %v334_v7  ;;  %360 = vmatpush.bf16.msra.mxu3 %v334_v7 }
  0x12   :  { %170 = vmatpush.bf16.msra.mxu0 %v325_v8  ;;  %353 = vmatpush.bf16.msra.mxu2 %v325_v8 }
  0x13   :  { %189 = vmatpush.bf16.msra.mxu1 %v333_v9  ;;  %361 = vmatpush.bf16.msra.mxu3 %v333_v9 }
  0x16   :  { %171 = vmatpush.bf16.msra.mxu0 %v324_v10  ;;  %354 = vmatpush.bf16.msra.mxu2 %v324_v10 }
  0x17   :  { %190 = vmatpush.bf16.msra.mxu1 %v332_v11  ;;  %362 = vmatpush.bf16.msra.mxu3 %v332_v11 }
  0x1a   :  { %172 = vmatpush.bf16.msra.mxu0 %v323_v12  ;;  %355 = vmatpush.bf16.msra.mxu2 %v323_v12 }
  0x1b   :  { %191 = vmatpush.bf16.msra.mxu1 %v331_v13  ;;  %363 = vmatpush.bf16.msra.mxu3 %v331_v13 }
  0x1e   :  { %173 = vmatpush.bf16.msra.mxu0 %v322_v14  ;;  %356 = vmatpush.bf16.msra.mxu2 %v322_v14 }
  0x1f   :  { %192 = vmatpush.bf16.msra.mxu1 %v330_v15  ;;  %364 = vmatpush.bf16.msra.mxu3 %v330_v15 }
  0x21   :  { %174 = vmatmul.bf16.vlgmr.msra.gmra.mxu0 %v241_v24  ;;  %179 = vmatmul.bf16.vlgmr.msra.gmra.mxu2 %v249_v25 }
  0x22   :  { %193 = vmatmul.bf16.vlgmr.msra.gmra.mxu1 %v245_v26  ;;  %198 = vmatmul.bf16.vlgmr.msra.gmra.mxu3 %v253_v27 }
  0x9e   :  { %v175_v28 = vpop.f32.mrf.mxu0 }
  0x9f   :  { %v194_v29 = vpop.f32.mrf.mxu1 }
  0xa0   :  { %v195_v31 = vadd.f32 %v194_v29, %v175_v28 }
  0xa2   :  { %v213_v36 = vmul.f32 %v195_v31, %v195_v31 }
  0xa4   :  { %v180_v30 = vpop.f32.mrf.mxu2 }
  0xa5   :  { %v199_v32 = vpop.f32.mrf.mxu3 }
  0xa6   :  { %v177_v33 = vpop.f32.mrf.mxu0  ;;  %v200_v37 = vadd.f32 %v199_v32, %v180_v30 }
  0xa7   :  { %v196_v34 = vpop.f32.mrf.mxu1 }
  0xa8   :  { %v197_v35 = vadd.f32 %v196_v34, %v177_v33  ;;  %v219_v44 = vmul.f32 %v200_v37, %v200_v37 }
  0xaa   :  { %v341_v38 = vpack.c.bf16 %v197_v35, %v195_v31  ;;  %v215_v39 = vadd.f32 %v197_v35, %v195_v31  ;;  %v216_v40 = vmul.f32 %v197_v35, %v197_v35 }
  0xac   :  { %342 = vst [vmem:[%s476_s2] sm:$0xff] %v341_v38   ;;  %v217_v41 = vadd.f32 %v216_v40, %v213_v36  ;;  %v182_v42 = vpop.f32.mrf.mxu2  ;;  %v218_v46 = vadd.f32 %v215_v39, %v200_v37 }
  0xad   :  { %v201_v43 = vpop.f32.mrf.mxu3 }
  0xae   :  { %v202_v45 = vadd.f32 %v201_v43, %v182_v42  ;;  %v220_v48 = vadd.f32 %v219_v44, %v217_v41 }
  0xb0   :  { %v346_v47 = vpack.c.bf16 %v202_v45, %v200_v37  ;;  %v221_v49 = vadd.f32 %v218_v46, %v202_v45  ;;  %v222_v50 = vmul.f32 %v202_v45, %v202_v45 }
  0xb2   :  { %348 = vst [vmem:[%s476_s2 + $0x8] sm:$0xff] %v346_v47   ;;  %v223_v51 = vadd.f32 %v222_v50, %v220_v48 }
  0xb3   :  { %224 = vst [vmem:[%s477_s3] sm:$0xff] %v221_v49 }
  0xb4   :  { %225 = vst [vmem:[%s478_s4] sm:$0xff] %v223_v51 }

// kernel: cycle_generator_forward.25
= control target key start
LH: loop header
LB: loop body
LE: loop exit
PB: predicated region body
PF: predicated region fallthrough
CT: control target
= control target key end

     0   :  { %s105_s0 = inlined_call_operand.vmem [shape: bf16[32,128], index: 0, kind: input, shape index: {}]   ;;  %s106_s1 = inlined_call_operand.vmem [shape: f32[1,128], index: 1, kind: input, shape index: {}]   ;;  %s107_s2 = inlined_call_operand.vmem [shape: f32[1,128], index: 2, kind: input, shape index: {}]   ;;  %s108_s3 = inlined_call_operand.vmem [shape: f32[32,128], index: 3, kind: output, shape index: {}]  }
   0x1   :  { %v51_v0 = vld [vmem:[%s105_s0] sm:$0xff]   ;;  %v58_v5 = vld [vmem:[%s105_s0 + $0x8] sm:$0xff]  }
   0x2   :  { %v59_v1 = vld [vmem:[%s106_s1] ss:$0 sm:$0xff]  ;;  %v52_v2 = vunpack.c.l.bf16 %v51_v0  ;;  %v53_v4 = vunpack.c.h.bf16 %v51_v0  ;;  %v56_v6 = vunpack.c.l.bf16 %v58_v5  ;;  %v57_v7 = vunpack.c.h.bf16 %v58_v5 }
   0x3   :  { %v60_v3 = vld [vmem:[%s107_s2] ss:$0 sm:$0xff] }
   0x4   :  { %v26_v8 = vmul.f32 %v59_v1, %v52_v2  ;;  %v27_v9 = vmul.f32 %v59_v1, %v53_v4  ;;  %v28_v10 = vmul.f32 %v59_v1, %v56_v6  ;;  %v29_v11 = vmul.f32 %v59_v1, %v57_v7 }
   0x6   :  { %v34_v12 = vadd.f32 %v60_v3, %v26_v8  ;;  %v35_v13 = vadd.f32 %v60_v3, %v27_v9  ;;  %v36_v14 = vadd.f32 %v60_v3, %v28_v10  ;;  %v37_v15 = vadd.f32 %v60_v3, %v29_v11 }
   0x8   :  { %v38_v16 = vmax.f32 %v34_v12, 0.0  ;;  %v39_v17 = vmax.f32 %v35_v13, 0.0  ;;  %v40_v18 = vmax.f32 %v36_v14, 0.0  ;;  %v41_v19 = vmax.f32 %v37_v15, 0.0 }
   0xa   :  { %42 = vst [vmem:[%s108_s3] sm:$0xff] %v38_v16 }
   0xb   :  { %43 = vst [vmem:[%s108_s3 + $0x8] sm:$0xff] %v39_v17 }
   0xc   :  { %44 = vst [vmem:[%s108_s3 + $0x10] sm:$0xff] %v40_v18 }
   0xd   :  { %45 = vst [vmem:[%s108_s3 + $0x18] sm:$0xff] %v41_v19 }

// kernel: cycle_generator_forward.29
= control target key start
LH: loop header
LB: loop body
LE: loop exit
PB: predicated region body
PF: predicated region fallthrough
CT: control target
= control target key end

     0   :  { %s129_s0 = inlined_call_operand.vmem [shape: bf16[32,128], index: 0, kind: input, shape index: {}]   ;;  %s130_s1 = inlined_call_operand.vmem [shape: f32[1,128], index: 1, kind: input, shape index: {}]   ;;  %s131_s2 = inlined_call_operand.vmem [shape: f32[1,128], index: 2, kind: input, shape index: {}]   ;;  %s132_s3 = inlined_call_operand.vmem [shape: f32[32,128], index: 3, kind: input, shape index: {}]   ;;  %s133_s4 = inlined_call_operand.vmem [shape: f32[32,128], index: 4, kind: output, shape index: {}]  }
   0x1   :  { %v58_v0 = vld [vmem:[%s129_s0] sm:$0xff]   ;;  %v65_v5 = vld [vmem:[%s129_s0 + $0x8] sm:$0xff]   ;;  %v43_v16 = vld [vmem:[%s132_s3 + $0x10] sm:$0xff] }
   0x2   :  { %v66_v1 = vld [vmem:[%s130_s1] ss:$0 sm:$0xff]  ;;  %v59_v2 = vunpack.c.l.bf16 %v58_v0  ;;  %v60_v4 = vunpack.c.h.bf16 %v58_v0  ;;  %v63_v8 = vunpack.c.l.bf16 %v65_v5  ;;  %v64_v9 = vunpack.c.h.bf16 %v65_v5  ;;  %v42_v11 = vld [vmem:[%s132_s3 + $0x8] sm:$0xff]  ;;  %v44_v17 = vld [vmem:[%s132_s3 + $0x18] sm:$0xff] }
   0x3   :  { %v67_v3 = vld [vmem:[%s131_s2] ss:$0 sm:$0xff] }
   0x4   :  { %v29_v6 = vmul.f32 %v66_v1, %v59_v2  ;;  %v30_v7 = vmul.f32 %v66_v1, %v60_v4  ;;  %v41_v10 = vld [vmem:[%s132_s3] sm:$0xff]  ;;  %v31_v14 = vmul.f32 %v66_v1, %v63_v8  ;;  %v32_v15 = vmul.f32 %v66_v1, %v64_v9 }
   0x6   :  { %v37_v12 = vadd.f32 %v67_v3, %v29_v6  ;;  %v38_v13 = vadd.f32 %v67_v3, %v30_v7  ;;  %v39_v20 = vadd.f32 %v67_v3, %v31_v14  ;;  %v40_v21 = vadd.f32 %v67_v3, %v32_v15 }
   0x8   :  { %v45_v18 = vadd.f32 %v41_v10, %v37_v12  ;;  %v46_v19 = vadd.f32 %v42_v11, %v38_v13  ;;  %v47_v22 = vadd.f32 %v43_v16, %v39_v20  ;;  %v48_v23 = vadd.f32 %v44_v17, %v40_v21 }
   0xa   :  { %49 = vst [vmem:[%s133_s4] sm:$0xff] %v45_v18 }
   0xb   :  { %50 = vst [vmem:[%s133_s4 + $0x8] sm:$0xff] %v46_v19 }
   0xc   :  { %51 = vst [vmem:[%s133_s4 + $0x10] sm:$0xff] %v47_v22 }
   0xd   :  { %52 = vst [vmem:[%s133_s4 + $0x18] sm:$0xff] %v48_v23 }

// kernel: cycle_generator_forward.26
= control target key start
LH: loop header
LB: loop body
LE: loop exit
PB: predicated region body
PF: predicated region fallthrough
CT: control target
= control target key end

     0   :  { %s651_s1 = inlined_call_operand.vmem [shape: bf16[384,128], index: 1, kind: input, shape index: {}]   ;;  %s652_s0 = inlined_call_operand.vmem [shape: bf16[32,384], index: 0, kind: input, shape index: {}]   ;;  %s653_s2 = inlined_call_operand.vmem [shape: bf16[32,128], index: 2, kind: output, shape index: {0}]   ;;  %s654_s3 = inlined_call_operand.vmem [shape: f32[1,8,128], index: 3, kind: output, shape index: {1}]   ;;  %s655_s4 = inlined_call_operand.vmem [shape: f32[1,8,128], index: 4, kind: output, shape index: {2}]  }
   0x1   :  { %v470_v0 = vld [vmem:[%s651_s1 + $0x38] sm:$0xff]  ;;  %v469_v3 = vld [vmem:[%s651_s1 + $0x30] sm:$0xff]  ;;  %v468_v6 = vld [vmem:[%s651_s1 + $0x28] sm:$0xff] }
   0x2   :  { %v478_v1 = vld [vmem:[%s651_s1 + $0x78] sm:$0xff]  ;;  %246 = vmatpush.bf16.msra.mxu0 %v470_v0  ;;  %v477_v4 = vld [vmem:[%s651_s1 + $0x70] sm:$0xff]  ;;  %498 = vmatpush.bf16.msra.mxu3 %v470_v0  ;;  %v476_v7 = vld [vmem:[%s651_s1 + $0x68] sm:$0xff] }
   0x3   :  { %v486_v2 = vld [vmem:[%s651_s1 + $0xb8] sm:$0xff]  ;;  %265 = vmatpush.bf16.msra.mxu1 %v478_v1  ;;  %v485_v5 = vld [vmem:[%s651_s1 + $0xb0] sm:$0xff]  ;;  %v484_v8 = vld [vmem:[%s651_s1 + $0xa8] sm:$0xff] }
   0x4   :  { %284 = vmatpush.bf16.msra.mxu2 %v486_v2  ;;  %v467_v9 = vld [vmem:[%s651_s1 + $0x20] sm:$0xff]  ;;  %v466_v12 = vld [vmem:[%s651_s1 + $0x18] sm:$0xff]  ;;  %v465_v15 = vld [vmem:[%s651_s1 + $0x10] sm:$0xff] }
   0x5   :  { %v475_v10 = vld [vmem:[%s651_s1 + $0x60] sm:$0xff]  ;;  %v474_v13 = vld [vmem:[%s651_s1 + $0x58] sm:$0xff]  ;;  %v473_v16 = vld [vmem:[%s651_s1 + $0x50] sm:$0xff] }
   0x6   :  { %247 = vmatpush.bf16.msra.mxu0 %v469_v3  ;;  %499 = vmatpush.bf16.msra.mxu3 %v469_v3  ;;  %v483_v11 = vld [vmem:[%s651_s1 + $0xa0] sm:$0xff]  ;;  %v482_v14 = vld [vmem:[%s651_s1 + $0x98] sm:$0xff]  ;;  %v481_v17 = vld [vmem:[%s651_s1 + $0x90] sm:$0xff] }
   0x7   :  { %266 = vmatpush.bf16.msra.mxu1 %v477_v4  ;;  %v464_v18 = vld [vmem:[%s651_s1 + $0x8] sm:$0xff]  ;;  %v463_v21 = vld [vmem:[%s651_s1] sm:$0xff]  ;;  %v341_v27 = vld [vmem:[%s652_s0 + $0xc] sm:$0xf0] }
   0x8   :  { %285 = vmatpush.bf16.msra.mxu2 %v485_v5  ;;  %v472_v19 = vld [vmem:[%s651_s1 + $0x48] sm:$0xff]  ;;  %v471_v22 = vld [vmem:[%s651_s1 + $0x40] sm:$0xff]  ;;  %v459_v29 = vld [vmem:[%s652_s0 + $0x10] sm:$0xf0] }
   0x9   :  { %v480_v20 = vld [vmem:[%s651_s1 + $0x88] sm:$0xff]  ;;  %v479_v23 = vld [vmem:[%s651_s1 + $0x80] sm:$0xff]  ;;  %v351_v30 = vld [vmem:[%s652_s0 + $0x18] sm:$0xf] }
   0xa   :  { %248 = vmatpush.bf16.msra.mxu0 %v468_v6  ;;  %500 = vmatpush.bf16.msra.mxu3 %v468_v6  ;;  %v339_v24 = vld [vmem:[%s652_s0] sm:$0xf]  ;;  %v458_v25 = vld [vmem:[%s652_s0 + $0x8] sm:$0xf0]  ;;  %v457_v26 = vld [vmem:[%s652_s0 + $0x4] sm:$0xf] }
   0xb   :  { %267 = vmatpush.bf16.msra.mxu1 %v476_v7  ;;  %v347_v28 = vld [vmem:[%s652_s0 + $0x8] sm:$0xf]  ;;  %v461_v31 = vld [vmem:[%s652_s0 + $0x20] sm:$0xf0]  ;;  %v340_v32 = vor.u32 %v458_v25, %v339_v24  ;;  %v344_v33 = vor.u32 %v457_v26, %v341_v27  ;;  %v460_v36 = vld [vmem:[%s652_s0 + $0x1c] sm:$0xf] }
   0xc   :  { %286 = vmatpush.bf16.msra.mxu2 %v484_v8  ;;  %v348_v34 = vor.u32 %v459_v29, %v347_v28  ;;  %v352_v35 = vor.u32 %v461_v31, %v351_v30  ;;  %v353_v37 = vld [vmem:[%s652_s0 + $0x24] sm:$0xf0]  ;;  %v359_v38 = vld [vmem:[%s652_s0 + $0x20] sm:$0xf]  ;;  %v462_v39 = vld [vmem:[%s652_s0 + $0x28] sm:$0xf0] }
   0xd   :  { %v356_v40 = vor.u32 %v460_v36, %v353_v37  ;;  %v360_v41 = vor.u32 %v462_v39, %v359_v38 }
   0xe   :  { %249 = vmatpush.bf16.msra.mxu0 %v467_v9  ;;  %501 = vmatpush.bf16.msra.mxu3 %v467_v9 }
   0xf   :  { %268 = vmatpush.bf16.msra.mxu1 %v475_v10 }
  0x10   :  { %287 = vmatpush.bf16.msra.mxu2 %v483_v11 }
  0x12   :  { %250 = vmatpush.bf16.msra.mxu0 %v466_v12  ;;  %502 = vmatpush.bf16.msra.mxu3 %v466_v12 }
  0x13   :  { %269 = vmatpush.bf16.msra.mxu1 %v474_v13 }
  0x14   :  { %288 = vmatpush.bf16.msra.mxu2 %v482_v14 }
  0x16   :  { %251 = vmatpush.bf16.msra.mxu0 %v465_v15  ;;  %503 = vmatpush.bf16.msra.mxu3 %v465_v15 }
  0x17   :  { %270 = vmatpush.bf16.msra.mxu1 %v473_v16 }
  0x18   :  { %289 = vmatpush.bf16.msra.mxu2 %v481_v17 }
  0x1a   :  { %252 = vmatpush.bf16.msra.mxu0 %v464_v18  ;;  %504 = vmatpush.bf16.msra.mxu3 %v464_v18 }
  0x1b   :  { %271 = vmatpush.bf16.msra.mxu1 %v472_v19 }
  0x1c   :  { %290 = vmatpush.bf16.msra.mxu2 %v480_v20 }
  0x1e   :  { %253 = vmatpush.bf16.msra.mxu0 %v463_v21  ;;  %505 = vmatpush.bf16.msra.mxu3 %v463_v21 }
  0x1f   :  { %272 = vmatpush.bf16.msra.mxu1 %v471_v22 }
  0x20   :  { %291 = vmatpush.bf16.msra.mxu2 %v479_v23 }
  0x21   :  { %254 = vmatmul.bf16.vlgmr.msra.gmra.mxu0 %v340_v32  ;;  %259 = vmatmul.bf16.vlgmr.msra.gmra.mxu3 %v352_v35 }
  0x22   :  { %273 = vmatmul.bf16.vlgmr.msra.gmra.mxu1 %v344_v33 }
  0x23   :  { %292 = vmatmul.bf16.vlgmr.msra.gmra.mxu2 %v348_v34 }
  0x32   :  { %278 = vmatmul.bf16.gmra.mxu1 %v356_v40 }
  0x33   :  { %297 = vmatmul.bf16.gmra.mxu2 %v360_v41 }
  0x9e   :  { %v255_v43 = vpop.f32.mrf.mxu0 }
  0x9f   :  { %v274_v42 = vpop.f32.mrf.mxu1 }
  0xa0   :  { %v275_v47 = vadd.f32 %v274_v42, %v255_v43 }
  0xa4   :  { %v260_v54 = vpop.f32.mrf.mxu3 }
  0xa6   :  { %v293_v44 = vpop.f32.mrf.mxu2  ;;  %v257_v46 = vpop.f32.mrf.mxu0 }
  0xa7   :  { %v276_v45 = vpop.f32.mrf.mxu1  ;;  %v294_v50 = vadd.f32 %v293_v44, %v275_v47 }
  0xa8   :  { %v277_v48 = vadd.f32 %v276_v45, %v257_v46 }
  0xa9   :  { %v312_v61 = vmul.f32 %v294_v50, %v294_v50 }
  0xac   :  { %v262_v60 = vpop.f32.mrf.mxu3 }
  0xae   :  { %v295_v49 = vpop.f32.mrf.mxu2 }
  0xaf   :  { %v296_v51 = vadd.f32 %v295_v49, %v277_v48  ;;  %v279_v52 = vpop.f32.mrf.mxu1 }
  0xb0   :  { %v280_v55 = vadd.f32 %v279_v52, %v260_v54 }
  0xb1   :  { %v490_v53 = vpack.c.bf16 %v296_v51, %v294_v50  ;;  %v315_v59 = vmul.f32 %v296_v51, %v296_v51  ;;  %v314_v62 = vadd.f32 %v296_v51, %v294_v50 }
  0xb3   :  { %491 = vst [vmem:[%s653_s2] sm:$0xff] %v490_v53   ;;  %v316_v2 = vadd.f32 %v315_v59, %v312_v61 }
  0xb6   :  { %v298_v56 = vpop.f32.mrf.mxu2 }
  0xb7   :  { %v299_v57 = vadd.f32 %v298_v56, %v280_v55  ;;  %v281_v58 = vpop.f32.mrf.mxu1 }
  0xb8   :  { %v282_v0 = vadd.f32 %v281_v58, %v262_v60 }
  0xb9   :  { %v318_v63 = vmul.f32 %v299_v57, %v299_v57  ;;  %v317_v3 = vadd.f32 %v314_v62, %v299_v57 }
  0xbb   :  { %v319_v5 = vadd.f32 %v318_v63, %v316_v2 }
  0xbe   :  { %v300_v1 = vpop.f32.mrf.mxu2 }
  0xbf   :  { %v301_v4 = vadd.f32 %v300_v1, %v282_v0 }
  0xc1   :  { %v495_v6 = vpack.c.bf16 %v301_v4, %v299_v57  ;;  %v320_v7 = vadd.f32 %v317_v3, %v301_v4  ;;  %v321_v8 = vmul.f32 %v301_v4, %v301_v4 }
  0xc3   :  { %497 = vst [vmem:[%s653_s2 + $0x8] sm:$0xff] %v495_v6   ;;  %v322_v9 = vadd.f32 %v321_v8, %v319_v5 }
  0xc4   :  { %323 = vst [vmem:[%s654_s3] sm:$0xff] %v320_v7 }
  0xc5   :  { %324 = vst [vmem:[%s655_s4] sm:$0xff] %v322_v9 }

// kernel: tile.23
= control target key start
LH: loop header
LB: loop body
LE: loop exit
PB: predicated region body
PF: predicated region fallthrough
CT: control target
= control target key end

     0   :  { %s22_s0 = inlined_call_operand.vmem [shape: f32[16], index: 0, kind: input, shape index: {}]   ;;  %s23_s1 = inlined_call_operand.vmem [shape: f32[4,16], index: 1, kind: output, shape index: {}]  }
   0x1   :  { %v4_v0 = vld [vmem:[%s22_s0] ss:$0 sm:$0xff] }
   0x2   :  { %5 = vst [vmem:[%s23_s1] sm:$0xf] %v4_v0 }

// kernel: cycle_generator_forward.34
= control target key start
LH: loop header
LB: loop body
LE: loop exit
PB: predicated region body
PF: predicated region fallthrough
CT: control target
= control target key end

     0   :  { %s283_s1 = inlined_call_operand.vmem [shape: bf16[128,128], index: 1, kind: input, shape index: {}]   ;;  %s284_s0 = inlined_call_operand.vmem [shape: bf16[32,128], index: 0, kind: input, shape index: {}]   ;;  %s285_s2 = inlined_call_operand.vmem [shape: bf16[32,128], index: 2, kind: output, shape index: {0}]   ;;  %s286_s3 = inlined_call_operand.vmem [shape: f32[1,8,128], index: 3, kind: output, shape index: {1}]   ;;  %s287_s4 = inlined_call_operand.vmem [shape: f32[1,8,128], index: 4, kind: output, shape index: {2}]  }
   0x1   :  { %v196_v0 = vld [vmem:[%s283_s1 + $0x38] sm:$0xff]  ;;  %v195_v1 = vld [vmem:[%s283_s1 + $0x30] sm:$0xff]  ;;  %v194_v2 = vld [vmem:[%s283_s1 + $0x28] sm:$0xff] }
   0x2   :  { %94 = vmatpush.bf16.msra.mxu0 %v196_v0  ;;  %208 = vmatpush.bf16.msra.mxu1 %v196_v0  ;;  %v193_v3 = vld [vmem:[%s283_s1 + $0x20] sm:$0xff]  ;;  %v192_v4 = vld [vmem:[%s283_s1 + $0x18] sm:$0xff]  ;;  %v191_v5 = vld [vmem:[%s283_s1 + $0x10] sm:$0xff] }
   0x3   :  { %v190_v6 = vld [vmem:[%s283_s1 + $0x8] sm:$0xff]  ;;  %v189_v7 = vld [vmem:[%s283_s1] sm:$0xff] }
   0x4   :  { %v187_v8 = vld [vmem:[%s284_s0] sm:$0xff]  ;;  %v188_v9 = vld [vmem:[%s284_s0 + $0x8] sm:$0xff] }
   0x6   :  { %95 = vmatpush.bf16.msra.mxu0 %v195_v1  ;;  %209 = vmatpush.bf16.msra.mxu1 %v195_v1 }
   0xa   :  { %96 = vmatpush.bf16.msra.mxu0 %v194_v2  ;;  %210 = vmatpush.bf16.msra.mxu1 %v194_v2 }
   0xe   :  { %97 = vmatpush.bf16.msra.mxu0 %v193_v3  ;;  %211 = vmatpush.bf16.msra.mxu1 %v193_v3 }
  0x12   :  { %98 = vmatpush.bf16.msra.mxu0 %v192_v4  ;;  %212 = vmatpush.bf16.msra.mxu1 %v192_v4 }
  0x16   :  { %99 = vmatpush.bf16.msra.mxu0 %v191_v5  ;;  %213 = vmatpush.bf16.msra.mxu1 %v191_v5 }
  0x1a   :  { %100 = vmatpush.bf16.msra.mxu0 %v190_v6  ;;  %214 = vmatpush.bf16.msra.mxu1 %v190_v6 }
  0x1e   :  { %101 = vmatpush.bf16.msra.mxu0 %v189_v7  ;;  %215 = vmatpush.bf16.msra.mxu1 %v189_v7 }
  0x21   :  { %102 = vmatmul.bf16.vlgmr.msra.gmra.mxu0 %v187_v8  ;;  %107 = vmatmul.bf16.vlgmr.msra.gmra.mxu1 %v188_v9 }
  0x9e   :  { %v103_v10 = vpop.f32.mrf.mxu0  ;;  %v108_v11 = vpop.f32.mrf.mxu1 }
  0x9f   :  { %v122_v12 = vmul.f32 %v103_v10, %v103_v10  ;;  %v128_v19 = vmul.f32 %v108_v11, %v108_v11 }
  0xa6   :  { %v105_v13 = vpop.f32.mrf.mxu0  ;;  %v110_v14 = vpop.f32.mrf.mxu1 }
  0xa7   :  { %v200_v15 = vpack.c.bf16 %v105_v13, %v103_v10  ;;  %v124_v16 = vadd.f32 %v105_v13, %v103_v10  ;;  %v125_v17 = vmul.f32 %v105_v13, %v105_v13  ;;  %v205_v18 = vpack.c.bf16 %v110_v14, %v108_v11 }
  0xa8   :  { %v131_v24 = vmul.f32 %v110_v14, %v110_v14 }
  0xa9   :  { %201 = vst [vmem:[%s285_s2] sm:$0xff] %v200_v15   ;;  %v126_v20 = vadd.f32 %v125_v17, %v122_v12  ;;  %v127_v21 = vadd.f32 %v124_v16, %v108_v11 }
  0xaa   :  { %207 = vst [vmem:[%s285_s2 + $0x8] sm:$0xff] %v205_v18  }
  0xab   :  { %v129_v22 = vadd.f32 %v128_v19, %v126_v20  ;;  %v130_v23 = vadd.f32 %v127_v21, %v110_v14 }
  0xad   :  { %v132_v25 = vadd.f32 %v131_v24, %v129_v22  ;;  %133 = vst [vmem:[%s286_s3] sm:$0xff] %v130_v23 }
  0xaf   :  { %134 = vst [vmem:[%s287_s4] sm:$0xff] %v132_v25 }

// kernel: tile.33
= control target key start
LH: loop header
LB: loop body
LE: loop exit
PB: predicated region body
PF: predicated region fallthrough
CT: control target
= control target key end

     0   :  { %s22_s0 = inlined_call_operand.vmem [shape: f32[8], index: 0, kind: input, shape index: {}]   ;;  %s23_s1 = inlined_call_operand.vmem [shape: f32[4,8], index: 1, kind: output, shape index: {}]  }
   0x1   :  { %v4_v0 = vld [vmem:[%s22_s0] ss:$0 sm:$0xff] }
   0x2   :  { %5 = vst [vmem:[%s23_s1] sm:$0xf] %v4_v0 }

// kernel: cycle_generator_forward.39
= control target key start
LH: loop header
LB: loop body
LE: loop exit
PB: predicated region body
PF: predicated region fallthrough
CT: control target
= control target key end

     0   :  { %s1478_s0 = inlined_call_operand.vmem [shape: bf16[512,128], index: 0, kind: input, shape index: {}]   ;;  %s1479_s1 = inlined_call_operand.vmem [shape: f32[1,128], index: 1, kind: input, shape index: {}]   ;;  %s1480_s2 = inlined_call_operand.vmem [shape: f32[1,128], index: 2, kind: input, shape index: {}]   ;;  %s1481_s3 = inlined_call_operand.vmem [shape: f32[512,128], index: 3, kind: input, shape index: {}]   ;;  %s1482_s4 = inlined_call_operand.vmem [shape: f32[512,128], index: 4, kind: output, shape index: {}]  }
   0x1   :  { %v542_v0 = vld [vmem:[%s1478_s0] sm:$0xff]   ;;  %v669_v5 = vld [vmem:[%s1478_s0 + $0x8] sm:$0xff]   ;;  %v670_v10 = vld [vmem:[%s1478_s0 + $0x10] sm:$0xff]  }
   0x2   :  { %v863_v1 = vld [vmem:[%s1479_s1] ss:$0 sm:$0xff]  ;;  %v543_v2 = vunpack.c.l.bf16 %v542_v0  ;;  %v544_v4 = vunpack.c.h.bf16 %v542_v0  ;;  %v547_v8 = vunpack.c.l.bf16 %v669_v5  ;;  %v548_v9 = vunpack.c.h.bf16 %v669_v5  ;;  %v282_v12 = vld [vmem:[%s1481_s3 + $0x8] sm:$0xff]  ;;  %v671_v15 = vld [vmem:[%s1478_s0 + $0x18] sm:$0xff]  }
   0x3   :  { %v868_v3 = vld [vmem:[%s1480_s2] ss:$0 sm:$0xff]  ;;  %v551_v13 = vunpack.c.l.bf16 %v670_v10  ;;  %v552_v14 = vunpack.c.h.bf16 %v670_v10  ;;  %v283_v20 = vld [vmem:[%s1481_s3 + $0x10] sm:$0xff]  ;;  %v284_v21 = vld [vmem:[%s1481_s3 + $0x18] sm:$0xff]  ;;  %v555_v24 = vunpack.c.l.bf16 %v671_v15  ;;  %v556_v25 = vunpack.c.h.bf16 %v671_v15 }
   0x4   :  { %v149_v6 = vmul.f32 %v863_v1, %v543_v2  ;;  %v150_v7 = vmul.f32 %v863_v1, %v544_v4  ;;  %v281_v11 = vld [vmem:[%s1481_s3] sm:$0xff]  ;;  %v151_v18 = vmul.f32 %v863_v1, %v547_v8  ;;  %v152_v19 = vmul.f32 %v863_v1, %v548_v9  ;;  %v286_v32 = vld [vmem:[%s1481_s3 + $0x28] sm:$0xff]  ;;  %v287_v39 = vld [vmem:[%s1481_s3 + $0x30] sm:$0xff] }
   0x5   :  { %v153_v22 = vmul.f32 %v863_v1, %v551_v13  ;;  %v154_v23 = vmul.f32 %v863_v1, %v552_v14  ;;  %v672_v26 = vld [vmem:[%s1478_s0 + $0x20] sm:$0xff]   ;;  %v155_v35 = vmul.f32 %v863_v1, %v555_v24  ;;  %v156_v36 = vmul.f32 %v863_v1, %v556_v25  ;;  %v673_v41 = vld [vmem:[%s1478_s0 + $0x28] sm:$0xff]   ;;  %v288_v45 = vld [vmem:[%s1481_s3 + $0x38] sm:$0xff] }
   0x6   :  { %v217_v16 = vadd.f32 %v868_v3, %v149_v6  ;;  %v218_v17 = vadd.f32 %v868_v3, %v150_v7  ;;  %v219_v29 = vadd.f32 %v868_v3, %v151_v18  ;;  %v220_v30 = vadd.f32 %v868_v3, %v152_v19  ;;  %v285_v31 = vld [vmem:[%s1481_s3 + $0x20] sm:$0xff]  ;;  %v674_v49 = vld [vmem:[%s1478_s0 + $0x30] sm:$0xff]   ;;  %v290_v57 = vld [vmem:[%s1481_s3 + $0x48] sm:$0xff] }
   0x7   :  { %v221_v33 = vadd.f32 %v868_v3, %v153_v22  ;;  %v222_v34 = vadd.f32 %v868_v3, %v154_v23  ;;  %v559_v40 = vunpack.c.l.bf16 %v672_v26  ;;  %v223_v44 = vadd.f32 %v868_v3, %v155_v35  ;;  %v289_v51 = vld [vmem:[%s1481_s3 + $0x40] sm:$0xff]  ;;  %v675_v61 = vld [vmem:[%s1478_s0 + $0x38] sm:$0xff]   ;;  %v291_v2 = vld [vmem:[%s1481_s3 + $0x50] sm:$0xff] }
   0x8   :  { %v345_v27 = vadd.f32 %v281_v11, %v217_v16  ;;  %v346_v28 = vadd.f32 %v282_v12, %v218_v17  ;;  %v347_v37 = vadd.f32 %v283_v20, %v219_v29  ;;  %v348_v38 = vadd.f32 %v284_v21, %v220_v30  ;;  %v292_v4 = vld [vmem:[%s1481_s3 + $0x58] sm:$0xff]  ;;  %v676_v10 = vld [vmem:[%s1478_s0 + $0x40] sm:$0xff]   ;;  %v294_v20 = vld [vmem:[%s1481_s3 + $0x68] sm:$0xff] }
   0x9   :  { %v349_v42 = vadd.f32 %v285_v31, %v221_v33  ;;  %v350_v43 = vadd.f32 %v286_v32, %v222_v34  ;;  %v224_v46 = vadd.f32 %v868_v3, %v156_v36  ;;  %v157_v47 = vmul.f32 %v863_v1, %v559_v40  ;;  %v293_v13 = vld [vmem:[%s1481_s3 + $0x60] sm:$0xff]  ;;  %v295_v29 = vld [vmem:[%s1481_s3 + $0x70] sm:$0xff]  ;;  %v296_v35 = vld [vmem:[%s1481_s3 + $0x78] sm:$0xff] }
   0xa   :  { %702 = vtanh.f32 %v345_v27  ;;  %v560_v48 = vunpack.c.h.bf16 %v672_v26  ;;  %v351_v50 = vadd.f32 %v287_v39, %v223_v44  ;;  %v563_v52 = vunpack.c.l.bf16 %v673_v41  ;;  %v677_v26 = vld [vmem:[%s1478_s0 + $0x48] sm:$0xff]   ;;  %v297_v40 = vld [vmem:[%s1481_s3 + $0x80] sm:$0xff] }
   0xb   :  { %704 = vtanh.f32 %v346_v28  ;;  %v564_v53 = vunpack.c.h.bf16 %v673_v41  ;;  %v352_v54 = vadd.f32 %v288_v45, %v224_v46  ;;  %v225_v55 = vadd.f32 %v868_v3, %v157_v47  ;;  %v298_v46 = vld [vmem:[%s1481_s3 + $0x88] sm:$0xff] }
   0xc   :  { %706 = vtanh.f32 %v347_v37  ;;  %v158_v56 = vmul.f32 %v863_v1, %v560_v48  ;;  %v159_v58 = vmul.f32 %v863_v1, %v563_v52  ;;  %v567_v60 = vunpack.c.l.bf16 %v674_v49  ;;  %v678_v37 = vld [vmem:[%s1478_s0 + $0x50] sm:$0xff]   ;;  %v679_v52 = vld [vmem:[%s1478_s0 + $0x58] sm:$0xff]  }
   0xd   :  { %708 = vtanh.f32 %v348_v38  ;;  %v160_v59 = vmul.f32 %v863_v1, %v564_v53  ;;  %v353_v63 = vadd.f32 %v289_v51, %v225_v55  ;;  %v568_v5 = vunpack.c.h.bf16 %v674_v49  ;;  %v299_v55 = vld [vmem:[%s1481_s3 + $0x90] sm:$0xff] }
   0xe   :  { %710 = vtanh.f32 %v349_v42  ;;  %v226_v0 = vadd.f32 %v868_v3, %v158_v56  ;;  %v227_v7 = vadd.f32 %v868_v3, %v159_v58  ;;  %v161_v9 = vmul.f32 %v863_v1, %v567_v60 }
   0xf   :  { %712 = vtanh.f32 %v350_v43  ;;  %v228_v8 = vadd.f32 %v868_v3, %v160_v59  ;;  %v162_v14 = vmul.f32 %v863_v1, %v568_v5  ;;  %v571_v15 = vunpack.c.l.bf16 %v675_v61 }
  0x10   :  { %v703_v62 = vpop.eup %702  ;;  %714 = vtanh.f32 %v351_v50  ;;  %v354_v12 = vadd.f32 %v290_v57, %v226_v0  ;;  %v355_v17 = vadd.f32 %v291_v2, %v227_v7  ;;  %v229_v19 = vadd.f32 %v868_v3, %v161_v9 }
  0x11   :  { %v705_v6 = vpop.eup %704  ;;  %473 = vst [vmem:[%s1482_s4] sm:$0xff] %v703_v62  ;;  %716 = vtanh.f32 %v352_v54  ;;  %v356_v18 = vadd.f32 %v292_v4, %v228_v8  ;;  %v572_v21 = vunpack.c.h.bf16 %v675_v61  ;;  %v230_v23 = vadd.f32 %v868_v3, %v162_v14  ;;  %v300_v61 = vld [vmem:[%s1481_s3 + $0x98] sm:$0xff]  ;;  %v301_v4 = vld [vmem:[%s1481_s3 + $0xa0] sm:$0xff] }
  0x12   :  { %v707_v11 = vpop.eup %706  ;;  %474 = vst [vmem:[%s1482_s4 + $0x8] sm:$0xff] %v705_v6  ;;  %718 = vtanh.f32 %v353_v63  ;;  %v163_v24 = vmul.f32 %v863_v1, %v571_v15  ;;  %v575_v25 = vunpack.c.l.bf16 %v676_v10  ;;  %v357_v28 = vadd.f32 %v293_v13, %v229_v19  ;;  %v680_v63 = vld [vmem:[%s1478_s0 + $0x60] sm:$0xff]   ;;  %v303_v19 = vld [vmem:[%s1481_s3 + $0xb0] sm:$0xff] }
  0x13   :  { %v709_v16 = vpop.eup %708  ;;  %475 = vst [vmem:[%s1482_s4 + $0x10] sm:$0xff] %v707_v11  ;;  %720 = vtanh.f32 %v354_v12  ;;  %v164_v30 = vmul.f32 %v863_v1, %v572_v21  ;;  %v576_v31 = vunpack.c.h.bf16 %v676_v10  ;;  %v358_v33 = vadd.f32 %v294_v20, %v230_v23  ;;  %v302_v10 = vld [vmem:[%s1481_s3 + $0xa8] sm:$0xff] }
  0x14   :  { %v711_v22 = vpop.eup %710  ;;  %476 = vst [vmem:[%s1482_s4 + $0x18] sm:$0xff] %v709_v16  ;;  %722 = vtanh.f32 %v355_v17  ;;  %v231_v34 = vadd.f32 %v868_v3, %v163_v24  ;;  %v165_v36 = vmul.f32 %v863_v1, %v575_v25  ;;  %v579_v42 = vunpack.c.l.bf16 %v677_v26  ;;  %v681_v17 = vld [vmem:[%s1478_s0 + $0x68] sm:$0xff]   ;;  %v304_v25 = vld [vmem:[%s1481_s3 + $0xb8] sm:$0xff] }
  0x15   :  { %v713_v27 = vpop.eup %712  ;;  %477 = vst [vmem:[%s1482_s4 + $0x20] sm:$0xff] %v711_v22  ;;  %724 = vtanh.f32 %v356_v18  ;;  %v232_v39 = vadd.f32 %v868_v3, %v164_v30  ;;  %v166_v41 = vmul.f32 %v863_v1, %v576_v31  ;;  %v580_v47 = vunpack.c.h.bf16 %v677_v26  ;;  %v305_v30 = vld [vmem:[%s1481_s3 + $0xc0] sm:$0xff] }
  0x16   :  { %v715_v32 = vpop.eup %714  ;;  %478 = vst [vmem:[%s1482_s4 + $0x28] sm:$0xff] %v713_v27  ;;  %726 = vtanh.f32 %v357_v28  ;;  %v359_v44 = vadd.f32 %v295_v29, %v231_v34  ;;  %v233_v45 = vadd.f32 %v868_v3, %v165_v36  ;;  %v167_v50 = vmul.f32 %v863_v1, %v579_v42  ;;  %v682_v27 = vld [vmem:[%s1478_s0 + $0x70] sm:$0xff]   ;;  %v306_v36 = vld [vmem:[%s1481_s3 + $0xc8] sm:$0xff] }
  0x17   :  { %v717_v38 = vpop.eup %716  ;;  %479 = vst [vmem:[%s1482_s4 + $0x30] sm:$0xff] %v715_v32  ;;  %728 = vtanh.f32 %v358_v33  ;;  %v360_v48 = vadd.f32 %v296_v35, %v232_v39  ;;  %v234_v49 = vadd.f32 %v868_v3, %v166_v41  ;;  %v583_v51 = vunpack.c.l.bf16 %v678_v37 }
  0x18   :  { %v719_v43 = vpop.eup %718  ;;  %480 = vst [vmem:[%s1482_s4 + $0x38] sm:$0xff] %v717_v38  ;;  %730 = vtanh.f32 %v359_v44  ;;  %v361_v54 = vadd.f32 %v297_v40, %v233_v45  ;;  %v168_v56 = vmul.f32 %v863_v1, %v580_v47  ;;  %v584_v57 = vunpack.c.h.bf16 %v678_v37  ;;  %v307_v45 = vld [vmem:[%s1481_s3 + $0xd0] sm:$0xff] }
  0x19   :  { %481 = vst [vmem:[%s1482_s4 + $0x40] sm:$0xff] %v719_v43  ;;  %v721_v53 = vpop.eup %720  ;;  %732 = vtanh.f32 %v360_v48  ;;  %v362_v59 = vadd.f32 %v298_v46, %v234_v49  ;;  %v235_v60 = vadd.f32 %v868_v3, %v167_v50  ;;  %v169_v62 = vmul.f32 %v863_v1, %v583_v51  ;;  %v683_v43 = vld [vmem:[%s1478_s0 + $0x78] sm:$0xff]  }
  0x1a   :  { %v723_v58 = vpop.eup %722  ;;  %482 = vst [vmem:[%s1482_s4 + $0x48] sm:$0xff] %v721_v53  ;;  %734 = vtanh.f32 %v361_v54  ;;  %v236_v2 = vadd.f32 %v868_v3, %v168_v56  ;;  %v170_v5 = vmul.f32 %v863_v1, %v584_v57  ;;  %v587_v6 = vunpack.c.l.bf16 %v679_v52  ;;  %v308_v51 = vld [vmem:[%s1481_s3 + $0xd8] sm:$0xff]  ;;  %v684_v53 = vld [vmem:[%s1478_s0 + $0x80] sm:$0xff]  }
  0x1b   :  { %v725_v0 = vpop.eup %724  ;;  %483 = vst [vmem:[%s1482_s4 + $0x50] sm:$0xff] %v723_v58  ;;  %736 = vtanh.f32 %v362_v59  ;;  %v363_v8 = vadd.f32 %v299_v55, %v235_v60  ;;  %v237_v9 = vadd.f32 %v868_v3, %v169_v62  ;;  %v588_v11 = vunpack.c.h.bf16 %v679_v52  ;;  %v309_v56 = vld [vmem:[%s1481_s3 + $0xe0] sm:$0xff]  ;;  %v310_v62 = vld [vmem:[%s1481_s3 + $0xe8] sm:$0xff] }
  0x1c   :  { %v727_v7 = vpop.eup %726  ;;  %484 = vst [vmem:[%s1482_s4 + $0x58] sm:$0xff] %v725_v0  ;;  %v364_v13 = vadd.f32 %v300_v61, %v236_v2  ;;  %v238_v14 = vadd.f32 %v868_v3, %v170_v5  ;;  %v171_v15 = vmul.f32 %v863_v1, %v587_v6  ;;  %v591_v16 = vunpack.c.l.bf16 %v680_v63 }
  0x1d   :  { %v729_v12 = vpop.eup %728  ;;  %485 = vst [vmem:[%s1482_s4 + $0x60] sm:$0xff] %v727_v7  ;;  %738 = vtanh.f32 %v363_v8  ;;  %v365_v18 = vadd.f32 %v301_v4, %v237_v9  ;;  %v172_v20 = vmul.f32 %v863_v1, %v588_v11  ;;  %v592_v21 = vunpack.c.h.bf16 %v680_v63  ;;  %v685_v7 = vld [vmem:[%s1478_s0 + $0x88] sm:$0xff]   ;;  %v311_v9 = vld [vmem:[%s1481_s3 + $0xf0] sm:$0xff] }
  0x1e   :  { %486 = vst [vmem:[%s1482_s4 + $0x68] sm:$0xff] %v729_v12  ;;  %v731_v22 = vpop.eup %730  ;;  %740 = vtanh.f32 %v364_v13  ;;  %v366_v23 = vadd.f32 %v302_v10, %v238_v14  ;;  %v239_v24 = vadd.f32 %v868_v3, %v171_v15  ;;  %v173_v26 = vmul.f32 %v863_v1, %v591_v16  ;;  %v312_v15 = vld [vmem:[%s1481_s3 + $0xf8] sm:$0xff] }
  0x1f   :  { %v733_v28 = vpop.eup %732  ;;  %487 = vst [vmem:[%s1482_s4 + $0x70] sm:$0xff] %v731_v22  ;;  %742 = vtanh.f32 %v365_v18  ;;  %v240_v29 = vadd.f32 %v868_v3, %v172_v20  ;;  %v174_v31 = vmul.f32 %v863_v1, %v592_v21  ;;  %v595_v32 = vunpack.c.l.bf16 %v681_v17  ;;  %v313_v20 = vld [vmem:[%s1481_s3 + $0x100] sm:$0xff] }
  0x20   :  { %v735_v33 = vpop.eup %734  ;;  %488 = vst [vmem:[%s1482_s4 + $0x78] sm:$0xff] %v733_v28  ;;  %744 = vtanh.f32 %v366_v23  ;;  %v367_v34 = vadd.f32 %v303_v19, %v239_v24  ;;  %v241_v35 = vadd.f32 %v868_v3, %v173_v26  ;;  %v596_v37 = vunpack.c.h.bf16 %v681_v17  ;;  %v686_v17 = vld [vmem:[%s1478_s0 + $0x90] sm:$0xff]   ;;  %v314_v26 = vld [vmem:[%s1481_s3 + $0x108] sm:$0xff] }
  0x21   :  { %v737_v38 = vpop.eup %736  ;;  %489 = vst [vmem:[%s1482_s4 + $0x80] sm:$0xff] %v735_v33  ;;  %v368_v39 = vadd.f32 %v304_v25, %v240_v29  ;;  %v242_v40 = vadd.f32 %v868_v3, %v174_v31  ;;  %v175_v41 = vmul.f32 %v863_v1, %v595_v32  ;;  %v599_v42 = vunpack.c.l.bf16 %v682_v27  ;;  %v687_v33 = vld [vmem:[%s1478_s0 + $0x98] sm:$0xff]  }
  0x22   :  { %490 = vst [vmem:[%s1482_s4 + $0x88] sm:$0xff] %v737_v38  ;;  %746 = vtanh.f32 %v367_v34  ;;  %v369_v44 = vadd.f32 %v305_v30, %v241_v35  ;;  %v176_v46 = vmul.f32 %v863_v1, %v596_v37  ;;  %v600_v47 = vunpack.c.h.bf16 %v682_v27  ;;  %v315_v35 = vld [vmem:[%s1481_s3 + $0x110] sm:$0xff] }
  0x23   :  { %v739_v48 = vpop.eup %738  ;;  %748 = vtanh.f32 %v368_v39  ;;  %v370_v49 = vadd.f32 %v306_v36, %v242_v40  ;;  %v243_v50 = vadd.f32 %v868_v3, %v175_v41  ;;  %v177_v52 = vmul.f32 %v863_v1, %v599_v42  ;;  %v316_v41 = vld [vmem:[%s1481_s3 + $0x118] sm:$0xff] }
  0x24   :  { %v741_v54 = vpop.eup %740  ;;  %491 = vst [vmem:[%s1482_s4 + $0x90] sm:$0xff] %v739_v48  ;;  %750 = vtanh.f32 %v369_v44  ;;  %v244_v55 = vadd.f32 %v868_v3, %v176_v46  ;;  %v178_v57 = vmul.f32 %v863_v1, %v600_v47  ;;  %v603_v58 = vunpack.c.l.bf16 %v683_v43  ;;  %v317_v46 = vld [vmem:[%s1481_s3 + $0x120] sm:$0xff] }
  0x25   :  { %v743_v59 = vpop.eup %742  ;;  %492 = vst [vmem:[%s1482_s4 + $0x98] sm:$0xff] %v741_v54  ;;  %752 = vtanh.f32 %v370_v49  ;;  %v371_v60 = vadd.f32 %v307_v45, %v243_v50  ;;  %v245_v61 = vadd.f32 %v868_v3, %v177_v52  ;;  %v604_v63 = vunpack.c.h.bf16 %v683_v43  ;;  %v688_v43 = vld [vmem:[%s1478_s0 + $0xa0] sm:$0xff]   ;;  %v318_v52 = vld [vmem:[%s1481_s3 + $0x128] sm:$0xff] }
  0x26   :  { %v745_v0 = vpop.eup %744  ;;  %493 = vst [vmem:[%s1482_s4 + $0xa0] sm:$0xff] %v743_v59  ;;  %v372_v2 = vadd.f32 %v308_v51, %v244_v55  ;;  %v246_v4 = vadd.f32 %v868_v3, %v178_v57  ;;  %v179_v5 = vmul.f32 %v863_v1, %v603_v58  ;;  %v607_v6 = vunpack.c.l.bf16 %v684_v53  ;;  %v689_v59 = vld [vmem:[%s1478_s0 + $0xa8] sm:$0xff]  }
  0x27   :  { %494 = vst [vmem:[%s1482_s4 + $0xa8] sm:$0xff] %v745_v0  ;;  %754 = vtanh.f32 %v371_v60  ;;  %v373_v8 = vadd.f32 %v309_v56, %v245_v61  ;;  %v180_v10 = vmul.f32 %v863_v1, %v604_v63  ;;  %v608_v11 = vunpack.c.h.bf16 %v684_v53  ;;  %v319_v61 = vld [vmem:[%s1481_s3 + $0x130] sm:$0xff] }
  0x28   :  { %v747_v12 = vpop.eup %746  ;;  %756 = vtanh.f32 %v372_v2  ;;  %v374_v13 = vadd.f32 %v310_v62, %v246_v4  ;;  %v247_v14 = vadd.f32 %v868_v3, %v179_v5  ;;  %v181_v16 = vmul.f32 %v863_v1, %v607_v6  ;;  %v320_v5 = vld [vmem:[%s1481_s3 + $0x138] sm:$0xff] }
  0x29   :  { %v749_v18 = vpop.eup %748  ;;  %495 = vst [vmem:[%s1482_s4 + $0xb0] sm:$0xff] %v747_v12  ;;  %758 = vtanh.f32 %v373_v8  ;;  %v248_v19 = vadd.f32 %v868_v3, %v180_v10  ;;  %v182_v21 = vmul.f32 %v863_v1, %v608_v11  ;;  %v611_v22 = vunpack.c.l.bf16 %v685_v7  ;;  %v321_v10 = vld [vmem:[%s1481_s3 + $0x140] sm:$0xff] }
  0x2a   :  { %v751_v23 = vpop.eup %750  ;;  %496 = vst [vmem:[%s1482_s4 + $0xb8] sm:$0xff] %v749_v18  ;;  %760 = vtanh.f32 %v374_v13  ;;  %v375_v24 = vadd.f32 %v311_v9, %v247_v14  ;;  %v249_v25 = vadd.f32 %v868_v3, %v181_v16  ;;  %v612_v27 = vunpack.c.h.bf16 %v685_v7  ;;  %v690_v7 = vld [vmem:[%s1478_s0 + $0xb0] sm:$0xff]   ;;  %v322_v16 = vld [vmem:[%s1481_s3 + $0x148] sm:$0xff] }
  0x2b   :  { %v753_v28 = vpop.eup %752  ;;  %497 = vst [vmem:[%s1482_s4 + $0xc0] sm:$0xff] %v751_v23  ;;  %v376_v29 = vadd.f32 %v312_v15, %v248_v19  ;;  %v250_v30 = vadd.f32 %v868_v3, %v182_v21  ;;  %v183_v31 = vmul.f32 %v863_v1, %v611_v22  ;;  %v615_v32 = vunpack.c.l.bf16 %v686_v17  ;;  %v691_v23 = vld [vmem:[%s1478_s0 + $0xb8] sm:$0xff]  }
  0x2c   :  { %498 = vst [vmem:[%s1482_s4 + $0xc8] sm:$0xff] %v753_v28  ;;  %762 = vtanh.f32 %v375_v24  ;;  %v377_v34 = vadd.f32 %v313_v20, %v249_v25  ;;  %v184_v36 = vmul.f32 %v863_v1, %v612_v27  ;;  %v616_v37 = vunpack.c.h.bf16 %v686_v17  ;;  %v323_v25 = vld [vmem:[%s1481_s3 + $0x150] sm:$0xff] }
  0x2d   :  { %v755_v38 = vpop.eup %754  ;;  %764 = vtanh.f32 %v376_v29  ;;  %v378_v39 = vadd.f32 %v314_v26, %v250_v30  ;;  %v251_v40 = vadd.f32 %v868_v3, %v183_v31  ;;  %v185_v42 = vmul.f32 %v863_v1, %v615_v32  ;;  %v324_v31 = vld [vmem:[%s1481_s3 + $0x158] sm:$0xff] }
  0x2e   :  { %v757_v44 = vpop.eup %756  ;;  %499 = vst [vmem:[%s1482_s4 + $0xd0] sm:$0xff] %v755_v38  ;;  %766 = vtanh.f32 %v377_v34  ;;  %v252_v45 = vadd.f32 %v868_v3, %v184_v36  ;;  %v186_v47 = vmul.f32 %v863_v1, %v616_v37  ;;  %v619_v48 = vunpack.c.l.bf16 %v687_v33  ;;  %v325_v36 = vld [vmem:[%s1481_s3 + $0x160] sm:$0xff] }
  0x2f   :  { %v759_v49 = vpop.eup %758  ;;  %500 = vst [vmem:[%s1482_s4 + $0xd8] sm:$0xff] %v757_v44  ;;  %768 = vtanh.f32 %v378_v39  ;;  %v379_v50 = vadd.f32 %v315_v35, %v251_v40  ;;  %v253_v51 = vadd.f32 %v868_v3, %v185_v42  ;;  %v620_v53 = vunpack.c.h.bf16 %v687_v33  ;;  %v692_v33 = vld [vmem:[%s1478_s0 + $0xc0] sm:$0xff]   ;;  %v326_v42 = vld [vmem:[%s1481_s3 + $0x168] sm:$0xff] }
  0x30   :  { %v761_v54 = vpop.eup %760  ;;  %501 = vst [vmem:[%s1482_s4 + $0xe0] sm:$0xff] %v759_v49  ;;  %v380_v55 = vadd.f32 %v316_v41, %v252_v45  ;;  %v254_v56 = vadd.f32 %v868_v3, %v186_v47  ;;  %v187_v57 = vmul.f32 %v863_v1, %v619_v48  ;;  %v623_v58 = vunpack.c.l.bf16 %v688_v43  ;;  %v693_v49 = vld [vmem:[%s1478_s0 + $0xc8] sm:$0xff]  }
  0x31   :  { %502 = vst [vmem:[%s1482_s4 + $0xe8] sm:$0xff] %v761_v54  ;;  %770 = vtanh.f32 %v379_v50  ;;  %v381_v60 = vadd.f32 %v317_v46, %v253_v51  ;;  %v188_v62 = vmul.f32 %v863_v1, %v620_v53  ;;  %v624_v63 = vunpack.c.h.bf16 %v688_v43  ;;  %v327_v51 = vld [vmem:[%s1481_s3 + $0x170] sm:$0xff] }
  0x32   :  { %v763_v0 = vpop.eup %762  ;;  %772 = vtanh.f32 %v380_v55  ;;  %v382_v2 = vadd.f32 %v318_v52, %v254_v56  ;;  %v255_v4 = vadd.f32 %v868_v3, %v187_v57  ;;  %v189_v6 = vmul.f32 %v863_v1, %v623_v58  ;;  %v328_v57 = vld [vmem:[%s1481_s3 + $0x178] sm:$0xff] }
  0x33   :  { %v765_v8 = vpop.eup %764  ;;  %503 = vst [vmem:[%s1482_s4 + $0xf0] sm:$0xff] %v763_v0  ;;  %774 = vtanh.f32 %v381_v60  ;;  %v256_v9 = vadd.f32 %v868_v3, %v188_v62  ;;  %v190_v11 = vmul.f32 %v863_v1, %v624_v63  ;;  %v627_v12 = vunpack.c.l.bf16 %v689_v59  ;;  %v329_v62 = vld [vmem:[%s1481_s3 + $0x180] sm:$0xff] }
  0x34   :  { %v767_v13 = vpop.eup %766  ;;  %504 = vst [vmem:[%s1482_s4 + $0xf8] sm:$0xff] %v765_v8  ;;  %776 = vtanh.f32 %v382_v2  ;;  %v383_v14 = vadd.f32 %v319_v61, %v255_v4  ;;  %v257_v15 = vadd.f32 %v868_v3, %v189_v6  ;;  %v628_v17 = vunpack.c.h.bf16 %v689_v59  ;;  %v694_v59 = vld [vmem:[%s1478_s0 + $0xd0] sm:$0xff]   ;;  %v330_v6 = vld [vmem:[%s1481_s3 + $0x188] sm:$0xff] }
  0x35   :  { %v769_v18 = vpop.eup %768  ;;  %505 = vst [vmem:[%s1482_s4 + $0x100] sm:$0xff] %v767_v13  ;;  %v384_v19 = vadd.f32 %v320_v5, %v256_v9  ;;  %v258_v20 = vadd.f32 %v868_v3, %v190_v11  ;;  %v191_v21 = vmul.f32 %v863_v1, %v627_v12  ;;  %v631_v22 = vunpack.c.l.bf16 %v690_v7  ;;  %v695_v13 = vld [vmem:[%s1478_s0 + $0xd8] sm:$0xff]  }
  0x36   :  { %506 = vst [vmem:[%s1482_s4 + $0x108] sm:$0xff] %v769_v18  ;;  %778 = vtanh.f32 %v383_v14  ;;  %v385_v24 = vadd.f32 %v321_v10, %v257_v15  ;;  %v192_v26 = vmul.f32 %v863_v1, %v628_v17  ;;  %v632_v27 = vunpack.c.h.bf16 %v690_v7  ;;  %v331_v15 = vld [vmem:[%s1481_s3 + $0x190] sm:$0xff] }
  0x37   :  { %v771_v28 = vpop.eup %770  ;;  %780 = vtanh.f32 %v384_v19  ;;  %v386_v29 = vadd.f32 %v322_v16, %v258_v20  ;;  %v259_v30 = vadd.f32 %v868_v3, %v191_v21  ;;  %v193_v32 = vmul.f32 %v863_v1, %v631_v22  ;;  %v332_v21 = vld [vmem:[%s1481_s3 + $0x198] sm:$0xff] }
  0x38   :  { %v773_v34 = vpop.eup %772  ;;  %507 = vst [vmem:[%s1482_s4 + $0x110] sm:$0xff] %v771_v28  ;;  %782 = vtanh.f32 %v385_v24  ;;  %v260_v35 = vadd.f32 %v868_v3, %v192_v26  ;;  %v194_v37 = vmul.f32 %v863_v1, %v632_v27  ;;  %v635_v38 = vunpack.c.l.bf16 %v691_v23  ;;  %v333_v26 = vld [vmem:[%s1481_s3 + $0x1a0] sm:$0xff] }
  0x39   :  { %v775_v39 = vpop.eup %774  ;;  %508 = vst [vmem:[%s1482_s4 + $0x118] sm:$0xff] %v773_v34  ;;  %784 = vtanh.f32 %v386_v29  ;;  %v387_v40 = vadd.f32 %v323_v25, %v259_v30  ;;  %v261_v41 = vadd.f32 %v868_v3, %v193_v32  ;;  %v636_v43 = vunpack.c.h.bf16 %v691_v23  ;;  %v696_v23 = vld [vmem:[%s1478_s0 + $0xe0] sm:$0xff]   ;;  %v334_v32 = vld [vmem:[%s1481_s3 + $0x1a8] sm:$0xff] }
  0x3a   :  { %v777_v44 = vpop.eup %776  ;;  %509 = vst [vmem:[%s1482_s4 + $0x120] sm:$0xff] %v775_v39  ;;  %v388_v45 = vadd.f32 %v324_v31, %v260_v35  ;;  %v262_v46 = vadd.f32 %v868_v3, %v194_v37  ;;  %v195_v47 = vmul.f32 %v863_v1, %v635_v38  ;;  %v639_v48 = vunpack.c.l.bf16 %v692_v33  ;;  %v697_v39 = vld [vmem:[%s1478_s0 + $0xe8] sm:$0xff]  }
  0x3b   :  { %510 = vst [vmem:[%s1482_s4 + $0x128] sm:$0xff] %v777_v44  ;;  %786 = vtanh.f32 %v387_v40  ;;  %v389_v50 = vadd.f32 %v325_v36, %v261_v41  ;;  %v196_v52 = vmul.f32 %v863_v1, %v636_v43  ;;  %v640_v53 = vunpack.c.h.bf16 %v692_v33  ;;  %v335_v41 = vld [vmem:[%s1481_s3 + $0x1b0] sm:$0xff] }
  0x3c   :  { %v779_v54 = vpop.eup %778  ;;  %788 = vtanh.f32 %v388_v45  ;;  %v390_v55 = vadd.f32 %v326_v42, %v262_v46  ;;  %v263_v56 = vadd.f32 %v868_v3, %v195_v47  ;;  %v197_v58 = vmul.f32 %v863_v1, %v639_v48  ;;  %v336_v47 = vld [vmem:[%s1481_s3 + $0x1b8] sm:$0xff] }
  0x3d   :  { %v781_v60 = vpop.eup %780  ;;  %511 = vst [vmem:[%s1482_s4 + $0x130] sm:$0xff] %v779_v54  ;;  %790 = vtanh.f32 %v389_v50  ;;  %v264_v61 = vadd.f32 %v868_v3, %v196_v52  ;;  %v198_v63 = vmul.f32 %v863_v1, %v640_v53  ;;  %v643_v0 = vunpack.c.l.bf16 %v693_v49  ;;  %v337_v52 = vld [vmem:[%s1481_s3 + $0x1c0] sm:$0xff] }
  0x3e   :  { %v783_v2 = vpop.eup %782  ;;  %512 = vst [vmem:[%s1482_s4 + $0x138] sm:$0xff] %v781_v60  ;;  %792 = vtanh.f32 %v390_v55  ;;  %v391_v4 = vadd.f32 %v327_v51, %v263_v56  ;;  %v265_v5 = vadd.f32 %v868_v3, %v197_v58  ;;  %v644_v7 = vunpack.c.h.bf16 %v693_v49  ;;  %v698_v49 = vld [vmem:[%s1478_s0 + $0xf0] sm:$0xff]   ;;  %v338_v58 = vld [vmem:[%s1481_s3 + $0x1c8] sm:$0xff] }
  0x3f   :  { %v785_v8 = vpop.eup %784  ;;  %513 = vst [vmem:[%s1482_s4 + $0x140] sm:$0xff] %v783_v2  ;;  %v392_v9 = vadd.f32 %v328_v57, %v264_v61  ;;  %v266_v10 = vadd.f32 %v868_v3, %v198_v63  ;;  %v199_v11 = vmul.f32 %v863_v1, %v643_v0  ;;  %v647_v12 = vunpack.c.l.bf16 %v694_v59  ;;  %v699_v2 = vld [vmem:[%s1478_s0 + $0xf8] sm:$0xff]  }
  0x40   :  { %514 = vst [vmem:[%s1482_s4 + $0x148] sm:$0xff] %v785_v8  ;;  %794 = vtanh.f32 %v391_v4  ;;  %v393_v14 = vadd.f32 %v329_v62, %v265_v5  ;;  %v200_v16 = vmul.f32 %v863_v1, %v644_v7  ;;  %v648_v17 = vunpack.c.h.bf16 %v694_v59  ;;  %v339_v5 = vld [vmem:[%s1481_s3 + $0x1d0] sm:$0xff] }
  0x41   :  { %v787_v18 = vpop.eup %786  ;;  %796 = vtanh.f32 %v392_v9  ;;  %v394_v19 = vadd.f32 %v330_v6, %v266_v10  ;;  %v267_v20 = vadd.f32 %v868_v3, %v199_v11  ;;  %v201_v22 = vmul.f32 %v863_v1, %v647_v12  ;;  %v340_v11 = vld [vmem:[%s1481_s3 + $0x1d8] sm:$0xff] }
  0x42   :  { %v789_v24 = vpop.eup %788  ;;  %515 = vst [vmem:[%s1482_s4 + $0x150] sm:$0xff] %v787_v18  ;;  %798 = vtanh.f32 %v393_v14  ;;  %v268_v25 = vadd.f32 %v868_v3, %v200_v16  ;;  %v202_v27 = vmul.f32 %v863_v1, %v648_v17  ;;  %v651_v28 = vunpack.c.l.bf16 %v695_v13 }
  0x43   :  { %v791_v29 = vpop.eup %790  ;;  %516 = vst [vmem:[%s1482_s4 + $0x158] sm:$0xff] %v789_v24  ;;  %800 = vtanh.f32 %v394_v19  ;;  %v395_v30 = vadd.f32 %v331_v15, %v267_v20  ;;  %v269_v31 = vadd.f32 %v868_v3, %v201_v22  ;;  %v652_v33 = vunpack.c.h.bf16 %v695_v13  ;;  %v341_v15 = vld [vmem:[%s1481_s3 + $0x1e0] sm:$0xff] }
  0x44   :  { %v793_v34 = vpop.eup %792  ;;  %517 = vst [vmem:[%s1482_s4 + $0x160] sm:$0xff] %v791_v29  ;;  %v396_v35 = vadd.f32 %v332_v21, %v268_v25  ;;  %v270_v36 = vadd.f32 %v868_v3, %v202_v27  ;;  %v203_v37 = vmul.f32 %v863_v1, %v651_v28  ;;  %v655_v38 = vunpack.c.l.bf16 %v696_v23  ;;  %v342_v21 = vld [vmem:[%s1481_s3 + $0x1e8] sm:$0xff]  ;;  %v343_v28 = vld [vmem:[%s1481_s3 + $0x1f0] sm:$0xff]  ;;  %v830_v29 = vld [vmem:[%s1479_s1] ss:$0 sm:$0xff] }
  0x45   :  { %518 = vst [vmem:[%s1482_s4 + $0x168] sm:$0xff] %v793_v34  ;;  %802 = vtanh.f32 %v395_v30  ;;  %v397_v40 = vadd.f32 %v333_v26, %v269_v31  ;;  %v204_v42 = vmul.f32 %v863_v1, %v652_v33  ;;  %v656_v43 = vunpack.c.h.bf16 %v696_v23  ;;  %v344_v33 = vld [vmem:[%s1481_s3 + $0x1f8] sm:$0xff] }
  0x46   :  { %v795_v44 = vpop.eup %794  ;;  %804 = vtanh.f32 %v396_v35  ;;  %v398_v45 = vadd.f32 %v334_v32, %v270_v36  ;;  %v271_v46 = vadd.f32 %v868_v3, %v203_v37  ;;  %v205_v48 = vmul.f32 %v863_v1, %v655_v38 }
  0x47   :  { %v797_v50 = vpop.eup %796  ;;  %519 = vst [vmem:[%s1482_s4 + $0x170] sm:$0xff] %v795_v44  ;;  %806 = vtanh.f32 %v397_v40  ;;  %v272_v51 = vadd.f32 %v868_v3, %v204_v42  ;;  %v206_v53 = vmul.f32 %v863_v1, %v656_v43  ;;  %v659_v54 = vunpack.c.l.bf16 %v697_v39 }
  0x48   :  { %v799_v55 = vpop.eup %798  ;;  %520 = vst [vmem:[%s1482_s4 + $0x178] sm:$0xff] %v797_v50  ;;  %808 = vtanh.f32 %v398_v45  ;;  %v399_v56 = vadd.f32 %v335_v41, %v271_v46  ;;  %v273_v57 = vadd.f32 %v868_v3, %v205_v48  ;;  %v660_v59 = vunpack.c.h.bf16 %v697_v39 }
  0x49   :  { %v801_v60 = vpop.eup %800  ;;  %521 = vst [vmem:[%s1482_s4 + $0x180] sm:$0xff] %v799_v55  ;;  %v400_v61 = vadd.f32 %v336_v47, %v272_v51  ;;  %v274_v62 = vadd.f32 %v868_v3, %v206_v53  ;;  %v207_v63 = vmul.f32 %v863_v1, %v659_v54  ;;  %v663_v0 = vunpack.c.l.bf16 %v698_v49 }
  0x4a   :  { %522 = vst [vmem:[%s1482_s4 + $0x188] sm:$0xff] %v801_v60  ;;  %810 = vtanh.f32 %v399_v56  ;;  %v401_v4 = vadd.f32 %v337_v52, %v273_v57  ;;  %v208_v6 = vmul.f32 %v863_v1, %v660_v59  ;;  %v664_v7 = vunpack.c.h.bf16 %v698_v49 }
  0x4b   :  { %v803_v8 = vpop.eup %802  ;;  %812 = vtanh.f32 %v400_v61  ;;  %v402_v9 = vadd.f32 %v338_v58, %v274_v62  ;;  %v275_v10 = vadd.f32 %v868_v3, %v207_v63  ;;  %v209_v12 = vmul.f32 %v863_v1, %v663_v0 }
  0x4c   :  { %v805_v13 = vpop.eup %804  ;;  %523 = vst [vmem:[%s1482_s4 + $0x190] sm:$0xff] %v803_v8  ;;  %814 = vtanh.f32 %v401_v4  ;;  %v276_v14 = vadd.f32 %v868_v3, %v208_v6  ;;  %v210_v16 = vmul.f32 %v863_v1, %v664_v7  ;;  %v667_v17 = vunpack.c.l.bf16 %v699_v2 }
  0x4d   :  { %v807_v18 = vpop.eup %806  ;;  %524 = vst [vmem:[%s1482_s4 + $0x198] sm:$0xff] %v805_v13  ;;  %816 = vtanh.f32 %v402_v9  ;;  %v403_v19 = vadd.f32 %v339_v5, %v275_v10  ;;  %v277_v20 = vadd.f32 %v868_v3, %v209_v12  ;;  %v668_v22 = vunpack.c.h.bf16 %v699_v2 }
  0x4e   :  { %v809_v23 = vpop.eup %808  ;;  %525 = vst [vmem:[%s1482_s4 + $0x1a0] sm:$0xff] %v807_v18  ;;  %v404_v24 = vadd.f32 %v340_v11, %v276_v14  ;;  %v278_v25 = vadd.f32 %v868_v3, %v210_v16  ;;  %v211_v26 = vmul.f32 %v863_v1, %v667_v17  ;;  %v831_v1 = vld [vmem:[%s1480_s2] ss:$0 sm:$0xff] }
  0x4f   :  { %526 = vst [vmem:[%s1482_s4 + $0x1a8] sm:$0xff] %v809_v23  ;;  %818 = vtanh.f32 %v403_v19  ;;  %v405_v27 = vadd.f32 %v341_v15, %v277_v20  ;;  %v212_v30 = vmul.f32 %v830_v29, %v668_v22 }
  0x50   :  { %v811_v31 = vpop.eup %810  ;;  %820 = vtanh.f32 %v404_v24  ;;  %v406_v3 = vadd.f32 %v342_v21, %v278_v25  ;;  %v279_v32 = vadd.f32 %v831_v1, %v211_v26 }
  0x51   :  { %v813_v34 = vpop.eup %812  ;;  %527 = vst [vmem:[%s1482_s4 + $0x1b0] sm:$0xff] %v811_v31  ;;  %822 = vtanh.f32 %v405_v27  ;;  %v280_v35 = vadd.f32 %v831_v1, %v212_v30 }
  0x52   :  { %v815_v36 = vpop.eup %814  ;;  %528 = vst [vmem:[%s1482_s4 + $0x1b8] sm:$0xff] %v813_v34  ;;  %824 = vtanh.f32 %v406_v3  ;;  %v407_v37 = vadd.f32 %v343_v28, %v279_v32 }
  0x53   :  { %v817_v38 = vpop.eup %816  ;;  %529 = vst [vmem:[%s1482_s4 + $0x1c0] sm:$0xff] %v815_v36  ;;  %v408_v39 = vadd.f32 %v344_v33, %v280_v35 }
  0x54   :  { %530 = vst [vmem:[%s1482_s4 + $0x1c8] sm:$0xff] %v817_v38  ;;  %826 = vtanh.f32 %v407_v37 }
  0x55   :  { %v819_v40 = vpop.eup %818  ;;  %828 = vtanh.f32 %v408_v39 }
  0x56   :  { %v821_v41 = vpop.eup %820  ;;  %531 = vst [vmem:[%s1482_s4 + $0x1d0] sm:$0xff] %v819_v40 }
  0x57   :  { %v823_v42 = vpop.eup %822  ;;  %532 = vst [vmem:[%s1482_s4 + $0x1d8] sm:$0xff] %v821_v41 }
  0x58   :  { %v825_v43 = vpop.eup %824  ;;  %533 = vst [vmem:[%s1482_s4 + $0x1e0] sm:$0xff] %v823_v42 }
  0x59   :  { %534 = vst [vmem:[%s1482_s4 + $0x1e8] sm:$0xff] %v825_v43 }
  0x5a   :  { %v827_v44 = vpop.eup %826 }
  0x5b   :  { %v829_v45 = vpop.eup %828  ;;  %535 = vst [vmem:[%s1482_s4 + $0x1f0] sm:$0xff] %v827_v44 }
  0x5c   :  { %536 = vst [vmem:[%s1482_s4 + $0x1f8] sm:$0xff] %v829_v45 }

// kernel: cycle_generator_forward.38
= control target key start
LH: loop header
LB: loop body
LE: loop exit
PB: predicated region body
PF: predicated region fallthrough
CT: control target
= control target key end

     0   :  { %10 = vsyncpa [#allocation3], 0  ;;  %s4124_s0 = inlined_call_operand.vmem [shape: bf16[512,512], index: 0, kind: input, shape index: {}]   ;;  %s4125_s1 = inlined_call_operand.vmem [shape: bf16[512,128], index: 1, kind: input, shape index: {}]   ;;  %s4126_s2 = inlined_call_operand.vmem [shape: bf16[512,128], index: 2, kind: output, shape index: {0}]   ;;  %s4127_s3 = inlined_call_operand.hbm [shape: f32[1,8,128], index: 3, kind: output, shape index: {1}]   ;;  %s4128_s4 = inlined_call_operand.hbm [shape: f32[1,8,128], index: 4, kind: output, shape index: {2}]  }
   0x1   :  { %v2849_v0 = vld [vmem:[%s4125_s1 + $0x38] sm:$0xff]  ;;  %v2848_v4 = vld [vmem:[%s4125_s1 + $0x30] sm:$0xff]  ;;  %v2847_v8 = vld [vmem:[%s4125_s1 + $0x28] sm:$0xff] }
   0x2   :  { %v2857_v1 = vld [vmem:[%s4125_s1 + $0x78] sm:$0xff]  ;;  %1040 = vmatpush.bf16.msra.mxu0 %v2849_v0  ;;  %v2856_v5 = vld [vmem:[%s4125_s1 + $0x70] sm:$0xff]  ;;  %v2855_v9 = vld [vmem:[%s4125_s1 + $0x68] sm:$0xff] }
   0x3   :  { %v2865_v2 = vld [vmem:[%s4125_s1 + $0xb8] sm:$0xff]  ;;  %1209 = vmatpush.bf16.msra.mxu1 %v2857_v1  ;;  %v2864_v6 = vld [vmem:[%s4125_s1 + $0xb0] sm:$0xff]  ;;  %v2863_v10 = vld [vmem:[%s4125_s1 + $0xa8] sm:$0xff] }
   0x4   :  { %v2873_v3 = vld [vmem:[%s4125_s1 + $0xf8] sm:$0xff]  ;;  %1378 = vmatpush.bf16.msra.mxu2 %v2865_v2  ;;  %v2872_v7 = vld [vmem:[%s4125_s1 + $0xf0] sm:$0xff]  ;;  %v2871_v11 = vld [vmem:[%s4125_s1 + $0xe8] sm:$0xff] }
   0x5   :  { %1547 = vmatpush.bf16.msra.mxu3 %v2873_v3  ;;  %v2846_v12 = vld [vmem:[%s4125_s1 + $0x20] sm:$0xff]  ;;  %v2845_v16 = vld [vmem:[%s4125_s1 + $0x18] sm:$0xff] }
   0x6   :  { %1041 = vmatpush.bf16.msra.mxu0 %v2848_v4  ;;  %v2854_v13 = vld [vmem:[%s4125_s1 + $0x60] sm:$0xff]  ;;  %v2853_v17 = vld [vmem:[%s4125_s1 + $0x58] sm:$0xff] }
   0x7   :  { %1210 = vmatpush.bf16.msra.mxu1 %v2856_v5  ;;  %v2862_v14 = vld [vmem:[%s4125_s1 + $0xa0] sm:$0xff] }
   0x8   :  { %1379 = vmatpush.bf16.msra.mxu2 %v2864_v6  ;;  %v2870_v15 = vld [vmem:[%s4125_s1 + $0xe0] sm:$0xff] }
   0x9   :  { %1548 = vmatpush.bf16.msra.mxu3 %v2872_v7 }
   0xa   :  { %1042 = vmatpush.bf16.msra.mxu0 %v2847_v8 }
   0xb   :  { %1211 = vmatpush.bf16.msra.mxu1 %v2855_v9 }
   0xc   :  { %1380 = vmatpush.bf16.msra.mxu2 %v2863_v10 }
   0xd   :  { %1549 = vmatpush.bf16.msra.mxu3 %v2871_v11 }
   0xe   :  { %1043 = vmatpush.bf16.msra.mxu0 %v2846_v12 }
   0xf   :  { %1212 = vmatpush.bf16.msra.mxu1 %v2854_v13 }
  0x10   :  { %11 = vsyncpa [#allocation5], 0  ;;  %1381 = vmatpush.bf16.msra.mxu2 %v2862_v14  ;;  %v2861_v18 = vld [vmem:[%s4125_s1 + $0x98] sm:$0xff]  ;;  %v2844_v20 = vld [vmem:[%s4125_s1 + $0x10] sm:$0xff]  ;;  %s3119_s7 = smov [#allocation2]   ;;  %s2047_s10 = sshll.u32 %s4127_s3, 4  ;;  %s2048_s10 = int_to_ptr.hbm [resolvable:$true] %s2047_s10 }
  0x11   :  { %1550 = vmatpush.bf16.msra.mxu3 %v2870_v15  ;;  %v2869_v19 = vld [vmem:[%s4125_s1 + $0xd8] sm:$0xff]  ;;  %v2852_v21 = vld [vmem:[%s4125_s1 + $0x50] sm:$0xff]  ;;  %v2843_v24 = vld [vmem:[%s4125_s1 + $0x8] sm:$0xff]  ;;  %s2045_s8 = sshll.u32 %s3119_s7, 4  ;;  %s3120_s11 = smov [#allocation4]   ;;  %s2046_s8 = int_to_ptr.vmem [resolvable:$true] %s2045_s8 }
  0x12   :  { %1044 = vmatpush.bf16.msra.mxu0 %v2845_v16  ;;  %v2860_v22 = vld [vmem:[%s4125_s1 + $0x90] sm:$0xff]  ;;  %v2851_v25 = vld [vmem:[%s4125_s1 + $0x48] sm:$0xff]  ;;  %v2842_v28 = vld [vmem:[%s4125_s1] sm:$0xff]  ;;  %s2056_s12 = sshll.u32 %s3120_s11, 4  ;;  %s2058_s15 = sshll.u32 %s4128_s4, 4  ;;  %s2057_s12 = int_to_ptr.vmem [resolvable:$true] %s2056_s12  ;;  %s2059_s15 = int_to_ptr.hbm [resolvable:$true] %s2058_s15 }
  0x13   :  { %1213 = vmatpush.bf16.msra.mxu1 %v2853_v17  ;;  %v2868_v23 = vld [vmem:[%s4125_s1 + $0xd0] sm:$0xff]  ;;  %v2859_v26 = vld [vmem:[%s4125_s1 + $0x88] sm:$0xff]  ;;  %v2850_v29 = vld [vmem:[%s4125_s1 + $0x40] sm:$0xff] }
  0x14   :  { %1382 = vmatpush.bf16.msra.mxu2 %v2861_v18  ;;  %v2867_v27 = vld [vmem:[%s4125_s1 + $0xc8] sm:$0xff]  ;;  %v2858_v30 = vld [vmem:[%s4125_s1 + $0x80] sm:$0xff]  ;;  %v2716_v33 = vld [vmem:[%s4124_s0 + $0xc] sm:$0xf0] }
  0x15   :  { %1551 = vmatpush.bf16.msra.mxu3 %v2869_v19  ;;  %v2866_v31 = vld [vmem:[%s4125_s1 + $0xc0] sm:$0xff]  ;;  %v2078_v35 = vld [vmem:[%s4124_s0 + $0x10] sm:$0xf0]  ;;  %v2084_v36 = vld [vmem:[%s4124_s0 + $0x8] sm:$0xf] }
  0x16   :  { %1045 = vmatpush.bf16.msra.mxu0 %v2844_v20  ;;  %v2076_v32 = vld [vmem:[%s4124_s0] sm:$0xf]  ;;  %v2714_v34 = vld [vmem:[%s4124_s0 + $0x4] sm:$0xf]  ;;  %v2717_v37 = vld [vmem:[%s4124_s0 + $0x14] sm:$0xf0] }
  0x17   :  { %1214 = vmatpush.bf16.msra.mxu1 %v2852_v21  ;;  %v2715_v38 = vld [vmem:[%s4124_s0 + $0xc] sm:$0xf]  ;;  %v2086_v39 = vld [vmem:[%s4124_s0 + $0x18] sm:$0xf0]  ;;  %v2077_v40 = vor.u32 %v2716_v33, %v2076_v32  ;;  %v2081_v41 = vor.u32 %v2714_v34, %v2078_v35  ;;  %v2085_v42 = vor.u32 %v2717_v37, %v2084_v36  ;;  %v2092_v44 = vld [vmem:[%s4124_s0 + $0x20] sm:$0xf] }
  0x18   :  { %1383 = vmatpush.bf16.msra.mxu2 %v2860_v22  ;;  %v2089_v43 = vor.u32 %v2715_v38, %v2086_v39  ;;  %v2720_v45 = vld [vmem:[%s4124_s0 + $0x2c] sm:$0xf0]  ;;  %v2718_v46 = vld [vmem:[%s4124_s0 + $0x24] sm:$0xf]  ;;  %v2094_v47 = vld [vmem:[%s4124_s0 + $0x30] sm:$0xf0] }
  0x19   :  { %1552 = vmatpush.bf16.msra.mxu3 %v2868_v23  ;;  %v2100_v48 = vld [vmem:[%s4124_s0 + $0x28] sm:$0xf]  ;;  %v2721_v49 = vld [vmem:[%s4124_s0 + $0x34] sm:$0xf0]  ;;  %v2719_v50 = vld [vmem:[%s4124_s0 + $0x2c] sm:$0xf]  ;;  %v2093_v52 = vor.u32 %v2720_v45, %v2092_v44  ;;  %v2097_v53 = vor.u32 %v2718_v46, %v2094_v47 }
  0x1a   :  { %1046 = vmatpush.bf16.msra.mxu0 %v2843_v24  ;;  %v2102_v51 = vld [vmem:[%s4124_s0 + $0x38] sm:$0xf0]  ;;  %v2101_v54 = vor.u32 %v2721_v49, %v2100_v48  ;;  %v2108_v56 = vld [vmem:[%s4124_s0 + $0x40] sm:$0xf]  ;;  %v2724_v57 = vld [vmem:[%s4124_s0 + $0x4c] sm:$0xf0] }
  0x1b   :  { %1215 = vmatpush.bf16.msra.mxu1 %v2851_v25  ;;  %v2105_v55 = vor.u32 %v2719_v50, %v2102_v51  ;;  %v2722_v58 = vld [vmem:[%s4124_s0 + $0x44] sm:$0xf]  ;;  %v2110_v59 = vld [vmem:[%s4124_s0 + $0x50] sm:$0xf0]  ;;  %v2116_v60 = vld [vmem:[%s4124_s0 + $0x48] sm:$0xf]  ;;  %v2109_v0 = vor.u32 %v2724_v57, %v2108_v56 }
  0x1c   :  { %1384 = vmatpush.bf16.msra.mxu2 %v2859_v26  ;;  %v2725_v61 = vld [vmem:[%s4124_s0 + $0x54] sm:$0xf0]  ;;  %v2723_v62 = vld [vmem:[%s4124_s0 + $0x4c] sm:$0xf]  ;;  %v2118_v63 = vld [vmem:[%s4124_s0 + $0x58] sm:$0xf0]  ;;  %v2113_v1 = vor.u32 %v2722_v58, %v2110_v59 }
  0x1d   :  { %1553 = vmatpush.bf16.msra.mxu3 %v2867_v27  ;;  %v2117_v2 = vor.u32 %v2725_v61, %v2116_v60  ;;  %v2121_v3 = vor.u32 %v2723_v62, %v2118_v63  ;;  %v2124_v4 = vld [vmem:[%s4124_s0 + $0x60] sm:$0xf]  ;;  %v2728_v5 = vld [vmem:[%s4124_s0 + $0x6c] sm:$0xf0]  ;;  %v2726_v6 = vld [vmem:[%s4124_s0 + $0x64] sm:$0xf] }
  0x1e   :  { %1047 = vmatpush.bf16.msra.mxu0 %v2842_v28  ;;  %v2126_v7 = vld [vmem:[%s4124_s0 + $0x70] sm:$0xf0]  ;;  %v2132_v8 = vld [vmem:[%s4124_s0 + $0x68] sm:$0xf]  ;;  %v2729_v9 = vld [vmem:[%s4124_s0 + $0x74] sm:$0xf0]  ;;  %v2125_v12 = vor.u32 %v2728_v5, %v2124_v4 }
  0x1f   :  { %1216 = vmatpush.bf16.msra.mxu1 %v2850_v29  ;;  %v2727_v10 = vld [vmem:[%s4124_s0 + $0x6c] sm:$0xf]  ;;  %v2134_v11 = vld [vmem:[%s4124_s0 + $0x78] sm:$0xf0]  ;;  %v2129_v13 = vor.u32 %v2726_v6, %v2126_v7  ;;  %v2133_v14 = vor.u32 %v2729_v9, %v2132_v8  ;;  %v2140_v16 = vld [vmem:[%s4124_s0 + $0x80] sm:$0xf] }
  0x20   :  { %1385 = vmatpush.bf16.msra.mxu2 %v2858_v30  ;;  %v2137_v15 = vor.u32 %v2727_v10, %v2134_v11  ;;  %v2732_v17 = vld [vmem:[%s4124_s0 + $0x8c] sm:$0xf0]  ;;  %v2730_v18 = vld [vmem:[%s4124_s0 + $0x84] sm:$0xf]  ;;  %v2142_v19 = vld [vmem:[%s4124_s0 + $0x90] sm:$0xf0] }
  0x21   :  { %1554 = vmatpush.bf16.msra.mxu3 %v2866_v31  ;;  %1048 = vmatmul.bf16.vlgmr.msra.gmra.mxu0 %v2077_v40  ;;  %v2148_v20 = vld [vmem:[%s4124_s0 + $0x88] sm:$0xf]  ;;  %v2733_v21 = vld [vmem:[%s4124_s0 + $0x94] sm:$0xf0]  ;;  %v2731_v22 = vld [vmem:[%s4124_s0 + $0x8c] sm:$0xf]  ;;  %v2141_v24 = vor.u32 %v2732_v17, %v2140_v16  ;;  %v2145_v25 = vor.u32 %v2730_v18, %v2142_v19 }
  0x22   :  { %1217 = vmatmul.bf16.vlgmr.msra.gmra.mxu1 %v2081_v41  ;;  %v2150_v23 = vld [vmem:[%s4124_s0 + $0x98] sm:$0xf0]  ;;  %v2149_v26 = vor.u32 %v2733_v21, %v2148_v20  ;;  %v2156_v28 = vld [vmem:[%s4124_s0 + $0xa0] sm:$0xf]  ;;  %v2736_v29 = vld [vmem:[%s4124_s0 + $0xac] sm:$0xf0] }
  0x23   :  { %1386 = vmatmul.bf16.vlgmr.msra.gmra.mxu2 %v2085_v42  ;;  %v2153_v27 = vor.u32 %v2731_v22, %v2150_v23  ;;  %v2734_v30 = vld [vmem:[%s4124_s0 + $0xa4] sm:$0xf]  ;;  %v2158_v31 = vld [vmem:[%s4124_s0 + $0xb0] sm:$0xf0]  ;;  %v2164_v32 = vld [vmem:[%s4124_s0 + $0xa8] sm:$0xf]  ;;  %v2157_v36 = vor.u32 %v2736_v29, %v2156_v28 }
  0x24   :  { %1555 = vmatmul.bf16.vlgmr.msra.gmra.mxu3 %v2089_v43  ;;  %v2737_v33 = vld [vmem:[%s4124_s0 + $0xb4] sm:$0xf0]  ;;  %v2735_v34 = vld [vmem:[%s4124_s0 + $0xac] sm:$0xf]  ;;  %v2166_v35 = vld [vmem:[%s4124_s0 + $0xb8] sm:$0xf0]  ;;  %v2161_v37 = vor.u32 %v2734_v30, %v2158_v31 }
  0x25   :  { %v2165_v38 = vor.u32 %v2737_v33, %v2164_v32  ;;  %v2169_v39 = vor.u32 %v2735_v34, %v2166_v35  ;;  %v2172_v40 = vld [vmem:[%s4124_s0 + $0xc0] sm:$0xf]  ;;  %v2740_v41 = vld [vmem:[%s4124_s0 + $0xcc] sm:$0xf0]  ;;  %v2738_v42 = vld [vmem:[%s4124_s0 + $0xc4] sm:$0xf] }
  0x26   :  { %v2174_v43 = vld [vmem:[%s4124_s0 + $0xd0] sm:$0xf0]  ;;  %v2180_v44 = vld [vmem:[%s4124_s0 + $0xc8] sm:$0xf]  ;;  %v2741_v45 = vld [vmem:[%s4124_s0 + $0xd4] sm:$0xf0]  ;;  %v2173_v48 = vor.u32 %v2740_v41, %v2172_v40 }
  0x27   :  { %v2739_v46 = vld [vmem:[%s4124_s0 + $0xcc] sm:$0xf]  ;;  %v2182_v47 = vld [vmem:[%s4124_s0 + $0xd8] sm:$0xf0]  ;;  %v2177_v49 = vor.u32 %v2738_v42, %v2174_v43  ;;  %v2181_v50 = vor.u32 %v2741_v45, %v2180_v44  ;;  %v2196_v56 = vld [vmem:[%s4124_s0 + $0xe8] sm:$0xf] }
  0x28   :  { %v2185_v51 = vor.u32 %v2739_v46, %v2182_v47  ;;  %v2745_v57 = vld [vmem:[%s4124_s0 + $0xf4] sm:$0xf0]  ;;  %v2743_v58 = vld [vmem:[%s4124_s0 + $0xec] sm:$0xf]  ;;  %v2198_v59 = vld [vmem:[%s4124_s0 + $0xf8] sm:$0xf0] }
  0x29   :  { %v2197_v62 = vor.u32 %v2745_v57, %v2196_v56  ;;  %v2201_v63 = vor.u32 %v2743_v58, %v2198_v59  ;;  %v2212_v4 = vld [vmem:[%s4124_s0 + $0x108] sm:$0xf]  ;;  %v2749_v5 = vld [vmem:[%s4124_s0 + $0x114] sm:$0xf0]  ;;  %v2747_v6 = vld [vmem:[%s4124_s0 + $0x10c] sm:$0xf] }
  0x2a   :  { %v2214_v7 = vld [vmem:[%s4124_s0 + $0x118] sm:$0xf0]  ;;  %v2220_v20 = vld [vmem:[%s4124_s0 + $0x120] sm:$0xf]  ;;  %v2752_v21 = vld [vmem:[%s4124_s0 + $0x12c] sm:$0xf0] }
  0x2b   :  { %v2750_v22 = vld [vmem:[%s4124_s0 + $0x124] sm:$0xf]  ;;  %v2222_v23 = vld [vmem:[%s4124_s0 + $0x130] sm:$0xf0]  ;;  %v2221_v32 = vor.u32 %v2752_v21, %v2220_v20  ;;  %v2244_v58 = vld [vmem:[%s4124_s0 + $0x148] sm:$0xf] }
  0x2c   :  { %v2225_v33 = vor.u32 %v2750_v22, %v2222_v23  ;;  %v2754_v56 = vld [vmem:[%s4124_s0 + $0x144] sm:$0xf]  ;;  %v2238_v57 = vld [vmem:[%s4124_s0 + $0x150] sm:$0xf0]  ;;  %v2757_v59 = vld [vmem:[%s4124_s0 + $0x154] sm:$0xf0] }
  0x2d   :  { %v2252_v21 = vld [vmem:[%s4124_s0 + $0x160] sm:$0xf]  ;;  %v2760_v22 = vld [vmem:[%s4124_s0 + $0x16c] sm:$0xf0] }
  0x31   :  { %1053 = vmatmul.bf16.gmra.mxu0 %v2093_v52  ;;  %v2188_v52 = vld [vmem:[%s4124_s0 + $0xe0] sm:$0xf] }
  0x32   :  { %1222 = vmatmul.bf16.gmra.mxu1 %v2097_v53  ;;  %v2744_v53 = vld [vmem:[%s4124_s0 + $0xec] sm:$0xf0] }
  0x33   :  { %1391 = vmatmul.bf16.gmra.mxu2 %v2101_v54  ;;  %v2742_v54 = vld [vmem:[%s4124_s0 + $0xe4] sm:$0xf]  ;;  %v2189_v60 = vor.u32 %v2744_v53, %v2188_v52  ;;  %v2236_v52 = vld [vmem:[%s4124_s0 + $0x140] sm:$0xf]  ;;  %v2756_v53 = vld [vmem:[%s4124_s0 + $0x14c] sm:$0xf0] }
  0x34   :  { %1560 = vmatmul.bf16.gmra.mxu3 %v2105_v55  ;;  %v2190_v55 = vld [vmem:[%s4124_s0 + $0xf0] sm:$0xf0] }
  0x35   :  { %v2193_v61 = vor.u32 %v2742_v54, %v2190_v55 }
  0x41   :  { %1058 = vmatmul.bf16.gmra.mxu0 %v2109_v0  ;;  %v2204_v0 = vld [vmem:[%s4124_s0 + $0x100] sm:$0xf] }
  0x42   :  { %1227 = vmatmul.bf16.gmra.mxu1 %v2113_v1  ;;  %v2748_v1 = vld [vmem:[%s4124_s0 + $0x10c] sm:$0xf0] }
  0x43   :  { %1396 = vmatmul.bf16.gmra.mxu2 %v2117_v2  ;;  %v2746_v2 = vld [vmem:[%s4124_s0 + $0x104] sm:$0xf]  ;;  %v2205_v8 = vor.u32 %v2748_v1, %v2204_v0 }
  0x44   :  { %1565 = vmatmul.bf16.gmra.mxu3 %v2121_v3  ;;  %v2206_v3 = vld [vmem:[%s4124_s0 + $0x110] sm:$0xf0] }
  0x45   :  { %v2209_v9 = vor.u32 %v2746_v2, %v2206_v3  ;;  %v2237_v2 = vor.u32 %v2756_v53, %v2236_v52  ;;  %v2241_v3 = vor.u32 %v2754_v56, %v2238_v57 }
  0x51   :  { %1063 = vmatmul.bf16.gmra.mxu0 %v2125_v12  ;;  %v2213_v12 = vor.u32 %v2749_v5, %v2212_v4 }
  0x52   :  { %1232 = vmatmul.bf16.gmra.mxu1 %v2129_v13  ;;  %v2217_v13 = vor.u32 %v2747_v6, %v2214_v7  ;;  %v2245_v7 = vor.u32 %v2757_v59, %v2244_v58  ;;  %v2762_v58 = vld [vmem:[%s4124_s0 + $0x184] sm:$0xf]  ;;  %v2270_v59 = vld [vmem:[%s4124_s0 + $0x190] sm:$0xf0] }
  0x53   :  { %1401 = vmatmul.bf16.gmra.mxu2 %v2133_v14 }
  0x54   :  { %1570 = vmatmul.bf16.gmra.mxu3 %v2137_v15 }
  0x61   :  { %1068 = vmatmul.bf16.gmra.mxu0 %v2141_v24  ;;  %v2228_v24 = vld [vmem:[%s4124_s0 + $0x128] sm:$0xf] }
  0x62   :  { %1237 = vmatmul.bf16.gmra.mxu1 %v2145_v25  ;;  %v2753_v25 = vld [vmem:[%s4124_s0 + $0x134] sm:$0xf0] }
  0x63   :  { %1406 = vmatmul.bf16.gmra.mxu2 %v2149_v26  ;;  %v2751_v26 = vld [vmem:[%s4124_s0 + $0x12c] sm:$0xf] }
  0x64   :  { %1575 = vmatmul.bf16.gmra.mxu3 %v2153_v27  ;;  %v2230_v27 = vld [vmem:[%s4124_s0 + $0x138] sm:$0xf0] }
  0x71   :  { %1073 = vmatmul.bf16.gmra.mxu0 %v2157_v36 }
  0x72   :  { %1242 = vmatmul.bf16.gmra.mxu1 %v2161_v37  ;;  %v2229_v37 = vor.u32 %v2753_v25, %v2228_v24  ;;  %v2758_v25 = vld [vmem:[%s4124_s0 + $0x164] sm:$0xf] }
  0x73   :  { %1411 = vmatmul.bf16.gmra.mxu2 %v2165_v38  ;;  %v2233_v38 = vor.u32 %v2751_v26, %v2230_v27  ;;  %v2254_v26 = vld [vmem:[%s4124_s0 + $0x170] sm:$0xf0]  ;;  %v2260_v27 = vld [vmem:[%s4124_s0 + $0x168] sm:$0xf] }
  0x74   :  { %1580 = vmatmul.bf16.gmra.mxu3 %v2169_v39 }
  0x81   :  { %1078 = vmatmul.bf16.gmra.mxu0 %v2173_v48 }
  0x82   :  { %1247 = vmatmul.bf16.gmra.mxu1 %v2177_v49 }
  0x83   :  { %1416 = vmatmul.bf16.gmra.mxu2 %v2181_v50 }
  0x84   :  { %1585 = vmatmul.bf16.gmra.mxu3 %v2185_v51 }
  0x91   :  { %1083 = vmatmul.bf16.gmra.mxu0 %v2189_v60  ;;  %v2755_v60 = vld [vmem:[%s4124_s0 + $0x14c] sm:$0xf] }
  0x92   :  { %1252 = vmatmul.bf16.gmra.mxu1 %v2193_v61  ;;  %v2246_v61 = vld [vmem:[%s4124_s0 + $0x158] sm:$0xf0] }
  0x93   :  { %1421 = vmatmul.bf16.gmra.mxu2 %v2197_v62 }
  0x94   :  { %1590 = vmatmul.bf16.gmra.mxu3 %v2201_v63 }
  0x9e   :  { %v1049_v10 = vpop.f32.mrf.mxu0 }
  0x9f   :  { %v1218_v11 = vpop.f32.mrf.mxu1 }
  0xa0   :  { %v1219_v14 = vadd.f32 %v1218_v11, %v1049_v10 }
  0xa1   :  { %1088 = vmatmul.bf16.gmra.mxu0 %v2205_v8  ;;  %v2249_v8 = vor.u32 %v2755_v60, %v2246_v61  ;;  %v2276_v60 = vld [vmem:[%s4124_s0 + $0x188] sm:$0xf]  ;;  %v2765_v61 = vld [vmem:[%s4124_s0 + $0x194] sm:$0xf0] }
  0xa2   :  { %1257 = vmatmul.bf16.gmra.mxu1 %v2209_v9 }
  0xa3   :  { %1426 = vmatmul.bf16.gmra.mxu2 %v2213_v12 }
  0xa4   :  { %1595 = vmatmul.bf16.gmra.mxu3 %v2217_v13 }
  0xa6   :  { %v1387_v15 = vpop.f32.mrf.mxu2  ;;  %v1051_v17 = vpop.f32.mrf.mxu0 }
  0xa7   :  { %v1556_v16 = vpop.f32.mrf.mxu3  ;;  %v1220_v18 = vpop.f32.mrf.mxu1  ;;  %v1388_v19 = vadd.f32 %v1387_v15, %v1219_v14 }
  0xa8   :  { %v1221_v28 = vadd.f32 %v1220_v18, %v1051_v17 }
  0xa9   :  { %v1557_v29 = vadd.f32 %v1556_v16, %v1388_v19 }
  0xab   :  { %v1845_v40 = vmul.f32 %v1557_v29, %v1557_v29 }
  0xae   :  { %v1389_v30 = vpop.f32.mrf.mxu2  ;;  %v1054_v35 = vpop.f32.mrf.mxu0 }
  0xaf   :  { %v1558_v31 = vpop.f32.mrf.mxu3  ;;  %v1390_v34 = vadd.f32 %v1389_v30, %v1221_v28  ;;  %v1223_v36 = vpop.f32.mrf.mxu1  ;;  %v2761_v28 = vld [vmem:[%s4124_s0 + $0x174] sm:$0xf0]  ;;  %v2262_v30 = vld [vmem:[%s4124_s0 + $0x178] sm:$0xf0] }
  0xb0   :  { %v1224_v41 = vadd.f32 %v1223_v36, %v1054_v35  ;;  %v2253_v35 = vor.u32 %v2760_v22, %v2252_v21  ;;  %v2257_v36 = vor.u32 %v2758_v25, %v2254_v26 }
  0xb1   :  { %v1559_v39 = vadd.f32 %v1558_v31, %v1390_v34  ;;  %1093 = vmatmul.bf16.gmra.mxu0 %v2221_v32 }
  0xb2   :  { %1262 = vmatmul.bf16.gmra.mxu1 %v2225_v33 }
  0xb3   :  { %v2877_v42 = vpack.c.bf16 %v1559_v39, %v1557_v29  ;;  %v1847_v43 = vadd.f32 %v1559_v39, %v1557_v29  ;;  %v1848_v44 = vmul.f32 %v1559_v39, %v1559_v39  ;;  %1431 = vmatmul.bf16.gmra.mxu2 %v2229_v37  ;;  %v2759_v29 = vld [vmem:[%s4124_s0 + $0x16c] sm:$0xf] }
  0xb4   :  { %1600 = vmatmul.bf16.gmra.mxu3 %v2233_v38 }
  0xb5   :  { %2878 = vst [vmem:[%s4126_s2] sm:$0xff] %v2877_v42   ;;  %v1849_v45 = vadd.f32 %v1848_v44, %v1845_v40  ;;  %v2261_v40 = vor.u32 %v2761_v28, %v2260_v27  ;;  %v2766_v27 = vld [vmem:[%s4124_s0 + $0x1a4] sm:$0xf]  ;;  %v2286_v28 = vld [vmem:[%s4124_s0 + $0x1b0] sm:$0xf0] }
  0xb6   :  { %v1392_v46 = vpop.f32.mrf.mxu2  ;;  %v1056_v49 = vpop.f32.mrf.mxu0 }
  0xb7   :  { %v1561_v47 = vpop.f32.mrf.mxu3  ;;  %v1393_v48 = vadd.f32 %v1392_v46, %v1224_v41  ;;  %v1225_v50 = vpop.f32.mrf.mxu1  ;;  %v2265_v41 = vor.u32 %v2759_v29, %v2262_v30  ;;  %v2292_v29 = vld [vmem:[%s4124_s0 + $0x1a8] sm:$0xf]  ;;  %v2769_v30 = vld [vmem:[%s4124_s0 + $0x1b4] sm:$0xf0] }
  0xb8   :  { %v1226_v63 = vadd.f32 %v1225_v50, %v1056_v49 }
  0xb9   :  { %v1562_v51 = vadd.f32 %v1561_v47, %v1393_v48 }
  0xbb   :  { %v1850_v54 = vadd.f32 %v1847_v43, %v1562_v51  ;;  %v1851_v55 = vmul.f32 %v1562_v51, %v1562_v51 }
  0xbd   :  { %v1852_v62 = vadd.f32 %v1851_v55, %v1849_v45  ;;  %v2764_v55 = vld [vmem:[%s4124_s0 + $0x18c] sm:$0xf0] }
  0xbe   :  { %v1394_v0 = vpop.f32.mrf.mxu2  ;;  %v1059_v5 = vpop.f32.mrf.mxu0 }
  0xbf   :  { %v1563_v1 = vpop.f32.mrf.mxu3  ;;  %v1395_v4 = vadd.f32 %v1394_v0, %v1226_v63  ;;  %v1228_v6 = vpop.f32.mrf.mxu1  ;;  %v2278_v63 = vld [vmem:[%s4124_s0 + $0x198] sm:$0xf0] }
  0xc0   :  { %v1229_v10 = vadd.f32 %v1228_v6, %v1059_v5  ;;  %v2273_v5 = vor.u32 %v2762_v58, %v2270_v59 }
  0xc1   :  { %v1564_v9 = vadd.f32 %v1563_v1, %v1395_v4  ;;  %1098 = vmatmul.bf16.gmra.mxu0 %v2237_v2 }
  0xc2   :  { %1267 = vmatmul.bf16.gmra.mxu1 %v2241_v3 }
  0xc3   :  { %v2882_v11 = vpack.c.bf16 %v1564_v9, %v1562_v51  ;;  %v1853_v12 = vadd.f32 %v1850_v54, %v1564_v9  ;;  %v1854_v13 = vmul.f32 %v1564_v9, %v1564_v9  ;;  %1436 = vmatmul.bf16.gmra.mxu2 %v2245_v7  ;;  %v2268_v54 = vld [vmem:[%s4124_s0 + $0x180] sm:$0xf]  ;;  %v2277_v9 = vor.u32 %v2765_v61, %v2276_v60  ;;  %v2770_v60 = vld [vmem:[%s4124_s0 + $0x1c4] sm:$0xf]  ;;  %v2302_v61 = vld [vmem:[%s4124_s0 + $0x1d0] sm:$0xf0] }
  0xc4   :  { %1605 = vmatmul.bf16.gmra.mxu3 %v2249_v8  ;;  %v2269_v4 = vor.u32 %v2764_v55, %v2268_v54 }
  0xc5   :  { %3034 = vst [vmem:[%s4126_s2 + $0x8] sm:$0xff] %v2882_v11   ;;  %v1855_v14 = vadd.f32 %v1854_v13, %v1852_v62  ;;  %v2763_v62 = vld [vmem:[%s4124_s0 + $0x18c] sm:$0xf] }
  0xc6   :  { %v1397_v15 = vpop.f32.mrf.mxu2  ;;  %v1061_v18 = vpop.f32.mrf.mxu0 }
  0xc7   :  { %v1566_v16 = vpop.f32.mrf.mxu3  ;;  %v1398_v17 = vadd.f32 %v1397_v15, %v1229_v10  ;;  %v1230_v19 = vpop.f32.mrf.mxu1  ;;  %v2281_v10 = vor.u32 %v2763_v62, %v2278_v63  ;;  %v2308_v62 = vld [vmem:[%s4124_s0 + $0x1c8] sm:$0xf]  ;;  %v2773_v63 = vld [vmem:[%s4124_s0 + $0x1d4] sm:$0xf0] }
  0xc8   :  { %v1231_v32 = vadd.f32 %v1230_v19, %v1061_v18 }
  0xc9   :  { %v1567_v20 = vadd.f32 %v1566_v16, %v1398_v17 }
  0xcb   :  { %v1856_v23 = vadd.f32 %v1853_v12, %v1567_v20  ;;  %v1857_v24 = vmul.f32 %v1567_v20, %v1567_v20 }
  0xcd   :  { %v1858_v31 = vadd.f32 %v1857_v24, %v1855_v14  ;;  %v2768_v24 = vld [vmem:[%s4124_s0 + $0x1ac] sm:$0xf0] }
  0xce   :  { %v1399_v33 = vpop.f32.mrf.mxu2  ;;  %v1064_v38 = vpop.f32.mrf.mxu0 }
  0xcf   :  { %v1568_v34 = vpop.f32.mrf.mxu3  ;;  %v1400_v37 = vadd.f32 %v1399_v33, %v1231_v32  ;;  %v1233_v39 = vpop.f32.mrf.mxu1  ;;  %v2294_v32 = vld [vmem:[%s4124_s0 + $0x1b8] sm:$0xf0] }
  0xd0   :  { %v1234_v43 = vadd.f32 %v1233_v39, %v1064_v38  ;;  %v2289_v38 = vor.u32 %v2766_v27, %v2286_v28 }
  0xd1   :  { %v1569_v42 = vadd.f32 %v1568_v34, %v1400_v37  ;;  %1103 = vmatmul.bf16.gmra.mxu0 %v2253_v35 }
  0xd2   :  { %1272 = vmatmul.bf16.gmra.mxu1 %v2257_v36 }
  0xd3   :  { %v2887_v44 = vpack.c.bf16 %v1569_v42, %v1567_v20  ;;  %v1859_v45 = vadd.f32 %v1856_v23, %v1569_v42  ;;  %v1860_v46 = vmul.f32 %v1569_v42, %v1569_v42  ;;  %1441 = vmatmul.bf16.gmra.mxu2 %v2261_v40  ;;  %v2284_v23 = vld [vmem:[%s4124_s0 + $0x1a0] sm:$0xf]  ;;  %v2293_v42 = vor.u32 %v2769_v30, %v2292_v29  ;;  %v2774_v29 = vld [vmem:[%s4124_s0 + $0x1e4] sm:$0xf]  ;;  %v2318_v30 = vld [vmem:[%s4124_s0 + $0x1f0] sm:$0xf0] }
  0xd4   :  { %1610 = vmatmul.bf16.gmra.mxu3 %v2265_v41  ;;  %v2285_v37 = vor.u32 %v2768_v24, %v2284_v23 }
  0xd5   :  { %3035 = vst [vmem:[%s4126_s2 + $0x10] sm:$0xff] %v2887_v44   ;;  %v1861_v47 = vadd.f32 %v1860_v46, %v1858_v31  ;;  %v2767_v31 = vld [vmem:[%s4124_s0 + $0x1ac] sm:$0xf] }
  0xd6   :  { %v1402_v48 = vpop.f32.mrf.mxu2  ;;  %v1066_v51 = vpop.f32.mrf.mxu0 }
  0xd7   :  { %v1571_v49 = vpop.f32.mrf.mxu3  ;;  %v1403_v50 = vadd.f32 %v1402_v48, %v1234_v43  ;;  %v1235_v52 = vpop.f32.mrf.mxu1  ;;  %v2297_v43 = vor.u32 %v2767_v31, %v2294_v32  ;;  %v2324_v31 = vld [vmem:[%s4124_s0 + $0x1e8] sm:$0xf]  ;;  %v2777_v32 = vld [vmem:[%s4124_s0 + $0x1f4] sm:$0xf0] }
  0xd8   :  { %v1236_v1 = vadd.f32 %v1235_v52, %v1066_v51 }
  0xd9   :  { %v1572_v53 = vadd.f32 %v1571_v49, %v1403_v50 }
  0xdb   :  { %v1862_v56 = vadd.f32 %v1859_v45, %v1572_v53  ;;  %v1863_v57 = vmul.f32 %v1572_v53, %v1572_v53 }
  0xdd   :  { %v1864_v0 = vadd.f32 %v1863_v57, %v1861_v47  ;;  %v2772_v57 = vld [vmem:[%s4124_s0 + $0x1cc] sm:$0xf0] }
  0xde   :  { %v1404_v2 = vpop.f32.mrf.mxu2  ;;  %v1069_v7 = vpop.f32.mrf.mxu0 }
  0xdf   :  { %v1573_v3 = vpop.f32.mrf.mxu3  ;;  %v1405_v6 = vadd.f32 %v1404_v2, %v1236_v1  ;;  %v1238_v8 = vpop.f32.mrf.mxu1  ;;  %v2310_v1 = vld [vmem:[%s4124_s0 + $0x1d8] sm:$0xf0] }
  0xe0   :  { %v1239_v12 = vadd.f32 %v1238_v8, %v1069_v7  ;;  %v2305_v7 = vor.u32 %v2770_v60, %v2302_v61 }
  0xe1   :  { %v1574_v11 = vadd.f32 %v1573_v3, %v1405_v6  ;;  %1108 = vmatmul.bf16.gmra.mxu0 %v2269_v4 }
  0xe2   :  { %1277 = vmatmul.bf16.gmra.mxu1 %v2273_v5 }
  0xe3   :  { %v2892_v13 = vpack.c.bf16 %v1574_v11, %v1572_v53  ;;  %v1865_v14 = vadd.f32 %v1862_v56, %v1574_v11  ;;  %v1866_v15 = vmul.f32 %v1574_v11, %v1574_v11  ;;  %1446 = vmatmul.bf16.gmra.mxu2 %v2277_v9  ;;  %v2300_v56 = vld [vmem:[%s4124_s0 + $0x1c0] sm:$0xf]  ;;  %v2309_v11 = vor.u32 %v2773_v63, %v2308_v62  ;;  %v2778_v62 = vld [vmem:[%s4124_s0 + $0x204] sm:$0xf]  ;;  %v2334_v63 = vld [vmem:[%s4124_s0 + $0x210] sm:$0xf0] }
  0xe4   :  { %1615 = vmatmul.bf16.gmra.mxu3 %v2281_v10  ;;  %v2301_v6 = vor.u32 %v2772_v57, %v2300_v56 }
  0xe5   :  { %3036 = vst [vmem:[%s4126_s2 + $0x18] sm:$0xff] %v2892_v13   ;;  %v1867_v16 = vadd.f32 %v1866_v15, %v1864_v0  ;;  %v2771_v0 = vld [vmem:[%s4124_s0 + $0x1cc] sm:$0xf] }
  0xe6   :  { %v1407_v17 = vpop.f32.mrf.mxu2  ;;  %v1071_v20 = vpop.f32.mrf.mxu0 }
  0xe7   :  { %v1576_v18 = vpop.f32.mrf.mxu3  ;;  %v1408_v19 = vadd.f32 %v1407_v17, %v1239_v12  ;;  %v1240_v21 = vpop.f32.mrf.mxu1  ;;  %v2313_v12 = vor.u32 %v2771_v0, %v2310_v1  ;;  %v2340_v0 = vld [vmem:[%s4124_s0 + $0x208] sm:$0xf]  ;;  %v2781_v1 = vld [vmem:[%s4124_s0 + $0x214] sm:$0xf0] }
  0xe8   :  { %v1241_v34 = vadd.f32 %v1240_v21, %v1071_v20 }
  0xe9   :  { %v1577_v22 = vadd.f32 %v1576_v18, %v1408_v19 }
  0xeb   :  { %v1868_v25 = vadd.f32 %v1865_v14, %v1577_v22  ;;  %v1869_v26 = vmul.f32 %v1577_v22, %v1577_v22 }
  0xed   :  { %v1870_v33 = vadd.f32 %v1869_v26, %v1867_v16  ;;  %v2776_v26 = vld [vmem:[%s4124_s0 + $0x1ec] sm:$0xf0] }
  0xee   :  { %v1409_v35 = vpop.f32.mrf.mxu2  ;;  %v1074_v40 = vpop.f32.mrf.mxu0 }
  0xef   :  { %v1578_v36 = vpop.f32.mrf.mxu3  ;;  %v1410_v39 = vadd.f32 %v1409_v35, %v1241_v34  ;;  %v1243_v41 = vpop.f32.mrf.mxu1  ;;  %v2326_v34 = vld [vmem:[%s4124_s0 + $0x1f8] sm:$0xf0] }
  0xf0   :  { %v1244_v45 = vadd.f32 %v1243_v41, %v1074_v40  ;;  %v2321_v40 = vor.u32 %v2774_v29, %v2318_v30 }
  0xf1   :  { %v1579_v44 = vadd.f32 %v1578_v36, %v1410_v39  ;;  %1113 = vmatmul.bf16.gmra.mxu0 %v2285_v37 }
  0xf2   :  { %1282 = vmatmul.bf16.gmra.mxu1 %v2289_v38 }
  0xf3   :  { %v2897_v46 = vpack.c.bf16 %v1579_v44, %v1577_v22  ;;  %v1871_v47 = vadd.f32 %v1868_v25, %v1579_v44  ;;  %v1872_v48 = vmul.f32 %v1579_v44, %v1579_v44  ;;  %1451 = vmatmul.bf16.gmra.mxu2 %v2293_v42  ;;  %v2316_v25 = vld [vmem:[%s4124_s0 + $0x1e0] sm:$0xf]  ;;  %v2325_v44 = vor.u32 %v2777_v32, %v2324_v31  ;;  %v2782_v31 = vld [vmem:[%s4124_s0 + $0x224] sm:$0xf]  ;;  %v2350_v32 = vld [vmem:[%s4124_s0 + $0x230] sm:$0xf0] }
  0xf4   :  { %1620 = vmatmul.bf16.gmra.mxu3 %v2297_v43  ;;  %v2317_v39 = vor.u32 %v2776_v26, %v2316_v25 }
  0xf5   :  { %3037 = vst [vmem:[%s4126_s2 + $0x20] sm:$0xff] %v2897_v46   ;;  %v1873_v49 = vadd.f32 %v1872_v48, %v1870_v33  ;;  %v2775_v33 = vld [vmem:[%s4124_s0 + $0x1ec] sm:$0xf] }
  0xf6   :  { %v1412_v50 = vpop.f32.mrf.mxu2  ;;  %v1076_v53 = vpop.f32.mrf.mxu0 }
  0xf7   :  { %v1581_v51 = vpop.f32.mrf.mxu3  ;;  %v1413_v52 = vadd.f32 %v1412_v50, %v1244_v45  ;;  %v1245_v54 = vpop.f32.mrf.mxu1  ;;  %v2329_v45 = vor.u32 %v2775_v33, %v2326_v34  ;;  %v2356_v33 = vld [vmem:[%s4124_s0 + $0x228] sm:$0xf]  ;;  %v2785_v34 = vld [vmem:[%s4124_s0 + $0x234] sm:$0xf0] }
  0xf8   :  { %v1246_v3 = vadd.f32 %v1245_v54, %v1076_v53 }
  0xf9   :  { %v1582_v55 = vadd.f32 %v1581_v51, %v1413_v52 }
  0xfb   :  { %v1874_v58 = vadd.f32 %v1871_v47, %v1582_v55  ;;  %v1875_v59 = vmul.f32 %v1582_v55, %v1582_v55 }
  0xfd   :  { %v1876_v2 = vadd.f32 %v1875_v59, %v1873_v49  ;;  %v2780_v59 = vld [vmem:[%s4124_s0 + $0x20c] sm:$0xf0] }
  0xfe   :  { %v1414_v4 = vpop.f32.mrf.mxu2  ;;  %v1079_v9 = vpop.f32.mrf.mxu0 }
  0xff   :  { %v1583_v5 = vpop.f32.mrf.mxu3  ;;  %v1415_v8 = vadd.f32 %v1414_v4, %v1246_v3  ;;  %v1248_v10 = vpop.f32.mrf.mxu1  ;;  %v2342_v3 = vld [vmem:[%s4124_s0 + $0x218] sm:$0xf0] }
 0x100   :  { %v1249_v14 = vadd.f32 %v1248_v10, %v1079_v9  ;;  %v2337_v9 = vor.u32 %v2778_v62, %v2334_v63 }
 0x101   :  { %v1584_v13 = vadd.f32 %v1583_v5, %v1415_v8  ;;  %1118 = vmatmul.bf16.gmra.mxu0 %v2301_v6 }
 0x102   :  { %1287 = vmatmul.bf16.gmra.mxu1 %v2305_v7 }
 0x103   :  { %v2902_v15 = vpack.c.bf16 %v1584_v13, %v1582_v55  ;;  %v1877_v16 = vadd.f32 %v1874_v58, %v1584_v13  ;;  %v1878_v17 = vmul.f32 %v1584_v13, %v1584_v13  ;;  %1456 = vmatmul.bf16.gmra.mxu2 %v2309_v11  ;;  %v2332_v58 = vld [vmem:[%s4124_s0 + $0x200] sm:$0xf]  ;;  %v2341_v13 = vor.u32 %v2781_v1, %v2340_v0  ;;  %v2786_v0 = vld [vmem:[%s4124_s0 + $0x244] sm:$0xf]  ;;  %v2366_v1 = vld [vmem:[%s4124_s0 + $0x250] sm:$0xf0] }
 0x104   :  { %1625 = vmatmul.bf16.gmra.mxu3 %v2313_v12  ;;  %v2333_v8 = vor.u32 %v2780_v59, %v2332_v58 }
 0x105   :  { %3038 = vst [vmem:[%s4126_s2 + $0x28] sm:$0xff] %v2902_v15   ;;  %v1879_v18 = vadd.f32 %v1878_v17, %v1876_v2  ;;  %v2779_v2 = vld [vmem:[%s4124_s0 + $0x20c] sm:$0xf] }
 0x106   :  { %v1417_v19 = vpop.f32.mrf.mxu2  ;;  %v1081_v22 = vpop.f32.mrf.mxu0 }
 0x107   :  { %v1586_v20 = vpop.f32.mrf.mxu3  ;;  %v1418_v21 = vadd.f32 %v1417_v19, %v1249_v14  ;;  %v1250_v23 = vpop.f32.mrf.mxu1  ;;  %v2345_v14 = vor.u32 %v2779_v2, %v2342_v3  ;;  %v2372_v2 = vld [vmem:[%s4124_s0 + $0x248] sm:$0xf]  ;;  %v2789_v3 = vld [vmem:[%s4124_s0 + $0x254] sm:$0xf0] }
 0x108   :  { %v1251_v36 = vadd.f32 %v1250_v23, %v1081_v22 }
 0x109   :  { %v1587_v24 = vadd.f32 %v1586_v20, %v1418_v21 }
 0x10b   :  { %v1880_v27 = vadd.f32 %v1877_v16, %v1587_v24  ;;  %v1881_v28 = vmul.f32 %v1587_v24, %v1587_v24 }
 0x10d   :  { %v1882_v35 = vadd.f32 %v1881_v28, %v1879_v18  ;;  %v2784_v28 = vld [vmem:[%s4124_s0 + $0x22c] sm:$0xf0] }
 0x10e   :  { %v1419_v37 = vpop.f32.mrf.mxu2  ;;  %v1084_v42 = vpop.f32.mrf.mxu0 }
 0x10f   :  { %v1588_v38 = vpop.f32.mrf.mxu3  ;;  %v1420_v41 = vadd.f32 %v1419_v37, %v1251_v36  ;;  %v1253_v43 = vpop.f32.mrf.mxu1  ;;  %v2358_v36 = vld [vmem:[%s4124_s0 + $0x238] sm:$0xf0] }
 0x110   :  { %v1254_v47 = vadd.f32 %v1253_v43, %v1084_v42  ;;  %v2353_v42 = vor.u32 %v2782_v31, %v2350_v32 }
 0x111   :  { %v1589_v46 = vadd.f32 %v1588_v38, %v1420_v41  ;;  %1123 = vmatmul.bf16.gmra.mxu0 %v2317_v39 }
 0x112   :  { %1292 = vmatmul.bf16.gmra.mxu1 %v2321_v40 }
 0x113   :  { %v2907_v48 = vpack.c.bf16 %v1589_v46, %v1587_v24  ;;  %v1883_v49 = vadd.f32 %v1880_v27, %v1589_v46  ;;  %v1884_v50 = vmul.f32 %v1589_v46, %v1589_v46  ;;  %1461 = vmatmul.bf16.gmra.mxu2 %v2325_v44  ;;  %v2348_v27 = vld [vmem:[%s4124_s0 + $0x220] sm:$0xf]  ;;  %v2357_v46 = vor.u32 %v2785_v34, %v2356_v33  ;;  %v2790_v33 = vld [vmem:[%s4124_s0 + $0x264] sm:$0xf]  ;;  %v2382_v34 = vld [vmem:[%s4124_s0 + $0x270] sm:$0xf0] }
 0x114   :  { %1630 = vmatmul.bf16.gmra.mxu3 %v2329_v45  ;;  %v2349_v41 = vor.u32 %v2784_v28, %v2348_v27 }
 0x115   :  { %3039 = vst [vmem:[%s4126_s2 + $0x30] sm:$0xff] %v2907_v48   ;;  %v1885_v51 = vadd.f32 %v1884_v50, %v1882_v35  ;;  %v2783_v35 = vld [vmem:[%s4124_s0 + $0x22c] sm:$0xf] }
 0x116   :  { %v1422_v52 = vpop.f32.mrf.mxu2  ;;  %v1086_v55 = vpop.f32.mrf.mxu0 }
 0x117   :  { %v1591_v53 = vpop.f32.mrf.mxu3  ;;  %v1423_v54 = vadd.f32 %v1422_v52, %v1254_v47  ;;  %v1255_v56 = vpop.f32.mrf.mxu1  ;;  %v2361_v47 = vor.u32 %v2783_v35, %v2358_v36  ;;  %v2388_v35 = vld [vmem:[%s4124_s0 + $0x268] sm:$0xf]  ;;  %v2793_v36 = vld [vmem:[%s4124_s0 + $0x274] sm:$0xf0] }
 0x118   :  { %v1256_v5 = vadd.f32 %v1255_v56, %v1086_v55 }
 0x119   :  { %v1592_v57 = vadd.f32 %v1591_v53, %v1423_v54 }
 0x11b   :  { %v1886_v60 = vadd.f32 %v1883_v49, %v1592_v57  ;;  %v1887_v61 = vmul.f32 %v1592_v57, %v1592_v57 }
 0x11d   :  { %v1888_v4 = vadd.f32 %v1887_v61, %v1885_v51  ;;  %v2788_v61 = vld [vmem:[%s4124_s0 + $0x24c] sm:$0xf0] }
 0x11e   :  { %v1424_v6 = vpop.f32.mrf.mxu2  ;;  %v1089_v11 = vpop.f32.mrf.mxu0 }
 0x11f   :  { %v1593_v7 = vpop.f32.mrf.mxu3  ;;  %v1425_v10 = vadd.f32 %v1424_v6, %v1256_v5  ;;  %v1258_v12 = vpop.f32.mrf.mxu1  ;;  %v2374_v5 = vld [vmem:[%s4124_s0 + $0x258] sm:$0xf0] }
 0x120   :  { %v1259_v16 = vadd.f32 %v1258_v12, %v1089_v11  ;;  %v2369_v11 = vor.u32 %v2786_v0, %v2366_v1 }
 0x121   :  { %v1594_v15 = vadd.f32 %v1593_v7, %v1425_v10  ;;  %1128 = vmatmul.bf16.gmra.mxu0 %v2333_v8 }
 0x122   :  { %1297 = vmatmul.bf16.gmra.mxu1 %v2337_v9 }
 0x123   :  { %v2912_v17 = vpack.c.bf16 %v1594_v15, %v1592_v57  ;;  %v1889_v18 = vadd.f32 %v1886_v60, %v1594_v15  ;;  %v1890_v19 = vmul.f32 %v1594_v15, %v1594_v15  ;;  %1466 = vmatmul.bf16.gmra.mxu2 %v2341_v13  ;;  %v2364_v60 = vld [vmem:[%s4124_s0 + $0x240] sm:$0xf]  ;;  %v2373_v15 = vor.u32 %v2789_v3, %v2372_v2  ;;  %v2794_v2 = vld [vmem:[%s4124_s0 + $0x284] sm:$0xf]  ;;  %v2398_v3 = vld [vmem:[%s4124_s0 + $0x290] sm:$0xf0] }
 0x124   :  { %1635 = vmatmul.bf16.gmra.mxu3 %v2345_v14  ;;  %v2365_v10 = vor.u32 %v2788_v61, %v2364_v60 }
 0x125   :  { %3040 = vst [vmem:[%s4126_s2 + $0x38] sm:$0xff] %v2912_v17   ;;  %v1891_v20 = vadd.f32 %v1890_v19, %v1888_v4  ;;  %v2787_v4 = vld [vmem:[%s4124_s0 + $0x24c] sm:$0xf] }
 0x126   :  { %v1427_v21 = vpop.f32.mrf.mxu2  ;;  %v1091_v24 = vpop.f32.mrf.mxu0 }
 0x127   :  { %v1596_v22 = vpop.f32.mrf.mxu3  ;;  %v1428_v23 = vadd.f32 %v1427_v21, %v1259_v16  ;;  %v1260_v25 = vpop.f32.mrf.mxu1  ;;  %v2377_v16 = vor.u32 %v2787_v4, %v2374_v5  ;;  %v2404_v4 = vld [vmem:[%s4124_s0 + $0x288] sm:$0xf]  ;;  %v2797_v5 = vld [vmem:[%s4124_s0 + $0x294] sm:$0xf0] }
 0x128   :  { %v1261_v38 = vadd.f32 %v1260_v25, %v1091_v24 }
 0x129   :  { %v1597_v26 = vadd.f32 %v1596_v22, %v1428_v23 }
 0x12b   :  { %v1892_v29 = vadd.f32 %v1889_v18, %v1597_v26  ;;  %v1893_v30 = vmul.f32 %v1597_v26, %v1597_v26 }
 0x12d   :  { %v1894_v37 = vadd.f32 %v1893_v30, %v1891_v20  ;;  %v2792_v30 = vld [vmem:[%s4124_s0 + $0x26c] sm:$0xf0] }
 0x12e   :  { %v1429_v39 = vpop.f32.mrf.mxu2  ;;  %v1094_v44 = vpop.f32.mrf.mxu0 }
 0x12f   :  { %v1598_v40 = vpop.f32.mrf.mxu3  ;;  %v1430_v43 = vadd.f32 %v1429_v39, %v1261_v38  ;;  %v1263_v45 = vpop.f32.mrf.mxu1  ;;  %v2390_v38 = vld [vmem:[%s4124_s0 + $0x278] sm:$0xf0] }
 0x130   :  { %v1264_v49 = vadd.f32 %v1263_v45, %v1094_v44  ;;  %v2385_v44 = vor.u32 %v2790_v33, %v2382_v34 }
 0x131   :  { %v1599_v48 = vadd.f32 %v1598_v40, %v1430_v43  ;;  %1133 = vmatmul.bf16.gmra.mxu0 %v2349_v41 }
 0x132   :  { %1302 = vmatmul.bf16.gmra.mxu1 %v2353_v42 }
 0x133   :  { %v2917_v50 = vpack.c.bf16 %v1599_v48, %v1597_v26  ;;  %v1895_v51 = vadd.f32 %v1892_v29, %v1599_v48  ;;  %v1896_v52 = vmul.f32 %v1599_v48, %v1599_v48  ;;  %1471 = vmatmul.bf16.gmra.mxu2 %v2357_v46  ;;  %v2380_v29 = vld [vmem:[%s4124_s0 + $0x260] sm:$0xf]  ;;  %v2389_v48 = vor.u32 %v2793_v36, %v2388_v35  ;;  %v2798_v35 = vld [vmem:[%s4124_s0 + $0x2a4] sm:$0xf]  ;;  %v2414_v36 = vld [vmem:[%s4124_s0 + $0x2b0] sm:$0xf0] }
 0x134   :  { %1640 = vmatmul.bf16.gmra.mxu3 %v2361_v47  ;;  %v2381_v43 = vor.u32 %v2792_v30, %v2380_v29 }
 0x135   :  { %3041 = vst [vmem:[%s4126_s2 + $0x40] sm:$0xff] %v2917_v50   ;;  %v1897_v53 = vadd.f32 %v1896_v52, %v1894_v37  ;;  %v2791_v37 = vld [vmem:[%s4124_s0 + $0x26c] sm:$0xf] }
 0x136   :  { %v1432_v54 = vpop.f32.mrf.mxu2  ;;  %v1096_v57 = vpop.f32.mrf.mxu0 }
 0x137   :  { %v1601_v55 = vpop.f32.mrf.mxu3  ;;  %v1433_v56 = vadd.f32 %v1432_v54, %v1264_v49  ;;  %v1265_v58 = vpop.f32.mrf.mxu1  ;;  %v2393_v49 = vor.u32 %v2791_v37, %v2390_v38  ;;  %v2420_v37 = vld [vmem:[%s4124_s0 + $0x2a8] sm:$0xf]  ;;  %v2801_v38 = vld [vmem:[%s4124_s0 + $0x2b4] sm:$0xf0] }
 0x138   :  { %v1266_v7 = vadd.f32 %v1265_v58, %v1096_v57 }
 0x139   :  { %v1602_v59 = vadd.f32 %v1601_v55, %v1433_v56 }
 0x13b   :  { %v1898_v62 = vadd.f32 %v1895_v51, %v1602_v59  ;;  %v1899_v63 = vmul.f32 %v1602_v59, %v1602_v59 }
 0x13d   :  { %v1900_v6 = vadd.f32 %v1899_v63, %v1897_v53  ;;  %v2796_v63 = vld [vmem:[%s4124_s0 + $0x28c] sm:$0xf0] }
 0x13e   :  { %v1434_v8 = vpop.f32.mrf.mxu2  ;;  %v1099_v13 = vpop.f32.mrf.mxu0 }
 0x13f   :  { %v1603_v9 = vpop.f32.mrf.mxu3  ;;  %v1435_v12 = vadd.f32 %v1434_v8, %v1266_v7  ;;  %v1268_v14 = vpop.f32.mrf.mxu1  ;;  %v2406_v7 = vld [vmem:[%s4124_s0 + $0x298] sm:$0xf0] }
 0x140   :  { %v1269_v18 = vadd.f32 %v1268_v14, %v1099_v13  ;;  %v2401_v13 = vor.u32 %v2794_v2, %v2398_v3 }
 0x141   :  { %v1604_v17 = vadd.f32 %v1603_v9, %v1435_v12  ;;  %1138 = vmatmul.bf16.gmra.mxu0 %v2365_v10 }
 0x142   :  { %1307 = vmatmul.bf16.gmra.mxu1 %v2369_v11 }
 0x143   :  { %v2922_v19 = vpack.c.bf16 %v1604_v17, %v1602_v59  ;;  %v1901_v20 = vadd.f32 %v1898_v62, %v1604_v17  ;;  %v1902_v21 = vmul.f32 %v1604_v17, %v1604_v17  ;;  %1476 = vmatmul.bf16.gmra.mxu2 %v2373_v15  ;;  %v2396_v62 = vld [vmem:[%s4124_s0 + $0x280] sm:$0xf]  ;;  %v2405_v17 = vor.u32 %v2797_v5, %v2404_v4  ;;  %v2802_v4 = vld [vmem:[%s4124_s0 + $0x2c4] sm:$0xf]  ;;  %v2430_v5 = vld [vmem:[%s4124_s0 + $0x2d0] sm:$0xf0] }
 0x144   :  { %1645 = vmatmul.bf16.gmra.mxu3 %v2377_v16  ;;  %v2397_v12 = vor.u32 %v2796_v63, %v2396_v62 }
 0x145   :  { %3042 = vst [vmem:[%s4126_s2 + $0x48] sm:$0xff] %v2922_v19   ;;  %v1903_v22 = vadd.f32 %v1902_v21, %v1900_v6  ;;  %v2795_v6 = vld [vmem:[%s4124_s0 + $0x28c] sm:$0xf] }
 0x146   :  { %v1437_v23 = vpop.f32.mrf.mxu2  ;;  %v1101_v26 = vpop.f32.mrf.mxu0 }
 0x147   :  { %v1606_v24 = vpop.f32.mrf.mxu3  ;;  %v1438_v25 = vadd.f32 %v1437_v23, %v1269_v18  ;;  %v1270_v27 = vpop.f32.mrf.mxu1  ;;  %v2409_v18 = vor.u32 %v2795_v6, %v2406_v7  ;;  %v2436_v6 = vld [vmem:[%s4124_s0 + $0x2c8] sm:$0xf]  ;;  %v2805_v7 = vld [vmem:[%s4124_s0 + $0x2d4] sm:$0xf0] }
 0x148   :  { %v1271_v40 = vadd.f32 %v1270_v27, %v1101_v26 }
 0x149   :  { %v1607_v28 = vadd.f32 %v1606_v24, %v1438_v25 }
 0x14b   :  { %v1904_v31 = vadd.f32 %v1901_v20, %v1607_v28  ;;  %v1905_v32 = vmul.f32 %v1607_v28, %v1607_v28 }
 0x14d   :  { %v1906_v39 = vadd.f32 %v1905_v32, %v1903_v22  ;;  %v2800_v32 = vld [vmem:[%s4124_s0 + $0x2ac] sm:$0xf0] }
 0x14e   :  { %v1439_v41 = vpop.f32.mrf.mxu2  ;;  %v1104_v46 = vpop.f32.mrf.mxu0 }
 0x14f   :  { %v1608_v42 = vpop.f32.mrf.mxu3  ;;  %v1440_v45 = vadd.f32 %v1439_v41, %v1271_v40  ;;  %v1273_v47 = vpop.f32.mrf.mxu1  ;;  %v2422_v40 = vld [vmem:[%s4124_s0 + $0x2b8] sm:$0xf0] }
 0x150   :  { %v1274_v51 = vadd.f32 %v1273_v47, %v1104_v46  ;;  %v2417_v46 = vor.u32 %v2798_v35, %v2414_v36 }
 0x151   :  { %v1609_v50 = vadd.f32 %v1608_v42, %v1440_v45  ;;  %1143 = vmatmul.bf16.gmra.mxu0 %v2381_v43 }
 0x152   :  { %1312 = vmatmul.bf16.gmra.mxu1 %v2385_v44 }
 0x153   :  { %v2927_v52 = vpack.c.bf16 %v1609_v50, %v1607_v28  ;;  %v1907_v53 = vadd.f32 %v1904_v31, %v1609_v50  ;;  %v1908_v54 = vmul.f32 %v1609_v50, %v1609_v50  ;;  %1481 = vmatmul.bf16.gmra.mxu2 %v2389_v48  ;;  %v2412_v31 = vld [vmem:[%s4124_s0 + $0x2a0] sm:$0xf]  ;;  %v2421_v50 = vor.u32 %v2801_v38, %v2420_v37  ;;  %v2806_v37 = vld [vmem:[%s4124_s0 + $0x2e4] sm:$0xf]  ;;  %v2446_v38 = vld [vmem:[%s4124_s0 + $0x2f0] sm:$0xf0] }
 0x154   :  { %1650 = vmatmul.bf16.gmra.mxu3 %v2393_v49  ;;  %v2413_v45 = vor.u32 %v2800_v32, %v2412_v31 }
 0x155   :  { %3043 = vst [vmem:[%s4126_s2 + $0x50] sm:$0xff] %v2927_v52   ;;  %v1909_v55 = vadd.f32 %v1908_v54, %v1906_v39  ;;  %v2799_v39 = vld [vmem:[%s4124_s0 + $0x2ac] sm:$0xf] }
 0x156   :  { %v1442_v56 = vpop.f32.mrf.mxu2  ;;  %v1106_v59 = vpop.f32.mrf.mxu0 }
 0x157   :  { %v1611_v57 = vpop.f32.mrf.mxu3  ;;  %v1443_v58 = vadd.f32 %v1442_v56, %v1274_v51  ;;  %v1275_v60 = vpop.f32.mrf.mxu1  ;;  %v2425_v51 = vor.u32 %v2799_v39, %v2422_v40  ;;  %v2452_v39 = vld [vmem:[%s4124_s0 + $0x2e8] sm:$0xf]  ;;  %v2809_v40 = vld [vmem:[%s4124_s0 + $0x2f4] sm:$0xf0] }
 0x158   :  { %v1276_v9 = vadd.f32 %v1275_v60, %v1106_v59 }
 0x159   :  { %v1612_v61 = vadd.f32 %v1611_v57, %v1443_v58 }
 0x15b   :  { %v1910_v0 = vadd.f32 %v1907_v53, %v1612_v61  ;;  %v1911_v1 = vmul.f32 %v1612_v61, %v1612_v61 }
 0x15d   :  { %v1912_v8 = vadd.f32 %v1911_v1, %v1909_v55  ;;  %v2804_v1 = vld [vmem:[%s4124_s0 + $0x2cc] sm:$0xf0] }
 0x15e   :  { %v1444_v10 = vpop.f32.mrf.mxu2  ;;  %v1109_v15 = vpop.f32.mrf.mxu0 }
 0x15f   :  { %v1613_v11 = vpop.f32.mrf.mxu3  ;;  %v1445_v14 = vadd.f32 %v1444_v10, %v1276_v9  ;;  %v1278_v16 = vpop.f32.mrf.mxu1  ;;  %v2438_v9 = vld [vmem:[%s4124_s0 + $0x2d8] sm:$0xf0] }
 0x160   :  { %v1279_v20 = vadd.f32 %v1278_v16, %v1109_v15  ;;  %v2433_v15 = vor.u32 %v2802_v4, %v2430_v5 }
 0x161   :  { %v1614_v19 = vadd.f32 %v1613_v11, %v1445_v14  ;;  %1148 = vmatmul.bf16.gmra.mxu0 %v2397_v12 }
 0x162   :  { %1317 = vmatmul.bf16.gmra.mxu1 %v2401_v13 }
 0x163   :  { %v2932_v21 = vpack.c.bf16 %v1614_v19, %v1612_v61  ;;  %v1913_v22 = vadd.f32 %v1910_v0, %v1614_v19  ;;  %v1914_v23 = vmul.f32 %v1614_v19, %v1614_v19  ;;  %1486 = vmatmul.bf16.gmra.mxu2 %v2405_v17  ;;  %v2428_v0 = vld [vmem:[%s4124_s0 + $0x2c0] sm:$0xf]  ;;  %v2437_v19 = vor.u32 %v2805_v7, %v2436_v6  ;;  %v2810_v6 = vld [vmem:[%s4124_s0 + $0x304] sm:$0xf]  ;;  %v2462_v7 = vld [vmem:[%s4124_s0 + $0x310] sm:$0xf0] }
 0x164   :  { %1655 = vmatmul.bf16.gmra.mxu3 %v2409_v18  ;;  %v2429_v14 = vor.u32 %v2804_v1, %v2428_v0 }
 0x165   :  { %3044 = vst [vmem:[%s4126_s2 + $0x58] sm:$0xff] %v2932_v21   ;;  %v1915_v24 = vadd.f32 %v1914_v23, %v1912_v8  ;;  %v2803_v8 = vld [vmem:[%s4124_s0 + $0x2cc] sm:$0xf] }
 0x166   :  { %v1447_v25 = vpop.f32.mrf.mxu2  ;;  %v1111_v28 = vpop.f32.mrf.mxu0 }
 0x167   :  { %v1616_v26 = vpop.f32.mrf.mxu3  ;;  %v1448_v27 = vadd.f32 %v1447_v25, %v1279_v20  ;;  %v1280_v29 = vpop.f32.mrf.mxu1  ;;  %v2441_v20 = vor.u32 %v2803_v8, %v2438_v9  ;;  %v2468_v8 = vld [vmem:[%s4124_s0 + $0x308] sm:$0xf]  ;;  %v2813_v9 = vld [vmem:[%s4124_s0 + $0x314] sm:$0xf0] }
 0x168   :  { %v1281_v42 = vadd.f32 %v1280_v29, %v1111_v28 }
 0x169   :  { %v1617_v30 = vadd.f32 %v1616_v26, %v1448_v27 }
 0x16b   :  { %v1916_v33 = vadd.f32 %v1913_v22, %v1617_v30  ;;  %v1917_v34 = vmul.f32 %v1617_v30, %v1617_v30 }
 0x16d   :  { %v1918_v41 = vadd.f32 %v1917_v34, %v1915_v24  ;;  %v2808_v34 = vld [vmem:[%s4124_s0 + $0x2ec] sm:$0xf0] }
 0x16e   :  { %v1449_v43 = vpop.f32.mrf.mxu2  ;;  %v1114_v48 = vpop.f32.mrf.mxu0 }
 0x16f   :  { %v1618_v44 = vpop.f32.mrf.mxu3  ;;  %v1450_v47 = vadd.f32 %v1449_v43, %v1281_v42  ;;  %v1283_v49 = vpop.f32.mrf.mxu1  ;;  %v2454_v42 = vld [vmem:[%s4124_s0 + $0x2f8] sm:$0xf0] }
 0x170   :  { %v1284_v53 = vadd.f32 %v1283_v49, %v1114_v48  ;;  %v2449_v48 = vor.u32 %v2806_v37, %v2446_v38 }
 0x171   :  { %v1619_v52 = vadd.f32 %v1618_v44, %v1450_v47  ;;  %1153 = vmatmul.bf16.gmra.mxu0 %v2413_v45 }
 0x172   :  { %1322 = vmatmul.bf16.gmra.mxu1 %v2417_v46 }
 0x173   :  { %v2937_v54 = vpack.c.bf16 %v1619_v52, %v1617_v30  ;;  %v1919_v55 = vadd.f32 %v1916_v33, %v1619_v52  ;;  %v1920_v56 = vmul.f32 %v1619_v52, %v1619_v52  ;;  %1491 = vmatmul.bf16.gmra.mxu2 %v2421_v50  ;;  %v2444_v33 = vld [vmem:[%s4124_s0 + $0x2e0] sm:$0xf]  ;;  %v2453_v52 = vor.u32 %v2809_v40, %v2452_v39  ;;  %v2814_v39 = vld [vmem:[%s4124_s0 + $0x324] sm:$0xf]  ;;  %v2478_v40 = vld [vmem:[%s4124_s0 + $0x330] sm:$0xf0] }
 0x174   :  { %1660 = vmatmul.bf16.gmra.mxu3 %v2425_v51  ;;  %v2445_v47 = vor.u32 %v2808_v34, %v2444_v33 }
 0x175   :  { %3045 = vst [vmem:[%s4126_s2 + $0x60] sm:$0xff] %v2937_v54   ;;  %v1921_v57 = vadd.f32 %v1920_v56, %v1918_v41  ;;  %v2807_v41 = vld [vmem:[%s4124_s0 + $0x2ec] sm:$0xf] }
 0x176   :  { %v1452_v58 = vpop.f32.mrf.mxu2  ;;  %v1116_v61 = vpop.f32.mrf.mxu0 }
 0x177   :  { %v1621_v59 = vpop.f32.mrf.mxu3  ;;  %v1453_v60 = vadd.f32 %v1452_v58, %v1284_v53  ;;  %v1285_v62 = vpop.f32.mrf.mxu1  ;;  %v2457_v53 = vor.u32 %v2807_v41, %v2454_v42  ;;  %v2484_v41 = vld [vmem:[%s4124_s0 + $0x328] sm:$0xf]  ;;  %v2817_v42 = vld [vmem:[%s4124_s0 + $0x334] sm:$0xf0] }
 0x178   :  { %v1286_v11 = vadd.f32 %v1285_v62, %v1116_v61 }
 0x179   :  { %v1622_v63 = vadd.f32 %v1621_v59, %v1453_v60 }
 0x17b   :  { %v1922_v2 = vadd.f32 %v1919_v55, %v1622_v63  ;;  %v1923_v3 = vmul.f32 %v1622_v63, %v1622_v63 }
 0x17d   :  { %v1924_v10 = vadd.f32 %v1923_v3, %v1921_v57  ;;  %v2812_v3 = vld [vmem:[%s4124_s0 + $0x30c] sm:$0xf0] }
 0x17e   :  { %v1454_v12 = vpop.f32.mrf.mxu2  ;;  %v1119_v17 = vpop.f32.mrf.mxu0 }
 0x17f   :  { %v1623_v13 = vpop.f32.mrf.mxu3  ;;  %v1455_v16 = vadd.f32 %v1454_v12, %v1286_v11  ;;  %v1288_v18 = vpop.f32.mrf.mxu1  ;;  %v2470_v11 = vld [vmem:[%s4124_s0 + $0x318] sm:$0xf0] }
 0x180   :  { %v1289_v22 = vadd.f32 %v1288_v18, %v1119_v17  ;;  %v2465_v17 = vor.u32 %v2810_v6, %v2462_v7 }
 0x181   :  { %v1624_v21 = vadd.f32 %v1623_v13, %v1455_v16  ;;  %1158 = vmatmul.bf16.gmra.mxu0 %v2429_v14 }
 0x182   :  { %1327 = vmatmul.bf16.gmra.mxu1 %v2433_v15 }
 0x183   :  { %v2942_v23 = vpack.c.bf16 %v1624_v21, %v1622_v63  ;;  %v1925_v24 = vadd.f32 %v1922_v2, %v1624_v21  ;;  %v1926_v25 = vmul.f32 %v1624_v21, %v1624_v21  ;;  %1496 = vmatmul.bf16.gmra.mxu2 %v2437_v19  ;;  %v2460_v2 = vld [vmem:[%s4124_s0 + $0x300] sm:$0xf]  ;;  %v2469_v21 = vor.u32 %v2813_v9, %v2468_v8  ;;  %v2818_v8 = vld [vmem:[%s4124_s0 + $0x344] sm:$0xf]  ;;  %v2494_v9 = vld [vmem:[%s4124_s0 + $0x350] sm:$0xf0] }
 0x184   :  { %1665 = vmatmul.bf16.gmra.mxu3 %v2441_v20  ;;  %v2461_v16 = vor.u32 %v2812_v3, %v2460_v2 }
 0x185   :  { %3046 = vst [vmem:[%s4126_s2 + $0x68] sm:$0xff] %v2942_v23   ;;  %v1927_v26 = vadd.f32 %v1926_v25, %v1924_v10  ;;  %v2811_v10 = vld [vmem:[%s4124_s0 + $0x30c] sm:$0xf] }
 0x186   :  { %v1457_v27 = vpop.f32.mrf.mxu2  ;;  %v1121_v30 = vpop.f32.mrf.mxu0 }
 0x187   :  { %v1626_v28 = vpop.f32.mrf.mxu3  ;;  %v1458_v29 = vadd.f32 %v1457_v27, %v1289_v22  ;;  %v1290_v31 = vpop.f32.mrf.mxu1  ;;  %v2473_v22 = vor.u32 %v2811_v10, %v2470_v11  ;;  %v2500_v10 = vld [vmem:[%s4124_s0 + $0x348] sm:$0xf]  ;;  %v2821_v11 = vld [vmem:[%s4124_s0 + $0x354] sm:$0xf0] }
 0x188   :  { %v1291_v44 = vadd.f32 %v1290_v31, %v1121_v30 }
 0x189   :  { %v1627_v32 = vadd.f32 %v1626_v28, %v1458_v29 }
 0x18b   :  { %v1928_v35 = vadd.f32 %v1925_v24, %v1627_v32  ;;  %v1929_v36 = vmul.f32 %v1627_v32, %v1627_v32 }
 0x18d   :  { %v1930_v43 = vadd.f32 %v1929_v36, %v1927_v26  ;;  %v2816_v36 = vld [vmem:[%s4124_s0 + $0x32c] sm:$0xf0] }
 0x18e   :  { %v1459_v45 = vpop.f32.mrf.mxu2  ;;  %v1124_v50 = vpop.f32.mrf.mxu0 }
 0x18f   :  { %v1628_v46 = vpop.f32.mrf.mxu3  ;;  %v1460_v49 = vadd.f32 %v1459_v45, %v1291_v44  ;;  %v1293_v51 = vpop.f32.mrf.mxu1  ;;  %v2486_v44 = vld [vmem:[%s4124_s0 + $0x338] sm:$0xf0] }
 0x190   :  { %v1294_v55 = vadd.f32 %v1293_v51, %v1124_v50  ;;  %v2481_v50 = vor.u32 %v2814_v39, %v2478_v40 }
 0x191   :  { %v1629_v54 = vadd.f32 %v1628_v46, %v1460_v49  ;;  %1163 = vmatmul.bf16.gmra.mxu0 %v2445_v47 }
 0x192   :  { %1332 = vmatmul.bf16.gmra.mxu1 %v2449_v48 }
 0x193   :  { %v2947_v56 = vpack.c.bf16 %v1629_v54, %v1627_v32  ;;  %v1931_v57 = vadd.f32 %v1928_v35, %v1629_v54  ;;  %v1932_v58 = vmul.f32 %v1629_v54, %v1629_v54  ;;  %1501 = vmatmul.bf16.gmra.mxu2 %v2453_v52  ;;  %v2476_v35 = vld [vmem:[%s4124_s0 + $0x320] sm:$0xf]  ;;  %v2485_v54 = vor.u32 %v2817_v42, %v2484_v41  ;;  %v2822_v41 = vld [vmem:[%s4124_s0 + $0x364] sm:$0xf]  ;;  %v2510_v42 = vld [vmem:[%s4124_s0 + $0x370] sm:$0xf0] }
 0x194   :  { %1670 = vmatmul.bf16.gmra.mxu3 %v2457_v53  ;;  %v2477_v49 = vor.u32 %v2816_v36, %v2476_v35 }
 0x195   :  { %3047 = vst [vmem:[%s4126_s2 + $0x70] sm:$0xff] %v2947_v56   ;;  %v1933_v59 = vadd.f32 %v1932_v58, %v1930_v43  ;;  %v2815_v43 = vld [vmem:[%s4124_s0 + $0x32c] sm:$0xf] }
 0x196   :  { %v1462_v60 = vpop.f32.mrf.mxu2  ;;  %v1126_v63 = vpop.f32.mrf.mxu0 }
 0x197   :  { %v1631_v61 = vpop.f32.mrf.mxu3  ;;  %v1463_v62 = vadd.f32 %v1462_v60, %v1294_v55  ;;  %v1295_v0 = vpop.f32.mrf.mxu1  ;;  %v2489_v55 = vor.u32 %v2815_v43, %v2486_v44  ;;  %v2516_v43 = vld [vmem:[%s4124_s0 + $0x368] sm:$0xf]  ;;  %v2825_v44 = vld [vmem:[%s4124_s0 + $0x374] sm:$0xf0] }
 0x198   :  { %v1296_v13 = vadd.f32 %v1295_v0, %v1126_v63 }
 0x199   :  { %v1632_v1 = vadd.f32 %v1631_v61, %v1463_v62 }
 0x19b   :  { %v1934_v4 = vadd.f32 %v1931_v57, %v1632_v1  ;;  %v1935_v5 = vmul.f32 %v1632_v1, %v1632_v1 }
 0x19d   :  { %v1936_v12 = vadd.f32 %v1935_v5, %v1933_v59  ;;  %v2820_v5 = vld [vmem:[%s4124_s0 + $0x34c] sm:$0xf0] }
 0x19e   :  { %v1464_v14 = vpop.f32.mrf.mxu2  ;;  %v1129_v19 = vpop.f32.mrf.mxu0 }
 0x19f   :  { %v1633_v15 = vpop.f32.mrf.mxu3  ;;  %v1465_v18 = vadd.f32 %v1464_v14, %v1296_v13  ;;  %v1298_v20 = vpop.f32.mrf.mxu1  ;;  %v2502_v13 = vld [vmem:[%s4124_s0 + $0x358] sm:$0xf0] }
 0x1a0   :  { %v1299_v24 = vadd.f32 %v1298_v20, %v1129_v19  ;;  %v2497_v19 = vor.u32 %v2818_v8, %v2494_v9 }
 0x1a1   :  { %v1634_v23 = vadd.f32 %v1633_v15, %v1465_v18  ;;  %1168 = vmatmul.bf16.gmra.mxu0 %v2461_v16 }
 0x1a2   :  { %1337 = vmatmul.bf16.gmra.mxu1 %v2465_v17 }
 0x1a3   :  { %v2952_v25 = vpack.c.bf16 %v1634_v23, %v1632_v1  ;;  %v1937_v26 = vadd.f32 %v1934_v4, %v1634_v23  ;;  %v1938_v27 = vmul.f32 %v1634_v23, %v1634_v23  ;;  %1506 = vmatmul.bf16.gmra.mxu2 %v2469_v21  ;;  %v2492_v4 = vld [vmem:[%s4124_s0 + $0x340] sm:$0xf]  ;;  %v2501_v23 = vor.u32 %v2821_v11, %v2500_v10  ;;  %v2826_v10 = vld [vmem:[%s4124_s0 + $0x384] sm:$0xf]  ;;  %v2526_v11 = vld [vmem:[%s4124_s0 + $0x390] sm:$0xf0] }
 0x1a4   :  { %1675 = vmatmul.bf16.gmra.mxu3 %v2473_v22  ;;  %v2493_v18 = vor.u32 %v2820_v5, %v2492_v4 }
 0x1a5   :  { %3048 = vst [vmem:[%s4126_s2 + $0x78] sm:$0xff] %v2952_v25   ;;  %v1939_v28 = vadd.f32 %v1938_v27, %v1936_v12  ;;  %v2819_v12 = vld [vmem:[%s4124_s0 + $0x34c] sm:$0xf] }
 0x1a6   :  { %v1467_v29 = vpop.f32.mrf.mxu2  ;;  %v1131_v32 = vpop.f32.mrf.mxu0 }
 0x1a7   :  { %v1636_v30 = vpop.f32.mrf.mxu3  ;;  %v1468_v31 = vadd.f32 %v1467_v29, %v1299_v24  ;;  %v1300_v33 = vpop.f32.mrf.mxu1  ;;  %v2505_v24 = vor.u32 %v2819_v12, %v2502_v13  ;;  %v2532_v12 = vld [vmem:[%s4124_s0 + $0x388] sm:$0xf]  ;;  %v2829_v13 = vld [vmem:[%s4124_s0 + $0x394] sm:$0xf0] }
 0x1a8   :  { %v1301_v46 = vadd.f32 %v1300_v33, %v1131_v32 }
 0x1a9   :  { %v1637_v34 = vadd.f32 %v1636_v30, %v1468_v31 }
 0x1ab   :  { %v1940_v37 = vadd.f32 %v1937_v26, %v1637_v34  ;;  %v1941_v38 = vmul.f32 %v1637_v34, %v1637_v34 }
 0x1ad   :  { %v1942_v45 = vadd.f32 %v1941_v38, %v1939_v28  ;;  %v2824_v38 = vld [vmem:[%s4124_s0 + $0x36c] sm:$0xf0] }
 0x1ae   :  { %v1469_v47 = vpop.f32.mrf.mxu2  ;;  %v1134_v52 = vpop.f32.mrf.mxu0 }
 0x1af   :  { %v1638_v48 = vpop.f32.mrf.mxu3  ;;  %v1470_v51 = vadd.f32 %v1469_v47, %v1301_v46  ;;  %v1303_v53 = vpop.f32.mrf.mxu1  ;;  %v2518_v46 = vld [vmem:[%s4124_s0 + $0x378] sm:$0xf0] }
 0x1b0   :  { %v1304_v57 = vadd.f32 %v1303_v53, %v1134_v52  ;;  %v2513_v52 = vor.u32 %v2822_v41, %v2510_v42 }
 0x1b1   :  { %v1639_v56 = vadd.f32 %v1638_v48, %v1470_v51  ;;  %1173 = vmatmul.bf16.gmra.mxu0 %v2477_v49 }
 0x1b2   :  { %1342 = vmatmul.bf16.gmra.mxu1 %v2481_v50 }
 0x1b3   :  { %v2957_v58 = vpack.c.bf16 %v1639_v56, %v1637_v34  ;;  %v1943_v59 = vadd.f32 %v1940_v37, %v1639_v56  ;;  %v1944_v60 = vmul.f32 %v1639_v56, %v1639_v56  ;;  %1511 = vmatmul.bf16.gmra.mxu2 %v2485_v54  ;;  %v2508_v37 = vld [vmem:[%s4124_s0 + $0x360] sm:$0xf]  ;;  %v2517_v56 = vor.u32 %v2825_v44, %v2516_v43  ;;  %v2830_v43 = vld [vmem:[%s4124_s0 + $0x3a4] sm:$0xf]  ;;  %v2542_v44 = vld [vmem:[%s4124_s0 + $0x3b0] sm:$0xf0] }
 0x1b4   :  { %1680 = vmatmul.bf16.gmra.mxu3 %v2489_v55  ;;  %v2509_v51 = vor.u32 %v2824_v38, %v2508_v37 }
 0x1b5   :  { %3049 = vst [vmem:[%s4126_s2 + $0x80] sm:$0xff] %v2957_v58   ;;  %v1945_v61 = vadd.f32 %v1944_v60, %v1942_v45  ;;  %v2823_v45 = vld [vmem:[%s4124_s0 + $0x36c] sm:$0xf] }
 0x1b6   :  { %v1472_v62 = vpop.f32.mrf.mxu2  ;;  %v1136_v1 = vpop.f32.mrf.mxu0 }
 0x1b7   :  { %v1641_v63 = vpop.f32.mrf.mxu3  ;;  %v1473_v0 = vadd.f32 %v1472_v62, %v1304_v57  ;;  %v1305_v2 = vpop.f32.mrf.mxu1  ;;  %v2521_v57 = vor.u32 %v2823_v45, %v2518_v46  ;;  %v2548_v45 = vld [vmem:[%s4124_s0 + $0x3a8] sm:$0xf]  ;;  %v2833_v46 = vld [vmem:[%s4124_s0 + $0x3b4] sm:$0xf0] }
 0x1b8   :  { %v1306_v15 = vadd.f32 %v1305_v2, %v1136_v1 }
 0x1b9   :  { %v1642_v3 = vadd.f32 %v1641_v63, %v1473_v0 }
 0x1bb   :  { %v1946_v6 = vadd.f32 %v1943_v59, %v1642_v3  ;;  %v1947_v7 = vmul.f32 %v1642_v3, %v1642_v3 }
 0x1bd   :  { %v1948_v14 = vadd.f32 %v1947_v7, %v1945_v61  ;;  %v2828_v7 = vld [vmem:[%s4124_s0 + $0x38c] sm:$0xf0] }
 0x1be   :  { %v1474_v16 = vpop.f32.mrf.mxu2  ;;  %v1139_v21 = vpop.f32.mrf.mxu0 }
 0x1bf   :  { %v1643_v17 = vpop.f32.mrf.mxu3  ;;  %v1475_v20 = vadd.f32 %v1474_v16, %v1306_v15  ;;  %v1308_v22 = vpop.f32.mrf.mxu1  ;;  %v2534_v15 = vld [vmem:[%s4124_s0 + $0x398] sm:$0xf0] }
 0x1c0   :  { %v1309_v26 = vadd.f32 %v1308_v22, %v1139_v21  ;;  %v2529_v21 = vor.u32 %v2826_v10, %v2526_v11 }
 0x1c1   :  { %v1644_v25 = vadd.f32 %v1643_v17, %v1475_v20  ;;  %1178 = vmatmul.bf16.gmra.mxu0 %v2493_v18 }
 0x1c2   :  { %1347 = vmatmul.bf16.gmra.mxu1 %v2497_v19 }
 0x1c3   :  { %v2962_v27 = vpack.c.bf16 %v1644_v25, %v1642_v3  ;;  %v1949_v28 = vadd.f32 %v1946_v6, %v1644_v25  ;;  %v1950_v29 = vmul.f32 %v1644_v25, %v1644_v25  ;;  %1516 = vmatmul.bf16.gmra.mxu2 %v2501_v23  ;;  %v2524_v6 = vld [vmem:[%s4124_s0 + $0x380] sm:$0xf]  ;;  %v2533_v25 = vor.u32 %v2829_v13, %v2532_v12  ;;  %v2834_v12 = vld [vmem:[%s4124_s0 + $0x3c4] sm:$0xf]  ;;  %v2558_v13 = vld [vmem:[%s4124_s0 + $0x3d0] sm:$0xf0] }
 0x1c4   :  { %1685 = vmatmul.bf16.gmra.mxu3 %v2505_v24  ;;  %v2525_v20 = vor.u32 %v2828_v7, %v2524_v6 }
 0x1c5   :  { %3050 = vst [vmem:[%s4126_s2 + $0x88] sm:$0xff] %v2962_v27   ;;  %v1951_v30 = vadd.f32 %v1950_v29, %v1948_v14  ;;  %v2827_v14 = vld [vmem:[%s4124_s0 + $0x38c] sm:$0xf] }
 0x1c6   :  { %v1477_v31 = vpop.f32.mrf.mxu2  ;;  %v1141_v34 = vpop.f32.mrf.mxu0 }
 0x1c7   :  { %v1646_v32 = vpop.f32.mrf.mxu3  ;;  %v1478_v33 = vadd.f32 %v1477_v31, %v1309_v26  ;;  %v1310_v35 = vpop.f32.mrf.mxu1  ;;  %v2537_v26 = vor.u32 %v2827_v14, %v2534_v15  ;;  %v2564_v14 = vld [vmem:[%s4124_s0 + $0x3c8] sm:$0xf]  ;;  %v2837_v15 = vld [vmem:[%s4124_s0 + $0x3d4] sm:$0xf0] }
 0x1c8   :  { %v1311_v48 = vadd.f32 %v1310_v35, %v1141_v34 }
 0x1c9   :  { %v1647_v36 = vadd.f32 %v1646_v32, %v1478_v33 }
 0x1cb   :  { %v1952_v39 = vadd.f32 %v1949_v28, %v1647_v36  ;;  %v1953_v40 = vmul.f32 %v1647_v36, %v1647_v36 }
 0x1cd   :  { %v1954_v47 = vadd.f32 %v1953_v40, %v1951_v30  ;;  %v2832_v40 = vld [vmem:[%s4124_s0 + $0x3ac] sm:$0xf0] }
 0x1ce   :  { %v1479_v49 = vpop.f32.mrf.mxu2  ;;  %v1144_v54 = vpop.f32.mrf.mxu0 }
 0x1cf   :  { %v1648_v50 = vpop.f32.mrf.mxu3  ;;  %v1480_v53 = vadd.f32 %v1479_v49, %v1311_v48  ;;  %v1313_v55 = vpop.f32.mrf.mxu1  ;;  %v2550_v48 = vld [vmem:[%s4124_s0 + $0x3b8] sm:$0xf0] }
 0x1d0   :  { %v1314_v59 = vadd.f32 %v1313_v55, %v1144_v54  ;;  %v2545_v54 = vor.u32 %v2830_v43, %v2542_v44 }
 0x1d1   :  { %v1649_v58 = vadd.f32 %v1648_v50, %v1480_v53  ;;  %1183 = vmatmul.bf16.gmra.mxu0 %v2509_v51 }
 0x1d2   :  { %1352 = vmatmul.bf16.gmra.mxu1 %v2513_v52 }
 0x1d3   :  { %v2967_v60 = vpack.c.bf16 %v1649_v58, %v1647_v36  ;;  %v1955_v61 = vadd.f32 %v1952_v39, %v1649_v58  ;;  %v1956_v62 = vmul.f32 %v1649_v58, %v1649_v58  ;;  %1521 = vmatmul.bf16.gmra.mxu2 %v2517_v56  ;;  %v2540_v39 = vld [vmem:[%s4124_s0 + $0x3a0] sm:$0xf]  ;;  %v2549_v58 = vor.u32 %v2833_v46, %v2548_v45  ;;  %v2838_v45 = vld [vmem:[%s4124_s0 + $0x3e4] sm:$0xf]  ;;  %v2574_v46 = vld [vmem:[%s4124_s0 + $0x3f0] sm:$0xf0] }
 0x1d4   :  { %1690 = vmatmul.bf16.gmra.mxu3 %v2521_v57  ;;  %v2541_v53 = vor.u32 %v2832_v40, %v2540_v39 }
 0x1d5   :  { %3051 = vst [vmem:[%s4126_s2 + $0x90] sm:$0xff] %v2967_v60   ;;  %v1957_v63 = vadd.f32 %v1956_v62, %v1954_v47  ;;  %v2831_v47 = vld [vmem:[%s4124_s0 + $0x3ac] sm:$0xf] }
 0x1d6   :  { %v1482_v0 = vpop.f32.mrf.mxu2  ;;  %v1146_v3 = vpop.f32.mrf.mxu0 }
 0x1d7   :  { %v1651_v1 = vpop.f32.mrf.mxu3  ;;  %v1483_v2 = vadd.f32 %v1482_v0, %v1314_v59  ;;  %v1315_v4 = vpop.f32.mrf.mxu1  ;;  %v2553_v59 = vor.u32 %v2831_v47, %v2550_v48  ;;  %v2580_v47 = vld [vmem:[%s4124_s0 + $0x3e8] sm:$0xf]  ;;  %v2841_v48 = vld [vmem:[%s4124_s0 + $0x3f4] sm:$0xf0] }
 0x1d8   :  { %v1316_v17 = vadd.f32 %v1315_v4, %v1146_v3 }
 0x1d9   :  { %v1652_v5 = vadd.f32 %v1651_v1, %v1483_v2 }
 0x1db   :  { %v1958_v8 = vadd.f32 %v1955_v61, %v1652_v5  ;;  %v1959_v9 = vmul.f32 %v1652_v5, %v1652_v5 }
 0x1dd   :  { %v1960_v16 = vadd.f32 %v1959_v9, %v1957_v63  ;;  %v2836_v9 = vld [vmem:[%s4124_s0 + $0x3cc] sm:$0xf0] }
 0x1de   :  { %v1484_v18 = vpop.f32.mrf.mxu2  ;;  %v1149_v23 = vpop.f32.mrf.mxu0 }
 0x1df   :  { %v1653_v19 = vpop.f32.mrf.mxu3  ;;  %v1485_v22 = vadd.f32 %v1484_v18, %v1316_v17  ;;  %v1318_v24 = vpop.f32.mrf.mxu1  ;;  %v2566_v17 = vld [vmem:[%s4124_s0 + $0x3d8] sm:$0xf0] }
 0x1e0   :  { %v1319_v28 = vadd.f32 %v1318_v24, %v1149_v23  ;;  %v2561_v23 = vor.u32 %v2834_v12, %v2558_v13 }
 0x1e1   :  { %v1654_v27 = vadd.f32 %v1653_v19, %v1485_v22  ;;  %1188 = vmatmul.bf16.gmra.mxu0 %v2525_v20 }
 0x1e2   :  { %1357 = vmatmul.bf16.gmra.mxu1 %v2529_v21 }
 0x1e3   :  { %v2972_v29 = vpack.c.bf16 %v1654_v27, %v1652_v5  ;;  %v1961_v30 = vadd.f32 %v1958_v8, %v1654_v27  ;;  %v1962_v31 = vmul.f32 %v1654_v27, %v1654_v27  ;;  %1526 = vmatmul.bf16.gmra.mxu2 %v2533_v25  ;;  %v2556_v8 = vld [vmem:[%s4124_s0 + $0x3c0] sm:$0xf]  ;;  %v2565_v27 = vor.u32 %v2837_v15, %v2564_v14 }
 0x1e4   :  { %1695 = vmatmul.bf16.gmra.mxu3 %v2537_v26  ;;  %v2557_v22 = vor.u32 %v2836_v9, %v2556_v8 }
 0x1e5   :  { %3052 = vst [vmem:[%s4126_s2 + $0x98] sm:$0xff] %v2972_v29   ;;  %v1963_v32 = vadd.f32 %v1962_v31, %v1960_v16  ;;  %v2835_v16 = vld [vmem:[%s4124_s0 + $0x3cc] sm:$0xf] }
 0x1e6   :  { %v1487_v33 = vpop.f32.mrf.mxu2  ;;  %v1151_v36 = vpop.f32.mrf.mxu0 }
 0x1e7   :  { %v1656_v34 = vpop.f32.mrf.mxu3  ;;  %v1488_v35 = vadd.f32 %v1487_v33, %v1319_v28  ;;  %v1320_v37 = vpop.f32.mrf.mxu1  ;;  %v2569_v28 = vor.u32 %v2835_v16, %v2566_v17 }
 0x1e8   :  { %v1321_v50 = vadd.f32 %v1320_v37, %v1151_v36 }
 0x1e9   :  { %v1657_v38 = vadd.f32 %v1656_v34, %v1488_v35 }
 0x1eb   :  { %v1964_v41 = vadd.f32 %v1961_v30, %v1657_v38  ;;  %v1965_v42 = vmul.f32 %v1657_v38, %v1657_v38 }
 0x1ed   :  { %v1966_v49 = vadd.f32 %v1965_v42, %v1963_v32  ;;  %v2840_v42 = vld [vmem:[%s4124_s0 + $0x3ec] sm:$0xf0] }
 0x1ee   :  { %v1489_v51 = vpop.f32.mrf.mxu2  ;;  %v1154_v56 = vpop.f32.mrf.mxu0 }
 0x1ef   :  { %v1658_v52 = vpop.f32.mrf.mxu3  ;;  %v1490_v55 = vadd.f32 %v1489_v51, %v1321_v50  ;;  %v1323_v57 = vpop.f32.mrf.mxu1  ;;  %v2582_v50 = vld [vmem:[%s4124_s0 + $0x3f8] sm:$0xf0] }
 0x1f0   :  { %v1324_v61 = vadd.f32 %v1323_v57, %v1154_v56  ;;  %v2577_v56 = vor.u32 %v2838_v45, %v2574_v46 }
 0x1f1   :  { %v1659_v60 = vadd.f32 %v1658_v52, %v1490_v55  ;;  %1193 = vmatmul.bf16.gmra.mxu0 %v2541_v53 }
 0x1f2   :  { %1362 = vmatmul.bf16.gmra.mxu1 %v2545_v54 }
 0x1f3   :  { %v2977_v62 = vpack.c.bf16 %v1659_v60, %v1657_v38  ;;  %v1967_v63 = vadd.f32 %v1964_v41, %v1659_v60  ;;  %v1968_v0 = vmul.f32 %v1659_v60, %v1659_v60  ;;  %1531 = vmatmul.bf16.gmra.mxu2 %v2549_v58  ;;  %v2572_v41 = vld [vmem:[%s4124_s0 + $0x3e0] sm:$0xf]  ;;  %v2581_v60 = vor.u32 %v2841_v48, %v2580_v47 }
 0x1f4   :  { %1700 = vmatmul.bf16.gmra.mxu3 %v2553_v59  ;;  %v2573_v55 = vor.u32 %v2840_v42, %v2572_v41 }
 0x1f5   :  { %3053 = vst [vmem:[%s4126_s2 + $0xa0] sm:$0xff] %v2977_v62   ;;  %v1969_v1 = vadd.f32 %v1968_v0, %v1966_v49  ;;  %v2839_v49 = vld [vmem:[%s4124_s0 + $0x3ec] sm:$0xf] }
 0x1f6   :  { %v1492_v2 = vpop.f32.mrf.mxu2  ;;  %v1156_v5 = vpop.f32.mrf.mxu0 }
 0x1f7   :  { %v1661_v3 = vpop.f32.mrf.mxu3  ;;  %v1493_v4 = vadd.f32 %v1492_v2, %v1324_v61  ;;  %v1325_v6 = vpop.f32.mrf.mxu1  ;;  %v2585_v61 = vor.u32 %v2839_v49, %v2582_v50 }
 0x1f8   :  { %v1326_v19 = vadd.f32 %v1325_v6, %v1156_v5 }
 0x1f9   :  { %v1662_v7 = vadd.f32 %v1661_v3, %v1493_v4 }
 0x1fb   :  { %v1970_v10 = vadd.f32 %v1967_v63, %v1662_v7  ;;  %v1971_v11 = vmul.f32 %v1662_v7, %v1662_v7 }
 0x1fd   :  { %v1972_v18 = vadd.f32 %v1971_v11, %v1969_v1 }
 0x1fe   :  { %v1494_v20 = vpop.f32.mrf.mxu2  ;;  %v1159_v25 = vpop.f32.mrf.mxu0 }
 0x1ff   :  { %v1663_v21 = vpop.f32.mrf.mxu3  ;;  %v1495_v24 = vadd.f32 %v1494_v20, %v1326_v19  ;;  %v1328_v26 = vpop.f32.mrf.mxu1 }
 0x200   :  { %v1329_v30 = vadd.f32 %v1328_v26, %v1159_v25 }
 0x201   :  { %v1664_v29 = vadd.f32 %v1663_v21, %v1495_v24  ;;  %1198 = vmatmul.bf16.gmra.mxu0 %v2557_v22 }
 0x202   :  { %1367 = vmatmul.bf16.gmra.mxu1 %v2561_v23 }
 0x203   :  { %v2982_v31 = vpack.c.bf16 %v1664_v29, %v1662_v7  ;;  %v1973_v32 = vadd.f32 %v1970_v10, %v1664_v29  ;;  %v1974_v33 = vmul.f32 %v1664_v29, %v1664_v29  ;;  %1536 = vmatmul.bf16.gmra.mxu2 %v2565_v27 }
 0x204   :  { %1705 = vmatmul.bf16.gmra.mxu3 %v2569_v28 }
 0x205   :  { %3054 = vst [vmem:[%s4126_s2 + $0xa8] sm:$0xff] %v2982_v31   ;;  %v1975_v34 = vadd.f32 %v1974_v33, %v1972_v18 }
 0x206   :  { %v1497_v35 = vpop.f32.mrf.mxu2  ;;  %v1161_v38 = vpop.f32.mrf.mxu0 }
 0x207   :  { %v1666_v36 = vpop.f32.mrf.mxu3  ;;  %v1498_v37 = vadd.f32 %v1497_v35, %v1329_v30  ;;  %v1330_v39 = vpop.f32.mrf.mxu1 }
 0x208   :  { %v1331_v52 = vadd.f32 %v1330_v39, %v1161_v38 }
 0x209   :  { %v1667_v40 = vadd.f32 %v1666_v36, %v1498_v37 }
 0x20b   :  { %v1976_v43 = vadd.f32 %v1973_v32, %v1667_v40  ;;  %v1977_v44 = vmul.f32 %v1667_v40, %v1667_v40 }
 0x20d   :  { %v1978_v51 = vadd.f32 %v1977_v44, %v1975_v34 }
 0x20e   :  { %v1499_v53 = vpop.f32.mrf.mxu2  ;;  %v1164_v58 = vpop.f32.mrf.mxu0 }
 0x20f   :  { %v1668_v54 = vpop.f32.mrf.mxu3  ;;  %v1500_v57 = vadd.f32 %v1499_v53, %v1331_v52  ;;  %v1333_v59 = vpop.f32.mrf.mxu1 }
 0x210   :  { %v1334_v63 = vadd.f32 %v1333_v59, %v1164_v58 }
 0x211   :  { %v1669_v62 = vadd.f32 %v1668_v54, %v1500_v57  ;;  %1203 = vmatmul.bf16.gmra.mxu0 %v2573_v55 }
 0x212   :  { %1372 = vmatmul.bf16.gmra.mxu1 %v2577_v56 }
 0x213   :  { %v2987_v0 = vpack.c.bf16 %v1669_v62, %v1667_v40  ;;  %v1979_v1 = vadd.f32 %v1976_v43, %v1669_v62  ;;  %v1980_v2 = vmul.f32 %v1669_v62, %v1669_v62  ;;  %1541 = vmatmul.bf16.gmra.mxu2 %v2581_v60 }
 0x214   :  { %1710 = vmatmul.bf16.gmra.mxu3 %v2585_v61 }
 0x215   :  { %3055 = vst [vmem:[%s4126_s2 + $0xb0] sm:$0xff] %v2987_v0   ;;  %v1981_v3 = vadd.f32 %v1980_v2, %v1978_v51 }
 0x216   :  { %v1502_v4 = vpop.f32.mrf.mxu2  ;;  %v1166_v7 = vpop.f32.mrf.mxu0 }
 0x217   :  { %v1671_v5 = vpop.f32.mrf.mxu3  ;;  %v1503_v6 = vadd.f32 %v1502_v4, %v1334_v63  ;;  %v1335_v8 = vpop.f32.mrf.mxu1 }
 0x218   :  { %v1336_v13 = vadd.f32 %v1335_v8, %v1166_v7 }
 0x219   :  { %v1672_v9 = vadd.f32 %v1671_v5, %v1503_v6 }
 0x21b   :  { %v1982_v10 = vadd.f32 %v1979_v1, %v1672_v9  ;;  %v1983_v11 = vmul.f32 %v1672_v9, %v1672_v9 }
 0x21d   :  { %v1984_v12 = vadd.f32 %v1983_v11, %v1981_v3 }
 0x21e   :  { %v1504_v14 = vpop.f32.mrf.mxu2  ;;  %v1169_v17 = vpop.f32.mrf.mxu0 }
 0x21f   :  { %v1673_v15 = vpop.f32.mrf.mxu3  ;;  %v1505_v16 = vadd.f32 %v1504_v14, %v1336_v13  ;;  %v1338_v18 = vpop.f32.mrf.mxu1 }
 0x220   :  { %v1339_v23 = vadd.f32 %v1338_v18, %v1169_v17 }
 0x221   :  { %v1674_v19 = vadd.f32 %v1673_v15, %v1505_v16 }
 0x223   :  { %v2992_v20 = vpack.c.bf16 %v1674_v19, %v1672_v9  ;;  %v1985_v21 = vadd.f32 %v1982_v10, %v1674_v19  ;;  %v1986_v22 = vmul.f32 %v1674_v19, %v1674_v19 }
 0x225   :  { %3056 = vst [vmem:[%s4126_s2 + $0xb8] sm:$0xff] %v2992_v20   ;;  %v1987_v24 = vadd.f32 %v1986_v22, %v1984_v12 }
 0x226   :  { %v1507_v25 = vpop.f32.mrf.mxu2  ;;  %v1171_v28 = vpop.f32.mrf.mxu0 }
 0x227   :  { %v1676_v26 = vpop.f32.mrf.mxu3  ;;  %v1508_v27 = vadd.f32 %v1507_v25, %v1339_v23  ;;  %v1340_v29 = vpop.f32.mrf.mxu1 }
 0x228   :  { %v1341_v34 = vadd.f32 %v1340_v29, %v1171_v28 }
 0x229   :  { %v1677_v30 = vadd.f32 %v1676_v26, %v1508_v27 }
 0x22b   :  { %v1988_v31 = vadd.f32 %v1985_v21, %v1677_v30  ;;  %v1989_v32 = vmul.f32 %v1677_v30, %v1677_v30 }
 0x22d   :  { %v1990_v33 = vadd.f32 %v1989_v32, %v1987_v24 }
 0x22e   :  { %v1509_v35 = vpop.f32.mrf.mxu2  ;;  %v1174_v38 = vpop.f32.mrf.mxu0 }
 0x22f   :  { %v1678_v36 = vpop.f32.mrf.mxu3  ;;  %v1510_v37 = vadd.f32 %v1509_v35, %v1341_v34  ;;  %v1343_v39 = vpop.f32.mrf.mxu1 }
 0x230   :  { %v1344_v44 = vadd.f32 %v1343_v39, %v1174_v38 }
 0x231   :  { %v1679_v40 = vadd.f32 %v1678_v36, %v1510_v37 }
 0x233   :  { %v2997_v41 = vpack.c.bf16 %v1679_v40, %v1677_v30  ;;  %v1991_v42 = vadd.f32 %v1988_v31, %v1679_v40  ;;  %v1992_v43 = vmul.f32 %v1679_v40, %v1679_v40 }
 0x235   :  { %3057 = vst [vmem:[%s4126_s2 + $0xc0] sm:$0xff] %v2997_v41   ;;  %v1993_v45 = vadd.f32 %v1992_v43, %v1990_v33 }
 0x236   :  { %v1512_v46 = vpop.f32.mrf.mxu2  ;;  %v1176_v49 = vpop.f32.mrf.mxu0 }
 0x237   :  { %v1681_v47 = vpop.f32.mrf.mxu3  ;;  %v1513_v48 = vadd.f32 %v1512_v46, %v1344_v44  ;;  %v1345_v50 = vpop.f32.mrf.mxu1 }
 0x238   :  { %v1346_v55 = vadd.f32 %v1345_v50, %v1176_v49 }
 0x239   :  { %v1682_v51 = vadd.f32 %v1681_v47, %v1513_v48 }
 0x23b   :  { %v1994_v52 = vadd.f32 %v1991_v42, %v1682_v51  ;;  %v1995_v53 = vmul.f32 %v1682_v51, %v1682_v51 }
 0x23d   :  { %v1996_v54 = vadd.f32 %v1995_v53, %v1993_v45 }
 0x23e   :  { %v1514_v56 = vpop.f32.mrf.mxu2  ;;  %v1179_v59 = vpop.f32.mrf.mxu0 }
 0x23f   :  { %v1683_v57 = vpop.f32.mrf.mxu3  ;;  %v1515_v58 = vadd.f32 %v1514_v56, %v1346_v55  ;;  %v1348_v60 = vpop.f32.mrf.mxu1 }
 0x240   :  { %v1349_v6 = vadd.f32 %v1348_v60, %v1179_v59 }
 0x241   :  { %v1684_v61 = vadd.f32 %v1683_v57, %v1515_v58 }
 0x243   :  { %v3002_v62 = vpack.c.bf16 %v1684_v61, %v1682_v51  ;;  %v4085_v63 = vadd.f32 %v1994_v52, %v1684_v61  ;;  %v1998_v0 = vmul.f32 %v1684_v61, %v1684_v61 }
 0x245   :  { %3058 = vst [vmem:[%s4126_s2 + $0xc8] sm:$0xff] %v3002_v62   ;;  %v4090_v1 = vadd.f32 %v1998_v0, %v1996_v54 }
 0x246   :  { %v1517_v2 = vpop.f32.mrf.mxu2  ;;  %v1181_v4 = vpop.f32.mrf.mxu0 }
 0x247   :  { %v1686_v3 = vpop.f32.mrf.mxu3  ;;  %v1350_v5 = vpop.f32.mrf.mxu1  ;;  %v1518_v7 = vadd.f32 %v1517_v2, %v1349_v6 }
 0x248   :  { %v1351_v8 = vadd.f32 %v1350_v5, %v1181_v4 }
 0x249   :  { %v1687_v14 = vadd.f32 %v1686_v3, %v1518_v7 }
 0x24b   :  { %v2001_v5 = vmul.f32 %v1687_v14, %v1687_v14  ;;  %v2000_v7 = vadd.f32 %v4085_v63, %v1687_v14 }
 0x24e   :  { %v1519_v9 = vpop.f32.mrf.mxu2  ;;  %v1184_v12 = vpop.f32.mrf.mxu0 }
 0x24f   :  { %v1688_v10 = vpop.f32.mrf.mxu3  ;;  %v1520_v11 = vadd.f32 %v1519_v9, %v1351_v8  ;;  %v1353_v13 = vpop.f32.mrf.mxu1 }
 0x250   :  { %v1354_v21 = vadd.f32 %v1353_v13, %v1184_v12 }
 0x251   :  { %v4092_v15 = vadd.f32 %v1688_v10, %v1520_v11  ;;  %v2002_v10 = vadd.f32 %v2001_v5, %v4090_v1 }
 0x253   :  { %v3007_v16 = vpack.c.bf16 %v4092_v15, %v1687_v14  ;;  %v2004_v6 = vmul.f32 %v4092_v15, %v4092_v15 }
 0x255   :  { %3059 = vst [vmem:[%s4126_s2 + $0xd0] sm:$0xff] %v3007_v16   ;;  %v2003_v16 = vadd.f32 %v2000_v7, %v4092_v15 }
 0x256   :  { %v1522_v17 = vpop.f32.mrf.mxu2  ;;  %v1186_v19 = vpop.f32.mrf.mxu0 }
 0x257   :  { %v1691_v18 = vpop.f32.mrf.mxu3  ;;  %v1355_v20 = vpop.f32.mrf.mxu1  ;;  %v1523_v22 = vadd.f32 %v1522_v17, %v1354_v21 }
 0x258   :  { %v1356_v23 = vadd.f32 %v1355_v20, %v1186_v19 }
 0x259   :  { %v1692_v29 = vadd.f32 %v1691_v18, %v1523_v22  ;;  %v2005_v18 = vadd.f32 %v2004_v6, %v2002_v10 }
 0x25b   :  { %v2007_v11 = vmul.f32 %v1692_v29, %v1692_v29  ;;  %v2006_v21 = vadd.f32 %v2003_v16, %v1692_v29 }
 0x25e   :  { %v1524_v24 = vpop.f32.mrf.mxu2  ;;  %v1189_v27 = vpop.f32.mrf.mxu0 }
 0x25f   :  { %v1693_v25 = vpop.f32.mrf.mxu3  ;;  %v1525_v26 = vadd.f32 %v1524_v24, %v1356_v23  ;;  %v1358_v28 = vpop.f32.mrf.mxu1 }
 0x260   :  { %v1359_v36 = vadd.f32 %v1358_v28, %v1189_v27 }
 0x261   :  { %v1694_v30 = vadd.f32 %v1693_v25, %v1525_v26  ;;  %v2008_v25 = vadd.f32 %v2007_v11, %v2005_v18 }
 0x263   :  { %v3012_v31 = vpack.c.bf16 %v1694_v30, %v1692_v29  ;;  %v2010_v22 = vmul.f32 %v1694_v30, %v1694_v30  ;;  %v2009_v26 = vadd.f32 %v2006_v21, %v1694_v30 }
 0x265   :  { %3060 = vst [vmem:[%s4126_s2 + $0xd8] sm:$0xff] %v3012_v31   ;;  %v2011_v28 = vadd.f32 %v2010_v22, %v2008_v25 }
 0x266   :  { %v1527_v32 = vpop.f32.mrf.mxu2  ;;  %v1191_v34 = vpop.f32.mrf.mxu0 }
 0x267   :  { %v1696_v33 = vpop.f32.mrf.mxu3  ;;  %v1360_v35 = vpop.f32.mrf.mxu1  ;;  %v1528_v37 = vadd.f32 %v1527_v32, %v1359_v36 }
 0x268   :  { %v1361_v38 = vadd.f32 %v1360_v35, %v1191_v34 }
 0x269   :  { %v1697_v44 = vadd.f32 %v1696_v33, %v1528_v37 }
 0x26b   :  { %v2013_v63 = vmul.f32 %v1697_v44, %v1697_v44  ;;  %v2012_v1 = vadd.f32 %v2009_v26, %v1697_v44 }
 0x26d   :  { %v2014_v33 = vadd.f32 %v2013_v63, %v2011_v28 }
 0x26e   :  { %v1529_v39 = vpop.f32.mrf.mxu2  ;;  %v1194_v42 = vpop.f32.mrf.mxu0 }
 0x26f   :  { %v1698_v40 = vpop.f32.mrf.mxu3  ;;  %v1530_v41 = vadd.f32 %v1529_v39, %v1361_v38  ;;  %v1363_v43 = vpop.f32.mrf.mxu1 }
 0x270   :  { %v1364_v51 = vadd.f32 %v1363_v43, %v1194_v42 }
 0x271   :  { %v1699_v45 = vadd.f32 %v1698_v40, %v1530_v41 }
 0x273   :  { %v3017_v46 = vpack.c.bf16 %v1699_v45, %v1697_v44  ;;  %v2016_v31 = vmul.f32 %v1699_v45, %v1699_v45  ;;  %v2015_v34 = vadd.f32 %v2012_v1, %v1699_v45 }
 0x275   :  { %3061 = vst [vmem:[%s4126_s2 + $0xe0] sm:$0xff] %v3017_v46   ;;  %v2017_v36 = vadd.f32 %v2016_v31, %v2014_v33 }
 0x276   :  { %v1532_v47 = vpop.f32.mrf.mxu2  ;;  %v1196_v49 = vpop.f32.mrf.mxu0 }
 0x277   :  { %v1701_v48 = vpop.f32.mrf.mxu3  ;;  %v1365_v50 = vpop.f32.mrf.mxu1  ;;  %v1533_v52 = vadd.f32 %v1532_v47, %v1364_v51 }
 0x278   :  { %v1366_v53 = vadd.f32 %v1365_v50, %v1196_v49 }
 0x279   :  { %v1702_v59 = vadd.f32 %v1701_v48, %v1533_v52 }
 0x27b   :  { %v2019_v29 = vmul.f32 %v1702_v59, %v1702_v59  ;;  %v2018_v37 = vadd.f32 %v2015_v34, %v1702_v59 }
 0x27d   :  { %v2020_v40 = vadd.f32 %v2019_v29, %v2017_v36 }
 0x27e   :  { %v1534_v54 = vpop.f32.mrf.mxu2  ;;  %v1199_v57 = vpop.f32.mrf.mxu0 }
 0x27f   :  { %v1703_v55 = vpop.f32.mrf.mxu3  ;;  %v1535_v56 = vadd.f32 %v1534_v54, %v1366_v53  ;;  %v1368_v58 = vpop.f32.mrf.mxu1 }
 0x280   :  { %v1369_v4 = vadd.f32 %v1368_v58, %v1199_v57 }
 0x281   :  { %v1704_v60 = vadd.f32 %v1703_v55, %v1535_v56 }
 0x283   :  { %v3022_v61 = vpack.c.bf16 %v1704_v60, %v1702_v59  ;;  %v2022_v38 = vmul.f32 %v1704_v60, %v1704_v60  ;;  %v2021_v41 = vadd.f32 %v2018_v37, %v1704_v60 }
 0x285   :  { %3062 = vst [vmem:[%s4126_s2 + $0xe8] sm:$0xff] %v3022_v61   ;;  %v2023_v44 = vadd.f32 %v2022_v38, %v2020_v40 }
 0x286   :  { %v1537_v62 = vpop.f32.mrf.mxu2  ;;  %v1201_v2 = vpop.f32.mrf.mxu0 }
 0x287   :  { %v1706_v0 = vpop.f32.mrf.mxu3  ;;  %v1370_v3 = vpop.f32.mrf.mxu1  ;;  %v1538_v8 = vadd.f32 %v1537_v62, %v1369_v4 }
 0x288   :  { %v1371_v9 = vadd.f32 %v1370_v3, %v1201_v2 }
 0x289   :  { %v1707_v23 = vadd.f32 %v1706_v0, %v1538_v8 }
 0x28b   :  { %v2025_v42 = vmul.f32 %v1707_v23, %v1707_v23  ;;  %v2024_v46 = vadd.f32 %v2021_v41, %v1707_v23 }
 0x28d   :  { %v2026_v50 = vadd.f32 %v2025_v42, %v2023_v44 }
 0x28e   :  { %v1539_v12 = vpop.f32.mrf.mxu2  ;;  %v1204_v19 = vpop.f32.mrf.mxu0 }
 0x28f   :  { %v1708_v13 = vpop.f32.mrf.mxu3  ;;  %v1540_v17 = vadd.f32 %v1539_v12, %v1371_v9  ;;  %v1373_v20 = vpop.f32.mrf.mxu1 }
 0x290   :  { %v1374_v27 = vadd.f32 %v1373_v20, %v1204_v19 }
 0x291   :  { %v1709_v24 = vadd.f32 %v1708_v13, %v1540_v17 }
 0x293   :  { %v3027_v14 = vpack.c.bf16 %v1709_v24, %v1707_v23  ;;  %v2028_v47 = vmul.f32 %v1709_v24, %v1709_v24  ;;  %v2027_v51 = vadd.f32 %v2024_v46, %v1709_v24 }
 0x295   :  { %3063 = vst [vmem:[%s4126_s2 + $0xf0] sm:$0xff] %v3027_v14   ;;  %v2029_v54 = vadd.f32 %v2028_v47, %v2026_v50 }
 0x296   :  { %v1542_v15 = vpop.f32.mrf.mxu2  ;;  %v1206_v30 = vpop.f32.mrf.mxu0 }
 0x297   :  { %v1711_v32 = vpop.f32.mrf.mxu3  ;;  %v1543_v35 = vadd.f32 %v1542_v15, %v1374_v27  ;;  %v1375_v39 = vpop.f32.mrf.mxu1 }
 0x298   :  { %v1376_v48 = vadd.f32 %v1375_v39, %v1206_v30 }
 0x299   :  { %v1712_v43 = vadd.f32 %v1711_v32, %v1543_v35 }
 0x29b   :  { %v2031_v52 = vmul.f32 %v1712_v43, %v1712_v43  ;;  %v2030_v56 = vadd.f32 %v2027_v51, %v1712_v43 }
 0x29d   :  { %v2032_v60 = vadd.f32 %v2031_v52, %v2029_v54 }
 0x29e   :  { %v1544_v49 = vpop.f32.mrf.mxu2 }
 0x29f   :  { %v1545_v45 = vadd.f32 %v1544_v49, %v1376_v48  ;;  %v1713_v53 = vpop.f32.mrf.mxu3 }
 0x2a1   :  { %v1714_v55 = vadd.f32 %v1713_v53, %v1545_v45 }
 0x2a3   :  { %v3032_v57 = vpack.c.bf16 %v1714_v55, %v1712_v43  ;;  %v2034_v58 = vmul.f32 %v1714_v55, %v1714_v55  ;;  %v2033_v59 = vadd.f32 %v2030_v56, %v1714_v55 }
 0x2a5   :  { %3064 = vst [vmem:[%s4126_s2 + $0xf8] sm:$0xff] %v3032_v57   ;;  %v2035_v61 = vadd.f32 %v2034_v58, %v2032_v60 }
 0x2a6   :  { %2036 = vst [vmem:[#allocation2] sm:$0xff] %v2033_v59 }
 0x2a7   :  { %2050 = dma.vmem_to_hbm [thread:$0]  %s2046_s8, 128, %s2048_s10, [#allocation3]   ;;  %2037 = vst [vmem:[#allocation4] sm:$0xff] %v2035_v61 }
 0x2a8   :  { %2061 = dma.vmem_to_hbm [thread:$0]  %s2057_s12, 128, %s2059_s15, [#allocation5]  }
 0x2a9   :  { %3115 = dma.done.wait [#allocation3], 128  }
 0x2aa   :  { %3116 = vsyncadd [#allocation3], 4294967168 }
 0x2ab   :  { %3117 = dma.done.wait [#allocation5], 128  }
 0x2ac   :  { %3118 = vsyncadd [#allocation5], 4294967168 }
 0x2ad   :  { %2072 = vsyncpa [#allocation3], 1 }
 0x2ae   :  { %2073 = vsyncpa [#allocation5], 1 }

</bundles_post_ra>
